<compile_context>
chip_gen: v7x
topology: tpu7x:2x2x1
jax: 0.10.0
libtpu: 0.0.40
codegen_flags: <defaults>
</compile_context>

<pallas_src>
import jax
import jax.numpy as jnp
from jax.experimental import pallas as pl
from jax.experimental.pallas import tpu as pltpu

# ---------------------------------------------------------------------------
# Model dimensions (match Emulator.__init__ defaults)
# ---------------------------------------------------------------------------
N_PARAMETERS = 26
N_EIGEN = 64
N_HIDDEN = 128          # n_hidden_1..4 and n_hidden_head
N_GRID = 128            # n_grid_points
K_IN_PAD = 32           # x / w1 contraction dim padded to a sublane multiple
LN_EPS = 1e-5           # torch.nn.LayerNorm default


def _device_kind():
    try:
        return jax.devices()[0].device_kind.lower()
    except Exception:
        return ""


def _default_use_bf16():
    # bf16 matmul inputs pay off on v6e/v7x (MXU issue bound); v5e's VPU has no
    # bf16 path so the per-matmul casts cost VALU slots -> keep f32 there.
    kind = _device_kind()
    return ("v6" in kind) or ("v7" in kind)


def _pick_batch_tile(B):
    # v7x has 2 TensorCores per chip -> keep >=2 parallel grid steps.
    # v5e/v6e have 1 TC -> prefer a single larger tile (per-step overhead).
    kind = _device_kind()
    n_parallel = 2 if "v7" in kind else 1
    bt = -(-B // n_parallel)
    bt = min(bt, 512)                       # cap per-tile activation footprint
    return max(8, ((bt + 7) // 8) * 8)      # sublane-align


def _leaky_relu(x):
    return jnp.where(x > 0, x, 0.01 * x)


def _layernorm(x, gamma, beta):
    # One-pass reduction: the two lane-reductions are independent -> overlap on
    # the XLUs; avoids an extra VPU pass over (x - mean)^2.
    inv_n = 1.0 / N_HIDDEN
    s1 = jnp.sum(x, axis=-1, keepdims=True)
    s2 = jnp.sum(x * x, axis=-1, keepdims=True)
    mean = s1 * inv_n
    var = jnp.maximum(s2 * inv_n - mean * mean, 0.0)
    return (x - mean) * jax.lax.rsqrt(var + LN_EPS) * gamma + beta


def _mm(a, w_ref):
    """MXU matmul; if weights were pre-cast to bf16, cast the activation too
    (f32 accumulation either way; LayerNorm/residual math stays f32)."""
    w = w_ref[...]
    if w.dtype != a.dtype:
        a = a.astype(w.dtype)
    return jnp.dot(a, w, preferred_element_type=jnp.float32)


def emulator_kernel(
    x_ref,                              # [bt, K_IN_PAD]
    w1_ref,                             # [K_IN_PAD, 128]
    w2_ref, w3_ref, w4_ref,             # [128, 128]
    w56_ref,                            # [128, 384]  (w5 @ [v1aw|v2aw|v3aw])
    vbw_ref,                            # [384, 384]  block-diagonal head 2nd layer
    bln_ref,                            # [10, 128]: rows 0-3 b1..b4, 4-6 g1..g3, 7-9 be1..be3
    b56_ref,                            # [1, 384]
    vbb_ref,                            # [1, 384]
    o_ref,                              # [bt, 384]  lane-dense output slab
):
    x = x_ref[...]
    b1, b2, b3, b4 = (bln_ref[0:1, :], bln_ref[1:2, :],
                      bln_ref[2:3, :], bln_ref[3:4, :])
    g1, g2, g3 = bln_ref[4:5, :], bln_ref[5:6, :], bln_ref[6:7, :]
    be1, be2, be3 = bln_ref[7:8, :], bln_ref[8:9, :], bln_ref[9:10, :]

    # Block 1 (dropout p=0.0 -> identity)
    z1 = _leaky_relu(_layernorm(_mm(x, w1_ref) + b1, g1, be1))
    # Block 2 (+ residual); dropout identity in eval
    z2 = _leaky_relu(_layernorm(_mm(z1, w2_ref) + b2, g2, be2)) + z1
    # Block 3 (+ residual)
    z3 = _leaky_relu(_layernorm(_mm(z2, w3_ref) + b3, g3, be3)) + z2
    # Block 4 (+ residual) -- torch forward reuses norm_3 here (norm_4 unused)
    z4 = _leaky_relu(_layernorm(_mm(z3, w4_ref) + b4, g3, be3)) + z3

    # Fused l_5 + head first layers: one K=128, N=384 matmul.
    h = _leaky_relu(_mm(z4, w56_ref) + b56_ref[...])

    # Block-diagonal head second layer: one N=384/K=384 matmul + full-width store.
    o_ref[...] = _mm(h, vbw_ref) + vbb_ref[...]


def _const_spec(shape):
    # Whole-array block, same block for every grid step (weights stay resident).
    ndim = len(shape)
    return pl.BlockSpec(shape, lambda i, _n=ndim: (0,) * _n)


def pack_params(params, *, use_bf16=None):
    """Host-side one-time packing of raw (torch-layout transposed) params."""
    if use_bf16 is None:
        use_bf16 = _default_use_bf16()
    wdt = jnp.bfloat16 if use_bf16 else jnp.float32
    f32 = jnp.float32

    # Zero-pad w1's contraction dim 26 -> 32 (x is padded to match).
    w1p = jnp.zeros((K_IN_PAD, N_HIDDEN), f32).at[:N_PARAMETERS].set(params["w1"])

    # Fuse l_5 with the three head first layers (no nonlinearity between).
    vaw = jnp.concatenate(
        [params["v1aw"], params["v2aw"], params["v3aw"]], axis=1)   # [64, 384]
    vab = jnp.concatenate(
        [params["v1ab"], params["v2ab"], params["v3ab"]], axis=1)   # [1, 384]
    w56 = params["w5"] @ vaw                                        # [128, 384]
    b56 = params["b5"] @ vaw + vab                                  # [1, 384]

    # Block-diagonal head second-layer weight.
    vbw = jnp.zeros((3 * N_HIDDEN, 3 * N_GRID), f32)
    vbw = vbw.at[0:N_HIDDEN, 0:N_GRID].set(params["v1bw"])
    vbw = vbw.at[N_HIDDEN:2 * N_HIDDEN, N_GRID:2 * N_GRID].set(params["v2bw"])
    vbw = vbw.at[2 * N_HIDDEN:3 * N_HIDDEN, 2 * N_GRID:3 * N_GRID].set(params["v3bw"])

    packed = {
        "w1": w1p.astype(wdt),
        "w2": params["w2"].astype(wdt),
        "w3": params["w3"].astype(wdt),
        "w4": params["w4"].astype(wdt),
        "w56": w56.astype(wdt),
        "vbw": vbw.astype(wdt),
        # One slab for all per-layer biases + LayerNorm affine params (f32).
        "bln": jnp.concatenate(
            [params["b1"], params["b2"], params["b3"], params["b4"],
             params["g1"], params["g2"], params["g3"],
             params["be1"], params["be2"], params["be3"]], axis=0),
        "b56": b56,
        "vbb": jnp.concatenate(
            [params["v1bb"], params["v2bb"], params["v3bb"]], axis=1),
    }
    return packed


def emulator_forward(x, p, *, batch_tile=None):
    """x: [B, N_PARAMETERS] float32, p: pack_params output -> [B, 3, N_GRID]."""
    B = x.shape[0]
    bt = _pick_batch_tile(B) if batch_tile is None else batch_tile
    bt = max(8, ((min(bt, max(B, 8)) + 7) // 8) * 8)
    n_steps = -(-B // bt)
    B_pad = n_steps * bt

    # Pad batch to a tile multiple; pad features only to 32 (not 128) to keep
    # the input HBM stream small while staying sublane-aligned.
    x_p = jnp.zeros((B_pad, K_IN_PAD), jnp.float32).at[:B, :N_PARAMETERS].set(x)

    param_list = [
        p["w1"], p["w2"], p["w3"], p["w4"],
        p["w56"], p["vbw"], p["bln"], p["b56"], p["vbb"],
    ]

    in_specs = [pl.BlockSpec((bt, K_IN_PAD), lambda i: (i, 0))]
    in_specs += [_const_spec(q.shape) for q in param_list]

    out = pl.pallas_call(
        emulator_kernel,
        grid=(n_steps,),
        in_specs=in_specs,
        out_specs=pl.BlockSpec((bt, 3 * N_GRID), lambda i: (i, 0)),
        out_shape=jax.ShapeDtypeStruct((B_pad, 3 * N_GRID), jnp.float32),
        compiler_params=pltpu.CompilerParams(
            dimension_semantics=("parallel",)),
    )(x_p, *param_list)

    # Lane-dense slab -> (B, 3, n_grid_points); matches torch.stack(..., axis=1).
    return out[:B].reshape(B, 3, N_GRID)


def init_params(key):
    """Deterministic synthetic parameters (shapes match Emulator.__init__),
    with Linear weights stored as [in, out] (transposed from torch)."""
    def linear(k, n_in, n_out, scale=0.05):
        kw, kb = jax.random.split(k)
        w = scale * jax.random.normal(kw, (n_in, n_out), jnp.float32)
        b = scale * jax.random.normal(kb, (1, n_out), jnp.float32)
        return w, b

    keys = jax.random.split(key, 11)
    p = {}
    p["w1"], p["b1"] = linear(keys[0], N_PARAMETERS, N_HIDDEN)
    p["w2"], p["b2"] = linear(keys[1], N_HIDDEN, N_HIDDEN)
    p["w3"], p["b3"] = linear(keys[2], N_HIDDEN, N_HIDDEN)
    p["w4"], p["b4"] = linear(keys[3], N_HIDDEN, N_HIDDEN)
    p["w5"], p["b5"] = linear(keys[4], N_HIDDEN, N_EIGEN)
    p["v1aw"], p["v1ab"] = linear(keys[5], N_EIGEN, N_HIDDEN)
    p["v2aw"], p["v2ab"] = linear(keys[6], N_EIGEN, N_HIDDEN)
    p["v3aw"], p["v3ab"] = linear(keys[7], N_EIGEN, N_HIDDEN)
    p["v1bw"], p["v1bb"] = linear(keys[8], N_HIDDEN, N_GRID)
    p["v2bw"], p["v2bb"] = linear(keys[9], N_HIDDEN, N_GRID)
    p["v3bw"], p["v3bb"] = linear(keys[10], N_HIDDEN, N_GRID)
    # LayerNorm affine params (torch default: weight=1, bias=0)
    for i in (1, 2, 3):
        p[f"g{i}"] = jnp.ones((1, N_HIDDEN), jnp.float32)
        p[f"be{i}"] = jnp.zeros((1, N_HIDDEN), jnp.float32)
    # norm_4 params exist in the torch module but are unused in forward.
    return p


if __name__ == "__main__":
    key = jax.random.PRNGKey(0)
    kx, kp = jax.random.split(key)

    B = 256
    x = jax.random.normal(kx, (B, N_PARAMETERS), jnp.float32)
    params = init_params(kp)
    # Host-side one-time packing; bf16 matmul inputs auto-enabled on v6e/v7x,
    # f32 kept on v5e / unknown chips. Pass use_bf16=False for exact-f32 runs.
    packed = pack_params(params)

    fwd = jax.jit(emulator_forward)
    out = jax.block_until_ready(fwd(x, packed))

    assert out.shape == (B, 3, N_GRID), out.shape
    assert out.dtype == jnp.float32
    assert bool(jnp.all(jnp.isfinite(out)))
    print("KERNEL_OK")
</pallas_src>

<mosaic_0001>
module attributes {stable_mosaic.version = 11 : i64} {
  func.func @emulator_kernel(%arg0: i32, %arg1: memref<256x32xf32, #tpu.memory_space<vmem>>, %arg2: memref<32x128xf32, #tpu.memory_space<vmem>>, %arg3: memref<128x128xf32, #tpu.memory_space<vmem>>, %arg4: memref<128x128xf32, #tpu.memory_space<vmem>>, %arg5: memref<128x128xf32, #tpu.memory_space<vmem>>, %arg6: memref<128x384xf32, #tpu.memory_space<vmem>>, %arg7: memref<384x384xf32, #tpu.memory_space<vmem>>, %arg8: memref<10x128xf32, #tpu.memory_space<vmem>>, %arg9: memref<1x384xf32, #tpu.memory_space<vmem>>, %arg10: memref<1x384xf32, #tpu.memory_space<vmem>>, %arg11: memref<256x384xf32, #tpu.memory_space<vmem>>) attributes {dimension_semantics = [#tpu.dimension_semantics<parallel>], iteration_bounds = array<i64: 1>, scalar_prefetch = 0 : i64, scratch_operands = 0 : i64, tpu.core_type = #tpu.core_type<tc>, window_params = [{transform_indices = @transform_0, window_bounds = array<i64: 256, 32>}, {pipeline_mode = #tpu.pipeline_mode<synchronous>, transform_indices = @transform_1, window_bounds = array<i64: 32, 128>}, {pipeline_mode = #tpu.pipeline_mode<synchronous>, transform_indices = @transform_2, window_bounds = array<i64: 128, 128>}, {pipeline_mode = #tpu.pipeline_mode<synchronous>, transform_indices = @transform_3, window_bounds = array<i64: 128, 128>}, {pipeline_mode = #tpu.pipeline_mode<synchronous>, transform_indices = @transform_4, window_bounds = array<i64: 128, 128>}, {pipeline_mode = #tpu.pipeline_mode<synchronous>, transform_indices = @transform_5, window_bounds = array<i64: 128, 384>}, {pipeline_mode = #tpu.pipeline_mode<synchronous>, transform_indices = @transform_6, window_bounds = array<i64: 384, 384>}, {pipeline_mode = #tpu.pipeline_mode<synchronous>, transform_indices = @transform_7, window_bounds = array<i64: 10, 128>}, {pipeline_mode = #tpu.pipeline_mode<synchronous>, transform_indices = @transform_8, window_bounds = array<i64: 1, 384>}, {pipeline_mode = #tpu.pipeline_mode<synchronous>, transform_indices = @transform_9, window_bounds = array<i64: 1, 384>}, {transform_indices = @transform_10, window_bounds = array<i64: 256, 384>}]} {
    %c0 = arith.constant 0 : index
    %c0_0 = arith.constant 0 : index
    %0 = vector.load %arg1[%c0, %c0_0] : memref<256x32xf32, #tpu.memory_space<vmem>>, vector<256x32xf32>
    %c0_1 = arith.constant 0 : index
    %c0_2 = arith.constant 0 : index
    %1 = vector.load %arg8[%c0_1, %c0_2] : memref<10x128xf32, #tpu.memory_space<vmem>>, vector<1x128xf32>
    %c1 = arith.constant 1 : index
    %c0_3 = arith.constant 0 : index
    %2 = vector.load %arg8[%c1, %c0_3] : memref<10x128xf32, #tpu.memory_space<vmem>>, vector<1x128xf32>
    %c2 = arith.constant 2 : index
    %c0_4 = arith.constant 0 : index
    %3 = vector.load %arg8[%c2, %c0_4] : memref<10x128xf32, #tpu.memory_space<vmem>>, vector<1x128xf32>
    %c3 = arith.constant 3 : index
    %c0_5 = arith.constant 0 : index
    %4 = vector.load %arg8[%c3, %c0_5] : memref<10x128xf32, #tpu.memory_space<vmem>>, vector<1x128xf32>
    %c4 = arith.constant 4 : index
    %c0_6 = arith.constant 0 : index
    %5 = vector.load %arg8[%c4, %c0_6] : memref<10x128xf32, #tpu.memory_space<vmem>>, vector<1x128xf32>
    %c5 = arith.constant 5 : index
    %c0_7 = arith.constant 0 : index
    %6 = vector.load %arg8[%c5, %c0_7] : memref<10x128xf32, #tpu.memory_space<vmem>>, vector<1x128xf32>
    %c6 = arith.constant 6 : index
    %c0_8 = arith.constant 0 : index
    %7 = vector.load %arg8[%c6, %c0_8] : memref<10x128xf32, #tpu.memory_space<vmem>>, vector<1x128xf32>
    %c7 = arith.constant 7 : index
    %c0_9 = arith.constant 0 : index
    %8 = vector.load %arg8[%c7, %c0_9] : memref<10x128xf32, #tpu.memory_space<vmem>>, vector<1x128xf32>
    %c8 = arith.constant 8 : index
    %c0_10 = arith.constant 0 : index
    %9 = vector.load %arg8[%c8, %c0_10] : memref<10x128xf32, #tpu.memory_space<vmem>>, vector<1x128xf32>
    %c9 = arith.constant 9 : index
    %c0_11 = arith.constant 0 : index
    %10 = vector.load %arg8[%c9, %c0_11] : memref<10x128xf32, #tpu.memory_space<vmem>>, vector<1x128xf32>
    %c0_12 = arith.constant 0 : index
    %c0_13 = arith.constant 0 : index
    %11 = vector.load %arg2[%c0_12, %c0_13] : memref<32x128xf32, #tpu.memory_space<vmem>>, vector<32x128xf32>
    %cst = arith.constant dense<0.000000e+00> : vector<256x128xf32>
    %12 = tpu.matmul %0, %11, %cst {dimension_numbers = #tpu.dot_dimension_numbers<[1], [0], [0], [1], [0, 0, 1, 1], [], []>} : vector<256x32xf32>, vector<32x128xf32>, vector<256x128xf32> -> vector<256x128xf32>
    %13 = vector.broadcast %1 : vector<1x128xf32> to vector<256x128xf32>
    %14 = arith.addf %12, %13 : vector<256x128xf32>
    %cst_14 = arith.constant dense<0.000000e+00> : vector<256xf32>
    %15 = vector.multi_reduction <add>, %14, %cst_14 [1] : vector<256x128xf32> to vector<256xf32>
    %16 = vector.shape_cast %15 : vector<256xf32> to vector<256x1xf32>
    %17 = arith.mulf %14, %14 : vector<256x128xf32>
    %cst_15 = arith.constant dense<0.000000e+00> : vector<256xf32>
    %18 = vector.multi_reduction <add>, %17, %cst_15 [1] : vector<256x128xf32> to vector<256xf32>
    %19 = vector.shape_cast %18 : vector<256xf32> to vector<256x1xf32>
    %cst_16 = arith.constant 7.812500e-03 : f32
    %20 = vector.broadcast %cst_16 : f32 to vector<256x1xf32>
    %21 = arith.mulf %16, %20 : vector<256x1xf32>
    %cst_17 = arith.constant 7.812500e-03 : f32
    %22 = vector.broadcast %cst_17 : f32 to vector<256x1xf32>
    %23 = arith.mulf %19, %22 : vector<256x1xf32>
    %24 = arith.mulf %21, %21 : vector<256x1xf32>
    %25 = arith.subf %23, %24 : vector<256x1xf32>
    %cst_18 = arith.constant 0.000000e+00 : f32
    %26 = vector.broadcast %cst_18 : f32 to vector<256x1xf32>
    %27 = arith.maximumf %25, %26 : vector<256x1xf32>
    %28 = vector.broadcast %21 : vector<256x1xf32> to vector<256x128xf32>
    %29 = arith.subf %14, %28 : vector<256x128xf32>
    %cst_19 = arith.constant 9.99999974E-6 : f32
    %30 = vector.broadcast %cst_19 : f32 to vector<256x1xf32>
    %31 = arith.addf %27, %30 : vector<256x1xf32>
    %32 = math.rsqrt %31 : vector<256x1xf32>
    %33 = vector.broadcast %32 : vector<256x1xf32> to vector<256x128xf32>
    %34 = arith.mulf %29, %33 : vector<256x128xf32>
    %35 = vector.broadcast %5 : vector<1x128xf32> to vector<256x128xf32>
    %36 = arith.mulf %34, %35 : vector<256x128xf32>
    %37 = vector.broadcast %8 : vector<1x128xf32> to vector<256x128xf32>
    %38 = arith.addf %36, %37 : vector<256x128xf32>
    %cst_20 = arith.constant 0.000000e+00 : f32
    %39 = vector.broadcast %cst_20 : f32 to vector<256x128xf32>
    %40 = arith.cmpf ogt, %38, %39 : vector<256x128xf32>
    %cst_21 = arith.constant 0.00999999977 : f32
    %41 = vector.broadcast %cst_21 : f32 to vector<256x128xf32>
    %42 = arith.mulf %41, %38 : vector<256x128xf32>
    %43 = arith.select %40, %38, %42 : vector<256x128xi1>, vector<256x128xf32>
    %c0_22 = arith.constant 0 : index
    %c0_23 = arith.constant 0 : index
    %44 = vector.load %arg3[%c0_22, %c0_23] : memref<128x128xf32, #tpu.memory_space<vmem>>, vector<128x128xf32>
    %cst_24 = arith.constant dense<0.000000e+00> : vector<256x128xf32>
    %45 = tpu.matmul %43, %44, %cst_24 {dimension_numbers = #tpu.dot_dimension_numbers<[1], [0], [0], [1], [0, 0, 1, 1], [], []>} : vector<256x128xf32>, vector<128x128xf32>, vector<256x128xf32> -> vector<256x128xf32>
    %46 = vector.broadcast %2 : vector<1x128xf32> to vector<256x128xf32>
    %47 = arith.addf %45, %46 : vector<256x128xf32>
    %cst_25 = arith.constant dense<0.000000e+00> : vector<256xf32>
    %48 = vector.multi_reduction <add>, %47, %cst_25 [1] : vector<256x128xf32> to vector<256xf32>
    %49 = vector.shape_cast %48 : vector<256xf32> to vector<256x1xf32>
    %50 = arith.mulf %47, %47 : vector<256x128xf32>
    %cst_26 = arith.constant dense<0.000000e+00> : vector<256xf32>
    %51 = vector.multi_reduction <add>, %50, %cst_26 [1] : vector<256x128xf32> to vector<256xf32>
    %52 = vector.shape_cast %51 : vector<256xf32> to vector<256x1xf32>
    %cst_27 = arith.constant 7.812500e-03 : f32
    %53 = vector.broadcast %cst_27 : f32 to vector<256x1xf32>
    %54 = arith.mulf %49, %53 : vector<256x1xf32>
    %cst_28 = arith.constant 7.812500e-03 : f32
    %55 = vector.broadcast %cst_28 : f32 to vector<256x1xf32>
    %56 = arith.mulf %52, %55 : vector<256x1xf32>
    %57 = arith.mulf %54, %54 : vector<256x1xf32>
    %58 = arith.subf %56, %57 : vector<256x1xf32>
    %cst_29 = arith.constant 0.000000e+00 : f32
    %59 = vector.broadcast %cst_29 : f32 to vector<256x1xf32>
    %60 = arith.maximumf %58, %59 : vector<256x1xf32>
    %61 = vector.broadcast %54 : vector<256x1xf32> to vector<256x128xf32>
    %62 = arith.subf %47, %61 : vector<256x128xf32>
    %cst_30 = arith.constant 9.99999974E-6 : f32
    %63 = vector.broadcast %cst_30 : f32 to vector<256x1xf32>
    %64 = arith.addf %60, %63 : vector<256x1xf32>
    %65 = math.rsqrt %64 : vector<256x1xf32>
    %66 = vector.broadcast %65 : vector<256x1xf32> to vector<256x128xf32>
    %67 = arith.mulf %62, %66 : vector<256x128xf32>
    %68 = vector.broadcast %6 : vector<1x128xf32> to vector<256x128xf32>
    %69 = arith.mulf %67, %68 : vector<256x128xf32>
    %70 = vector.broadcast %9 : vector<1x128xf32> to vector<256x128xf32>
    %71 = arith.addf %69, %70 : vector<256x128xf32>
    %cst_31 = arith.constant 0.000000e+00 : f32
    %72 = vector.broadcast %cst_31 : f32 to vector<256x128xf32>
    %73 = arith.cmpf ogt, %71, %72 : vector<256x128xf32>
    %cst_32 = arith.constant 0.00999999977 : f32
    %74 = vector.broadcast %cst_32 : f32 to vector<256x128xf32>
    %75 = arith.mulf %74, %71 : vector<256x128xf32>
    %76 = arith.select %73, %71, %75 : vector<256x128xi1>, vector<256x128xf32>
    %77 = arith.addf %76, %43 : vector<256x128xf32>
    %c0_33 = arith.constant 0 : index
    %c0_34 = arith.constant 0 : index
    %78 = vector.load %arg4[%c0_33, %c0_34] : memref<128x128xf32, #tpu.memory_space<vmem>>, vector<128x128xf32>
    %cst_35 = arith.constant dense<0.000000e+00> : vector<256x128xf32>
    %79 = tpu.matmul %77, %78, %cst_35 {dimension_numbers = #tpu.dot_dimension_numbers<[1], [0], [0], [1], [0, 0, 1, 1], [], []>} : vector<256x128xf32>, vector<128x128xf32>, vector<256x128xf32> -> vector<256x128xf32>
    %80 = vector.broadcast %3 : vector<1x128xf32> to vector<256x128xf32>
    %81 = arith.addf %79, %80 : vector<256x128xf32>
    %cst_36 = arith.constant dense<0.000000e+00> : vector<256xf32>
    %82 = vector.multi_reduction <add>, %81, %cst_36 [1] : vector<256x128xf32> to vector<256xf32>
    %83 = vector.shape_cast %82 : vector<256xf32> to vector<256x1xf32>
    %84 = arith.mulf %81, %81 : vector<256x128xf32>
    %cst_37 = arith.constant dense<0.000000e+00> : vector<256xf32>
    %85 = vector.multi_reduction <add>, %84, %cst_37 [1] : vector<256x128xf32> to vector<256xf32>
    %86 = vector.shape_cast %85 : vector<256xf32> to vector<256x1xf32>
    %cst_38 = arith.constant 7.812500e-03 : f32
    %87 = vector.broadcast %cst_38 : f32 to vector<256x1xf32>
    %88 = arith.mulf %83, %87 : vector<256x1xf32>
    %cst_39 = arith.constant 7.812500e-03 : f32
    %89 = vector.broadcast %cst_39 : f32 to vector<256x1xf32>
    %90 = arith.mulf %86, %89 : vector<256x1xf32>
    %91 = arith.mulf %88, %88 : vector<256x1xf32>
    %92 = arith.subf %90, %91 : vector<256x1xf32>
    %cst_40 = arith.constant 0.000000e+00 : f32
    %93 = vector.broadcast %cst_40 : f32 to vector<256x1xf32>
    %94 = arith.maximumf %92, %93 : vector<256x1xf32>
    %95 = vector.broadcast %88 : vector<256x1xf32> to vector<256x128xf32>
    %96 = arith.subf %81, %95 : vector<256x128xf32>
    %cst_41 = arith.constant 9.99999974E-6 : f32
    %97 = vector.broadcast %cst_41 : f32 to vector<256x1xf32>
    %98 = arith.addf %94, %97 : vector<256x1xf32>
    %99 = math.rsqrt %98 : vector<256x1xf32>
    %100 = vector.broadcast %99 : vector<256x1xf32> to vector<256x128xf32>
    %101 = arith.mulf %96, %100 : vector<256x128xf32>
    %102 = vector.broadcast %7 : vector<1x128xf32> to vector<256x128xf32>
    %103 = arith.mulf %101, %102 : vector<256x128xf32>
    %104 = vector.broadcast %10 : vector<1x128xf32> to vector<256x128xf32>
    %105 = arith.addf %103, %104 : vector<256x128xf32>
    %cst_42 = arith.constant 0.000000e+00 : f32
    %106 = vector.broadcast %cst_42 : f32 to vector<256x128xf32>
    %107 = arith.cmpf ogt, %105, %106 : vector<256x128xf32>
    %cst_43 = arith.constant 0.00999999977 : f32
    %108 = vector.broadcast %cst_43 : f32 to vector<256x128xf32>
    %109 = arith.mulf %108, %105 : vector<256x128xf32>
    %110 = arith.select %107, %105, %109 : vector<256x128xi1>, vector<256x128xf32>
    %111 = arith.addf %110, %77 : vector<256x128xf32>
    %c0_44 = arith.constant 0 : index
    %c0_45 = arith.constant 0 : index
    %112 = vector.load %arg5[%c0_44, %c0_45] : memref<128x128xf32, #tpu.memory_space<vmem>>, vector<128x128xf32>
    %cst_46 = arith.constant dense<0.000000e+00> : vector<256x128xf32>
    %113 = tpu.matmul %111, %112, %cst_46 {dimension_numbers = #tpu.dot_dimension_numbers<[1], [0], [0], [1], [0, 0, 1, 1], [], []>} : vector<256x128xf32>, vector<128x128xf32>, vector<256x128xf32> -> vector<256x128xf32>
    %114 = vector.broadcast %4 : vector<1x128xf32> to vector<256x128xf32>
    %115 = arith.addf %113, %114 : vector<256x128xf32>
    %cst_47 = arith.constant dense<0.000000e+00> : vector<256xf32>
    %116 = vector.multi_reduction <add>, %115, %cst_47 [1] : vector<256x128xf32> to vector<256xf32>
    %117 = vector.shape_cast %116 : vector<256xf32> to vector<256x1xf32>
    %118 = arith.mulf %115, %115 : vector<256x128xf32>
    %cst_48 = arith.constant dense<0.000000e+00> : vector<256xf32>
    %119 = vector.multi_reduction <add>, %118, %cst_48 [1] : vector<256x128xf32> to vector<256xf32>
    %120 = vector.shape_cast %119 : vector<256xf32> to vector<256x1xf32>
    %cst_49 = arith.constant 7.812500e-03 : f32
    %121 = vector.broadcast %cst_49 : f32 to vector<256x1xf32>
    %122 = arith.mulf %117, %121 : vector<256x1xf32>
    %cst_50 = arith.constant 7.812500e-03 : f32
    %123 = vector.broadcast %cst_50 : f32 to vector<256x1xf32>
    %124 = arith.mulf %120, %123 : vector<256x1xf32>
    %125 = arith.mulf %122, %122 : vector<256x1xf32>
    %126 = arith.subf %124, %125 : vector<256x1xf32>
    %cst_51 = arith.constant 0.000000e+00 : f32
    %127 = vector.broadcast %cst_51 : f32 to vector<256x1xf32>
    %128 = arith.maximumf %126, %127 : vector<256x1xf32>
    %129 = vector.broadcast %122 : vector<256x1xf32> to vector<256x128xf32>
    %130 = arith.subf %115, %129 : vector<256x128xf32>
    %cst_52 = arith.constant 9.99999974E-6 : f32
    %131 = vector.broadcast %cst_52 : f32 to vector<256x1xf32>
    %132 = arith.addf %128, %131 : vector<256x1xf32>
    %133 = math.rsqrt %132 : vector<256x1xf32>
    %134 = vector.broadcast %133 : vector<256x1xf32> to vector<256x128xf32>
    %135 = arith.mulf %130, %134 : vector<256x128xf32>
    %136 = vector.broadcast %7 : vector<1x128xf32> to vector<256x128xf32>
    %137 = arith.mulf %135, %136 : vector<256x128xf32>
    %138 = vector.broadcast %10 : vector<1x128xf32> to vector<256x128xf32>
    %139 = arith.addf %137, %138 : vector<256x128xf32>
    %cst_53 = arith.constant 0.000000e+00 : f32
    %140 = vector.broadcast %cst_53 : f32 to vector<256x128xf32>
    %141 = arith.cmpf ogt, %139, %140 : vector<256x128xf32>
    %cst_54 = arith.constant 0.00999999977 : f32
    %142 = vector.broadcast %cst_54 : f32 to vector<256x128xf32>
    %143 = arith.mulf %142, %139 : vector<256x128xf32>
    %144 = arith.select %141, %139, %143 : vector<256x128xi1>, vector<256x128xf32>
    %145 = arith.addf %144, %111 : vector<256x128xf32>
    %c0_55 = arith.constant 0 : index
    %c0_56 = arith.constant 0 : index
    %146 = vector.load %arg6[%c0_55, %c0_56] : memref<128x384xf32, #tpu.memory_space<vmem>>, vector<128x384xf32>
    %cst_57 = arith.constant dense<0.000000e+00> : vector<256x384xf32>
    %147 = tpu.matmul %145, %146, %cst_57 {dimension_numbers = #tpu.dot_dimension_numbers<[1], [0], [0], [1], [0, 0, 1, 1], [], []>} : vector<256x128xf32>, vector<128x384xf32>, vector<256x384xf32> -> vector<256x384xf32>
    %c0_58 = arith.constant 0 : index
    %c0_59 = arith.constant 0 : index
    %148 = vector.load %arg9[%c0_58, %c0_59] : memref<1x384xf32, #tpu.memory_space<vmem>>, vector<1x384xf32>
    %149 = vector.broadcast %148 : vector<1x384xf32> to vector<256x384xf32>
    %150 = arith.addf %147, %149 : vector<256x384xf32>
    %cst_60 = arith.constant 0.000000e+00 : f32
    %151 = vector.broadcast %cst_60 : f32 to vector<256x384xf32>
    %152 = arith.cmpf ogt, %150, %151 : vector<256x384xf32>
    %cst_61 = arith.constant 0.00999999977 : f32
    %153 = vector.broadcast %cst_61 : f32 to vector<256x384xf32>
    %154 = arith.mulf %153, %150 : vector<256x384xf32>
    %155 = arith.select %152, %150, %154 : vector<256x384xi1>, vector<256x384xf32>
    %c0_62 = arith.constant 0 : index
    %c0_63 = arith.constant 0 : index
    %156 = vector.load %arg7[%c0_62, %c0_63] : memref<384x384xf32, #tpu.memory_space<vmem>>, vector<384x384xf32>
    %cst_64 = arith.constant dense<0.000000e+00> : vector<256x384xf32>
    %157 = tpu.matmul %155, %156, %cst_64 {dimension_numbers = #tpu.dot_dimension_numbers<[1], [0], [0], [1], [0, 0, 1, 1], [], []>} : vector<256x384xf32>, vector<384x384xf32>, vector<256x384xf32> -> vector<256x384xf32>
    %c0_65 = arith.constant 0 : index
    %c0_66 = arith.constant 0 : index
    %158 = vector.load %arg10[%c0_65, %c0_66] : memref<1x384xf32, #tpu.memory_space<vmem>>, vector<1x384xf32>
    %159 = vector.broadcast %158 : vector<1x384xf32> to vector<256x384xf32>
    %160 = arith.addf %157, %159 : vector<256x384xf32>
    %c0_67 = arith.constant 0 : index
    %c0_68 = arith.constant 0 : index
    %161 = vector.load %arg11[%c0_67, %c0_68] : memref<256x384xf32, #tpu.memory_space<vmem>>, vector<256x384xf32>
    tpu.vector_store %arg11[%c0_67, %c0_68], %160 {strides = array<i32>} : memref<256x384xf32, #tpu.memory_space<vmem>>, vector<256x384xf32>,
    return
  }
  func.func @transform_0(%arg0: i32) -> (i32, i32) {
    %c0_i32 = arith.constant 0 : i32
    %c0_i32_0 = arith.constant 0 : i32
    return %arg0, %c0_i32 : i32, i32
  }
  func.func @transform_1(%arg0: i32) -> (i32, i32) {
    %c0_i32 = arith.constant 0 : i32
    %c0_i32_0 = arith.constant 0 : i32
    %c0_i32_1 = arith.constant 0 : i32
    return %c0_i32, %c0_i32_0 : i32, i32
  }
  func.func @transform_2(%arg0: i32) -> (i32, i32) {
    %c0_i32 = arith.constant 0 : i32
    %c0_i32_0 = arith.constant 0 : i32
    %c0_i32_1 = arith.constant 0 : i32
    return %c0_i32, %c0_i32_0 : i32, i32
  }
  func.func @transform_3(%arg0: i32) -> (i32, i32) {
    %c0_i32 = arith.constant 0 : i32
    %c0_i32_0 = arith.constant 0 : i32
    %c0_i32_1 = arith.constant 0 : i32
    return %c0_i32, %c0_i32_0 : i32, i32
  }
  func.func @transform_4(%arg0: i32) -> (i32, i32) {
    %c0_i32 = arith.constant 0 : i32
    %c0_i32_0 = arith.constant 0 : i32
    %c0_i32_1 = arith.constant 0 : i32
    return %c0_i32, %c0_i32_0 : i32, i32
  }
  func.func @transform_5(%arg0: i32) -> (i32, i32) {
    %c0_i32 = arith.constant 0 : i32
    %c0_i32_0 = arith.constant 0 : i32
    %c0_i32_1 = arith.constant 0 : i32
    return %c0_i32, %c0_i32_0 : i32, i32
  }
  func.func @transform_6(%arg0: i32) -> (i32, i32) {
    %c0_i32 = arith.constant 0 : i32
    %c0_i32_0 = arith.constant 0 : i32
    %c0_i32_1 = arith.constant 0 : i32
    return %c0_i32, %c0_i32_0 : i32, i32
  }
  func.func @transform_7(%arg0: i32) -> (i32, i32) {
    %c0_i32 = arith.constant 0 : i32
    %c0_i32_0 = arith.constant 0 : i32
    %c0_i32_1 = arith.constant 0 : i32
    return %c0_i32, %c0_i32_0 : i32, i32
  }
  func.func @transform_8(%arg0: i32) -> (i32, i32) {
    %c0_i32 = arith.constant 0 : i32
    %c0_i32_0 = arith.constant 0 : i32
    %c0_i32_1 = arith.constant 0 : i32
    return %c0_i32, %c0_i32_0 : i32, i32
  }
  func.func @transform_9(%arg0: i32) -> (i32, i32) {
    %c0_i32 = arith.constant 0 : i32
    %c0_i32_0 = arith.constant 0 : i32
    %c0_i32_1 = arith.constant 0 : i32
    return %c0_i32, %c0_i32_0 : i32, i32
  }
  func.func @transform_10(%arg0: i32) -> (i32, i32) {
    %c0_i32 = arith.constant 0 : i32
    %c0_i32_0 = arith.constant 0 : i32
    return %arg0, %c0_i32 : i32, i32
  }
}

</mosaic_0001>

<bundles_post_ra>
// kernel: emulator_forward.1
= control target key start
LH: loop header
LB: loop body
LE: loop exit
PB: predicated region body
PF: predicated region fallthrough
CT: control target
= control target key end

     0   :  { %15 = vsyncpa [#allocation3], 0  ;;  %s11260_s0 = inlined_call_operand.vmem [shape: f32[256,32], index: 0, kind: input, shape index: {}]   ;;  %s11261_s1 = inlined_call_operand.vmem [shape: f32[32,128], index: 1, kind: input, shape index: {}]   ;;  %s11262_s2 = inlined_call_operand.vmem [shape: f32[128,128], index: 2, kind: input, shape index: {}]   ;;  %s11263_s3 = inlined_call_operand.hbm [shape: f32[128,128], index: 3, kind: input, shape index: {}]   ;;  %s11264_s4 = inlined_call_operand.hbm [shape: f32[128,128], index: 4, kind: input, shape index: {}]   ;;  %s11265_s5 = inlined_call_operand.hbm [shape: f32[128,384], index: 5, kind: input, shape index: {}]   ;;  %s11266_s6 = inlined_call_operand.vmem [shape: f32[384,384], index: 6, kind: input, shape index: {}]   ;;  %s11267_s7 = inlined_call_operand.vmem [shape: f32[10,128], index: 7, kind: input, shape index: {}]   ;;  %s11268_s8 = inlined_call_operand.vmem [shape: f32[1,384], index: 8, kind: input, shape index: {}]   ;;  %s11269_s9 = inlined_call_operand.vmem [shape: f32[1,384], index: 9, kind: input, shape index: {}]   ;;  %s11270_s10 = inlined_call_operand.vmem [shape: f32[256,384], index: 10, kind: output, shape index: {}]  }
   0x1   :  { %16 = vsyncpa [#allocation5], 0  ;;  %s7388_s13 = smov [#allocation4]   ;;  %s7389_s15 = smov [#allocation2]  }
   0x2   :  { %s40_s14 = sshll.u32 %s7388_s13, 4  ;;  %s28_s16 = sshll.u32 %s7389_s15, 4  ;;  %s41_s14 = int_to_ptr.vmem [resolvable:$true] %s40_s14  ;;  %s7452_s16 = int_to_ptr.vmem [resolvable:$true] %s28_s16 }
   0x3   :  { %s7318_s19 = scalar_lea.hbm %s11264_s4, 2048 }
   0x4   :  { %p7319_p0 = scmp.ne.s32.totalorder %s11264_s4, %s7318_s19  ;;  %p7322_p1 = scmp.lt.u32.totalorder %s7318_s19, %s11264_s4 }
   0x6   :  { %p7324_p2 = pnand %p7322_p1, %p7319_p0 }
   0x8   :  { %7327 = shalt.err (!%p7324_p2)
}
   0x9   :  { %s7328_s24 = scalar_lea.vmem %s41_s14, 2048  ;;  %p7333_p4 = scmp.lt.s32.totalorder %s41_s14, %s41_s14 }
   0xa   :  { %p7329_p3 = scmp.ne.s32.totalorder %s41_s14, %s7328_s24  ;;  %p7334_p5 = scmp.lt.s32.totalorder %s7328_s24, %s7328_s24 }
   0xc   :  { %p7335_p6 = por %p7334_p5, %p7333_p4 }
   0xe   :  { %p7336_p7 = pnand %p7335_p6, %p7329_p3 }
  0x10   :  { %7339 = shalt.err (!%p7336_p7)
}
  0x11   :  { %s7390_s25 = smov 128   ;;  %s7391_s26 = smov 8  }
  0x12   :  { %46 = dma.hbm_to_vmem [thread:$0]  %s11264_s4, 2048, %s41_s14, [#allocation5], %s7390_s25, %s7390_s25, %s7391_s26  }
  0x13   :  { %s7340_s11 = scalar_lea.hbm %s11263_s3, 2048 }
  0x14   :  { %p7341_p8 = scmp.ne.s32.totalorder %s11263_s3, %s7340_s11  ;;  %p7344_p9 = scmp.lt.u32.totalorder %s7340_s11, %s11263_s3 }
  0x16   :  { %p7346_p10 = pnand %p7344_p9, %p7341_p8 }
  0x18   :  { %7349 = shalt.err (!%p7346_p10)
}
  0x19   :  { %s7350_s18 = scalar_lea.vmem %s7452_s16, 2048  ;;  %p7355_p12 = scmp.lt.s32.totalorder %s7452_s16, %s7452_s16 }
  0x1a   :  { %p7351_p11 = scmp.ne.s32.totalorder %s7452_s16, %s7350_s18  ;;  %p7356_p13 = scmp.lt.s32.totalorder %s7350_s18, %s7350_s18 }
  0x1c   :  { %p7357_p0 = por %p7356_p13, %p7355_p12 }
  0x1e   :  { %p7358_p1 = pnand %p7357_p0, %p7351_p11 }
  0x20   :  { %7361 = shalt.err (!%p7358_p1)
}
  0x21   :  { %34 = dma.hbm_to_vmem [thread:$0]  %s11263_s3, 2048, %s7452_s16, [#allocation3], %s7390_s25, %s7390_s25, %s7391_s26  }
  0x22   :  { %s7392_s19 = smov [#allocation6]   ;;  %s7362_s23 = scalar_lea.hbm %s11265_s5, 6144 }
  0x23   :  { %s52_s20 = sshll.u32 %s7392_s19, 4  ;;  %p7363_p2 = scmp.ne.s32.totalorder %s11265_s5, %s7362_s23  ;;  %s53_s20 = int_to_ptr.vmem [resolvable:$true] %s52_s20 }
  0x24   :  { %p7366_p3 = scmp.lt.u32.totalorder %s7362_s23, %s11265_s5 }
  0x26   :  { %p7368_p4 = pnand %p7366_p3, %p7363_p2 }
  0x28   :  { %7371 = shalt.err (!%p7368_p4)
}
  0x29   :  { %s7372_s30 = scalar_lea.vmem %s53_s20, 6144  ;;  %p7377_p6 = scmp.lt.s32.totalorder %s53_s20, %s53_s20 }
  0x2a   :  { %p7373_p5 = scmp.ne.s32.totalorder %s53_s20, %s7372_s30  ;;  %p7378_p7 = scmp.lt.s32.totalorder %s7372_s30, %s7372_s30 }
  0x2c   :  { %p7379_p8 = por %p7378_p7, %p7377_p6 }
  0x2e   :  { %p7380_p9 = pnand %p7379_p8, %p7373_p5 }
  0x30   :  { %7383 = shalt.err (!%p7380_p9)
}
  0x31   :  { %s7393_s3 = smov 384   ;;  %s7394_s16 = smov 24  }
  0x32   :  { %58 = dma.hbm_to_vmem [thread:$0]  %s11265_s5, 6144, %s53_s20, [#allocation5], %s7393_s3, %s7393_s3, %s7394_s16  }
  0x33   :  { %7384 = dma.done.wait [#allocation3], 2048  }
  0x34   :  { %7385 = vsyncadd [#allocation3], 4294965248 }
  0x35   :  { %7386 = dma.done.wait [#allocation5], 8192  }
  0x36   :  { %7387 = vsyncadd [#allocation5], 4294959104  ;;  %vm126_vm0 = vcmask 261120   ;;  %v118_v0 = vld [vmem:[%s11261_s1] sm:$0xff]  ;;  %v119_v1 = vld [vmem:[%s11261_s1 + $0x8] sm:$0xff] }
  0x37   :  { %v120_v2 = vld [vmem:[%s11261_s1 + $0x10] sm:$0xff]  ;;  %v6571_v3 = vpack.c.bf16 %v119_v1, %v118_v0  ;;  %v121_v4 = vld [vmem:[%s11261_s1 + $0x18] sm:$0xff]  ;;  %v76_v5 = vld [vmem:[%s11260_s0] sm:$0xff] }
  0x38   :  { %v6575_v6 = vpack.c.bf16 %v121_v4, %v120_v2  ;;  %6123 = vmatprep.mubr.msk.f32.mxu0 %vm126_vm0, %v76_v5  ;;  %v77_v7 = vld [vmem:[%s11260_s0 + $0x8] sm:$0xff]  ;;  %v78_v8 = vld [vmem:[%s11260_s0 + $0x10] sm:$0xff]  ;;  %v79_v9 = vld [vmem:[%s11260_s0 + $0x18] sm:$0xff] }
  0x39   :  { %6572 = vmatprep.subr.bf16.mxu0 %v6571_v3  ;;  %v80_v10 = vld [vmem:[%s11260_s0 + $0x20] sm:$0xff]  ;;  %v81_v11 = vld [vmem:[%s11260_s0 + $0x28] sm:$0xff]  ;;  %v82_v12 = vld [vmem:[%s11260_s0 + $0x30] sm:$0xff] }
  0x3a   :  { %6574 = vmatpush3.bf16.msra.mxu0 %v6571_v3  ;;  %v83_v13 = vld [vmem:[%s11260_s0 + $0x38] sm:$0xff]  ;;  %v84_v14 = vld [vmem:[%s11260_s0 + $0x40] sm:$0xff]  ;;  %v85_v15 = vld [vmem:[%s11260_s0 + $0x48] sm:$0xff] }
  0x3b   :  { %6576 = vmatprep.subr.bf16.mxu0 %v6575_v6  ;;  %v86_v16 = vld [vmem:[%s11260_s0 + $0x50] sm:$0xff]  ;;  %v87_v17 = vld [vmem:[%s11260_s0 + $0x58] sm:$0xff]  ;;  %v88_v18 = vld [vmem:[%s11260_s0 + $0x60] sm:$0xff] }
  0x3c   :  { %v89_v19 = vld [vmem:[%s11260_s0 + $0x68] sm:$0xff]  ;;  %v90_v20 = vld [vmem:[%s11260_s0 + $0x70] sm:$0xff]  ;;  %v91_v21 = vld [vmem:[%s11260_s0 + $0x78] sm:$0xff] }
  0x3d   :  { %v92_v22 = vld [vmem:[%s11260_s0 + $0x80] sm:$0xff]  ;;  %v93_v23 = vld [vmem:[%s11260_s0 + $0x88] sm:$0xff]  ;;  %v94_v24 = vld [vmem:[%s11260_s0 + $0x90] sm:$0xff] }
  0x3e   :  { %6578 = vmatpush3.bf16.msra.mxu0 %v6575_v6  ;;  %v95_v25 = vld [vmem:[%s11260_s0 + $0x98] sm:$0xff]  ;;  %v96_v26 = vld [vmem:[%s11260_s0 + $0xa0] sm:$0xff]  ;;  %v97_v27 = vld [vmem:[%s11260_s0 + $0xa8] sm:$0xff] }
  0x3f   :  { %v98_v28 = vld [vmem:[%s11260_s0 + $0xb0] sm:$0xff]  ;;  %v99_v29 = vld [vmem:[%s11260_s0 + $0xb8] sm:$0xff]  ;;  %v100_v30 = vld [vmem:[%s11260_s0 + $0xc0] sm:$0xff] }
  0x40   :  { %v101_v31 = vld [vmem:[%s11260_s0 + $0xc8] sm:$0xff]  ;;  %v102_v32 = vld [vmem:[%s11260_s0 + $0xd0] sm:$0xff]  ;;  %v103_v33 = vld [vmem:[%s11260_s0 + $0xd8] sm:$0xff] }
  0x41   :  { %6124 = vmatmul.mubr.msk.f32.vlgmr.msra.gmra.mrb[0].mxu0 %vm126_vm0, %v77_v7  ;;  %v104_v34 = vld [vmem:[%s11260_s0 + $0xe0] sm:$0xff]  ;;  %v105_v35 = vld [vmem:[%s11260_s0 + $0xe8] sm:$0xff]  ;;  %v106_v36 = vld [vmem:[%s11260_s0 + $0xf0] sm:$0xff] }
  0x42   :  { %6126 = vmatprep.mubr.msk.f32.mxu0 %vm126_vm0, %v78_v8  ;;  %v107_v37 = vld [vmem:[%s11260_s0 + $0xf8] sm:$0xff]  ;;  %v7638_v38 = vld [vmem:[%s11267_s7] ss:$0 sm:$0xff]  ;;  %v1065_v59 = vld [vmem:[%s11262_s2 + $0x8] sm:$0xff] }
  0x43   :  { %v1064_v58 = vld [vmem:[%s11262_s2] sm:$0xff]  ;;  %v1066_v0 = vld [vmem:[%s11262_s2 + $0x10] sm:$0xff]  ;;  %v1067_v1 = vld [vmem:[%s11262_s2 + $0x18] sm:$0xff] }
  0x44   :  { %v6579_v60 = vpack.c.bf16 %v1065_v59, %v1064_v58  ;;  %v6583_v3 = vpack.c.bf16 %v1067_v1, %v1066_v0  ;;  %v1068_v8 = vld [vmem:[%s11262_s2 + $0x20] sm:$0xff]  ;;  %v1079_v58 = vld [vmem:[%s11262_s2 + $0x78] sm:$0xff] }
  0x45   :  { %6127 = vmatmul.mubr.msk.f32.gmra.mrb[2].mxu0 %vm126_vm0, %v79_v9  ;;  %v1069_v9 = vld [vmem:[%s11262_s2 + $0x28] sm:$0xff] }
  0x46   :  { %6129 = vmatprep.mubr.msk.f32.mxu0 %vm126_vm0, %v80_v10  ;;  %6580 = vmatprep.subr.bf16.mxu1 %v6579_v60  ;;  %v6587_v10 = vpack.c.bf16 %v1069_v9, %v1068_v8 }
  0x47   :  { %6582 = vmatpush3.bf16.msra.mxu1 %v6579_v60 }
  0x48   :  { %6584 = vmatprep.subr.bf16.mxu1 %v6583_v3 }
  0x49   :  { %6130 = vmatmul.mubr.msk.f32.gmra.mrb[4].mxu0 %vm126_vm0, %v81_v11 }
  0x4a   :  { %6132 = vmatprep.mubr.msk.f32.mxu0 %vm126_vm0, %v82_v12 }
  0x4b   :  { %6586 = vmatpush3.bf16.msra.mxu1 %v6583_v3 }
  0x4c   :  { %6588 = vmatprep.subr.bf16.mxu1 %v6587_v10 }
  0x4d   :  { %6133 = vmatmul.mubr.msk.f32.gmra.mrb[6].mxu0 %vm126_vm0, %v83_v13 }
  0x4e   :  { %6135 = vmatprep.mubr.msk.f32.mxu0 %vm126_vm0, %v84_v14 }
  0x4f   :  { %6590 = vmatpush3.bf16.msra.mxu1 %v6587_v10 }
  0x51   :  { %6136 = vmatmul.mubr.msk.f32.gmra.mrb[8].mxu0 %vm126_vm0, %v85_v15  ;;  %v1070_v15 = vld [vmem:[%s11262_s2 + $0x30] sm:$0xff] }
  0x52   :  { %6138 = vmatprep.mubr.msk.f32.mxu0 %vm126_vm0, %v86_v16  ;;  %v1071_v16 = vld [vmem:[%s11262_s2 + $0x38] sm:$0xff] }
  0x55   :  { %6139 = vmatmul.mubr.msk.f32.gmra.mrb[10].mxu0 %vm126_vm0, %v87_v17  ;;  %v6591_v17 = vpack.c.bf16 %v1071_v16, %v1070_v15 }
  0x56   :  { %6141 = vmatprep.mubr.msk.f32.mxu0 %vm126_vm0, %v88_v18 }
  0x57   :  { %6592 = vmatprep.subr.bf16.mxu1 %v6591_v17 }
  0x58   :  { %6594 = vmatpush3.bf16.msra.mxu1 %v6591_v17 }
  0x59   :  { %6142 = vmatmul.mubr.msk.f32.gmra.mrb[12].mxu0 %vm126_vm0, %v89_v19 }
  0x5a   :  { %6144 = vmatprep.mubr.msk.f32.mxu0 %vm126_vm0, %v90_v20 }
  0x5d   :  { %6145 = vmatmul.mubr.msk.f32.gmra.mrb[14].mxu0 %vm126_vm0, %v91_v21 }
  0x5e   :  { %6147 = vmatprep.mubr.msk.f32.mxu0 %vm126_vm0, %v92_v22 }
  0x61   :  { %6148 = vmatmul.mubr.msk.f32.gmra.mrb[16].mxu0 %vm126_vm0, %v93_v23 }
  0x62   :  { %6150 = vmatprep.mubr.msk.f32.mxu0 %vm126_vm0, %v94_v24  ;;  %v1072_v24 = vld [vmem:[%s11262_s2 + $0x40] sm:$0xff] }
  0x65   :  { %6151 = vmatmul.mubr.msk.f32.gmra.mrb[18].mxu0 %vm126_vm0, %v95_v25  ;;  %v1073_v25 = vld [vmem:[%s11262_s2 + $0x48] sm:$0xff] }
  0x66   :  { %6153 = vmatprep.mubr.msk.f32.mxu0 %vm126_vm0, %v96_v26  ;;  %v6595_v26 = vpack.c.bf16 %v1073_v25, %v1072_v24 }
  0x68   :  { %6596 = vmatprep.subr.bf16.mxu1 %v6595_v26 }
  0x69   :  { %6154 = vmatmul.mubr.msk.f32.gmra.mrb[20].mxu0 %vm126_vm0, %v97_v27  ;;  %6598 = vmatpush3.bf16.msra.mxu1 %v6595_v26 }
  0x6a   :  { %6156 = vmatprep.mubr.msk.f32.mxu0 %vm126_vm0, %v98_v28 }
  0x6d   :  { %6157 = vmatmul.mubr.msk.f32.gmra.mrb[22].mxu0 %vm126_vm0, %v99_v29 }
  0x6e   :  { %6159 = vmatprep.mubr.msk.f32.mxu0 %vm126_vm0, %v100_v30 }
  0x71   :  { %6160 = vmatmul.mubr.msk.f32.gmra.mrb[24].mxu0 %vm126_vm0, %v101_v31 }
  0x72   :  { %6162 = vmatprep.mubr.msk.f32.mxu0 %vm126_vm0, %v102_v32 }
  0x75   :  { %6163 = vmatmul.mubr.msk.f32.gmra.mrb[26].mxu0 %vm126_vm0, %v103_v33  ;;  %v1074_v33 = vld [vmem:[%s11262_s2 + $0x50] sm:$0xff] }
  0x76   :  { %6165 = vmatprep.mubr.msk.f32.mxu0 %vm126_vm0, %v104_v34  ;;  %v1075_v34 = vld [vmem:[%s11262_s2 + $0x58] sm:$0xff] }
  0x79   :  { %6166 = vmatmul.mubr.msk.f32.gmra.mrb[28].mxu0 %vm126_vm0, %v105_v35  ;;  %v6599_v35 = vpack.c.bf16 %v1075_v34, %v1074_v33 }
  0x7a   :  { %6168 = vmatprep.mubr.msk.f32.mxu0 %vm126_vm0, %v106_v36 }
  0x7b   :  { %6600 = vmatprep.subr.bf16.mxu1 %v6599_v35 }
  0x7c   :  { %6602 = vmatpush3.bf16.msra.mxu1 %v6599_v35 }
  0x7d   :  { %6169 = vmatmul.mubr.msk.f32.gmra.mrb[30].mxu0 %vm126_vm0, %v107_v37 }
 0x114   :  { %v6125_v39 = vpop.f32.mrb[0].mxu0 }
 0x115   :  { %v289_v40 = vpop.f32.mrb[1].mxu0  ;;  %v7644_v42 = vadd.f32 %v6125_v39, %v7638_v38 }
 0x116   :  { %v7641_v41 = vadd.f32 %v7638_v38, %v289_v40 }
 0x117   :  { %v513_v47 = vmul.f32 %v7644_v42, %v7644_v42 }
 0x118   :  { %448 = vadd.xlane.f32.xlu0 %v7641_v41  ;;  %v512_v43 = vmul.f32 %v7641_v41, %v7641_v41  ;;  %v6128_v44 = vpop.f32.mrb[2].mxu0 }
 0x119   :  { %v299_v45 = vpop.f32.mrb[3].mxu0  ;;  %v7656_v50 = vadd.f32 %v6128_v44, %v7638_v38 }
 0x11a   :  { %544 = vadd.xlane.f32.xlu1 %v512_v43  ;;  %v7651_v46 = vadd.f32 %v7638_v38, %v299_v45  ;;  %v1076_v45 = vld [vmem:[%s11262_s2 + $0x60] sm:$0xff] }
 0x11b   :  { %v515_v55 = vmul.f32 %v7656_v50, %v7656_v50 }
 0x11c   :  { %450 = vadd.xlane.f32.xlu0 %v7644_v42  ;;  %v6131_v48 = vpop.f32.mrb[4].mxu0  ;;  %v514_v53 = vmul.f32 %v7651_v46, %v7651_v46 }
 0x11d   :  { %v309_v49 = vpop.f32.mrb[5].mxu0  ;;  %v7674_v61 = vadd.f32 %v6131_v48, %v7638_v38 }
 0x11e   :  { %546 = vadd.xlane.f32.xlu1 %v513_v47  ;;  %v7663_v54 = vadd.f32 %v7638_v38, %v309_v49  ;;  %v1077_v47 = vld [vmem:[%s11262_s2 + $0x68] sm:$0xff] }
 0x11f   :  { %v517_v5 = vmul.f32 %v7674_v61, %v7674_v61  ;;  %v6603_v48 = vpack.c.bf16 %v1077_v47, %v1076_v45 }
 0x120   :  { %452 = vadd.xlane.f32.xlu0 %v7651_v46  ;;  %v6134_v51 = vpop.f32.mrb[6].mxu0  ;;  %v516_v2 = vmul.f32 %v7663_v54, %v7663_v54 }
 0x121   :  { %v319_v52 = vpop.f32.mrb[7].mxu0  ;;  %v7704_v11 = vadd.f32 %v6134_v51, %v7638_v38  ;;  %6604 = vmatprep.subr.bf16.mxu1 %v6603_v48 }
 0x122   :  { %454 = vadd.xlane.f32.xlu1 %v7656_v50  ;;  %v7689_v4 = vadd.f32 %v7638_v38, %v319_v52  ;;  %6606 = vmatpush3.bf16.msra.mxu1 %v6603_v48 }
 0x123   :  { %v519_v19 = vmul.f32 %v7704_v11, %v7704_v11 }
 0x124   :  { %548 = vadd.xlane.f32.xlu0 %v514_v53  ;;  %v6137_v56 = vpop.f32.mrb[8].mxu0  ;;  %v518_v14 = vmul.f32 %v7689_v4, %v7689_v4 }
 0x125   :  { %v329_v57 = vpop.f32.mrb[9].mxu0  ;;  %v7738_v27 = vadd.f32 %v6137_v56, %v7638_v38 }
 0x126   :  { %550 = vadd.xlane.f32.xlu1 %v515_v55  ;;  %v7721_v18 = vadd.f32 %v7638_v38, %v329_v57  ;;  %v1078_v57 = vld [vmem:[%s11262_s2 + $0x70] sm:$0xff] }
 0x127   :  { %v521_v37 = vmul.f32 %v7738_v27, %v7738_v27  ;;  %v6607_v59 = vpack.c.bf16 %v1079_v58, %v1078_v57 }
 0x128   :  { %456 = vadd.xlane.f32.xlu0 %v7663_v54  ;;  %v7677_v62 = vpop.f32.mrb[10].mxu0  ;;  %v520_v31 = vmul.f32 %v7721_v18, %v7721_v18 }
 0x129   :  { %v339_v63 = vpop.f32.mrb[11].mxu0  ;;  %v7775_v49 = vadd.f32 %v7677_v62, %v7638_v38  ;;  %6608 = vmatprep.subr.bf16.mxu1 %v6607_v59 }
 0x12a   :  { %458 = vadd.xlane.f32.xlu1 %v7674_v61  ;;  %v7757_v36 = vadd.f32 %v7638_v38, %v339_v63  ;;  %6610 = vmatpush3.bf16.msra.mxu1 %v6607_v59 }
 0x12b   :  { %v523_v62 = vmul.f32 %v7775_v49, %v7775_v49 }
 0x12c   :  { %552 = vadd.xlane.f32.xlu0 %v516_v2  ;;  %v7693_v6 = vpop.f32.mrb[12].mxu0  ;;  %v522_v55 = vmul.f32 %v7757_v36, %v7757_v36 }
 0x12d   :  { %v7695_v7 = vpop.f32.mrb[13].mxu0  ;;  %v7807_v3 = vadd.f32 %v7693_v6, %v7638_v38 }
 0x12e   :  { %554 = vadd.xlane.f32.xlu1 %v517_v5  ;;  %v7795_v60 = vadd.f32 %v7638_v38, %v7695_v7 }
 0x130   :  { %460 = vadd.xlane.f32.xlu0 %v7689_v4  ;;  %v7707_v12 = vpop.f32.mrb[14].mxu0  ;;  %v524_v9 = vmul.f32 %v7795_v60, %v7795_v60 }
 0x131   :  { %v7709_v13 = vpop.f32.mrb[15].mxu0 }
 0x132   :  { %462 = vadd.xlane.f32.xlu1 %v7704_v11  ;;  %v7821_v6 = vadd.f32 %v7638_v38, %v7709_v13 }
 0x134   :  { %556 = vadd.xlane.f32.xlu0 %v518_v14  ;;  %v6149_v20 = vpop.f32.mrb[16].mxu0  ;;  %v525_v14 = vmul.f32 %v7807_v3, %v7807_v3  ;;  %v526_v25 = vmul.f32 %v7821_v6, %v7821_v6 }
 0x135   :  { %v7726_v21 = vadd.f32 %v6149_v20, %v7638_v38  ;;  %v369_v22 = vpop.f32.mrb[17].mxu0  ;;  %v7833_v20 = vadd.f32 %v7707_v12, %v7638_v38 }
 0x136   :  { %558 = vadd.xlane.f32.xlu1 %v519_v19  ;;  %v7729_v23 = vadd.f32 %v7638_v38, %v369_v22 }
 0x137   :  { %v527_v12 = vmul.f32 %v7833_v20, %v7833_v20 }
 0x138   :  { %464 = vadd.xlane.f32.xlu0 %v7721_v18  ;;  %v6152_v28 = vpop.f32.mrb[18].mxu0 }
 0x139   :  { %v7742_v29 = vadd.f32 %v6152_v28, %v7638_v38  ;;  %v379_v30 = vpop.f32.mrb[19].mxu0  ;;  %v528_v28 = vmul.f32 %v7729_v23, %v7729_v23 }
 0x13a   :  { %466 = vadd.xlane.f32.xlu1 %v7738_v27  ;;  %v7748_v32 = vadd.f32 %v7638_v38, %v379_v30  ;;  %v529_v30 = vmul.f32 %v7726_v21, %v7726_v21 }
 0x13c   :  { %560 = vadd.xlane.f32.xlu0 %v520_v31  ;;  %v6155_v39 = vpop.f32.mrb[20].mxu0  ;;  %v531_v31 = vmul.f32 %v7742_v29, %v7742_v29 }
 0x13d   :  { %v7762_v40 = vadd.f32 %v6155_v39, %v7638_v38  ;;  %v389_v43 = vpop.f32.mrb[21].mxu0 }
 0x13e   :  { %562 = vadd.xlane.f32.xlu1 %v521_v37  ;;  %v7765_v44 = vadd.f32 %v7638_v38, %v389_v43 }
 0x13f   :  { %v533_v34 = vmul.f32 %v7762_v40, %v7762_v40 }
 0x140   :  { %468 = vadd.xlane.f32.xlu0 %v7757_v36  ;;  %v6158_v51 = vpop.f32.mrb[22].mxu0  ;;  %v532_v33 = vmul.f32 %v7765_v44, %v7765_v44 }
 0x141   :  { %v7779_v52 = vadd.f32 %v6158_v51, %v7638_v38  ;;  %v399_v53 = vpop.f32.mrb[23].mxu0 }
 0x142   :  { %470 = vadd.xlane.f32.xlu1 %v7775_v49  ;;  %v7785_v56 = vadd.f32 %v7638_v38, %v399_v53 }
 0x143   :  { %v535_v37 = vmul.f32 %v7779_v52, %v7779_v52 }
 0x144   :  { %564 = vadd.xlane.f32.xlu0 %v522_v55  ;;  %v6161_v63 = vpop.f32.mrb[24].mxu0  ;;  %v534_v35 = vmul.f32 %v7785_v56, %v7785_v56 }
 0x145   :  { %v7800_v0 = vadd.f32 %v6161_v63, %v7638_v38  ;;  %v409_v1 = vpop.f32.mrb[25].mxu0 }
 0x146   :  { %566 = vadd.xlane.f32.xlu1 %v523_v62  ;;  %v7803_v2 = vadd.f32 %v7638_v38, %v409_v1 }
 0x147   :  { %v537_v43 = vmul.f32 %v7800_v0, %v7800_v0 }
 0x148   :  { %472 = vadd.xlane.f32.xlu0 %v7795_v60  ;;  %v6164_v5 = vpop.f32.mrb[26].mxu0  ;;  %v536_v39 = vmul.f32 %v7803_v2, %v7803_v2 }
 0x149   :  { %v7811_v7 = vadd.f32 %v6164_v5, %v7638_v38  ;;  %v419_v8 = vpop.f32.mrb[27].mxu0 }
 0x14a   :  { %474 = vadd.xlane.f32.xlu1 %v7807_v3  ;;  %v7817_v10 = vadd.f32 %v7638_v38, %v419_v8 }
 0x14b   :  { %v539_v47 = vmul.f32 %v7811_v7, %v7811_v7 }
 0x14c   :  { %568 = vadd.xlane.f32.xlu0 %v524_v9  ;;  %v6167_v15 = vpop.f32.mrb[28].mxu0  ;;  %v538_v45 = vmul.f32 %v7817_v10, %v7817_v10 }
 0x14d   :  { %v7826_v16 = vadd.f32 %v6167_v15, %v7638_v38  ;;  %v429_v17 = vpop.f32.mrb[29].mxu0 }
 0x14e   :  { %570 = vadd.xlane.f32.xlu1 %v525_v14  ;;  %v7829_v19 = vadd.f32 %v7638_v38, %v429_v17 }
 0x14f   :  { %v541_v51 = vmul.f32 %v7826_v16, %v7826_v16 }
 0x150   :  { %476 = vadd.xlane.f32.xlu0 %v7821_v6  ;;  %v6170_v13 = vpop.f32.mrb[30].mxu0  ;;  %v540_v48 = vmul.f32 %v7829_v19, %v7829_v19 }
 0x151   :  { %v7837_v22 = vadd.f32 %v6170_v13, %v7638_v38  ;;  %v439_v24 = vpop.f32.mrb[31].mxu0 }
 0x152   :  { %478 = vadd.xlane.f32.xlu1 %v7833_v20  ;;  %v7843_v26 = vadd.f32 %v7638_v38, %v439_v24  ;;  %v530_v38 = vmul.f32 %v7748_v32, %v7748_v32 }
 0x153   :  { %v543_v55 = vmul.f32 %v7837_v22, %v7837_v22 }
 0x154   :  { %572 = vadd.xlane.f32.xlu0 %v526_v25  ;;  %v542_v53 = vmul.f32 %v7843_v26, %v7843_v26 }
 0x156   :  { %574 = vadd.xlane.f32.xlu1 %v527_v12 }
 0x158   :  { %480 = vadd.xlane.f32.xlu0 %v7729_v23 }
 0x15a   :  { %482 = vadd.xlane.f32.xlu1 %v7726_v21 }
 0x15c   :  { %576 = vadd.xlane.f32.xlu0 %v528_v28 }
 0x15e   :  { %578 = vadd.xlane.f32.xlu1 %v529_v30 }
 0x160   :  { %484 = vadd.xlane.f32.xlu0 %v7748_v32 }
 0x162   :  { %486 = vadd.xlane.f32.xlu1 %v7742_v29 }
 0x164   :  { %580 = vadd.xlane.f32.xlu0 %v530_v38 }
 0x166   :  { %582 = vadd.xlane.f32.xlu1 %v531_v31 }
 0x168   :  { %488 = vadd.xlane.f32.xlu0 %v7765_v44 }
 0x16a   :  { %490 = vadd.xlane.f32.xlu1 %v7762_v40 }
 0x16c   :  { %584 = vadd.xlane.f32.xlu0 %v532_v33 }
 0x16e   :  { %586 = vadd.xlane.f32.xlu1 %v533_v34 }
 0x170   :  { %492 = vadd.xlane.f32.xlu0 %v7785_v56 }
 0x172   :  { %494 = vadd.xlane.f32.xlu1 %v7779_v52 }
 0x174   :  { %588 = vadd.xlane.f32.xlu0 %v534_v35 }
 0x176   :  { %590 = vadd.xlane.f32.xlu1 %v535_v37 }
 0x178   :  { %496 = vadd.xlane.f32.xlu0 %v7803_v2 }
 0x17a   :  { %498 = vadd.xlane.f32.xlu1 %v7800_v0 }
 0x17c   :  { %592 = vadd.xlane.f32.xlu0 %v536_v39 }
 0x17e   :  { %594 = vadd.xlane.f32.xlu1 %v537_v43 }
 0x180   :  { %500 = vadd.xlane.f32.xlu0 %v7817_v10 }
 0x182   :  { %502 = vadd.xlane.f32.xlu1 %v7811_v7 }
 0x184   :  { %596 = vadd.xlane.f32.xlu0 %v538_v45 }
 0x186   :  { %598 = vadd.xlane.f32.xlu1 %v539_v47 }
 0x188   :  { %504 = vadd.xlane.f32.xlu0 %v7829_v19 }
 0x18a   :  { %506 = vadd.xlane.f32.xlu1 %v7826_v16 }
 0x18c   :  { %600 = vadd.xlane.f32.xlu0 %v540_v48 }
 0x18e   :  { %602 = vadd.xlane.f32.xlu1 %v541_v51 }
 0x190   :  { %508 = vadd.xlane.f32.xlu0 %v7843_v26 }
 0x192   :  { %510 = vadd.xlane.f32.xlu1 %v7837_v22 }
 0x194   :  { %604 = vadd.xlane.f32.xlu0 %v542_v53 }
 0x196   :  { %606 = vadd.xlane.f32.xlu1 %v543_v55 }
 0x1a5   :  { %v449_v57 = vpop.xlane.xlu0 %448 }
 0x1a6   :  { %v608_v58 = vmul.f32 0.0078125, %v449_v57 }
 0x1a7   :  { %v545_v59 = vpop.xlane.xlu1 %544 }
 0x1a8   :  { %v672_v62 = vmul.f32 %v608_v58, %v608_v58  ;;  %v640_v63 = vmul.f32 0.0078125, %v545_v59 }
 0x1a9   :  { %v451_v1 = vpop.xlane.xlu0 %450 }
 0x1aa   :  { %v704_v5 = vsub.f32 %v640_v63, %v672_v62  ;;  %v609_v8 = vmul.f32 0.0078125, %v451_v1  ;;  %v768_v62 = vsub.f32 %v7641_v41, %v608_v58 }
 0x1ab   :  { %v547_v9 = vpop.xlane.xlu1 %546 }
 0x1ac   :  { %v736_v14 = vmax.f32 %v704_v5, 0.0  ;;  %v673_v15 = vmul.f32 %v609_v8, %v609_v8  ;;  %v641_v17 = vmul.f32 0.0078125, %v547_v9 }
 0x1ad   :  { %v453_v13 = vpop.xlane.xlu0 %452 }
 0x1ae   :  { %v800_v24 = vadd.f32 1e-05, %v736_v14  ;;  %v705_v25 = vsub.f32 %v641_v17, %v673_v15  ;;  %v7895_v12 = vmul.f32 0.0078125, %v453_v13  ;;  %v7913_v17 = vld [vmem:[%s11267_s7 + $0x4] ss:$0 sm:$0xff] }
 0x1af   :  { %v455_v28 = vpop.xlane.xlu1 %454 }
 0x1b0   :  { %7052 = vrsqrt.f32 %v800_v24  ;;  %v737_v30 = vmax.f32 %v705_v25, 0.0  ;;  %v7897_v38 = vmul.f32 0.0078125, %v455_v28  ;;  %v674_v34 = vmul.f32 %v7895_v12, %v7895_v12  ;;  %v7920_v28 = vld [vmem:[%s11267_s7 + $0x7] ss:$0 sm:$0xff] }
 0x1b1   :  { %v549_v31 = vpop.xlane.xlu0 %548 }
 0x1b2   :  { %v801_v33 = vadd.f32 1e-05, %v737_v30  ;;  %v642_v35 = vmul.f32 0.0078125, %v549_v31  ;;  %v675_v39 = vmul.f32 %v7897_v38, %v7897_v38  ;;  %v769_v30 = vsub.f32 %v7644_v42, %v609_v8 }
 0x1b3   :  { %v551_v37 = vpop.xlane.xlu1 %550 }
 0x1b4   :  { %7054 = vrsqrt.f32 %v801_v33  ;;  %v706_v43 = vsub.f32 %v642_v35, %v674_v34  ;;  %v643_v45 = vmul.f32 0.0078125, %v551_v37 }
 0x1b5   :  { %v457_v47 = vpop.xlane.xlu0 %456 }
 0x1b6   :  { %v738_v48 = vmax.f32 %v706_v43, 0.0  ;;  %v707_v51 = vsub.f32 %v643_v45, %v675_v39  ;;  %v7903_v53 = vmul.f32 0.0078125, %v457_v47 }
 0x1b7   :  { %v459_v55 = vpop.xlane.xlu1 %458 }
 0x1b8   :  { %v802_v57 = vadd.f32 1e-05, %v738_v48  ;;  %v739_v59 = vmax.f32 %v707_v51, 0.0  ;;  %v7906_v63 = vmul.f32 0.0078125, %v459_v55  ;;  %v676_v14 = vmul.f32 %v7903_v53, %v7903_v53 }
 0x1b9   :  { %v553_v1 = vpop.xlane.xlu0 %552 }
 0x1ba   :  { %v7053_v5 = vpop.eup %7052  ;;  %7056 = vrsqrt.f32 %v802_v57  ;;  %v803_v9 = vadd.f32 1e-05, %v739_v59  ;;  %v644_v15 = vmul.f32 0.0078125, %v553_v1  ;;  %v677_v41 = vmul.f32 %v7906_v63, %v7906_v63 }
 0x1bb   :  { %v555_v13 = vpop.xlane.xlu1 %554  ;;  %v864_v24 = vmul.f32 %v7053_v5, %v768_v62  ;;  %v770_v5 = vsub.f32 %v7651_v46, %v7895_v12 }
 0x1bc   :  { %7058 = vrsqrt.f32 %v803_v9  ;;  %v708_v58 = vsub.f32 %v644_v15, %v676_v14  ;;  %v645_v25 = vmul.f32 0.0078125, %v555_v13 }
 0x1bd   :  { %v461_v31 = vpop.xlane.xlu0 %460  ;;  %v900_v33 = vmul.f32 %v7913_v17, %v864_v24 }
 0x1be   :  { %v7055_v34 = vpop.eup %7054  ;;  %v740_v35 = vmax.f32 %v708_v58, 0.0  ;;  %v709_v37 = vsub.f32 %v645_v25, %v677_v41  ;;  %v7924_v39 = vmul.f32 0.0078125, %v461_v31  ;;  %v771_v25 = vsub.f32 %v7656_v50, %v7897_v38 }
 0x1bf   :  { %v463_v43 = vpop.xlane.xlu1 %462  ;;  %v936_v45 = vadd.f32 %v7920_v28, %v900_v33  ;;  %v865_v47 = vmul.f32 %v7055_v34, %v769_v30 }
 0x1c0   :  { %v804_v48 = vadd.f32 1e-05, %v740_v35  ;;  %v741_v51 = vmax.f32 %v709_v37, 0.0  ;;  %v7927_v55 = vmul.f32 0.0078125, %v463_v43  ;;  %v678_v62 = vmul.f32 %v7924_v39, %v7924_v39 }
 0x1c1   :  { %v557_v57 = vpop.xlane.xlu0 %556  ;;  %vm968_vm1 = vcmp.gt.f32.partialorder %v936_v45, 0.0  ;;  %v1000_v59 = vmul.f32 0.01, %v936_v45  ;;  %v901_v42 = vmul.f32 %v7913_v17, %v865_v47 }
 0x1c2   :  { %7060 = vrsqrt.f32 %v804_v48  ;;  %v805_v8 = vadd.f32 1e-05, %v741_v51  ;;  %v646_v1 = vmul.f32 0.0078125, %v557_v57  ;;  %v679_v24 = vmul.f32 %v7927_v55, %v7927_v55 }
 0x1c3   :  { %v559_v9 = vpop.xlane.xlu1 %558  ;;  %v7934_v14 = vsel %vm968_vm1, %v936_v45, %v1000_v59  ;;  %v937_v15 = vadd.f32 %v7920_v28, %v901_v42 }
 0x1c4   :  { %v7057_v13 = vpop.eup %7056  ;;  %7062 = vrsqrt.f32 %v805_v8  ;;  %v710_v41 = vsub.f32 %v646_v1, %v678_v62  ;;  %v647_v58 = vmul.f32 0.0078125, %v559_v9  ;;  %6203 = vmatprep.mubr.f32.mxu1 %v7934_v14  ;;  %v772_v1 = vsub.f32 %v7663_v54, %v7903_v53 }
 0x1c5   :  { %v465_v30 = vpop.xlane.xlu0 %464  ;;  %vm969_vm2 = vcmp.gt.f32.partialorder %v937_v15, 0.0  ;;  %v1001_v46 = vmul.f32 0.01, %v937_v15  ;;  %v866_v12 = vmul.f32 %v7057_v13, %v770_v5 }
 0x1c6   :  { %v7059_v31 = vpop.eup %7058  ;;  %v742_v33 = vmax.f32 %v710_v41, 0.0  ;;  %v711_v34 = vsub.f32 %v647_v58, %v679_v24  ;;  %v7942_v35 = vmul.f32 0.0078125, %v465_v30 }
 0x1c7   :  { %v467_v37 = vpop.xlane.xlu1 %466  ;;  %v7944_v43 = vsel %vm969_vm2, %v937_v15, %v1001_v46  ;;  %v902_v45 = vmul.f32 %v7913_v17, %v866_v12  ;;  %v867_v47 = vmul.f32 %v7059_v31, %v771_v25  ;;  %v773_v25 = vsub.f32 %v7674_v61, %v7906_v63 }
 0x1c8   :  { %v806_v48 = vadd.f32 1e-05, %v742_v33  ;;  %v743_v51 = vmax.f32 %v711_v34, 0.0  ;;  %6204 = vmatmul.mubr.f32.vlgmr.msra.gmra.mrb[0].mxu1 %v7944_v43  ;;  %v7948_v50 = vmul.f32 0.0078125, %v467_v37  ;;  %v680_v8 = vmul.f32 %v7942_v35, %v7942_v35 }
 0x1c9   :  { %v561_v38 = vpop.xlane.xlu0 %560  ;;  %v938_v57 = vadd.f32 %v7920_v28, %v902_v45  ;;  %v903_v59 = vmul.f32 %v7913_v17, %v867_v47 }
 0x1ca   :  { %7064 = vrsqrt.f32 %v806_v48  ;;  %v807_v42 = vadd.f32 1e-05, %v743_v51  ;;  %v648_v62 = vmul.f32 0.0078125, %v561_v38  ;;  %v681_v5 = vmul.f32 %v7948_v50, %v7948_v50 }
 0x1cb   :  { %v563_v9 = vpop.xlane.xlu1 %562  ;;  %vm970_vm3 = vcmp.gt.f32.partialorder %v938_v57, 0.0  ;;  %v1002_v15 = vmul.f32 0.01, %v938_v57  ;;  %v939_v58 = vadd.f32 %v7920_v28, %v903_v59 }
 0x1cc   :  { %v7061_v13 = vpop.eup %7060  ;;  %7066 = vrsqrt.f32 %v807_v42  ;;  %v712_v24 = vsub.f32 %v648_v62, %v680_v8  ;;  %v649_v41 = vmul.f32 0.0078125, %v563_v9 }
 0x1cd   :  { %v469_v30 = vpop.xlane.xlu0 %468  ;;  %v7961_v46 = vsel %vm970_vm3, %v938_v57, %v1002_v15  ;;  %v868_v12 = vmul.f32 %v7061_v13, %v772_v1  ;;  %vm971_vm4 = vcmp.gt.f32.partialorder %v939_v58, 0.0  ;;  %v1003_v37 = vmul.f32 0.01, %v939_v58 }
 0x1ce   :  { %v7063_v54 = vpop.eup %7062  ;;  %v744_v53 = vmax.f32 %v712_v24, 0.0  ;;  %v713_v31 = vsub.f32 %v649_v41, %v681_v5  ;;  %v7963_v33 = vmul.f32 0.0078125, %v469_v30  ;;  %6206 = vmatprep.mubr.f32.mxu1 %v7961_v46  ;;  %v774_v1 = vsub.f32 %v7689_v4, %v7924_v39 }
 0x1cf   :  { %v471_v34 = vpop.xlane.xlu1 %470  ;;  %v904_v45 = vmul.f32 %v7913_v17, %v868_v12  ;;  %v869_v47 = vmul.f32 %v7063_v54, %v773_v25  ;;  %v7969_v63 = vsel %vm971_vm4, %v939_v58, %v1003_v37  ;;  %v775_v25 = vsub.f32 %v7704_v11, %v7927_v55 }
 0x1d0   :  { %v808_v48 = vadd.f32 1e-05, %v744_v53  ;;  %v745_v51 = vmax.f32 %v713_v31, 0.0  ;;  %v7967_v61 = vmul.f32 0.0078125, %v471_v34  ;;  %v682_v8 = vmul.f32 %v7963_v33, %v7963_v33  ;;  %6207 = vmatmul.mubr.f32.gmra.mrb[2].mxu1 %v7969_v63 }
 0x1d1   :  { %v565_v38 = vpop.xlane.xlu0 %564  ;;  %v940_v57 = vadd.f32 %v7920_v28, %v904_v45  ;;  %v905_v59 = vmul.f32 %v7913_v17, %v869_v47 }
 0x1d2   :  { %7068 = vrsqrt.f32 %v808_v48  ;;  %v809_v42 = vadd.f32 1e-05, %v745_v51  ;;  %v650_v62 = vmul.f32 0.0078125, %v565_v38  ;;  %v683_v5 = vmul.f32 %v7967_v61, %v7967_v61 }
 0x1d3   :  { %v567_v9 = vpop.xlane.xlu1 %566  ;;  %vm972_vm5 = vcmp.gt.f32.partialorder %v940_v57, 0.0  ;;  %v1004_v15 = vmul.f32 0.01, %v940_v57  ;;  %v941_v58 = vadd.f32 %v7920_v28, %v905_v59 }
 0x1d4   :  { %v7065_v13 = vpop.eup %7064  ;;  %7070 = vrsqrt.f32 %v809_v42  ;;  %v714_v24 = vsub.f32 %v650_v62, %v682_v8  ;;  %v651_v41 = vmul.f32 0.0078125, %v567_v9 }
 0x1d5   :  { %v473_v30 = vpop.xlane.xlu0 %472  ;;  %v7983_v12 = vsel %vm972_vm5, %v940_v57, %v1004_v15  ;;  %v870_v54 = vmul.f32 %v7065_v13, %v774_v1  ;;  %vm973_vm6 = vcmp.gt.f32.partialorder %v941_v58, 0.0  ;;  %v1005_v37 = vmul.f32 0.01, %v941_v58 }
 0x1d6   :  { %v7067_v4 = vpop.eup %7066  ;;  %v746_v39 = vmax.f32 %v714_v24, 0.0  ;;  %v715_v53 = vsub.f32 %v651_v41, %v683_v5  ;;  %v7985_v31 = vmul.f32 0.0078125, %v473_v30  ;;  %6209 = vmatprep.mubr.f32.mxu1 %v7983_v12  ;;  %v776_v1 = vsub.f32 %v7721_v18, %v7942_v35 }
 0x1d7   :  { %v475_v34 = vpop.xlane.xlu1 %474  ;;  %v906_v45 = vmul.f32 %v7913_v17, %v870_v54  ;;  %v871_v47 = vmul.f32 %v7067_v4, %v775_v25  ;;  %v7991_v55 = vsel %vm973_vm6, %v941_v58, %v1005_v37  ;;  %v777_v25 = vsub.f32 %v7738_v27, %v7948_v50 }
 0x1d8   :  { %v810_v48 = vadd.f32 1e-05, %v746_v39  ;;  %v747_v51 = vmax.f32 %v715_v53, 0.0  ;;  %v7989_v11 = vmul.f32 0.0078125, %v475_v34  ;;  %v684_v8 = vmul.f32 %v7985_v31, %v7985_v31  ;;  %6210 = vmatmul.mubr.f32.gmra.mrb[4].mxu1 %v7991_v55 }
 0x1d9   :  { %v569_v38 = vpop.xlane.xlu0 %568  ;;  %v942_v57 = vadd.f32 %v7920_v28, %v906_v45  ;;  %v907_v59 = vmul.f32 %v7913_v17, %v871_v47 }
 0x1da   :  { %7072 = vrsqrt.f32 %v810_v48  ;;  %v811_v42 = vadd.f32 1e-05, %v747_v51  ;;  %v652_v62 = vmul.f32 0.0078125, %v569_v38  ;;  %v685_v5 = vmul.f32 %v7989_v11, %v7989_v11 }
 0x1db   :  { %v571_v9 = vpop.xlane.xlu1 %570  ;;  %vm974_vm7 = vcmp.gt.f32.partialorder %v942_v57, 0.0  ;;  %v1006_v15 = vmul.f32 0.01, %v942_v57  ;;  %v943_v58 = vadd.f32 %v7920_v28, %v907_v59 }
 0x1dc   :  { %v7069_v13 = vpop.eup %7068  ;;  %7074 = vrsqrt.f32 %v811_v42  ;;  %v716_v24 = vsub.f32 %v652_v62, %v684_v8  ;;  %v653_v41 = vmul.f32 0.0078125, %v571_v9 }
 0x1dd   :  { %v477_v30 = vpop.xlane.xlu0 %476  ;;  %v8005_v54 = vsel %vm974_vm7, %v942_v57, %v1006_v15  ;;  %v872_v4 = vmul.f32 %v7069_v13, %v776_v1  ;;  %vm975_vm8 = vcmp.gt.f32.partialorder %v943_v58, 0.0  ;;  %v1007_v37 = vmul.f32 0.01, %v943_v58 }
 0x1de   :  { %v7071_v18 = vpop.eup %7070  ;;  %v748_v35 = vmax.f32 %v716_v24, 0.0  ;;  %v717_v39 = vsub.f32 %v653_v41, %v685_v5  ;;  %v8007_v53 = vmul.f32 0.0078125, %v477_v30  ;;  %6212 = vmatprep.mubr.f32.mxu1 %v8005_v54  ;;  %v778_v1 = vsub.f32 %v7757_v36, %v7963_v33 }
 0x1df   :  { %v479_v34 = vpop.xlane.xlu1 %478  ;;  %v908_v45 = vmul.f32 %v7913_v17, %v872_v4  ;;  %v873_v47 = vmul.f32 %v7071_v18, %v777_v25  ;;  %v8013_v50 = vsel %vm975_vm8, %v943_v58, %v1007_v37  ;;  %v779_v25 = vsub.f32 %v7775_v49, %v7967_v61 }
 0x1e0   :  { %v812_v48 = vadd.f32 1e-05, %v748_v35  ;;  %v749_v51 = vmax.f32 %v717_v39, 0.0  ;;  %v8011_v27 = vmul.f32 0.0078125, %v479_v34  ;;  %v686_v8 = vmul.f32 %v8007_v53, %v8007_v53  ;;  %6213 = vmatmul.mubr.f32.gmra.mrb[6].mxu1 %v8013_v50 }
 0x1e1   :  { %v573_v38 = vpop.xlane.xlu0 %572  ;;  %v944_v57 = vadd.f32 %v7920_v28, %v908_v45  ;;  %v909_v59 = vmul.f32 %v7913_v17, %v873_v47 }
 0x1e2   :  { %7076 = vrsqrt.f32 %v812_v48  ;;  %v813_v42 = vadd.f32 1e-05, %v749_v51  ;;  %v654_v62 = vmul.f32 0.0078125, %v573_v38  ;;  %v687_v5 = vmul.f32 %v8011_v27, %v8011_v27 }
 0x1e3   :  { %v575_v9 = vpop.xlane.xlu1 %574  ;;  %vm976_vm9 = vcmp.gt.f32.partialorder %v944_v57, 0.0  ;;  %v1008_v15 = vmul.f32 0.01, %v944_v57  ;;  %v945_v58 = vadd.f32 %v7920_v28, %v909_v59 }
 0x1e4   :  { %v7073_v13 = vpop.eup %7072  ;;  %7078 = vrsqrt.f32 %v813_v42  ;;  %v718_v24 = vsub.f32 %v654_v62, %v686_v8  ;;  %v655_v41 = vmul.f32 0.0078125, %v575_v9 }
 0x1e5   :  { %v481_v30 = vpop.xlane.xlu0 %480  ;;  %v8027_v4 = vsel %vm976_vm9, %v944_v57, %v1008_v15  ;;  %v874_v18 = vmul.f32 %v7073_v13, %v778_v1  ;;  %vm977_vm10 = vcmp.gt.f32.partialorder %v945_v58, 0.0  ;;  %v1009_v37 = vmul.f32 0.01, %v945_v58 }
 0x1e6   :  { %v7075_v36 = vpop.eup %7074  ;;  %v750_v33 = vmax.f32 %v718_v24, 0.0  ;;  %v719_v35 = vsub.f32 %v655_v41, %v687_v5  ;;  %v8029_v39 = vmul.f32 0.0078125, %v481_v30  ;;  %6215 = vmatprep.mubr.f32.mxu1 %v8027_v4  ;;  %v780_v1 = vsub.f32 %v7795_v60, %v7985_v31 }
 0x1e7   :  { %v483_v34 = vpop.xlane.xlu1 %482  ;;  %v910_v45 = vmul.f32 %v7913_v17, %v874_v18  ;;  %v875_v47 = vmul.f32 %v7075_v36, %v779_v25  ;;  %v8035_v61 = vsel %vm977_vm10, %v945_v58, %v1009_v37  ;;  %v781_v25 = vsub.f32 %v7807_v3, %v7989_v11 }
 0x1e8   :  { %v814_v48 = vadd.f32 1e-05, %v750_v33  ;;  %v751_v51 = vmax.f32 %v719_v35, 0.0  ;;  %v8033_v49 = vmul.f32 0.0078125, %v483_v34  ;;  %v688_v8 = vmul.f32 %v8029_v39, %v8029_v39  ;;  %6216 = vmatmul.mubr.f32.gmra.mrb[8].mxu1 %v8035_v61 }
 0x1e9   :  { %v577_v38 = vpop.xlane.xlu0 %576  ;;  %v946_v57 = vadd.f32 %v7920_v28, %v910_v45  ;;  %v911_v59 = vmul.f32 %v7913_v17, %v875_v47 }
 0x1ea   :  { %7080 = vrsqrt.f32 %v814_v48  ;;  %v815_v42 = vadd.f32 1e-05, %v751_v51  ;;  %v656_v62 = vmul.f32 0.0078125, %v577_v38  ;;  %v689_v5 = vmul.f32 %v8033_v49, %v8033_v49 }
 0x1eb   :  { %v579_v9 = vpop.xlane.xlu1 %578  ;;  %vm978_vm11 = vcmp.gt.f32.partialorder %v946_v57, 0.0  ;;  %v1010_v15 = vmul.f32 0.01, %v946_v57  ;;  %v947_v58 = vadd.f32 %v7920_v28, %v911_v59 }
 0x1ec   :  { %v7077_v13 = vpop.eup %7076  ;;  %7082 = vrsqrt.f32 %v815_v42  ;;  %v720_v24 = vsub.f32 %v656_v62, %v688_v8  ;;  %v657_v41 = vmul.f32 0.0078125, %v579_v9 }
 0x1ed   :  { %v485_v30 = vpop.xlane.xlu0 %484  ;;  %v8049_v18 = vsel %vm978_vm11, %v946_v57, %v1010_v15  ;;  %v876_v36 = vmul.f32 %v7077_v13, %v780_v1  ;;  %vm979_vm12 = vcmp.gt.f32.partialorder %v947_v58, 0.0  ;;  %v1011_v37 = vmul.f32 0.01, %v947_v58 }
 0x1ee   :  { %v7079_v60 = vpop.eup %7078  ;;  %v752_v31 = vmax.f32 %v720_v24, 0.0  ;;  %v721_v33 = vsub.f32 %v657_v41, %v689_v5  ;;  %v8051_v35 = vmul.f32 0.0078125, %v485_v30  ;;  %6218 = vmatprep.mubr.f32.mxu1 %v8049_v18  ;;  %v782_v1 = vsub.f32 %v7821_v6, %v8007_v53 }
 0x1ef   :  { %v487_v34 = vpop.xlane.xlu1 %486  ;;  %v912_v45 = vmul.f32 %v7913_v17, %v876_v36  ;;  %v877_v47 = vmul.f32 %v7079_v60, %v781_v25  ;;  %v8057_v11 = vsel %vm979_vm12, %v947_v58, %v1011_v37  ;;  %v783_v25 = vsub.f32 %v7833_v20, %v8011_v27 }
 0x1f0   :  { %v816_v48 = vadd.f32 1e-05, %v752_v31  ;;  %v753_v51 = vmax.f32 %v721_v33, 0.0  ;;  %v8055_v3 = vmul.f32 0.0078125, %v487_v34  ;;  %v690_v8 = vmul.f32 %v8051_v35, %v8051_v35  ;;  %6219 = vmatmul.mubr.f32.gmra.mrb[10].mxu1 %v8057_v11 }
 0x1f1   :  { %v581_v38 = vpop.xlane.xlu0 %580  ;;  %v948_v57 = vadd.f32 %v7920_v28, %v912_v45  ;;  %v913_v59 = vmul.f32 %v7913_v17, %v877_v47 }
 0x1f2   :  { %7084 = vrsqrt.f32 %v816_v48  ;;  %v817_v42 = vadd.f32 1e-05, %v753_v51  ;;  %v658_v62 = vmul.f32 0.0078125, %v581_v38  ;;  %v691_v5 = vmul.f32 %v8055_v3, %v8055_v3 }
 0x1f3   :  { %v583_v9 = vpop.xlane.xlu1 %582  ;;  %vm980_vm13 = vcmp.gt.f32.partialorder %v948_v57, 0.0  ;;  %v1012_v15 = vmul.f32 0.01, %v948_v57  ;;  %v949_v58 = vadd.f32 %v7920_v28, %v913_v59 }
 0x1f4   :  { %v7081_v13 = vpop.eup %7080  ;;  %7086 = vrsqrt.f32 %v817_v42  ;;  %v722_v24 = vsub.f32 %v658_v62, %v690_v8  ;;  %v659_v41 = vmul.f32 0.0078125, %v583_v9 }
 0x1f5   :  { %v489_v30 = vpop.xlane.xlu0 %488  ;;  %v8071_v36 = vsel %vm980_vm13, %v948_v57, %v1012_v15  ;;  %v878_v60 = vmul.f32 %v7081_v13, %v782_v1  ;;  %vm981_vm14 = vcmp.gt.f32.partialorder %v949_v58, 0.0  ;;  %v1013_v37 = vmul.f32 0.01, %v949_v58 }
 0x1f6   :  { %v7083_v6 = vpop.eup %7082  ;;  %v754_v53 = vmax.f32 %v722_v24, 0.0  ;;  %v723_v31 = vsub.f32 %v659_v41, %v691_v5  ;;  %v8073_v33 = vmul.f32 0.0078125, %v489_v30  ;;  %6221 = vmatprep.mubr.f32.mxu1 %v8071_v36  ;;  %v784_v1 = vsub.f32 %v7729_v23, %v8029_v39 }
 0x1f7   :  { %v491_v34 = vpop.xlane.xlu1 %490  ;;  %v914_v45 = vmul.f32 %v7913_v17, %v878_v60  ;;  %v879_v47 = vmul.f32 %v7083_v6, %v783_v25  ;;  %v8079_v27 = vsel %vm981_vm14, %v949_v58, %v1013_v37  ;;  %v785_v25 = vsub.f32 %v7726_v21, %v8033_v49 }
 0x1f8   :  { %v818_v48 = vadd.f32 1e-05, %v754_v53  ;;  %v755_v51 = vmax.f32 %v723_v31, 0.0  ;;  %v8077_v20 = vmul.f32 0.0078125, %v491_v34  ;;  %v692_v8 = vmul.f32 %v8073_v33, %v8073_v33  ;;  %6222 = vmatmul.mubr.f32.gmra.mrb[12].mxu1 %v8079_v27 }
 0x1f9   :  { %v585_v38 = vpop.xlane.xlu0 %584  ;;  %v950_v57 = vadd.f32 %v7920_v28, %v914_v45  ;;  %v915_v59 = vmul.f32 %v7913_v17, %v879_v47 }
 0x1fa   :  { %7088 = vrsqrt.f32 %v818_v48  ;;  %v819_v42 = vadd.f32 1e-05, %v755_v51  ;;  %v660_v62 = vmul.f32 0.0078125, %v585_v38  ;;  %v693_v5 = vmul.f32 %v8077_v20, %v8077_v20 }
 0x1fb   :  { %v587_v9 = vpop.xlane.xlu1 %586  ;;  %vm982_vm15 = vcmp.gt.f32.partialorder %v950_v57, 0.0  ;;  %v1014_v15 = vmul.f32 0.01, %v950_v57  ;;  %v951_v58 = vadd.f32 %v7920_v28, %v915_v59 }
 0x1fc   :  { %v7085_v13 = vpop.eup %7084  ;;  %7090 = vrsqrt.f32 %v819_v42  ;;  %v724_v24 = vsub.f32 %v660_v62, %v692_v8  ;;  %v661_v41 = vmul.f32 0.0078125, %v587_v9 }
 0x1fd   :  { %v493_v30 = vpop.xlane.xlu0 %492  ;;  %v8093_v60 = vsel %vm982_vm15, %v950_v57, %v1014_v15  ;;  %v880_v6 = vmul.f32 %v7085_v13, %v784_v1  ;;  %vm983_vm0 = vcmp.gt.f32.partialorder %v951_v58, 0.0  ;;  %v1015_v37 = vmul.f32 0.01, %v951_v58 }
 0x1fe   :  { %v7087_v23 = vpop.eup %7086  ;;  %v756_v39 = vmax.f32 %v724_v24, 0.0  ;;  %v725_v53 = vsub.f32 %v661_v41, %v693_v5  ;;  %v8095_v31 = vmul.f32 0.0078125, %v493_v30  ;;  %6224 = vmatprep.mubr.f32.mxu1 %v8093_v60  ;;  %v786_v1 = vsub.f32 %v7748_v32, %v8051_v35 }
 0x1ff   :  { %v495_v34 = vpop.xlane.xlu1 %494  ;;  %v916_v45 = vmul.f32 %v7913_v17, %v880_v6  ;;  %v881_v47 = vmul.f32 %v7087_v23, %v785_v25  ;;  %v8101_v49 = vsel %vm983_vm0, %v951_v58, %v1015_v37  ;;  %v787_v25 = vsub.f32 %v7742_v29, %v8055_v3 }
 0x200   :  { %v820_v48 = vadd.f32 1e-05, %v756_v39  ;;  %v757_v51 = vmax.f32 %v725_v53, 0.0  ;;  %v8099_v21 = vmul.f32 0.0078125, %v495_v34  ;;  %v694_v8 = vmul.f32 %v8095_v31, %v8095_v31  ;;  %6225 = vmatmul.mubr.f32.gmra.mrb[14].mxu1 %v8101_v49 }
 0x201   :  { %v589_v38 = vpop.xlane.xlu0 %588  ;;  %v952_v57 = vadd.f32 %v7920_v28, %v916_v45  ;;  %v917_v59 = vmul.f32 %v7913_v17, %v881_v47 }
 0x202   :  { %7092 = vrsqrt.f32 %v820_v48  ;;  %v821_v42 = vadd.f32 1e-05, %v757_v51  ;;  %v662_v62 = vmul.f32 0.0078125, %v589_v38  ;;  %v695_v5 = vmul.f32 %v8099_v21, %v8099_v21 }
 0x203   :  { %v591_v9 = vpop.xlane.xlu1 %590  ;;  %vm984_vm1 = vcmp.gt.f32.partialorder %v952_v57, 0.0  ;;  %v1016_v15 = vmul.f32 0.01, %v952_v57  ;;  %v953_v58 = vadd.f32 %v7920_v28, %v917_v59 }
 0x204   :  { %v7089_v13 = vpop.eup %7088  ;;  %7094 = vrsqrt.f32 %v821_v42  ;;  %v726_v24 = vsub.f32 %v662_v62, %v694_v8  ;;  %v663_v41 = vmul.f32 0.0078125, %v591_v9 }
 0x205   :  { %v497_v30 = vpop.xlane.xlu0 %496  ;;  %v8115_v6 = vsel %vm984_vm1, %v952_v57, %v1016_v15  ;;  %v882_v23 = vmul.f32 %v7089_v13, %v786_v1  ;;  %vm985_vm2 = vcmp.gt.f32.partialorder %v953_v58, 0.0  ;;  %v1017_v37 = vmul.f32 0.01, %v953_v58 }
 0x206   :  { %11350 = vst [vmem:[#allocation9_spill] sm:$0xff] %v8115_v6  ;;  %v7091_v32 = vpop.eup %7090  ;;  %v758_v35 = vmax.f32 %v726_v24, 0.0  ;;  %v727_v39 = vsub.f32 %v663_v41, %v695_v5  ;;  %v8117_v53 = vmul.f32 0.0078125, %v497_v30  ;;  %6227 = vmatprep.mubr.f32.mxu1 %v8115_v6  ;;  %v788_v1 = vsub.f32 %v7765_v44, %v8073_v33 }
 0x207   :  { %v499_v34 = vpop.xlane.xlu1 %498  ;;  %v918_v45 = vmul.f32 %v7913_v17, %v882_v23  ;;  %v883_v47 = vmul.f32 %v7091_v32, %v787_v25  ;;  %v8123_v3 = vsel %vm985_vm2, %v953_v58, %v1017_v37  ;;  %v789_v25 = vsub.f32 %v7762_v40, %v8077_v20 }
 0x208   :  { %v822_v48 = vadd.f32 1e-05, %v758_v35  ;;  %v759_v51 = vmax.f32 %v727_v39, 0.0  ;;  %v8121_v29 = vmul.f32 0.0078125, %v499_v34  ;;  %11351 = vst [vmem:[#allocation10_spill] sm:$0xff] %v8123_v3  ;;  %v696_v8 = vmul.f32 %v8117_v53, %v8117_v53  ;;  %6228 = vmatmul.mubr.f32.gmra.mrb[16].mxu1 %v8123_v3 }
 0x209   :  { %v593_v38 = vpop.xlane.xlu0 %592  ;;  %v954_v57 = vadd.f32 %v7920_v28, %v918_v45  ;;  %v919_v59 = vmul.f32 %v7913_v17, %v883_v47 }
 0x20a   :  { %7096 = vrsqrt.f32 %v822_v48  ;;  %v823_v42 = vadd.f32 1e-05, %v759_v51  ;;  %v664_v62 = vmul.f32 0.0078125, %v593_v38  ;;  %v697_v5 = vmul.f32 %v8121_v29, %v8121_v29 }
 0x20b   :  { %v595_v9 = vpop.xlane.xlu1 %594  ;;  %vm986_vm3 = vcmp.gt.f32.partialorder %v954_v57, 0.0  ;;  %v1018_v15 = vmul.f32 0.01, %v954_v57  ;;  %v955_v58 = vadd.f32 %v7920_v28, %v919_v59 }
 0x20c   :  { %v7093_v13 = vpop.eup %7092  ;;  %7098 = vrsqrt.f32 %v823_v42  ;;  %v728_v24 = vsub.f32 %v664_v62, %v696_v8  ;;  %v665_v41 = vmul.f32 0.0078125, %v595_v9 }
 0x20d   :  { %v501_v30 = vpop.xlane.xlu0 %500  ;;  %v8137_v23 = vsel %vm986_vm3, %v954_v57, %v1018_v15  ;;  %v884_v32 = vmul.f32 %v7093_v13, %v788_v1  ;;  %vm987_vm4 = vcmp.gt.f32.partialorder %v955_v58, 0.0  ;;  %v1019_v37 = vmul.f32 0.01, %v955_v58 }
 0x20e   :  { %11352 = vst [vmem:[#allocation11_spill] sm:$0xff] %v8137_v23  ;;  %v7095_v44 = vpop.eup %7094  ;;  %v760_v33 = vmax.f32 %v728_v24, 0.0  ;;  %v729_v35 = vsub.f32 %v665_v41, %v697_v5  ;;  %v8139_v39 = vmul.f32 0.0078125, %v501_v30  ;;  %6230 = vmatprep.mubr.f32.mxu1 %v8137_v23  ;;  %v790_v1 = vsub.f32 %v7785_v56, %v8095_v31 }
 0x20f   :  { %v503_v34 = vpop.xlane.xlu1 %502  ;;  %v920_v45 = vmul.f32 %v7913_v17, %v884_v32  ;;  %v885_v47 = vmul.f32 %v7095_v44, %v789_v25  ;;  %v8145_v20 = vsel %vm987_vm4, %v955_v58, %v1019_v37  ;;  %v791_v25 = vsub.f32 %v7779_v52, %v8099_v21 }
 0x210   :  { %v824_v48 = vadd.f32 1e-05, %v760_v33  ;;  %v761_v51 = vmax.f32 %v729_v35, 0.0  ;;  %v8143_v40 = vmul.f32 0.0078125, %v503_v34  ;;  %11353 = vst [vmem:[#allocation12_spill] sm:$0xff] %v8145_v20  ;;  %v698_v8 = vmul.f32 %v8139_v39, %v8139_v39  ;;  %6231 = vmatmul.mubr.f32.gmra.mrb[18].mxu1 %v8145_v20 }
 0x211   :  { %v597_v38 = vpop.xlane.xlu0 %596  ;;  %v956_v57 = vadd.f32 %v7920_v28, %v920_v45  ;;  %v921_v59 = vmul.f32 %v7913_v17, %v885_v47 }
 0x212   :  { %7100 = vrsqrt.f32 %v824_v48  ;;  %v825_v42 = vadd.f32 1e-05, %v761_v51  ;;  %v666_v62 = vmul.f32 0.0078125, %v597_v38  ;;  %v699_v5 = vmul.f32 %v8143_v40, %v8143_v40 }
 0x213   :  { %v599_v9 = vpop.xlane.xlu1 %598  ;;  %vm988_vm5 = vcmp.gt.f32.partialorder %v956_v57, 0.0  ;;  %v1020_v15 = vmul.f32 0.01, %v956_v57  ;;  %v957_v58 = vadd.f32 %v7920_v28, %v921_v59 }
 0x214   :  { %v7097_v13 = vpop.eup %7096  ;;  %7102 = vrsqrt.f32 %v825_v42  ;;  %v730_v24 = vsub.f32 %v666_v62, %v698_v8  ;;  %v667_v41 = vmul.f32 0.0078125, %v599_v9 }
 0x215   :  { %v505_v30 = vpop.xlane.xlu0 %504  ;;  %v8159_v32 = vsel %vm988_vm5, %v956_v57, %v1020_v15  ;;  %v886_v44 = vmul.f32 %v7097_v13, %v790_v1  ;;  %vm989_vm6 = vcmp.gt.f32.partialorder %v957_v58, 0.0  ;;  %v1021_v37 = vmul.f32 0.01, %v957_v58 }
 0x216   :  { %11354 = vst [vmem:[#allocation13_spill] sm:$0xff] %v8159_v32  ;;  %v7099_v56 = vpop.eup %7098  ;;  %v762_v31 = vmax.f32 %v730_v24, 0.0  ;;  %v731_v33 = vsub.f32 %v667_v41, %v699_v5  ;;  %v8161_v35 = vmul.f32 0.0078125, %v505_v30  ;;  %6233 = vmatprep.mubr.f32.mxu1 %v8159_v32  ;;  %v792_v1 = vsub.f32 %v7803_v2, %v8117_v53 }
 0x217   :  { %v507_v34 = vpop.xlane.xlu1 %506  ;;  %v922_v45 = vmul.f32 %v7913_v17, %v886_v44  ;;  %v887_v47 = vmul.f32 %v7099_v56, %v791_v25  ;;  %v8167_v21 = vsel %vm989_vm6, %v957_v58, %v1021_v37  ;;  %v793_v25 = vsub.f32 %v7800_v0, %v8121_v29 }
 0x218   :  { %v826_v48 = vadd.f32 1e-05, %v762_v31  ;;  %v763_v51 = vmax.f32 %v731_v33, 0.0  ;;  %v8165_v52 = vmul.f32 0.0078125, %v507_v34  ;;  %11355 = vst [vmem:[#allocation14_spill] sm:$0xff] %v8167_v21  ;;  %v700_v8 = vmul.f32 %v8161_v35, %v8161_v35  ;;  %6234 = vmatmul.mubr.f32.gmra.mrb[20].mxu1 %v8167_v21 }
 0x219   :  { %v601_v38 = vpop.xlane.xlu0 %600  ;;  %v958_v57 = vadd.f32 %v7920_v28, %v922_v45  ;;  %v923_v59 = vmul.f32 %v7913_v17, %v887_v47 }
 0x21a   :  { %7104 = vrsqrt.f32 %v826_v48  ;;  %v827_v42 = vadd.f32 1e-05, %v763_v51  ;;  %v668_v62 = vmul.f32 0.0078125, %v601_v38  ;;  %v701_v5 = vmul.f32 %v8165_v52, %v8165_v52 }
 0x21b   :  { %v603_v9 = vpop.xlane.xlu1 %602  ;;  %vm990_vm7 = vcmp.gt.f32.partialorder %v958_v57, 0.0  ;;  %v1022_v15 = vmul.f32 0.01, %v958_v57  ;;  %v959_v58 = vadd.f32 %v7920_v28, %v923_v59 }
 0x21c   :  { %v7101_v13 = vpop.eup %7100  ;;  %7106 = vrsqrt.f32 %v827_v42  ;;  %v732_v24 = vsub.f32 %v668_v62, %v700_v8  ;;  %v669_v41 = vmul.f32 0.0078125, %v603_v9 }
 0x21d   :  { %v509_v30 = vpop.xlane.xlu0 %508  ;;  %v8181_v44 = vsel %vm990_vm7, %v958_v57, %v1022_v15  ;;  %v888_v56 = vmul.f32 %v7101_v13, %v792_v1  ;;  %vm991_vm8 = vcmp.gt.f32.partialorder %v959_v58, 0.0  ;;  %v1023_v37 = vmul.f32 0.01, %v959_v58 }
 0x21e   :  { %11356 = vst [vmem:[#allocation15_spill] sm:$0xff] %v8181_v44  ;;  %v7103_v2 = vpop.eup %7102  ;;  %v764_v53 = vmax.f32 %v732_v24, 0.0  ;;  %v733_v31 = vsub.f32 %v669_v41, %v701_v5  ;;  %v8183_v33 = vmul.f32 0.0078125, %v509_v30  ;;  %6236 = vmatprep.mubr.f32.mxu1 %v8181_v44  ;;  %v794_v1 = vsub.f32 %v7817_v10, %v8139_v39 }
 0x21f   :  { %v511_v34 = vpop.xlane.xlu1 %510  ;;  %v924_v45 = vmul.f32 %v7913_v17, %v888_v56  ;;  %v889_v47 = vmul.f32 %v7103_v2, %v793_v25  ;;  %v8189_v29 = vsel %vm991_vm8, %v959_v58, %v1023_v37  ;;  %v795_v25 = vsub.f32 %v7811_v7, %v8143_v40 }
 0x220   :  { %v828_v48 = vadd.f32 1e-05, %v764_v53  ;;  %v765_v51 = vmax.f32 %v733_v31, 0.0  ;;  %v8187_v0 = vmul.f32 0.0078125, %v511_v34  ;;  %11357 = vst [vmem:[#allocation16_spill] sm:$0xff] %v8189_v29  ;;  %v702_v8 = vmul.f32 %v8183_v33, %v8183_v33  ;;  %6237 = vmatmul.mubr.f32.gmra.mrb[22].mxu1 %v8189_v29 }
 0x221   :  { %v605_v38 = vpop.xlane.xlu0 %604  ;;  %v960_v57 = vadd.f32 %v7920_v28, %v924_v45  ;;  %v925_v59 = vmul.f32 %v7913_v17, %v889_v47 }
 0x222   :  { %7108 = vrsqrt.f32 %v828_v48  ;;  %v829_v42 = vadd.f32 1e-05, %v765_v51  ;;  %v670_v62 = vmul.f32 0.0078125, %v605_v38  ;;  %v703_v5 = vmul.f32 %v8187_v0, %v8187_v0 }
 0x223   :  { %v607_v9 = vpop.xlane.xlu1 %606  ;;  %vm992_vm9 = vcmp.gt.f32.partialorder %v960_v57, 0.0  ;;  %v1024_v15 = vmul.f32 0.01, %v960_v57  ;;  %v961_v58 = vadd.f32 %v7920_v28, %v925_v59  ;;  %v796_v51 = vsub.f32 %v7829_v19, %v8161_v35 }
 0x224   :  { %v7105_v13 = vpop.eup %7104  ;;  %7110 = vrsqrt.f32 %v829_v42  ;;  %v734_v24 = vsub.f32 %v670_v62, %v702_v8  ;;  %v671_v41 = vmul.f32 0.0078125, %v607_v9  ;;  %v797_v42 = vsub.f32 %v7826_v16, %v8165_v52 }
 0x225   :  { %v8203_v30 = vsel %vm992_vm9, %v960_v57, %v1024_v15  ;;  %v890_v56 = vmul.f32 %v7105_v13, %v794_v1  ;;  %vm993_vm10 = vcmp.gt.f32.partialorder %v961_v58, 0.0  ;;  %v1025_v53 = vmul.f32 0.01, %v961_v58 }
 0x226   :  { %11358 = vst [vmem:[#allocation17_spill] sm:$0xff] %v8203_v30  ;;  %v7107_v2 = vpop.eup %7106  ;;  %v766_v10 = vmax.f32 %v734_v24, 0.0  ;;  %v735_v39 = vsub.f32 %v671_v41, %v703_v5  ;;  %6239 = vmatprep.mubr.f32.mxu1 %v8203_v30  ;;  %v798_v52 = vsub.f32 %v7843_v26, %v8183_v33  ;;  %v7308_v26 = vld [vmem:[%s11267_s7 + $0x4] ss:$0 sm:$0xff] }
 0x227   :  { %v926_v31 = vmul.f32 %v7913_v17, %v890_v56  ;;  %v891_v34 = vmul.f32 %v7107_v2, %v795_v25  ;;  %v8207_v47 = vsel %vm993_vm10, %v961_v58, %v1025_v53  ;;  %v799_v58 = vsub.f32 %v7837_v22, %v8187_v0  ;;  %v7309_v22 = vld [vmem:[%s11267_s7 + $0x7] ss:$0 sm:$0xff] }
 0x228   :  { %v830_v37 = vadd.f32 1e-05, %v766_v10  ;;  %v767_v45 = vmax.f32 %v735_v39, 0.0  ;;  %11359 = vst [vmem:[#allocation18_spill] sm:$0xff] %v8207_v47  ;;  %6240 = vmatmul.mubr.f32.gmra.mrb[24].mxu1 %v8207_v47 }
 0x229   :  { %v962_v7 = vadd.f32 %v7920_v28, %v926_v31  ;;  %v927_v40 = vmul.f32 %v7913_v17, %v891_v34 }
 0x22a   :  { %7112 = vrsqrt.f32 %v830_v37  ;;  %v831_v48 = vadd.f32 1e-05, %v767_v45 }
 0x22b   :  { %vm994_vm11 = vcmp.gt.f32.partialorder %v962_v7, 0.0  ;;  %v1026_v38 = vmul.f32 0.01, %v962_v7  ;;  %v963_v57 = vadd.f32 %v7920_v28, %v927_v40  ;;  %v1958_v40 = vld [vmem:[#allocation2 + $0x8] sm:$0xff] }
 0x22c   :  { %v7109_v59 = vpop.eup %7108  ;;  %7114 = vrsqrt.f32 %v831_v48 }
 0x22d   :  { %v8217_v8 = vsel %vm994_vm11, %v962_v7, %v1026_v38  ;;  %vm995_vm12 = vcmp.gt.f32.partialorder %v963_v57, 0.0  ;;  %v1027_v62 = vmul.f32 0.01, %v963_v57  ;;  %v892_v1 = vmul.f32 %v7109_v59, %v796_v51  ;;  %v1957_v7 = vld [vmem:[#allocation2] sm:$0xff]  ;;  %v1959_v51 = vld [vmem:[#allocation2 + $0x10] sm:$0xff]  ;;  %v1960_v38 = vld [vmem:[#allocation2 + $0x18] sm:$0xff] }
 0x22e   :  { %11360 = vst [vmem:[#allocation19_spill] sm:$0xff] %v8217_v8  ;;  %v7111_v5 = vpop.eup %7110  ;;  %6242 = vmatprep.mubr.f32.mxu1 %v8217_v8  ;;  %v6611_v48 = vpack.c.bf16 %v1958_v40, %v1957_v7  ;;  %v6615_v59 = vpack.c.bf16 %v1960_v38, %v1959_v51 }
 0x22f   :  { %v8220_v9 = vsel %vm995_vm12, %v963_v57, %v1027_v62  ;;  %v928_v19 = vmul.f32 %v7913_v17, %v892_v1  ;;  %v893_v35 = vmul.f32 %v7111_v5, %v797_v42  ;;  %v8252_v57 = vld [vmem:[%s11267_s7 + $0x1] ss:$0 sm:$0xff] }
 0x230   :  { %11361 = vst [vmem:[#allocation20_spill] sm:$0xff] %v8220_v9  ;;  %6243 = vmatmul.mubr.f32.gmra.mrb[26].mxu1 %v8220_v9  ;;  %6612 = vmatprep.subr.bf16.mxu0 %v6611_v48 }
 0x231   :  { %v964_v15 = vadd.f32 %v7920_v28, %v928_v19  ;;  %v929_v16 = vmul.f32 %v7913_v17, %v893_v35  ;;  %6614 = vmatpush3.bf16.msra.mxu0 %v6611_v48  ;;  %v1961_v19 = vld [vmem:[#allocation2 + $0x20] sm:$0xff]  ;;  %v1962_v35 = vld [vmem:[#allocation2 + $0x28] sm:$0xff] }
 0x232   :  { %6616 = vmatprep.subr.bf16.mxu0 %v6615_v59 }
 0x233   :  { %vm996_vm13 = vcmp.gt.f32.partialorder %v964_v15, 0.0  ;;  %v1028_v13 = vmul.f32 0.01, %v964_v15  ;;  %v965_v24 = vadd.f32 %v7920_v28, %v929_v16  ;;  %v6619_v16 = vpack.c.bf16 %v1962_v35, %v1961_v19 }
 0x234   :  { %v7113_v41 = vpop.eup %7112 }
 0x235   :  { %v8231_v25 = vsel %vm996_vm13, %v964_v15, %v1028_v13  ;;  %vm997_vm14 = vcmp.gt.f32.partialorder %v965_v24, 0.0  ;;  %v1029_v56 = vmul.f32 0.01, %v965_v24  ;;  %v894_v2 = vmul.f32 %v7113_v41, %v798_v52  ;;  %6618 = vmatpush3.bf16.msra.mxu0 %v6615_v59  ;;  %v1963_v15 = vld [vmem:[#allocation2 + $0x30] sm:$0xff]  ;;  %v1964_v52 = vld [vmem:[#allocation2 + $0x38] sm:$0xff] }
 0x236   :  { %11362 = vst [vmem:[#allocation21_spill] sm:$0xff] %v8231_v25  ;;  %v7115_v10 = vpop.eup %7114  ;;  %6245 = vmatprep.mubr.f32.mxu1 %v8231_v25  ;;  %v6623_v13 = vpack.c.bf16 %v1964_v52, %v1963_v15  ;;  %6620 = vmatprep.subr.bf16.mxu0 %v6619_v16 }
 0x237   :  { %v8234_v17 = vsel %vm997_vm14, %v965_v24, %v1029_v56  ;;  %v930_v33 = vmul.f32 %v7308_v26, %v894_v2  ;;  %v895_v28 = vmul.f32 %v7115_v10, %v799_v58 }
 0x238   :  { %11363 = vst [vmem:[#allocation22_spill] sm:$0xff] %v8234_v17  ;;  %6246 = vmatmul.mubr.f32.gmra.mrb[28].mxu1 %v8234_v17 }
 0x239   :  { %v966_v0 = vadd.f32 %v7309_v22, %v930_v33  ;;  %v931_v39 = vmul.f32 %v7308_v26, %v895_v28  ;;  %6622 = vmatpush3.bf16.msra.mxu0 %v6619_v16 }
 0x23a   :  { %6624 = vmatprep.subr.bf16.mxu0 %v6623_v13 }
 0x23b   :  { %vm998_vm15 = vcmp.gt.f32.partialorder %v966_v0, 0.0  ;;  %v1030_v53 = vmul.f32 0.01, %v966_v0  ;;  %v967_v31 = vadd.f32 %v7309_v22, %v931_v39 }
 0x23d   :  { %v8243_v34 = vsel %vm998_vm15, %v966_v0, %v1030_v53  ;;  %vm999_vm0 = vcmp.gt.f32.partialorder %v967_v31, 0.0  ;;  %v1031_v37 = vmul.f32 0.01, %v967_v31  ;;  %6626 = vmatpush3.bf16.msra.mxu0 %v6623_v13  ;;  %v1965_v53 = vld [vmem:[#allocation2 + $0x40] sm:$0xff] }
 0x23e   :  { %11364 = vst [vmem:[#allocation23_spill] sm:$0xff] %v8243_v34  ;;  %6248 = vmatprep.mubr.f32.mxu1 %v8243_v34 }
 0x23f   :  { %v8246_v45 = vsel %vm999_vm0, %v967_v31, %v1031_v37  ;;  %v1966_v31 = vld [vmem:[#allocation2 + $0x48] sm:$0xff] }
 0x240   :  { %11365 = vst [vmem:[#allocation24_spill] sm:$0xff] %v8246_v45  ;;  %6249 = vmatmul.mubr.f32.gmra.mrb[30].mxu1 %v8246_v45  ;;  %v6627_v37 = vpack.c.bf16 %v1966_v31, %v1965_v53 }
 0x242   :  { %6628 = vmatprep.subr.bf16.mxu0 %v6627_v37 }
 0x243   :  { %6630 = vmatpush3.bf16.msra.mxu0 %v6627_v37 }
 0x29b   :  { %v6205_v42 = vpop.f32.mrb[0].mxu1 }
 0x29c   :  { %v8255_v62 = vadd.f32 %v6205_v42, %v8252_v57  ;;  %v1150_v1 = vpop.f32.mrb[1].mxu1 }
 0x29d   :  { %v8258_v5 = vadd.f32 %v8252_v57, %v1150_v1 }
 0x29e   :  { %1311 = vadd.xlane.f32.xlu1 %v8255_v62  ;;  %v1374_v24 = vmul.f32 %v8255_v62, %v8255_v62 }
 0x29f   :  { %1309 = vadd.xlane.f32.xlu0 %v8258_v5  ;;  %v1373_v41 = vmul.f32 %v8258_v5, %v8258_v5 }
 0x2a2   :  { %1407 = vadd.xlane.f32.xlu1 %v1374_v24  ;;  %v1967_v24 = vld [vmem:[#allocation2 + $0x50] sm:$0xff] }
 0x2a3   :  { %1405 = vadd.xlane.f32.xlu0 %v1373_v41  ;;  %v6208_v58 = vpop.f32.mrb[2].mxu1  ;;  %v1968_v41 = vld [vmem:[#allocation2 + $0x58] sm:$0xff] }
 0x2a4   :  { %v8267_v56 = vadd.f32 %v6208_v58, %v8252_v57  ;;  %v1160_v2 = vpop.f32.mrb[3].mxu1  ;;  %v6631_v58 = vpack.c.bf16 %v1968_v41, %v1967_v24 }
 0x2a5   :  { %v8270_v10 = vadd.f32 %v8252_v57, %v1160_v2 }
 0x2a6   :  { %1315 = vadd.xlane.f32.xlu1 %v8267_v56  ;;  %v1376_v26 = vmul.f32 %v8267_v56, %v8267_v56  ;;  %6632 = vmatprep.subr.bf16.mxu0 %v6631_v58 }
 0x2a7   :  { %1313 = vadd.xlane.f32.xlu0 %v8270_v10  ;;  %v1375_v33 = vmul.f32 %v8270_v10, %v8270_v10  ;;  %6634 = vmatpush3.bf16.msra.mxu0 %v6631_v58 }
 0x2aa   :  { %1411 = vadd.xlane.f32.xlu1 %v1376_v26  ;;  %v1969_v26 = vld [vmem:[#allocation2 + $0x60] sm:$0xff] }
 0x2ab   :  { %1409 = vadd.xlane.f32.xlu0 %v1375_v33  ;;  %v6211_v28 = vpop.f32.mrb[4].mxu1  ;;  %v1970_v33 = vld [vmem:[#allocation2 + $0x68] sm:$0xff] }
 0x2ac   :  { %v8279_v22 = vadd.f32 %v6211_v28, %v8252_v57  ;;  %v1170_v0 = vpop.f32.mrb[5].mxu1  ;;  %v6635_v53 = vpack.c.bf16 %v1970_v33, %v1969_v26 }
 0x2ad   :  { %v8282_v39 = vadd.f32 %v8252_v57, %v1170_v0 }
 0x2ae   :  { %1319 = vadd.xlane.f32.xlu1 %v8279_v22  ;;  %v1378_v7 = vmul.f32 %v8279_v22, %v8279_v22  ;;  %6636 = vmatprep.subr.bf16.mxu0 %v6635_v53 }
 0x2af   :  { %1317 = vadd.xlane.f32.xlu0 %v8282_v39  ;;  %v1377_v40 = vmul.f32 %v8282_v39, %v8282_v39  ;;  %6638 = vmatpush3.bf16.msra.mxu0 %v6635_v53 }
 0x2b2   :  { %1415 = vadd.xlane.f32.xlu1 %v1378_v7 }
 0x2b3   :  { %1413 = vadd.xlane.f32.xlu0 %v1377_v40  ;;  %v6214_v48 = vpop.f32.mrb[6].mxu1  ;;  %v1971_v40 = vld [vmem:[#allocation2 + $0x70] sm:$0xff] }
 0x2b4   :  { %v8291_v51 = vadd.f32 %v6214_v48, %v8252_v57  ;;  %v1180_v38 = vpop.f32.mrb[7].mxu1  ;;  %v1972_v48 = vld [vmem:[#allocation2 + $0x78] sm:$0xff] }
 0x2b5   :  { %v8294_v59 = vadd.f32 %v8252_v57, %v1180_v38  ;;  %v6639_v38 = vpack.c.bf16 %v1972_v48, %v1971_v40 }
 0x2b6   :  { %1323 = vadd.xlane.f32.xlu1 %v8291_v51  ;;  %v1380_v42 = vmul.f32 %v8291_v51, %v8291_v51 }
 0x2b7   :  { %1321 = vadd.xlane.f32.xlu0 %v8294_v59  ;;  %v1379_v1 = vmul.f32 %v8294_v59, %v8294_v59  ;;  %6640 = vmatprep.subr.bf16.mxu0 %v6639_v38 }
 0x2b8   :  { %6642 = vmatpush3.bf16.msra.mxu0 %v6639_v38 }
 0x2ba   :  { %1419 = vadd.xlane.f32.xlu1 %v1380_v42 }
 0x2bb   :  { %1417 = vadd.xlane.f32.xlu0 %v1379_v1  ;;  %v6217_v19 = vpop.f32.mrb[8].mxu1 }
 0x2bc   :  { %v8303_v35 = vadd.f32 %v6217_v19, %v8252_v57  ;;  %v1190_v15 = vpop.f32.mrb[9].mxu1 }
 0x2bd   :  { %v8306_v16 = vadd.f32 %v8252_v57, %v1190_v15 }
 0x2be   :  { %1327 = vadd.xlane.f32.xlu1 %v8303_v35  ;;  %v1382_v52 = vmul.f32 %v8303_v35, %v8303_v35 }
 0x2bf   :  { %1325 = vadd.xlane.f32.xlu0 %v8306_v16  ;;  %v1381_v13 = vmul.f32 %v8306_v16, %v8306_v16 }
 0x2c2   :  { %1423 = vadd.xlane.f32.xlu1 %v1382_v52 }
 0x2c3   :  { %1421 = vadd.xlane.f32.xlu0 %v1381_v13  ;;  %v6220_v2 = vpop.f32.mrb[10].mxu1 }
 0x2c4   :  { %v8315_v28 = vadd.f32 %v6220_v2, %v8252_v57  ;;  %v1200_v0 = vpop.f32.mrb[11].mxu1 }
 0x2c5   :  { %v8318_v31 = vadd.f32 %v8252_v57, %v1200_v0 }
 0x2c6   :  { %1331 = vadd.xlane.f32.xlu1 %v8315_v28  ;;  %v1384_v37 = vmul.f32 %v8315_v28, %v8315_v28 }
 0x2c7   :  { %1329 = vadd.xlane.f32.xlu0 %v8318_v31  ;;  %v1383_v7 = vmul.f32 %v8318_v31, %v8318_v31 }
 0x2ca   :  { %1427 = vadd.xlane.f32.xlu1 %v1384_v37 }
 0x2cb   :  { %1425 = vadd.xlane.f32.xlu0 %v1383_v7  ;;  %v6223_v42 = vpop.f32.mrb[12].mxu1 }
 0x2cc   :  { %v8327_v1 = vadd.f32 %v6223_v42, %v8252_v57  ;;  %v1210_v19 = vpop.f32.mrb[13].mxu1 }
 0x2cd   :  { %v8330_v15 = vadd.f32 %v8252_v57, %v1210_v19 }
 0x2ce   :  { %1335 = vadd.xlane.f32.xlu1 %v8327_v1  ;;  %v1386_v52 = vmul.f32 %v8327_v1, %v8327_v1 }
 0x2cf   :  { %1333 = vadd.xlane.f32.xlu0 %v8330_v15  ;;  %v1385_v13 = vmul.f32 %v8330_v15, %v8330_v15 }
 0x2d2   :  { %1431 = vadd.xlane.f32.xlu1 %v1386_v52 }
 0x2d3   :  { %1429 = vadd.xlane.f32.xlu0 %v1385_v13  ;;  %v6226_v24 = vpop.f32.mrb[14].mxu1 }
 0x2d4   :  { %v8339_v41 = vadd.f32 %v6226_v24, %v8252_v57  ;;  %v1220_v58 = vpop.f32.mrb[15].mxu1 }
 0x2d5   :  { %v8342_v2 = vadd.f32 %v8252_v57, %v1220_v58 }
 0x2d6   :  { %1339 = vadd.xlane.f32.xlu1 %v8339_v41  ;;  %v1388_v26 = vmul.f32 %v8339_v41, %v8339_v41 }
 0x2d7   :  { %1337 = vadd.xlane.f32.xlu0 %v8342_v2  ;;  %v1387_v33 = vmul.f32 %v8342_v2, %v8342_v2 }
 0x2da   :  { %1435 = vadd.xlane.f32.xlu1 %v1388_v26 }
 0x2db   :  { %1433 = vadd.xlane.f32.xlu0 %v1387_v33  ;;  %v6229_v0 = vpop.f32.mrb[16].mxu1 }
 0x2dc   :  { %v8351_v53 = vadd.f32 %v6229_v0, %v8252_v57  ;;  %v1230_v37 = vpop.f32.mrb[17].mxu1 }
 0x2dd   :  { %v8354_v7 = vadd.f32 %v8252_v57, %v1230_v37 }
 0x2de   :  { %1343 = vadd.xlane.f32.xlu1 %v8351_v53  ;;  %v1390_v40 = vmul.f32 %v8351_v53, %v8351_v53 }
 0x2df   :  { %1341 = vadd.xlane.f32.xlu0 %v8354_v7  ;;  %v1389_v48 = vmul.f32 %v8354_v7, %v8354_v7 }
 0x2e2   :  { %1439 = vadd.xlane.f32.xlu1 %v1390_v40 }
 0x2e3   :  { %1437 = vadd.xlane.f32.xlu0 %v1389_v48  ;;  %v6232_v38 = vpop.f32.mrb[18].mxu1 }
 0x2e4   :  { %v8363_v42 = vadd.f32 %v6232_v38, %v8252_v57  ;;  %v1240_v19 = vpop.f32.mrb[19].mxu1 }
 0x2e5   :  { %v8366_v52 = vadd.f32 %v8252_v57, %v1240_v19 }
 0x2e6   :  { %1347 = vadd.xlane.f32.xlu1 %v8363_v42  ;;  %v1392_v13 = vmul.f32 %v8363_v42, %v8363_v42 }
 0x2e7   :  { %1345 = vadd.xlane.f32.xlu0 %v8366_v52  ;;  %v1391_v24 = vmul.f32 %v8366_v52, %v8366_v52 }
 0x2ea   :  { %1443 = vadd.xlane.f32.xlu1 %v1392_v13 }
 0x2eb   :  { %1441 = vadd.xlane.f32.xlu0 %v1391_v24  ;;  %v6235_v58 = vpop.f32.mrb[20].mxu1 }
 0x2ec   :  { %v8375_v26 = vadd.f32 %v6235_v58, %v8252_v57  ;;  %v1250_v33 = vpop.f32.mrb[21].mxu1 }
 0x2ed   :  { %v8378_v0 = vadd.f32 %v8252_v57, %v1250_v33 }
 0x2ee   :  { %11366 = vst [vmem:[#allocation25_spill] sm:$0xff] %v8375_v26  ;;  %1351 = vadd.xlane.f32.xlu1 %v8375_v26  ;;  %v1394_v37 = vmul.f32 %v8375_v26, %v8375_v26 }
 0x2ef   :  { %11367 = vst [vmem:[#allocation26_spill] sm:$0xff] %v8378_v0  ;;  %1349 = vadd.xlane.f32.xlu0 %v8378_v0  ;;  %v1393_v40 = vmul.f32 %v8378_v0, %v8378_v0 }
 0x2f2   :  { %1447 = vadd.xlane.f32.xlu1 %v1394_v37 }
 0x2f3   :  { %1445 = vadd.xlane.f32.xlu0 %v1393_v40  ;;  %v6238_v48 = vpop.f32.mrb[22].mxu1 }
 0x2f4   :  { %v8387_v38 = vadd.f32 %v6238_v48, %v8252_v57  ;;  %v1260_v19 = vpop.f32.mrb[23].mxu1 }
 0x2f5   :  { %v8390_v13 = vadd.f32 %v8252_v57, %v1260_v19 }
 0x2f6   :  { %11368 = vst [vmem:[#allocation27_spill] sm:$0xff] %v8387_v38  ;;  %1355 = vadd.xlane.f32.xlu1 %v8387_v38  ;;  %v1396_v24 = vmul.f32 %v8387_v38, %v8387_v38 }
 0x2f7   :  { %11369 = vst [vmem:[#allocation28_spill] sm:$0xff] %v8390_v13  ;;  %1353 = vadd.xlane.f32.xlu0 %v8390_v13  ;;  %v1395_v58 = vmul.f32 %v8390_v13, %v8390_v13 }
 0x2fa   :  { %1451 = vadd.xlane.f32.xlu1 %v1396_v24 }
 0x2fb   :  { %v6241_v33 = vpop.f32.mrb[24].mxu1  ;;  %1449 = vadd.xlane.f32.xlu0 %v1395_v58 }
 0x2fc   :  { %v8399_v37 = vadd.f32 %v6241_v33, %v8252_v57  ;;  %v1270_v40 = vpop.f32.mrb[25].mxu1 }
 0x2fd   :  { %v8402_v48 = vadd.f32 %v8252_v57, %v1270_v40 }
 0x2fe   :  { %11370 = vst [vmem:[#allocation29_spill] sm:$0xff] %v8399_v37  ;;  %1359 = vadd.xlane.f32.xlu1 %v8399_v37  ;;  %v1398_v19 = vmul.f32 %v8399_v37, %v8399_v37 }
 0x2ff   :  { %11371 = vst [vmem:[#allocation30_spill] sm:$0xff] %v8402_v48  ;;  %1357 = vadd.xlane.f32.xlu0 %v8402_v48  ;;  %v1397_v45 = vmul.f32 %v8402_v48, %v8402_v48 }
 0x302   :  { %1455 = vadd.xlane.f32.xlu1 %v1398_v19 }
 0x303   :  { %v6244_v24 = vpop.f32.mrb[26].mxu1  ;;  %1453 = vadd.xlane.f32.xlu0 %v1397_v45 }
 0x304   :  { %v8411_v58 = vadd.f32 %v6244_v24, %v8252_v57  ;;  %v1280_v33 = vpop.f32.mrb[27].mxu1 }
 0x305   :  { %v8414_v40 = vadd.f32 %v8252_v57, %v1280_v33 }
 0x306   :  { %11372 = vst [vmem:[#allocation31_spill] sm:$0xff] %v8411_v58  ;;  %1363 = vadd.xlane.f32.xlu1 %v8411_v58  ;;  %v1400_v34 = vmul.f32 %v8411_v58, %v8411_v58 }
 0x307   :  { %11373 = vst [vmem:[#allocation32_spill] sm:$0xff] %v8414_v40  ;;  %1361 = vadd.xlane.f32.xlu0 %v8414_v40  ;;  %v1399_v17 = vmul.f32 %v8414_v40, %v8414_v40 }
 0x30a   :  { %1459 = vadd.xlane.f32.xlu1 %v1400_v34 }
 0x30b   :  { %v6247_v25 = vpop.f32.mrb[28].mxu1  ;;  %1457 = vadd.xlane.f32.xlu0 %v1399_v17 }
 0x30c   :  { %v8423_v19 = vadd.f32 %v6247_v25, %v8252_v57  ;;  %v1290_v24 = vpop.f32.mrb[29].mxu1 }
 0x30d   :  { %v8426_v45 = vadd.f32 %v8252_v57, %v1290_v24 }
 0x30e   :  { %11374 = vst [vmem:[#allocation33_spill] sm:$0xff] %v8423_v19  ;;  %1367 = vadd.xlane.f32.xlu1 %v8423_v19  ;;  %v1402_v33 = vmul.f32 %v8423_v19, %v8423_v19 }
 0x30f   :  { %11375 = vst [vmem:[#allocation34_spill] sm:$0xff] %v8426_v45  ;;  %1365 = vadd.xlane.f32.xlu0 %v8426_v45  ;;  %v1401_v9 = vmul.f32 %v8426_v45, %v8426_v45 }
 0x312   :  { %1463 = vadd.xlane.f32.xlu1 %v1402_v33 }
 0x313   :  { %v6250_v8 = vpop.f32.mrb[30].mxu1  ;;  %1461 = vadd.xlane.f32.xlu0 %v1401_v9 }
 0x314   :  { %v8435_v25 = vadd.f32 %v6250_v8, %v8252_v57  ;;  %v1300_v34 = vpop.f32.mrb[31].mxu1 }
 0x315   :  { %v8438_v17 = vadd.f32 %v8252_v57, %v1300_v34 }
 0x316   :  { %11376 = vst [vmem:[#allocation35_spill] sm:$0xff] %v8435_v25  ;;  %1371 = vadd.xlane.f32.xlu1 %v8435_v25  ;;  %v1404_v24 = vmul.f32 %v8435_v25, %v8435_v25 }
 0x317   :  { %11377 = vst [vmem:[#allocation36_spill] sm:$0xff] %v8438_v17  ;;  %1369 = vadd.xlane.f32.xlu0 %v8438_v17  ;;  %v1403_v45 = vmul.f32 %v8438_v17, %v8438_v17 }
 0x31a   :  { %1467 = vadd.xlane.f32.xlu1 %v1404_v24 }
 0x31b   :  { %1465 = vadd.xlane.f32.xlu0 %v1403_v45 }
 0x32b   :  { %v1312_v33 = vpop.xlane.xlu1 %1311 }
 0x32c   :  { %v1470_v8 = vmul.f32 0.0078125, %v1312_v33  ;;  %v1310_v47 = vpop.xlane.xlu0 %1309 }
 0x32d   :  { %v1469_v19 = vmul.f32 0.0078125, %v1310_v47 }
 0x32e   :  { %v1534_v30 = vmul.f32 %v1470_v8, %v1470_v8 }
 0x32f   :  { %v1408_v9 = vpop.xlane.xlu1 %1407  ;;  %v1533_v29 = vmul.f32 %v1469_v19, %v1469_v19  ;;  %v1629_v38 = vsub.f32 %v8258_v5, %v1469_v19  ;;  %v8472_v5 = vld [vmem:[%s11267_s7 + $0x8] ss:$0 sm:$0xff] }
 0x330   :  { %v1502_v57 = vmul.f32 0.0078125, %v1408_v9  ;;  %v1406_v34 = vpop.xlane.xlu0 %1405 }
 0x331   :  { %v1501_v40 = vmul.f32 0.0078125, %v1406_v34 }
 0x332   :  { %v1566_v58 = vsub.f32 %v1502_v57, %v1534_v30 }
 0x333   :  { %v1565_v44 = vsub.f32 %v1501_v40, %v1533_v29  ;;  %v1316_v25 = vpop.xlane.xlu1 %1315 }
 0x334   :  { %v1598_v21 = vmax.f32 %v1566_v58, 0.0  ;;  %v8446_v32 = vmul.f32 0.0078125, %v1316_v25  ;;  %v1314_v24 = vpop.xlane.xlu0 %1313 }
 0x335   :  { %v1597_v48 = vmax.f32 %v1565_v44, 0.0  ;;  %v8448_v17 = vmul.f32 0.0078125, %v1314_v24 }
 0x336   :  { %v1662_v37 = vadd.f32 1e-05, %v1598_v21  ;;  %v1536_v33 = vmul.f32 %v8446_v32, %v8446_v32 }
 0x337   :  { %v1661_v45 = vadd.f32 1e-05, %v1597_v48  ;;  %v1412_v47 = vpop.xlane.xlu1 %1411  ;;  %v1535_v29 = vmul.f32 %v8448_v17, %v8448_v17 }
 0x338   :  { %7116 = vrsqrt.f32 %v1662_v37  ;;  %v1504_v9 = vmul.f32 0.0078125, %v1412_v47  ;;  %v1410_v34 = vpop.xlane.xlu0 %1409 }
 0x339   :  { %7118 = vrsqrt.f32 %v1661_v45  ;;  %v1503_v44 = vmul.f32 0.0078125, %v1410_v34  ;;  %v1630_v45 = vsub.f32 %v8255_v62, %v1470_v8 }
 0x33a   :  { %v1568_v30 = vsub.f32 %v1504_v9, %v1536_v33  ;;  %v8463_v33 = vld [vmem:[%s11267_s7 + $0x5] ss:$0 sm:$0xff] }
 0x33b   :  { %v1567_v21 = vsub.f32 %v1503_v44, %v1535_v29  ;;  %v1320_v58 = vpop.xlane.xlu1 %1319 }
 0x33c   :  { %v1600_v40 = vmax.f32 %v1568_v30, 0.0  ;;  %v8454_v25 = vmul.f32 0.0078125, %v1320_v58  ;;  %v1318_v48 = vpop.xlane.xlu0 %1317 }
 0x33d   :  { %v1599_v57 = vmax.f32 %v1567_v21, 0.0  ;;  %v8456_v37 = vmul.f32 0.0078125, %v1318_v48 }
 0x33e   :  { %v1664_v24 = vadd.f32 1e-05, %v1600_v40  ;;  %v1538_v9 = vmul.f32 %v8454_v25, %v8454_v25 }
 0x33f   :  { %v1663_v20 = vadd.f32 1e-05, %v1599_v57  ;;  %v1416_v47 = vpop.xlane.xlu1 %1415  ;;  %v1537_v62 = vmul.f32 %v8456_v37, %v8456_v37 }
 0x340   :  { %7120 = vrsqrt.f32 %v1664_v24  ;;  %v1506_v34 = vmul.f32 0.0078125, %v1416_v47  ;;  %v1414_v29 = vpop.xlane.xlu0 %1413 }
 0x341   :  { %7122 = vrsqrt.f32 %v1663_v20  ;;  %v1505_v8 = vmul.f32 0.0078125, %v1414_v29 }
 0x342   :  { %v7117_v13 = vpop.eup %7116  ;;  %v1570_v21 = vsub.f32 %v1506_v34, %v1538_v9 }
 0x343   :  { %v7119_v44 = vpop.eup %7118  ;;  %v1726_v30 = vmul.f32 %v7117_v13, %v1630_v45  ;;  %v1569_v40 = vsub.f32 %v1505_v8, %v1537_v62  ;;  %v1324_v48 = vpop.xlane.xlu1 %1323 }
 0x344   :  { %v1725_v19 = vmul.f32 %v7119_v44, %v1629_v38  ;;  %v1602_v57 = vmax.f32 %v1570_v21, 0.0  ;;  %v8475_v24 = vmul.f32 0.0078125, %v1324_v48  ;;  %v1322_v13 = vpop.xlane.xlu0 %1321  ;;  %v1632_v38 = vsub.f32 %v8267_v56, %v8446_v32 }
 0x345   :  { %v1762_v58 = vmul.f32 %v8463_v33, %v1726_v30  ;;  %v1601_v45 = vmax.f32 %v1569_v40, 0.0  ;;  %v8478_v47 = vmul.f32 0.0078125, %v1322_v13  ;;  %v1631_v32 = vsub.f32 %v8270_v10, %v8448_v17 }
 0x346   :  { %v1761_v20 = vmul.f32 %v8463_v33, %v1725_v19  ;;  %v1666_v34 = vadd.f32 1e-05, %v1602_v57  ;;  %v1540_v30 = vmul.f32 %v8475_v24, %v8475_v24 }
 0x347   :  { %v1798_v9 = vadd.f32 %v8472_v5, %v1762_v58  ;;  %v1665_v44 = vadd.f32 1e-05, %v1601_v45  ;;  %v1420_v62 = vpop.xlane.xlu1 %1419  ;;  %v1539_v58 = vmul.f32 %v8478_v47, %v8478_v47 }
 0x348   :  { %v1797_v29 = vadd.f32 %v8472_v5, %v1761_v20  ;;  %7124 = vrsqrt.f32 %v1666_v34  ;;  %v1508_v8 = vmul.f32 0.0078125, %v1420_v62  ;;  %v1418_v21 = vpop.xlane.xlu0 %1417 }
 0x349   :  { %vm1830_vm1 = vcmp.gt.f32.partialorder %v1798_v9, 0.0  ;;  %7126 = vrsqrt.f32 %v1665_v44  ;;  %v1507_v40 = vmul.f32 0.0078125, %v1418_v21  ;;  %v1862_v48 = vmul.f32 0.01, %v1798_v9 }
 0x34a   :  { %vm1829_vm2 = vcmp.gt.f32.partialorder %v1797_v29, 0.0  ;;  %v1861_v19 = vmul.f32 0.01, %v1797_v29  ;;  %v7121_v57 = vpop.eup %7120  ;;  %v1572_v56 = vsub.f32 %v1508_v8, %v1540_v30 }
 0x34b   :  { %v7123_v20 = vpop.eup %7122  ;;  %v1571_v45 = vsub.f32 %v1507_v40, %v1539_v58  ;;  %v1328_v23 = vpop.xlane.xlu1 %1327  ;;  %v1894_v62 = vsel %vm1830_vm1, %v1798_v9, %v1862_v48  ;;  %v1728_v44 = vmul.f32 %v7121_v57, %v1632_v38 }
 0x34c   :  { %v1893_v13 = vsel %vm1829_vm2, %v1797_v29, %v1861_v19  ;;  %v1604_v3 = vmax.f32 %v1572_v56, 0.0  ;;  %v8494_v0 = vmul.f32 0.0078125, %v1328_v23  ;;  %v1326_v21 = vpop.xlane.xlu0 %1325  ;;  %v8497_v26 = vadd.f32 %v1894_v62, %v7944_v43 }
 0x34d   :  { %v8491_v34 = vadd.f32 %v1893_v13, %v7934_v14  ;;  %v1727_v6 = vmul.f32 %v7123_v20, %v1631_v32  ;;  %v1603_v10 = vmax.f32 %v1571_v45, 0.0  ;;  %v8499_v17 = vmul.f32 0.0078125, %v1326_v21 }
 0x34e   :  { %v1764_v29 = vmul.f32 %v8463_v33, %v1728_v44  ;;  %v1668_v14 = vadd.f32 1e-05, %v1604_v3  ;;  %v1634_v23 = vsub.f32 %v8279_v22, %v8454_v25  ;;  %v1542_v43 = vmul.f32 %v8494_v0, %v8494_v0 }
 0x34f   :  { %6283 = vmatprep.mubr.f32.mxu0 %v8491_v34  ;;  %v1763_v9 = vmul.f32 %v8463_v33, %v1727_v6  ;;  %v1667_v38 = vadd.f32 1e-05, %v1603_v10  ;;  %v1424_v30 = vpop.xlane.xlu1 %1423  ;;  %v1541_v19 = vmul.f32 %v8499_v17, %v8499_v17  ;;  %v1633_v56 = vsub.f32 %v8282_v39, %v8456_v37 }
 0x350   :  { %6284 = vmatmul.mubr.f32.vlgmr.msra.gmra.mrb[32].mxu0 %v8497_v26  ;;  %v1800_v8 = vadd.f32 %v8472_v5, %v1764_v29  ;;  %7128 = vrsqrt.f32 %v1668_v14  ;;  %v1510_v58 = vmul.f32 0.0078125, %v1424_v30  ;;  %v1422_v3 = vpop.xlane.xlu0 %1421  ;;  %v1636_v37 = vsub.f32 %v8291_v51, %v8475_v24 }
 0x351   :  { %v1799_v40 = vadd.f32 %v8472_v5, %v1763_v9  ;;  %7130 = vrsqrt.f32 %v1667_v38  ;;  %v1509_v6 = vmul.f32 0.0078125, %v1422_v3 }
 0x352   :  { %vm1832_vm3 = vcmp.gt.f32.partialorder %v1800_v8, 0.0  ;;  %v1864_v48 = vmul.f32 0.01, %v1800_v8  ;;  %v7125_v22 = vpop.eup %7124  ;;  %v1574_v25 = vsub.f32 %v1510_v58, %v1542_v43 }
 0x353   :  { %vm1831_vm4 = vcmp.gt.f32.partialorder %v1799_v40, 0.0  ;;  %v1863_v57 = vmul.f32 0.01, %v1799_v40  ;;  %v7127_v32 = vpop.eup %7126  ;;  %v1573_v13 = vsub.f32 %v1509_v6, %v1541_v19  ;;  %v1332_v20 = vpop.xlane.xlu1 %1331  ;;  %v1730_v62 = vmul.f32 %v7125_v22, %v1634_v23 }
 0x354   :  { %v1896_v45 = vsel %vm1832_vm3, %v1800_v8, %v1864_v48  ;;  %v1606_v44 = vmax.f32 %v1574_v25, 0.0  ;;  %v8515_v21 = vmul.f32 0.0078125, %v1332_v20  ;;  %v1330_v10 = vpop.xlane.xlu0 %1329  ;;  %v1729_v43 = vmul.f32 %v7127_v32, %v1633_v56 }
 0x355   :  { %v1895_v29 = vsel %vm1831_vm4, %v1799_v40, %v1863_v57  ;;  %v1605_v14 = vmax.f32 %v1573_v13, 0.0  ;;  %v8517_v9 = vmul.f32 0.0078125, %v1330_v10  ;;  %v8523_v58 = vadd.f32 %v1896_v45, %v7969_v63 }
 0x356   :  { %v8520_v38 = vadd.f32 %v1895_v29, %v7961_v46  ;;  %v1670_v30 = vadd.f32 1e-05, %v1606_v44  ;;  %v1766_v39 = vmul.f32 %v8463_v33, %v1730_v62  ;;  %v1765_v19 = vmul.f32 %v8463_v33, %v1729_v43 }
 0x357   :  { %v1669_v23 = vadd.f32 1e-05, %v1605_v14  ;;  %v1428_v8 = vpop.xlane.xlu1 %1427  ;;  %v1544_v46 = vmul.f32 %v8515_v21, %v8515_v21  ;;  %v1543_v51 = vmul.f32 %v8517_v9, %v8517_v9  ;;  %v1635_v22 = vsub.f32 %v8294_v59, %v8478_v47 }
 0x358   :  { %6286 = vmatprep.mubr.f32.mxu0 %v8520_v38  ;;  %7132 = vrsqrt.f32 %v1670_v30  ;;  %v1512_v3 = vmul.f32 0.0078125, %v1428_v8  ;;  %v1426_v40 = vpop.xlane.xlu0 %1425  ;;  %v1802_v63 = vadd.f32 %v8472_v5, %v1766_v39  ;;  %v1801_v6 = vadd.f32 %v8472_v5, %v1765_v19 }
 0x359   :  { %6287 = vmatmul.mubr.f32.gmra.mrb[34].mxu0 %v8523_v58  ;;  %7134 = vrsqrt.f32 %v1669_v23  ;;  %v1511_v24 = vmul.f32 0.0078125, %v1426_v40 }
 0x35a   :  { %v7129_v48 = vpop.eup %7128  ;;  %v1576_v25 = vsub.f32 %v1512_v3, %v1544_v46  ;;  %vm1834_vm5 = vcmp.gt.f32.partialorder %v1802_v63, 0.0  ;;  %v1866_v57 = vmul.f32 0.01, %v1802_v63  ;;  %vm1833_vm6 = vcmp.gt.f32.partialorder %v1801_v6, 0.0 }
 0x35b   :  { %v7131_v32 = vpop.eup %7130  ;;  %v1575_v56 = vsub.f32 %v1511_v24, %v1543_v51  ;;  %v1336_v13 = vpop.xlane.xlu1 %1335  ;;  %v1865_v20 = vmul.f32 0.01, %v1801_v6  ;;  %v1732_v45 = vmul.f32 %v7129_v48, %v1636_v37  ;;  %v1637_v48 = vsub.f32 %v8306_v16, %v8499_v17 }
 0x35c   :  { %v1608_v62 = vmax.f32 %v1576_v25, 0.0  ;;  %v8539_v44 = vmul.f32 0.0078125, %v1336_v13  ;;  %v1334_v10 = vpop.xlane.xlu0 %1333  ;;  %v1898_v29 = vsel %vm1834_vm5, %v1802_v63, %v1866_v57  ;;  %v1731_v14 = vmul.f32 %v7131_v32, %v1635_v22 }
 0x35d   :  { %v1607_v43 = vmax.f32 %v1575_v56, 0.0  ;;  %v8541_v30 = vmul.f32 0.0078125, %v1334_v10  ;;  %v1897_v39 = vsel %vm1833_vm6, %v1801_v6, %v1865_v20  ;;  %v8547_v19 = vadd.f32 %v1898_v29, %v7991_v55 }
 0x35e   :  { %v1672_v59 = vadd.f32 1e-05, %v1608_v62  ;;  %v8544_v47 = vadd.f32 %v1897_v39, %v7983_v12  ;;  %v1767_v37 = vmul.f32 %v8463_v33, %v1731_v14  ;;  %v1546_v46 = vmul.f32 %v8539_v44, %v8539_v44 }
 0x35f   :  { %v1671_v23 = vadd.f32 1e-05, %v1607_v43  ;;  %v1432_v8 = vpop.xlane.xlu1 %1431  ;;  %v1768_v63 = vmul.f32 %v8463_v33, %v1732_v45  ;;  %v1638_v12 = vsub.f32 %v8303_v35, %v8494_v0  ;;  %v1545_v51 = vmul.f32 %v8541_v30, %v8541_v30 }
 0x360   :  { %7136 = vrsqrt.f32 %v1672_v59  ;;  %6289 = vmatprep.mubr.f32.mxu0 %v8544_v47  ;;  %v1514_v3 = vmul.f32 0.0078125, %v1432_v8  ;;  %v1430_v40 = vpop.xlane.xlu0 %1429  ;;  %v1803_v24 = vadd.f32 %v8472_v5, %v1767_v37  ;;  %v1640_v39 = vsub.f32 %v8315_v28, %v8515_v21 }
 0x361   :  { %v1513_v55 = vmul.f32 0.0078125, %v1430_v40  ;;  %6290 = vmatmul.mubr.f32.gmra.mrb[36].mxu0 %v8547_v19  ;;  %7138 = vrsqrt.f32 %v1671_v23  ;;  %v1804_v25 = vadd.f32 %v8472_v5, %v1768_v63 }
 0x362   :  { %v7133_v6 = vpop.eup %7132  ;;  %v1578_v22 = vsub.f32 %v1514_v3, %v1546_v46  ;;  %vm1835_vm7 = vcmp.gt.f32.partialorder %v1803_v24, 0.0  ;;  %v1867_v35 = vmul.f32 0.01, %v1803_v24 }
 0x363   :  { %v7135_v57 = vpop.eup %7134  ;;  %v1577_v32 = vsub.f32 %v1513_v55, %v1545_v51  ;;  %v1340_v56 = vpop.xlane.xlu1 %1339  ;;  %v1734_v0 = vmul.f32 %v7133_v6, %v1638_v12  ;;  %vm1836_vm8 = vcmp.gt.f32.partialorder %v1804_v25, 0.0  ;;  %v1868_v62 = vmul.f32 0.01, %v1804_v25 }
 0x364   :  { %v1610_v13 = vmax.f32 %v1578_v22, 0.0  ;;  %v8563_v20 = vmul.f32 0.0078125, %v1340_v56  ;;  %v1338_v45 = vpop.xlane.xlu0 %1337  ;;  %v1899_v16 = vsel %vm1835_vm7, %v1803_v24, %v1867_v35  ;;  %v1733_v17 = vmul.f32 %v7135_v57, %v1637_v48 }
 0x365   :  { %v1609_v10 = vmax.f32 %v1577_v32, 0.0  ;;  %v8565_v29 = vmul.f32 0.0078125, %v1338_v45  ;;  %v8568_v43 = vadd.f32 %v1899_v16, %v8005_v54  ;;  %v1900_v37 = vsel %vm1836_vm8, %v1804_v25, %v1868_v62 }
 0x366   :  { %v1674_v14 = vadd.f32 1e-05, %v1610_v13  ;;  %v1548_v23 = vmul.f32 %v8563_v20, %v8563_v20  ;;  %v8576_v40 = vadd.f32 %v1900_v37, %v8013_v50  ;;  %v1769_v54 = vmul.f32 %v8463_v33, %v1733_v17 }
 0x367   :  { %v1673_v59 = vadd.f32 1e-05, %v1609_v10  ;;  %v1436_v8 = vpop.xlane.xlu1 %1435  ;;  %6292 = vmatprep.mubr.f32.mxu0 %v8568_v43  ;;  %v1547_v28 = vmul.f32 %v8565_v29, %v8565_v29  ;;  %v1770_v63 = vmul.f32 %v8463_v33, %v1734_v0  ;;  %v1639_v45 = vsub.f32 %v8318_v31, %v8517_v9 }
 0x368   :  { %7140 = vrsqrt.f32 %v1674_v14  ;;  %v1516_v46 = vmul.f32 0.0078125, %v1436_v8  ;;  %v1434_v3 = vpop.xlane.xlu0 %1433  ;;  %6293 = vmatmul.mubr.f32.gmra.mrb[38].mxu0 %v8576_v40  ;;  %v1805_v55 = vadd.f32 %v8472_v5, %v1769_v54 }
 0x369   :  { %7142 = vrsqrt.f32 %v1673_v59  ;;  %v1515_v21 = vmul.f32 0.0078125, %v1434_v3  ;;  %v1806_v50 = vadd.f32 %v8472_v5, %v1770_v63 }
 0x36a   :  { %v7137_v12 = vpop.eup %7136  ;;  %v1580_v51 = vsub.f32 %v1516_v46, %v1548_v23  ;;  %vm1837_vm9 = vcmp.gt.f32.partialorder %v1805_v55, 0.0  ;;  %v1869_v56 = vmul.f32 0.01, %v1805_v55 }
 0x36b   :  { %v1579_v24 = vsub.f32 %v1515_v21, %v1547_v28  ;;  %v1344_v6 = vpop.xlane.xlu1 %1343  ;;  %v1736_v48 = vmul.f32 %v7137_v12, %v1640_v39  ;;  %v7139_v22 = vpop.eup %7138  ;;  %vm1838_vm10 = vcmp.gt.f32.partialorder %v1806_v50, 0.0  ;;  %v1870_v13 = vmul.f32 0.01, %v1806_v50 }
 0x36c   :  { %v1612_v25 = vmax.f32 %v1580_v51, 0.0  ;;  %v8585_v57 = vmul.f32 0.0078125, %v1344_v6  ;;  %v1342_v32 = vpop.xlane.xlu0 %1341  ;;  %v1901_v10 = vsel %vm1837_vm9, %v1805_v55, %v1869_v56  ;;  %v1735_v46 = vmul.f32 %v7139_v22, %v1639_v45 }
 0x36d   :  { %v1611_v35 = vmax.f32 %v1579_v24, 0.0  ;;  %v8587_v0 = vmul.f32 0.0078125, %v1342_v32  ;;  %v8596_v39 = vadd.f32 %v1901_v10, %v8027_v4  ;;  %v1902_v37 = vsel %vm1838_vm10, %v1806_v50, %v1870_v13 }
 0x36e   :  { %v1676_v62 = vadd.f32 1e-05, %v1612_v25  ;;  %v1550_v17 = vmul.f32 %v8585_v57, %v8585_v57  ;;  %v8600_v9 = vadd.f32 %v1902_v37, %v8035_v61  ;;  %v1772_v3 = vmul.f32 %v8463_v33, %v1736_v48 }
 0x36f   :  { %v1675_v16 = vadd.f32 1e-05, %v1611_v35  ;;  %v1549_v14 = vmul.f32 %v8587_v0, %v8587_v0  ;;  %v1440_v59 = vpop.xlane.xlu1 %1439  ;;  %6295 = vmatprep.mubr.f32.mxu0 %v8596_v39  ;;  %v1641_v4 = vsub.f32 %v8330_v15, %v8541_v30  ;;  %v1771_v21 = vmul.f32 %v8463_v33, %v1735_v46 }
 0x370   :  { %7144 = vrsqrt.f32 %v1676_v62  ;;  %v1518_v23 = vmul.f32 0.0078125, %v1440_v59  ;;  %v1438_v8 = vpop.xlane.xlu0 %1437  ;;  %v1642_v12 = vsub.f32 %v8327_v1, %v8539_v44  ;;  %6296 = vmatmul.mubr.f32.gmra.mrb[40].mxu0 %v8600_v9  ;;  %v1808_v61 = vadd.f32 %v8472_v5, %v1772_v3 }
 0x371   :  { %7146 = vrsqrt.f32 %v1675_v16  ;;  %v1517_v31 = vmul.f32 0.0078125, %v1438_v8  ;;  %v1807_v48 = vadd.f32 %v8472_v5, %v1771_v21  ;;  %v1644_v44 = vsub.f32 %v8339_v41, %v8563_v20 }
 0x372   :  { %v7141_v54 = vpop.eup %7140  ;;  %v1582_v28 = vsub.f32 %v1518_v23, %v1550_v17  ;;  %vm1840_vm11 = vcmp.gt.f32.partialorder %v1808_v61, 0.0  ;;  %v1872_v25 = vmul.f32 0.01, %v1808_v61  ;;  %v1643_v3 = vsub.f32 %v8342_v2, %v8565_v29 }
 0x373   :  { %v7143_v63 = vpop.eup %7142  ;;  %v1581_v51 = vsub.f32 %v1517_v31, %v1549_v14  ;;  %v1348_v55 = vpop.xlane.xlu1 %1347  ;;  %vm1839_vm12 = vcmp.gt.f32.partialorder %v1807_v48, 0.0  ;;  %v1738_v1 = vmul.f32 %v7141_v54, %v1642_v12  ;;  %v1871_v13 = vmul.f32 0.01, %v1807_v48 }
 0x374   :  { %v1614_v24 = vmax.f32 %v1582_v28, 0.0  ;;  %v8610_v6 = vmul.f32 0.0078125, %v1348_v55  ;;  %v1346_v50 = vpop.xlane.xlu0 %1345  ;;  %v1737_v15 = vmul.f32 %v7143_v63, %v1641_v4  ;;  %v1904_v16 = vsel %vm1840_vm11, %v1808_v61, %v1872_v25 }
 0x375   :  { %v1613_v30 = vmax.f32 %v1581_v51, 0.0  ;;  %v8613_v22 = vmul.f32 0.0078125, %v1346_v50  ;;  %v1903_v59 = vsel %vm1839_vm12, %v1807_v48, %v1871_v13  ;;  %v1774_v46 = vmul.f32 %v8463_v33, %v1738_v1 }
 0x376   :  { %v1678_v32 = vadd.f32 1e-05, %v1614_v24  ;;  %v1552_v35 = vmul.f32 %v8610_v6, %v8610_v6  ;;  %v1773_v17 = vmul.f32 %v8463_v33, %v1737_v15  ;;  %v8623_v41 = vadd.f32 %v1903_v59, %v8049_v18 }
 0x377   :  { %v1677_v56 = vadd.f32 1e-05, %v1613_v30  ;;  %v1444_v45 = vpop.xlane.xlu1 %1443  ;;  %v1551_v14 = vmul.f32 %v8613_v22, %v8613_v22  ;;  %v8630_v4 = vadd.f32 %v1904_v16, %v8057_v11  ;;  %v1810_v2 = vadd.f32 %v8472_v5, %v1774_v46 }
 0x378   :  { %7148 = vrsqrt.f32 %v1678_v32  ;;  %v1520_v62 = vmul.f32 0.0078125, %v1444_v45  ;;  %v1442_v10 = vpop.xlane.xlu0 %1441  ;;  %v1809_v37 = vadd.f32 %v8472_v5, %v1773_v17  ;;  %6298 = vmatprep.mubr.f32.mxu0 %v8623_v41 }
 0x379   :  { %7150 = vrsqrt.f32 %v1677_v56  ;;  %v1519_v23 = vmul.f32 0.0078125, %v1442_v10  ;;  %6299 = vmatmul.mubr.f32.gmra.mrb[42].mxu0 %v8630_v4  ;;  %vm1842_vm14 = vcmp.gt.f32.partialorder %v1810_v2, 0.0 }
 0x37a   :  { %v7145_v8 = vpop.eup %7144  ;;  %v1584_v20 = vsub.f32 %v1520_v62, %v1552_v35  ;;  %vm1841_vm13 = vcmp.gt.f32.partialorder %v1809_v37, 0.0  ;;  %v1873_v51 = vmul.f32 0.01, %v1809_v37  ;;  %v1646_v62 = vsub.f32 %v8351_v53, %v8585_v57 }
 0x37b   :  { %v7147_v31 = vpop.eup %7146  ;;  %v1583_v54 = vsub.f32 %v1519_v23, %v1551_v14  ;;  %v1352_v28 = vpop.xlane.xlu1 %1351  ;;  %v1740_v21 = vmul.f32 %v7145_v8, %v1644_v44  ;;  %v1874_v44 = vmul.f32 0.01, %v1810_v2 }
 0x37c   :  { %v1616_v63 = vmax.f32 %v1584_v20, 0.0  ;;  %v8633_v18 = vmul.f32 0.0078125, %v1352_v28  ;;  %v1350_v12 = vpop.xlane.xlu0 %1349  ;;  %v1739_v29 = vmul.f32 %v7147_v31, %v1643_v3  ;;  %v1905_v24 = vsel %vm1841_vm13, %v1809_v37, %v1873_v51 }
 0x37d   :  { %v1615_v55 = vmax.f32 %v1583_v54, 0.0  ;;  %v8636_v61 = vmul.f32 0.0078125, %v1350_v12  ;;  %v8644_v30 = vadd.f32 %v1905_v24, %v8071_v36  ;;  %v1776_v13 = vmul.f32 %v8463_v33, %v1740_v21 }
 0x37e   :  { %v1680_v11 = vadd.f32 1e-05, %v1616_v63  ;;  %v1554_v48 = vmul.f32 %v8633_v18, %v8633_v18  ;;  %v1775_v35 = vmul.f32 %v8463_v33, %v1739_v29  ;;  %v1645_v36 = vsub.f32 %v8354_v7, %v8587_v0 }
 0x37f   :  { %v1679_v50 = vadd.f32 1e-05, %v1615_v55  ;;  %v1553_v15 = vmul.f32 %v8636_v61, %v8636_v61  ;;  %v1448_v25 = vpop.xlane.xlu1 %1447  ;;  %6301 = vmatprep.mubr.f32.mxu0 %v8644_v30  ;;  %v1906_v16 = vsel %vm1842_vm14, %v1810_v2, %v1874_v44  ;;  %v1812_v20 = vadd.f32 %v8472_v5, %v1776_v13 }
 0x380   :  { %7152 = vrsqrt.f32 %v1680_v11  ;;  %v1522_v32 = vmul.f32 0.0078125, %v1448_v25  ;;  %v1446_v1 = vpop.xlane.xlu0 %1445  ;;  %v8654_v59 = vadd.f32 %v1906_v16, %v8079_v27  ;;  %v1811_v8 = vadd.f32 %v8472_v5, %v1775_v35 }
 0x381   :  { %7154 = vrsqrt.f32 %v1679_v50  ;;  %v1521_v56 = vmul.f32 0.0078125, %v1446_v1  ;;  %vm1844_vm0 = vcmp.gt.f32.partialorder %v1812_v20, 0.0  ;;  %v1876_v29 = vmul.f32 0.01, %v1812_v20 }
 0x382   :  { %v7149_v45 = vpop.eup %7148  ;;  %v1586_v10 = vsub.f32 %v1522_v32, %v1554_v48  ;;  %6302 = vmatmul.mubr.f32.gmra.mrb[44].mxu0 %v8654_v59  ;;  %vm1843_vm15 = vcmp.gt.f32.partialorder %v1811_v8, 0.0  ;;  %v1875_v0 = vmul.f32 0.01, %v1811_v8  ;;  %v1647_v25 = vsub.f32 %v8366_v52, %v8613_v22 }
 0x383   :  { %v7151_v17 = vpop.eup %7150  ;;  %v1585_v14 = vsub.f32 %v1521_v56, %v1553_v15  ;;  %v1356_v23 = vpop.xlane.xlu1 %1355  ;;  %v1742_v57 = vmul.f32 %v7149_v45, %v1646_v62  ;;  %v1648_v15 = vsub.f32 %v8363_v42, %v8610_v6  ;;  %v1908_v32 = vsel %vm1844_vm0, %v1812_v20, %v1876_v29 }
 0x384   :  { %v1618_v37 = vmax.f32 %v1586_v10, 0.0  ;;  %v8658_v46 = vmul.f32 0.0078125, %v1356_v23  ;;  %v1354_v31 = vpop.xlane.xlu0 %1353  ;;  %v1741_v53 = vmul.f32 %v7151_v17, %v1645_v36  ;;  %v1907_v63 = vsel %vm1843_vm15, %v1811_v8, %v1875_v0 }
 0x385   :  { %v1617_v3 = vmax.f32 %v1585_v14, 0.0  ;;  %v8661_v7 = vmul.f32 0.0078125, %v1354_v31  ;;  %v8668_v51 = vadd.f32 %v1907_v63, %v8093_v60  ;;  %v1778_v50 = vmul.f32 %v8463_v33, %v1742_v57 }
 0x386   :  { %v1682_v27 = vadd.f32 1e-05, %v1618_v37  ;;  %v1556_v54 = vmul.f32 %v8658_v46, %v8658_v46  ;;  %v1777_v24 = vmul.f32 %v8463_v33, %v1741_v53  ;;  %v8678_v56 = vadd.f32 %v1908_v32, %v8101_v49  ;;  %v11378_v37 = vld [vmem:[#allocation9_spill] sm:$0xff] }
 0x387   :  { %v1681_v28 = vadd.f32 1e-05, %v1617_v3  ;;  %v1555_v21 = vmul.f32 %v8661_v7, %v8661_v7  ;;  %v1452_v12 = vpop.xlane.xlu1 %1451  ;;  %6304 = vmatprep.mubr.f32.mxu0 %v8668_v51  ;;  %v1814_v45 = vadd.f32 %v8472_v5, %v1778_v50  ;;  %v11381_v50 = vld [vmem:[#allocation10_spill] sm:$0xff] }
 0x388   :  { %7156 = vrsqrt.f32 %v1682_v27  ;;  %v1524_v55 = vmul.f32 0.0078125, %v1452_v12  ;;  %v1450_v2 = vpop.xlane.xlu0 %1449  ;;  %v1813_v13 = vadd.f32 %v8472_v5, %v1777_v24  ;;  %6305 = vmatmul.mubr.f32.gmra.mrb[46].mxu0 %v8678_v56  ;;  %v11380_v12 = vld [vmem:[#allocation26_spill] sm:$0xff] }
 0x389   :  { %7158 = vrsqrt.f32 %v1681_v28  ;;  %v1523_v11 = vmul.f32 0.0078125, %v1450_v2  ;;  %vm1846_vm2 = vcmp.gt.f32.partialorder %v1814_v45, 0.0  ;;  %v1878_v3 = vmul.f32 0.01, %v1814_v45 }
 0x38a   :  { %v7153_v48 = vpop.eup %7152  ;;  %v1588_v60 = vsub.f32 %v1524_v55, %v1556_v54  ;;  %vm1845_vm1 = vcmp.gt.f32.partialorder %v1813_v13, 0.0  ;;  %v1877_v16 = vmul.f32 0.01, %v1813_v13  ;;  %v1649_v55 = vsub.f32 %v11380_v12, %v8636_v61 }
 0x38b   :  { %v7155_v1 = vpop.eup %7154  ;;  %v1587_v44 = vsub.f32 %v1523_v11, %v1555_v21  ;;  %v1360_v35 = vpop.xlane.xlu1 %1359  ;;  %v1744_v52 = vmul.f32 %v7153_v48, %v1648_v15  ;;  %v11379_v21 = vld [vmem:[#allocation25_spill] sm:$0xff]  ;;  %v1910_v29 = vsel %vm1846_vm2, %v1814_v45, %v1878_v3  ;;  %v11384_v3 = vld [vmem:[#allocation27_spill] sm:$0xff] }
 0x38c   :  { %v1620_v62 = vmax.f32 %v1588_v60, 0.0  ;;  %v8682_v36 = vmul.f32 0.0078125, %v1360_v35  ;;  %v1358_v42 = vpop.xlane.xlu0 %1357  ;;  %v1743_v6 = vmul.f32 %v7155_v1, %v1647_v25  ;;  %v1909_v8 = vsel %vm1845_vm1, %v1813_v13, %v1877_v16 }
 0x38d   :  { %v1619_v22 = vmax.f32 %v1587_v44, 0.0  ;;  %v8685_v10 = vmul.f32 0.0078125, %v1358_v42  ;;  %v8692_v31 = vadd.f32 %v1909_v8, %v11378_v37  ;;  %v1780_v54 = vmul.f32 %v8463_v33, %v1744_v52 }
 0x38e   :  { %v1684_v49 = vadd.f32 1e-05, %v1620_v62  ;;  %v1558_v17 = vmul.f32 %v8682_v36, %v8682_v36  ;;  %v1779_v27 = vmul.f32 %v8463_v33, %v1743_v6  ;;  %v1650_v63 = vsub.f32 %v11379_v21, %v8633_v18 }
 0x38f   :  { %v1683_v14 = vadd.f32 1e-05, %v1619_v22  ;;  %v1557_v23 = vmul.f32 %v8685_v10, %v8685_v10  ;;  %v1456_v20 = vpop.xlane.xlu1 %1455  ;;  %6307 = vmatprep.mubr.f32.mxu0 %v8692_v31  ;;  %v8702_v48 = vadd.f32 %v1910_v29, %v11381_v50  ;;  %v1816_v60 = vadd.f32 %v8472_v5, %v1780_v54 }
 0x390   :  { %7160 = vrsqrt.f32 %v1684_v49  ;;  %v1526_v53 = vmul.f32 0.0078125, %v1456_v20  ;;  %v1454_v57 = vpop.xlane.xlu0 %1453  ;;  %v1815_v25 = vadd.f32 %v8472_v5, %v1779_v27  ;;  %v11382_v49 = vld [vmem:[#allocation11_spill] sm:$0xff]  ;;  %v11385_v27 = vld [vmem:[#allocation28_spill] sm:$0xff] }
 0x391   :  { %7162 = vrsqrt.f32 %v1683_v14  ;;  %v1525_v0 = vmul.f32 0.0078125, %v1454_v57  ;;  %6308 = vmatmul.mubr.f32.gmra.mrb[48].mxu0 %v8702_v48  ;;  %vm1848_vm4 = vcmp.gt.f32.partialorder %v1816_v60, 0.0  ;;  %v1880_v8 = vmul.f32 0.01, %v1816_v60 }
 0x392   :  { %v7157_v28 = vpop.eup %7156  ;;  %v1590_v2 = vsub.f32 %v1526_v53, %v1558_v17  ;;  %vm1847_vm3 = vcmp.gt.f32.partialorder %v1815_v25, 0.0  ;;  %v1879_v45 = vmul.f32 0.01, %v1815_v25  ;;  %v1651_v54 = vsub.f32 %v11385_v27, %v8661_v7 }
 0x393   :  { %v7159_v11 = vpop.eup %7158  ;;  %v1589_v24 = vsub.f32 %v1525_v0, %v1557_v23  ;;  %v1364_v15 = vpop.xlane.xlu1 %1363  ;;  %v1746_v61 = vmul.f32 %v7157_v28, %v1650_v63  ;;  %v1652_v0 = vsub.f32 %v11384_v3, %v8658_v46  ;;  %v1912_v21 = vsel %vm1848_vm4, %v1816_v60, %v1880_v8 }
 0x394   :  { %v1622_v32 = vmax.f32 %v1590_v2, 0.0  ;;  %v8706_v1 = vmul.f32 0.0078125, %v1364_v15  ;;  %v1362_v18 = vpop.xlane.xlu0 %1361  ;;  %v1745_v44 = vmul.f32 %v7159_v11, %v1649_v55  ;;  %v1911_v22 = vsel %vm1847_vm3, %v1815_v25, %v1879_v45  ;;  %v11386_v55 = vld [vmem:[#allocation12_spill] sm:$0xff] }
 0x395   :  { %v1621_v35 = vmax.f32 %v1589_v24, 0.0  ;;  %v8709_v13 = vmul.f32 0.0078125, %v1362_v18  ;;  %v8716_v17 = vadd.f32 %v1911_v22, %v11382_v49  ;;  %v1782_v53 = vmul.f32 %v8463_v33, %v1746_v61 }
 0x396   :  { %v1686_v62 = vadd.f32 1e-05, %v1622_v32  ;;  %v1560_v42 = vmul.f32 %v8706_v1, %v8706_v1  ;;  %v1781_v37 = vmul.f32 %v8463_v33, %v1745_v44  ;;  %v8726_v2 = vadd.f32 %v1912_v21, %v11386_v55  ;;  %v11392_v21 = vld [vmem:[#allocation14_spill] sm:$0xff] }
 0x397   :  { %v1685_v6 = vadd.f32 1e-05, %v1621_v35  ;;  %v1559_v52 = vmul.f32 %v8709_v13, %v8709_v13  ;;  %v1460_v16 = vpop.xlane.xlu1 %1459  ;;  %11383 = vst [vmem:[#allocation9_spill] sm:$0xff] %v8716_v17  ;;  %6310 = vmatprep.mubr.f32.mxu0 %v8716_v17  ;;  %v1818_v24 = vadd.f32 %v8472_v5, %v1782_v53 }
 0x398   :  { %7164 = vrsqrt.f32 %v1686_v62  ;;  %v1528_v14 = vmul.f32 0.0078125, %v1460_v16  ;;  %v1458_v23 = vpop.xlane.xlu0 %1457  ;;  %11387 = vst [vmem:[#allocation25_spill] sm:$0xff] %v8726_v2  ;;  %v1817_v11 = vadd.f32 %v8472_v5, %v1781_v37  ;;  %6311 = vmatmul.mubr.f32.gmra.mrb[50].mxu0 %v8726_v2  ;;  %v11390_v37 = vld [vmem:[#allocation29_spill] sm:$0xff] }
 0x399   :  { %7166 = vrsqrt.f32 %v1685_v6  ;;  %v1527_v20 = vmul.f32 0.0078125, %v1458_v23  ;;  %vm1850_vm6 = vcmp.gt.f32.partialorder %v1818_v24, 0.0  ;;  %v11388_v6 = vld [vmem:[#allocation13_spill] sm:$0xff]  ;;  %v1882_v49 = vmul.f32 0.01, %v1818_v24 }
 0x39a   :  { %v7161_v57 = vpop.eup %7160  ;;  %v1592_v28 = vsub.f32 %v1528_v14, %v1560_v42  ;;  %vm1849_vm5 = vcmp.gt.f32.partialorder %v1817_v11, 0.0  ;;  %v1881_v18 = vmul.f32 0.01, %v1817_v11  ;;  %v1654_v53 = vsub.f32 %v11390_v37, %v8682_v36 }
 0x39b   :  { %v7163_v63 = vpop.eup %7162  ;;  %v1591_v12 = vsub.f32 %v1527_v20, %v1559_v52  ;;  %v1368_v29 = vpop.xlane.xlu1 %1367  ;;  %v1748_v7 = vmul.f32 %v7161_v57, %v1652_v0  ;;  %v11391_v57 = vld [vmem:[#allocation30_spill] sm:$0xff]  ;;  %v1914_v27 = vsel %vm1850_vm6, %v1818_v24, %v1882_v49 }
 0x39c   :  { %v1624_v50 = vmax.f32 %v1592_v28, 0.0  ;;  %v8730_v15 = vmul.f32 0.0078125, %v1368_v29  ;;  %v1366_v46 = vpop.xlane.xlu0 %1365  ;;  %v1747_v25 = vmul.f32 %v7163_v63, %v1651_v54  ;;  %v1913_v62 = vsel %vm1849_vm5, %v1817_v11, %v1881_v18 }
 0x39d   :  { %v1623_v32 = vmax.f32 %v1591_v12, 0.0  ;;  %v8733_v60 = vmul.f32 0.0078125, %v1366_v46  ;;  %v8740_v52 = vadd.f32 %v1913_v62, %v11388_v6  ;;  %v1784_v8 = vmul.f32 %v8463_v33, %v1748_v7  ;;  %v11394_v62 = vld [vmem:[#allocation15_spill] sm:$0xff] }
 0x39e   :  { %v1688_v44 = vadd.f32 1e-05, %v1624_v50  ;;  %v1562_v61 = vmul.f32 %v8730_v15, %v8730_v15  ;;  %v1783_v23 = vmul.f32 %v8463_v33, %v1747_v25  ;;  %v1653_v3 = vsub.f32 %v11391_v57, %v8685_v10 }
 0x39f   :  { %v1687_v35 = vadd.f32 1e-05, %v1623_v32  ;;  %v1561_v45 = vmul.f32 %v8733_v60, %v8733_v60  ;;  %v1464_v42 = vpop.xlane.xlu1 %1463  ;;  %11389 = vst [vmem:[#allocation26_spill] sm:$0xff] %v8740_v52  ;;  %6313 = vmatprep.mubr.f32.mxu0 %v8740_v52  ;;  %v8750_v63 = vadd.f32 %v1914_v27, %v11392_v21  ;;  %v1820_v29 = vadd.f32 %v8472_v5, %v1784_v8 }
 0x3a0   :  { %7168 = vrsqrt.f32 %v1688_v44  ;;  %v1530_v22 = vmul.f32 0.0078125, %v1464_v42  ;;  %v1462_v16 = vpop.xlane.xlu0 %1461  ;;  %v1819_v55 = vadd.f32 %v8472_v5, %v1783_v23 }
 0x3a1   :  { %7170 = vrsqrt.f32 %v1687_v35  ;;  %v1529_v14 = vmul.f32 0.0078125, %v1462_v16  ;;  %11393 = vst [vmem:[#allocation10_spill] sm:$0xff] %v8750_v63  ;;  %6314 = vmatmul.mubr.f32.gmra.mrb[52].mxu0 %v8750_v63  ;;  %vm1852_vm8 = vcmp.gt.f32.partialorder %v1820_v29, 0.0  ;;  %v1884_v16 = vmul.f32 0.01, %v1820_v29 }
 0x3a2   :  { %v7165_v20 = vpop.eup %7164  ;;  %v1594_v0 = vsub.f32 %v1530_v22, %v1562_v61  ;;  %vm1851_vm7 = vcmp.gt.f32.partialorder %v1819_v55, 0.0  ;;  %v1883_v7 = vmul.f32 0.01, %v1819_v55 }
 0x3a3   :  { %v7167_v54 = vpop.eup %7166  ;;  %v1593_v28 = vsub.f32 %v1529_v14, %v1561_v45  ;;  %v1372_v12 = vpop.xlane.xlu1 %1371  ;;  %v1750_v10 = vmul.f32 %v7165_v20, %v1654_v53  ;;  %v11396_v20 = vld [vmem:[#allocation31_spill] sm:$0xff]  ;;  %v11397_v53 = vld [vmem:[#allocation32_spill] sm:$0xff] }
 0x3a4   :  { %v1626_v11 = vmax.f32 %v1594_v0, 0.0  ;;  %v8754_v50 = vmul.f32 0.0078125, %v1372_v12  ;;  %v1370_v36 = vpop.xlane.xlu0 %1369  ;;  %v1749_v46 = vmul.f32 %v7167_v54, %v1653_v3  ;;  %v1915_v35 = vsel %vm1851_vm7, %v1819_v55, %v1883_v7 }
 0x3a5   :  { %v1625_v25 = vmax.f32 %v1593_v28, 0.0  ;;  %v8757_v24 = vmul.f32 0.0078125, %v1370_v36  ;;  %v8764_v42 = vadd.f32 %v1915_v35, %v11394_v62  ;;  %v1786_v23 = vmul.f32 %v8463_v33, %v1750_v10  ;;  %v11398_v28 = vld [vmem:[#allocation16_spill] sm:$0xff]  ;;  %v11402_v62 = vld [vmem:[#allocation33_spill] sm:$0xff] }
 0x3a6   :  { %v1690_v32 = vadd.f32 1e-05, %v1626_v11  ;;  %v1564_v18 = vmul.f32 %v8754_v50, %v8754_v50  ;;  %v1785_v14 = vmul.f32 %v8463_v33, %v1749_v46  ;;  %v1656_v37 = vsub.f32 %v11396_v20, %v8706_v1 }
 0x3a7   :  { %v1689_v44 = vadd.f32 1e-05, %v1625_v25  ;;  %v1563_v61 = vmul.f32 %v8757_v24, %v8757_v24  ;;  %v1468_v45 = vpop.xlane.xlu1 %1467  ;;  %11395 = vst [vmem:[#allocation11_spill] sm:$0xff] %v8764_v42  ;;  %v1655_v57 = vsub.f32 %v11397_v53, %v8709_v13  ;;  %6316 = vmatprep.mubr.f32.mxu0 %v8764_v42  ;;  %v1916_v0 = vsel %vm1852_vm8, %v1820_v29, %v1884_v16 }
 0x3a8   :  { %7172 = vrsqrt.f32 %v1690_v32  ;;  %v1532_v6 = vmul.f32 0.0078125, %v1468_v45  ;;  %v1466_v22 = vpop.xlane.xlu0 %1465  ;;  %v8774_v21 = vadd.f32 %v1916_v0, %v11398_v28  ;;  %v1821_v12 = vadd.f32 %v8472_v5, %v1785_v14 }
 0x3a9   :  { %7174 = vrsqrt.f32 %v1689_v44  ;;  %v1531_v49 = vmul.f32 0.0078125, %v1466_v22  ;;  %v1822_v55 = vadd.f32 %v8472_v5, %v1786_v23  ;;  %v11400_v44 = vld [vmem:[#allocation17_spill] sm:$0xff]  ;;  %v11403_v22 = vld [vmem:[#allocation18_spill] sm:$0xff] }
 0x3aa   :  { %v7169_v8 = vpop.eup %7168  ;;  %v1596_v3 = vsub.f32 %v1532_v6, %v1564_v18  ;;  %11399 = vst [vmem:[#allocation27_spill] sm:$0xff] %v8774_v21  ;;  %6317 = vmatmul.mubr.f32.gmra.mrb[54].mxu0 %v8774_v21  ;;  %vm1853_vm9 = vcmp.gt.f32.partialorder %v1821_v12, 0.0  ;;  %v1885_v13 = vmul.f32 0.01, %v1821_v12  ;;  %v1658_v6 = vsub.f32 %v11402_v62, %v8730_v15  ;;  %v11412_v62 = vld [vmem:[#allocation21_spill] sm:$0xff] }
 0x3ab   :  { %v7171_v27 = vpop.eup %7170  ;;  %v1595_v54 = vsub.f32 %v1531_v49, %v1563_v61  ;;  %v1752_v46 = vmul.f32 %v7169_v8, %v1656_v37  ;;  %vm1854_vm10 = vcmp.gt.f32.partialorder %v1822_v55, 0.0  ;;  %v1886_v29 = vmul.f32 0.01, %v1822_v55 }
 0x3ac   :  { %v1628_v11 = vmax.f32 %v1596_v3, 0.0  ;;  %v1751_v36 = vmul.f32 %v7171_v27, %v1655_v57  ;;  %v1917_v18 = vsel %vm1853_vm9, %v1821_v12, %v1885_v13  ;;  %v11406_v3 = vld [vmem:[#allocation19_spill] sm:$0xff] }
 0x3ad   :  { %v1627_v1 = vmax.f32 %v1595_v54, 0.0  ;;  %v1788_v7 = vmul.f32 %v8463_v33, %v1752_v46  ;;  %v8782_v61 = vadd.f32 %v1917_v18, %v11400_v44  ;;  %v1918_v35 = vsel %vm1854_vm10, %v1822_v55, %v1886_v29  ;;  %v11408_v54 = vld [vmem:[#allocation20_spill] sm:$0xff]  ;;  %v7311_v55 = vld [vmem:[%s11267_s7 + $0x8] ss:$0 sm:$0xff]  ;;  %v11410_v46 = vld [vmem:[#allocation35_spill] sm:$0xff] }
 0x3ae   :  { %v1692_v10 = vadd.f32 1e-05, %v1628_v11  ;;  %v1787_v25 = vmul.f32 %v8463_v33, %v1751_v36  ;;  %v8788_v16 = vadd.f32 %v1918_v35, %v11403_v22  ;;  %v11405_v33 = vld [vmem:[#allocation34_spill] sm:$0xff]  ;;  %v11411_v29 = vld [vmem:[#allocation36_spill] sm:$0xff] }
 0x3af   :  { %v1691_v32 = vadd.f32 1e-05, %v1627_v1  ;;  %11401 = vst [vmem:[#allocation28_spill] sm:$0xff] %v8782_v61  ;;  %v1824_v49 = vadd.f32 %v8472_v5, %v1788_v7  ;;  %v1657_v23 = vsub.f32 %v11405_v33, %v8733_v60  ;;  %6319 = vmatprep.mubr.f32.mxu0 %v8782_v61  ;;  %v7310_v60 = vld [vmem:[%s11267_s7 + $0x5] ss:$0 sm:$0xff]  ;;  %v1660_v1 = vsub.f32 %v11410_v46, %v8754_v50  ;;  %v2852_v46 = vld [vmem:[#allocation4 + $0x10] sm:$0xff] }
 0x3b0   :  { %7176 = vrsqrt.f32 %v1692_v10  ;;  %v1823_v45 = vadd.f32 %v8472_v5, %v1787_v25  ;;  %11404 = vst [vmem:[#allocation12_spill] sm:$0xff] %v8788_v16  ;;  %6320 = vmatmul.mubr.f32.gmra.mrb[56].mxu0 %v8788_v16  ;;  %v1659_v25 = vsub.f32 %v11411_v29, %v8757_v24 }
 0x3b1   :  { %7178 = vrsqrt.f32 %v1691_v32  ;;  %vm1856_vm12 = vcmp.gt.f32.partialorder %v1824_v49, 0.0  ;;  %v1888_v37 = vmul.f32 0.01, %v1824_v49 }
 0x3b2   :  { %v7173_v14 = vpop.eup %7172  ;;  %vm1855_vm11 = vcmp.gt.f32.partialorder %v1823_v45, 0.0  ;;  %v1887_v8 = vmul.f32 0.01, %v1823_v45 }
 0x3b3   :  { %v7175_v20 = vpop.eup %7174  ;;  %v1754_v15 = vmul.f32 %v7173_v14, %v1658_v6  ;;  %v1920_v5 = vsel %vm1856_vm12, %v1824_v49, %v1888_v37  ;;  %v11414_v49 = vld [vmem:[#allocation22_spill] sm:$0xff] }
 0x3b4   :  { %v1919_v53 = vsel %vm1855_vm11, %v1823_v45, %v1887_v8  ;;  %v1753_v57 = vmul.f32 %v7175_v20, %v1657_v23  ;;  %v8802_v28 = vadd.f32 %v1920_v5, %v11408_v54  ;;  %v2850_v5 = vld [vmem:[#allocation4] sm:$0xff] }
 0x3b5   :  { %v8796_v0 = vadd.f32 %v1919_v53, %v11406_v3  ;;  %v1790_v27 = vmul.f32 %v7310_v60, %v1754_v15  ;;  %v11416_v15 = vld [vmem:[#allocation23_spill] sm:$0xff]  ;;  %v8832_v54 = vld [vmem:[%s11267_s7 + $0x2] ss:$0 sm:$0xff] }
 0x3b6   :  { %11409 = vst [vmem:[#allocation29_spill] sm:$0xff] %v8802_v28  ;;  %v1789_v12 = vmul.f32 %v7310_v60, %v1753_v57  ;;  %v11418_v57 = vld [vmem:[#allocation24_spill] sm:$0xff] }
 0x3b7   :  { %11407 = vst [vmem:[#allocation13_spill] sm:$0xff] %v8796_v0  ;;  %6322 = vmatprep.mubr.f32.mxu0 %v8796_v0  ;;  %v1826_v11 = vadd.f32 %v7311_v55, %v1790_v27 }
 0x3b8   :  { %6323 = vmatmul.mubr.f32.gmra.mrb[58].mxu0 %v8802_v28  ;;  %v1825_v36 = vadd.f32 %v7311_v55, %v1789_v12 }
 0x3b9   :  { %vm1858_vm13 = vcmp.gt.f32.partialorder %v1826_v11, 0.0  ;;  %v1890_v13 = vmul.f32 0.01, %v1826_v11 }
 0x3ba   :  { %v7177_v10 = vpop.eup %7176  ;;  %vm1857_vm14 = vcmp.gt.f32.partialorder %v1825_v36, 0.0  ;;  %v1889_v7 = vmul.f32 0.01, %v1825_v36 }
 0x3bb   :  { %v7179_v32 = vpop.eup %7178  ;;  %v1922_v18 = vsel %vm1858_vm13, %v1826_v11, %v1890_v13  ;;  %v1756_v44 = vmul.f32 %v7177_v10, %v1660_v1  ;;  %v2853_v1 = vld [vmem:[#allocation4 + $0x18] sm:$0xff] }
 0x3bc   :  { %v1921_v35 = vsel %vm1857_vm14, %v1825_v36, %v1889_v7  ;;  %v1755_v45 = vmul.f32 %v7179_v32, %v1659_v25  ;;  %v8817_v14 = vadd.f32 %v1922_v18, %v11414_v49  ;;  %v6647_v13 = vpack.c.bf16 %v2853_v1, %v2852_v46  ;;  %v2854_v25 = vld [vmem:[#allocation4 + $0x20] sm:$0xff]  ;;  %v2855_v7 = vld [vmem:[#allocation4 + $0x28] sm:$0xff]  ;;  %v2856_v32 = vld [vmem:[#allocation4 + $0x30] sm:$0xff] }
 0x3bd   :  { %v8814_v6 = vadd.f32 %v1921_v35, %v11412_v62  ;;  %v1792_v22 = vmul.f32 %v7310_v60, %v1756_v44  ;;  %v6651_v18 = vpack.c.bf16 %v2855_v7, %v2854_v25  ;;  %v2857_v44 = vld [vmem:[#allocation4 + $0x38] sm:$0xff] }
 0x3be   :  { %11415 = vst [vmem:[#allocation14_spill] sm:$0xff] %v8817_v14  ;;  %v1791_v50 = vmul.f32 %v7310_v60, %v1755_v45  ;;  %v2851_v60 = vld [vmem:[#allocation4 + $0x8] sm:$0xff]  ;;  %v6655_v35 = vpack.c.bf16 %v2857_v44, %v2856_v32  ;;  %v2861_v44 = vld [vmem:[#allocation4 + $0x58] sm:$0xff] }
 0x3bf   :  { %11413 = vst [vmem:[#allocation30_spill] sm:$0xff] %v8814_v6  ;;  %6325 = vmatprep.mubr.f32.mxu0 %v8814_v6  ;;  %v1828_v33 = vadd.f32 %v7311_v55, %v1792_v22  ;;  %v6643_v27 = vpack.c.bf16 %v2851_v60, %v2850_v5 }
 0x3c0   :  { %6326 = vmatmul.mubr.f32.gmra.mrb[60].mxu0 %v8817_v14  ;;  %v1827_v24 = vadd.f32 %v7311_v55, %v1791_v50 }
 0x3c1   :  { %vm1860_vm15 = vcmp.gt.f32.partialorder %v1828_v33, 0.0  ;;  %v1892_v23 = vmul.f32 0.01, %v1828_v33  ;;  %6644 = vmatprep.subr.bf16.mxu1 %v6643_v27 }
 0x3c2   :  { %vm1859_vm0 = vcmp.gt.f32.partialorder %v1827_v24, 0.0  ;;  %v1891_v8 = vmul.f32 0.01, %v1827_v24  ;;  %6646 = vmatpush3.bf16.msra.mxu1 %v6643_v27 }
 0x3c3   :  { %v1924_v20 = vsel %vm1860_vm15, %v1828_v33, %v1892_v23  ;;  %6648 = vmatprep.subr.bf16.mxu1 %v6647_v13 }
 0x3c4   :  { %v1923_v37 = vsel %vm1859_vm0, %v1827_v24, %v1891_v8  ;;  %v8825_v3 = vadd.f32 %v1924_v20, %v11418_v57  ;;  %v2858_v20 = vld [vmem:[#allocation4 + $0x40] sm:$0xff] }
 0x3c5   :  { %v8822_v53 = vadd.f32 %v1923_v37, %v11416_v15  ;;  %v2859_v37 = vld [vmem:[#allocation4 + $0x48] sm:$0xff] }
 0x3c6   :  { %11419 = vst [vmem:[#allocation31_spill] sm:$0xff] %v8825_v3  ;;  %6650 = vmatpush3.bf16.msra.mxu1 %v6647_v13  ;;  %v6659_v57 = vpack.c.bf16 %v2859_v37, %v2858_v20 }
 0x3c7   :  { %11417 = vst [vmem:[#allocation15_spill] sm:$0xff] %v8822_v53  ;;  %6328 = vmatprep.mubr.f32.mxu0 %v8822_v53  ;;  %6652 = vmatprep.subr.bf16.mxu1 %v6651_v18 }
 0x3c8   :  { %6329 = vmatmul.mubr.f32.gmra.mrb[62].mxu0 %v8825_v3 }
 0x3ca   :  { %6654 = vmatpush3.bf16.msra.mxu1 %v6651_v18  ;;  %v2860_v18 = vld [vmem:[#allocation4 + $0x50] sm:$0xff] }
 0x3cb   :  { %6656 = vmatprep.subr.bf16.mxu1 %v6655_v35 }
 0x3ce   :  { %6658 = vmatpush3.bf16.msra.mxu1 %v6655_v35  ;;  %v2862_v35 = vld [vmem:[#allocation4 + $0x60] sm:$0xff] }
 0x3cf   :  { %6660 = vmatprep.subr.bf16.mxu1 %v6659_v57 }
 0x3d2   :  { %6662 = vmatpush3.bf16.msra.mxu1 %v6659_v57  ;;  %v2864_v57 = vld [vmem:[#allocation4 + $0x70] sm:$0xff] }
 0x423   :  { %v6285_v12 = vpop.f32.mrb[32].mxu0 }
 0x424   :  { %v8835_v55 = vadd.f32 %v6285_v12, %v8832_v54  ;;  %v2043_v11 = vpop.f32.mrb[33].mxu0 }
 0x425   :  { %v8838_v36 = vadd.f32 %v8832_v54, %v2043_v11 }
 0x426   :  { %2204 = vadd.xlane.f32.xlu1 %v8835_v55  ;;  %v2267_v10 = vmul.f32 %v8835_v55, %v8835_v55 }
 0x427   :  { %2202 = vadd.xlane.f32.xlu0 %v8838_v36  ;;  %v2266_v29 = vmul.f32 %v8838_v36, %v8838_v36 }
 0x42a   :  { %2300 = vadd.xlane.f32.xlu1 %v2267_v10 }
 0x42b   :  { %2298 = vadd.xlane.f32.xlu0 %v2266_v29 }
 0x42c   :  { %v6288_v45 = vpop.f32.mrb[34].mxu0 }
 0x42d   :  { %v8847_v62 = vadd.f32 %v6288_v45, %v8832_v54  ;;  %v2053_v22 = vpop.f32.mrb[35].mxu0 }
 0x42e   :  { %v8850_v49 = vadd.f32 %v8832_v54, %v2053_v22  ;;  %v6663_v22 = vpack.c.bf16 %v2861_v44, %v2860_v18 }
 0x42f   :  { %2208 = vadd.xlane.f32.xlu1 %v8847_v62  ;;  %v2269_v50 = vmul.f32 %v8847_v62, %v8847_v62 }
 0x430   :  { %2206 = vadd.xlane.f32.xlu0 %v8850_v49  ;;  %v2268_v33 = vmul.f32 %v8850_v49, %v8850_v49  ;;  %6664 = vmatprep.subr.bf16.mxu1 %v6663_v22 }
 0x431   :  { %6666 = vmatpush3.bf16.msra.mxu1 %v6663_v22 }
 0x433   :  { %2304 = vadd.xlane.f32.xlu1 %v2269_v50  ;;  %v2863_v50 = vld [vmem:[#allocation4 + $0x68] sm:$0xff] }
 0x434   :  { %2302 = vadd.xlane.f32.xlu0 %v2268_v33  ;;  %v6291_v24 = vpop.f32.mrb[36].mxu0  ;;  %v6667_v33 = vpack.c.bf16 %v2863_v50, %v2862_v35 }
 0x435   :  { %v8859_v23 = vadd.f32 %v6291_v24, %v8832_v54  ;;  %v2063_v8 = vpop.f32.mrb[37].mxu0 }
 0x436   :  { %v8862_v15 = vadd.f32 %v8832_v54, %v2063_v8  ;;  %6668 = vmatprep.subr.bf16.mxu1 %v6667_v33 }
 0x437   :  { %2212 = vadd.xlane.f32.xlu1 %v8859_v23  ;;  %v2271_v5 = vmul.f32 %v8859_v23, %v8859_v23  ;;  %6670 = vmatpush3.bf16.msra.mxu1 %v6667_v33 }
 0x438   :  { %2210 = vadd.xlane.f32.xlu0 %v8862_v15  ;;  %v2270_v60 = vmul.f32 %v8862_v15, %v8862_v15 }
 0x43b   :  { %2308 = vadd.xlane.f32.xlu1 %v2271_v5  ;;  %v6294_v27 = vpop.f32.mrb[38].mxu0  ;;  %v2865_v5 = vld [vmem:[#allocation4 + $0x78] sm:$0xff] }
 0x43c   :  { %2306 = vadd.xlane.f32.xlu0 %v2270_v60  ;;  %v8871_v12 = vadd.f32 %v6294_v27, %v8832_v54  ;;  %v2073_v11 = vpop.f32.mrb[39].mxu0  ;;  %v6671_v60 = vpack.c.bf16 %v2865_v5, %v2864_v57 }
 0x43d   :  { %v8874_v46 = vadd.f32 %v8832_v54, %v2073_v11 }
 0x43e   :  { %v2273_v1 = vmul.f32 %v8871_v12, %v8871_v12  ;;  %6672 = vmatprep.subr.bf16.mxu1 %v6671_v60 }
 0x43f   :  { %2216 = vadd.xlane.f32.xlu1 %v8871_v12  ;;  %v2272_v13 = vmul.f32 %v8874_v46, %v8874_v46  ;;  %6674 = vmatpush3.bf16.msra.mxu1 %v6671_v60 }
 0x440   :  { %2214 = vadd.xlane.f32.xlu0 %v8874_v46 }
 0x443   :  { %2312 = vadd.xlane.f32.xlu1 %v2273_v1  ;;  %v6297_v10 = vpop.f32.mrb[40].mxu0 }
 0x444   :  { %2310 = vadd.xlane.f32.xlu0 %v2272_v13  ;;  %v8883_v29 = vadd.f32 %v6297_v10, %v8832_v54  ;;  %v2083_v25 = vpop.f32.mrb[41].mxu0 }
 0x445   :  { %v8886_v7 = vadd.f32 %v8832_v54, %v2083_v25 }
 0x446   :  { %v2275_v32 = vmul.f32 %v8883_v29, %v8883_v29 }
 0x447   :  { %2220 = vadd.xlane.f32.xlu1 %v8883_v29  ;;  %v2274_v45 = vmul.f32 %v8886_v7, %v8886_v7 }
 0x448   :  { %2218 = vadd.xlane.f32.xlu0 %v8886_v7 }
 0x44b   :  { %2316 = vadd.xlane.f32.xlu1 %v2275_v32 }
 0x44c   :  { %2314 = vadd.xlane.f32.xlu0 %v2274_v45  ;;  %v6300_v24 = vpop.f32.mrb[42].mxu0 }
 0x44d   :  { %v8895_v8 = vadd.f32 %v6300_v24, %v8832_v54  ;;  %v2093_v20 = vpop.f32.mrb[43].mxu0 }
 0x44e   :  { %v8898_v37 = vadd.f32 %v8832_v54, %v2093_v20 }
 0x44f   :  { %2224 = vadd.xlane.f32.xlu1 %v8895_v8  ;;  %v2277_v27 = vmul.f32 %v8895_v8, %v8895_v8 }
 0x450   :  { %2222 = vadd.xlane.f32.xlu0 %v8898_v37  ;;  %v2276_v11 = vmul.f32 %v8898_v37, %v8898_v37 }
 0x453   :  { %2320 = vadd.xlane.f32.xlu1 %v2277_v27 }
 0x454   :  { %2318 = vadd.xlane.f32.xlu0 %v2276_v11 }
 0x455   :  { %v6303_v1 = vpop.f32.mrb[44].mxu0 }
 0x456   :  { %v8907_v13 = vadd.f32 %v6303_v1, %v8832_v54  ;;  %v2103_v10 = vpop.f32.mrb[45].mxu0 }
 0x457   :  { %v8910_v25 = vadd.f32 %v8832_v54, %v2103_v10 }
 0x458   :  { %2228 = vadd.xlane.f32.xlu1 %v8907_v13  ;;  %v2279_v32 = vmul.f32 %v8907_v13, %v8907_v13 }
 0x459   :  { %2226 = vadd.xlane.f32.xlu0 %v8910_v25  ;;  %v2278_v18 = vmul.f32 %v8910_v25, %v8910_v25 }
 0x45b   :  { %v6306_v44 = vpop.f32.mrb[46].mxu0 }
 0x45c   :  { %2324 = vadd.xlane.f32.xlu1 %v2279_v32  ;;  %v8919_v35 = vadd.f32 %v6306_v44, %v8832_v54  ;;  %v2113_v45 = vpop.f32.mrb[47].mxu0 }
 0x45d   :  { %2322 = vadd.xlane.f32.xlu0 %v2278_v18  ;;  %v8922_v22 = vadd.f32 %v8832_v54, %v2113_v45 }
 0x45e   :  { %v2281_v50 = vmul.f32 %v8919_v35, %v8919_v35 }
 0x45f   :  { %v2280_v33 = vmul.f32 %v8922_v22, %v8922_v22 }
 0x460   :  { %2232 = vadd.xlane.f32.xlu1 %v8919_v35 }
 0x461   :  { %2230 = vadd.xlane.f32.xlu0 %v8922_v22 }
 0x464   :  { %2328 = vadd.xlane.f32.xlu1 %v2281_v50  ;;  %v6309_v24 = vpop.f32.mrb[48].mxu0 }
 0x465   :  { %2326 = vadd.xlane.f32.xlu0 %v2280_v33  ;;  %v8931_v20 = vadd.f32 %v6309_v24, %v8832_v54  ;;  %v2123_v57 = vpop.f32.mrb[49].mxu0 }
 0x466   :  { %v8934_v5 = vadd.f32 %v8832_v54, %v2123_v57 }
 0x467   :  { %v2283_v60 = vmul.f32 %v8931_v20, %v8931_v20 }
 0x468   :  { %2236 = vadd.xlane.f32.xlu1 %v8931_v20  ;;  %v2282_v27 = vmul.f32 %v8934_v5, %v8934_v5 }
 0x469   :  { %2234 = vadd.xlane.f32.xlu0 %v8934_v5 }
 0x46b   :  { %v6312_v11 = vpop.f32.mrb[50].mxu0 }
 0x46c   :  { %2332 = vadd.xlane.f32.xlu1 %v2283_v60  ;;  %v8943_v1 = vadd.f32 %v6312_v11, %v8832_v54  ;;  %v2133_v10 = vpop.f32.mrb[51].mxu0 }
 0x46d   :  { %2330 = vadd.xlane.f32.xlu0 %v2282_v27  ;;  %v8946_v32 = vadd.f32 %v8832_v54, %v2133_v10 }
 0x46e   :  { %v2285_v18 = vmul.f32 %v8943_v1, %v8943_v1 }
 0x46f   :  { %v2284_v44 = vmul.f32 %v8946_v32, %v8946_v32 }
 0x470   :  { %2240 = vadd.xlane.f32.xlu1 %v8943_v1 }
 0x471   :  { %2238 = vadd.xlane.f32.xlu0 %v8946_v32 }
 0x474   :  { %2336 = vadd.xlane.f32.xlu1 %v2285_v18  ;;  %v6315_v45 = vpop.f32.mrb[52].mxu0 }
 0x475   :  { %2334 = vadd.xlane.f32.xlu0 %v2284_v44  ;;  %v8955_v50 = vadd.f32 %v6315_v45, %v8832_v54  ;;  %v2143_v33 = vpop.f32.mrb[53].mxu0 }
 0x476   :  { %v8958_v24 = vadd.f32 %v8832_v54, %v2143_v33 }
 0x477   :  { %11420 = vst [vmem:[#allocation32_spill] sm:$0xff] %v8955_v50  ;;  %v2287_v57 = vmul.f32 %v8955_v50, %v8955_v50 }
 0x478   :  { %2244 = vadd.xlane.f32.xlu1 %v8955_v50  ;;  %v2286_v60 = vmul.f32 %v8958_v24, %v8958_v24 }
 0x479   :  { %2242 = vadd.xlane.f32.xlu0 %v8958_v24 }
 0x47c   :  { %2340 = vadd.xlane.f32.xlu1 %v2287_v57 }
 0x47d   :  { %2338 = vadd.xlane.f32.xlu0 %v2286_v60  ;;  %v6318_v27 = vpop.f32.mrb[54].mxu0 }
 0x47e   :  { %v8967_v11 = vadd.f32 %v6318_v27, %v8832_v54  ;;  %v2153_v10 = vpop.f32.mrb[55].mxu0 }
 0x47f   :  { %v8970_v18 = vadd.f32 %v8832_v54, %v2153_v10 }
 0x480   :  { %11421 = vst [vmem:[#allocation16_spill] sm:$0xff] %v8967_v11  ;;  %2248 = vadd.xlane.f32.xlu1 %v8967_v11  ;;  %v2289_v44 = vmul.f32 %v8967_v11, %v8967_v11 }
 0x481   :  { %11422 = vst [vmem:[#allocation17_spill] sm:$0xff] %v8970_v18  ;;  %2246 = vadd.xlane.f32.xlu0 %v8970_v18  ;;  %v2288_v45 = vmul.f32 %v8970_v18, %v8970_v18 }
 0x483   :  { %v6321_v33 = vpop.f32.mrb[56].mxu0 }
 0x484   :  { %2344 = vadd.xlane.f32.xlu1 %v2289_v44  ;;  %v8979_v57 = vadd.f32 %v6321_v33, %v8832_v54  ;;  %v2163_v60 = vpop.f32.mrb[57].mxu0 }
 0x485   :  { %2342 = vadd.xlane.f32.xlu0 %v2288_v45  ;;  %v8982_v27 = vadd.f32 %v8832_v54, %v2163_v60 }
 0x486   :  { %11423 = vst [vmem:[#allocation33_spill] sm:$0xff] %v8979_v57  ;;  %v2291_v53 = vmul.f32 %v8979_v57, %v8979_v57 }
 0x487   :  { %11424 = vst [vmem:[#allocation18_spill] sm:$0xff] %v8982_v27  ;;  %v2290_v44 = vmul.f32 %v8982_v27, %v8982_v27 }
 0x488   :  { %2252 = vadd.xlane.f32.xlu1 %v8979_v57 }
 0x489   :  { %2250 = vadd.xlane.f32.xlu0 %v8982_v27 }
 0x48b   :  { %v6324_v10 = vpop.f32.mrb[58].mxu0 }
 0x48c   :  { %v2173_v3 = vpop.f32.mrb[59].mxu0  ;;  %2348 = vadd.xlane.f32.xlu1 %v2291_v53  ;;  %v8991_v33 = vadd.f32 %v6324_v10, %v8832_v54 }
 0x48d   :  { %2346 = vadd.xlane.f32.xlu0 %v2290_v44  ;;  %v8994_v45 = vadd.f32 %v8832_v54, %v2173_v3 }
 0x48e   :  { %11425 = vst [vmem:[#allocation34_spill] sm:$0xff] %v8991_v33  ;;  %v2293_v6 = vmul.f32 %v8991_v33, %v8991_v33 }
 0x48f   :  { %11426 = vst [vmem:[#allocation19_spill] sm:$0xff] %v8994_v45  ;;  %v2292_v28 = vmul.f32 %v8994_v45, %v8994_v45 }
 0x490   :  { %2256 = vadd.xlane.f32.xlu1 %v8991_v33 }
 0x491   :  { %2254 = vadd.xlane.f32.xlu0 %v8994_v45 }
 0x493   :  { %v6327_v60 = vpop.f32.mrb[60].mxu0 }
 0x494   :  { %v2183_v14 = vpop.f32.mrb[61].mxu0  ;;  %2352 = vadd.xlane.f32.xlu1 %v2293_v6  ;;  %v9003_v53 = vadd.f32 %v6327_v60, %v8832_v54 }
 0x495   :  { %2350 = vadd.xlane.f32.xlu0 %v2292_v28  ;;  %v9006_v3 = vadd.f32 %v8832_v54, %v2183_v14 }
 0x496   :  { %11427 = vst [vmem:[#allocation20_spill] sm:$0xff] %v9003_v53  ;;  %v2295_v0 = vmul.f32 %v9003_v53, %v9003_v53 }
 0x497   :  { %11428 = vst [vmem:[#allocation35_spill] sm:$0xff] %v9006_v3  ;;  %v2294_v16 = vmul.f32 %v9006_v3, %v9006_v3 }
 0x498   :  { %2260 = vadd.xlane.f32.xlu1 %v9003_v53 }
 0x499   :  { %2258 = vadd.xlane.f32.xlu0 %v9006_v3 }
 0x49b   :  { %v6330_v10 = vpop.f32.mrb[62].mxu0 }
 0x49c   :  { %v2193_v44 = vpop.f32.mrb[63].mxu0  ;;  %2356 = vadd.xlane.f32.xlu1 %v2295_v0  ;;  %v9015_v6 = vadd.f32 %v6330_v10, %v8832_v54 }
 0x49d   :  { %2354 = vadd.xlane.f32.xlu0 %v2294_v16  ;;  %v9018_v28 = vadd.f32 %v8832_v54, %v2193_v44 }
 0x49e   :  { %11429 = vst [vmem:[#allocation36_spill] sm:$0xff] %v9015_v6  ;;  %v2297_v14 = vmul.f32 %v9015_v6, %v9015_v6 }
 0x49f   :  { %11430 = vst [vmem:[#allocation21_spill] sm:$0xff] %v9018_v28  ;;  %v2296_v60 = vmul.f32 %v9018_v28, %v9018_v28 }
 0x4a0   :  { %2264 = vadd.xlane.f32.xlu1 %v9015_v6 }
 0x4a1   :  { %2262 = vadd.xlane.f32.xlu0 %v9018_v28 }
 0x4a4   :  { %2360 = vadd.xlane.f32.xlu1 %v2297_v14 }
 0x4a5   :  { %2358 = vadd.xlane.f32.xlu0 %v2296_v60 }
 0x4b3   :  { %v2205_v0 = vpop.xlane.xlu1 %2204 }
 0x4b4   :  { %v2363_v3 = vmul.f32 0.0078125, %v2205_v0  ;;  %v2203_v10 = vpop.xlane.xlu0 %2202 }
 0x4b5   :  { %v2362_v53 = vmul.f32 0.0078125, %v2203_v10 }
 0x4b6   :  { %v2427_v61 = vmul.f32 %v2363_v3, %v2363_v3 }
 0x4b7   :  { %v2301_v16 = vpop.xlane.xlu1 %2300  ;;  %v2426_v21 = vmul.f32 %v2362_v53, %v2362_v53  ;;  %v2522_v18 = vsub.f32 %v8838_v36, %v2362_v53  ;;  %v9052_v36 = vld [vmem:[%s11267_s7 + $0x9] ss:$0 sm:$0xff] }
 0x4b8   :  { %v2395_v54 = vmul.f32 0.0078125, %v2301_v16  ;;  %v2299_v44 = vpop.xlane.xlu0 %2298 }
 0x4b9   :  { %v2394_v45 = vmul.f32 0.0078125, %v2299_v44 }
 0x4ba   :  { %v2459_v33 = vsub.f32 %v2395_v54, %v2427_v61 }
 0x4bb   :  { %v2458_v42 = vsub.f32 %v2394_v45, %v2426_v21 }
 0x4bc   :  { %v2491_v63 = vmax.f32 %v2459_v33, 0.0  ;;  %v2209_v6 = vpop.xlane.xlu1 %2208 }
 0x4bd   :  { %v2490_v27 = vmax.f32 %v2458_v42, 0.0  ;;  %v9026_v52 = vmul.f32 0.0078125, %v2209_v6  ;;  %v2207_v14 = vpop.xlane.xlu0 %2206 }
 0x4be   :  { %v2555_v57 = vadd.f32 1e-05, %v2491_v63  ;;  %v9028_v28 = vmul.f32 0.0078125, %v2207_v14 }
 0x4bf   :  { %v2554_v60 = vadd.f32 1e-05, %v2490_v27  ;;  %v2429_v10 = vmul.f32 %v9026_v52, %v9026_v52 }
 0x4c0   :  { %7180 = vrsqrt.f32 %v2555_v57  ;;  %v2305_v0 = vpop.xlane.xlu1 %2304  ;;  %v2428_v21 = vmul.f32 %v9028_v28, %v9028_v28 }
 0x4c1   :  { %7182 = vrsqrt.f32 %v2554_v60  ;;  %v2397_v16 = vmul.f32 0.0078125, %v2305_v0  ;;  %v2303_v44 = vpop.xlane.xlu0 %2302  ;;  %v2523_v60 = vsub.f32 %v8835_v55, %v2363_v3 }
 0x4c2   :  { %v2396_v42 = vmul.f32 0.0078125, %v2303_v44 }
 0x4c3   :  { %v2461_v61 = vsub.f32 %v2397_v16, %v2429_v10  ;;  %v9043_v10 = vld [vmem:[%s11267_s7 + $0x6] ss:$0 sm:$0xff] }
 0x4c4   :  { %v2460_v63 = vsub.f32 %v2396_v42, %v2428_v21  ;;  %v2213_v45 = vpop.xlane.xlu1 %2212 }
 0x4c5   :  { %v2493_v33 = vmax.f32 %v2461_v61, 0.0  ;;  %v9034_v27 = vmul.f32 0.0078125, %v2213_v45  ;;  %v2211_v54 = vpop.xlane.xlu0 %2210 }
 0x4c6   :  { %v2492_v6 = vmax.f32 %v2460_v63, 0.0  ;;  %v9036_v14 = vmul.f32 0.0078125, %v2211_v54 }
 0x4c7   :  { %v2557_v57 = vadd.f32 1e-05, %v2493_v33  ;;  %v2431_v42 = vmul.f32 %v9034_v27, %v9034_v27 }
 0x4c8   :  { %v2556_v2 = vadd.f32 1e-05, %v2492_v6  ;;  %v2309_v16 = vpop.xlane.xlu1 %2308  ;;  %v2430_v55 = vmul.f32 %v9036_v14, %v9036_v14 }
 0x4c9   :  { %7184 = vrsqrt.f32 %v2557_v57  ;;  %v2399_v61 = vmul.f32 0.0078125, %v2309_v16  ;;  %v2307_v63 = vpop.xlane.xlu0 %2306 }
 0x4ca   :  { %v7181_v0 = vpop.eup %7180  ;;  %7186 = vrsqrt.f32 %v2556_v2  ;;  %v2398_v3 = vmul.f32 0.0078125, %v2307_v63 }
 0x4cb   :  { %v7183_v44 = vpop.eup %7182  ;;  %v2619_v21 = vmul.f32 %v7181_v0, %v2523_v60  ;;  %v2463_v45 = vsub.f32 %v2399_v61, %v2431_v42  ;;  %v2524_v42 = vsub.f32 %v8850_v49, %v9028_v28 }
 0x4cc   :  { %v2618_v53 = vmul.f32 %v7183_v44, %v2522_v18  ;;  %v2462_v6 = vsub.f32 %v2398_v3, %v2430_v55  ;;  %v2217_v57 = vpop.xlane.xlu1 %2216 }
 0x4cd   :  { %v2655_v33 = vmul.f32 %v9043_v10, %v2619_v21  ;;  %v2495_v54 = vmax.f32 %v2463_v45, 0.0  ;;  %v9057_v16 = vmul.f32 0.0078125, %v2217_v57  ;;  %v2215_v63 = vpop.xlane.xlu0 %2214  ;;  %v2525_v21 = vsub.f32 %v8847_v62, %v9026_v52 }
 0x4ce   :  { %v2654_v2 = vmul.f32 %v9043_v10, %v2618_v53  ;;  %v2494_v0 = vmax.f32 %v2462_v6, 0.0  ;;  %v9060_v50 = vmul.f32 0.0078125, %v2215_v63 }
 0x4cf   :  { %v2691_v60 = vadd.f32 %v9052_v36, %v2655_v33  ;;  %v2559_v11 = vadd.f32 1e-05, %v2495_v54  ;;  %v2433_v53 = vmul.f32 %v9057_v16, %v9057_v16 }
 0x4d0   :  { %v2690_v17 = vadd.f32 %v9052_v36, %v2654_v2  ;;  %v2558_v44 = vadd.f32 1e-05, %v2494_v0  ;;  %v2313_v61 = vpop.xlane.xlu1 %2312  ;;  %v2432_v54 = vmul.f32 %v9060_v50, %v9060_v50 }
 0x4d1   :  { %vm2723_vm1 = vcmp.gt.f32.partialorder %v2691_v60, 0.0  ;;  %v2755_v18 = vmul.f32 0.01, %v2691_v60  ;;  %7188 = vrsqrt.f32 %v2559_v11  ;;  %v2401_v33 = vmul.f32 0.0078125, %v2313_v61  ;;  %v2311_v45 = vpop.xlane.xlu0 %2310 }
 0x4d2   :  { %vm2722_vm2 = vcmp.gt.f32.partialorder %v2690_v17, 0.0  ;;  %v2754_v55 = vmul.f32 0.01, %v2690_v17  ;;  %7190 = vrsqrt.f32 %v2558_v44  ;;  %v2400_v57 = vmul.f32 0.0078125, %v2311_v45 }
 0x4d3   :  { %v7185_v3 = vpop.eup %7184  ;;  %v2787_v6 = vsel %vm2723_vm1, %v2691_v60, %v2755_v18  ;;  %v2465_v0 = vsub.f32 %v2401_v33, %v2433_v53  ;;  %v2526_v53 = vsub.f32 %v8862_v15, %v9036_v14 }
 0x4d4   :  { %v7187_v2 = vpop.eup %7186  ;;  %v2786_v52 = vsel %vm2722_vm2, %v2690_v17, %v2754_v55  ;;  %v2621_v62 = vmul.f32 %v7185_v3, %v2525_v21  ;;  %v2464_v28 = vsub.f32 %v2400_v57, %v2432_v54  ;;  %v9074_v63 = vadd.f32 %v2787_v6, %v8497_v26  ;;  %v2221_v60 = vpop.xlane.xlu1 %2220 }
 0x4d5   :  { %v9071_v49 = vadd.f32 %v2786_v52, %v8491_v34  ;;  %v2620_v11 = vmul.f32 %v7187_v2, %v2524_v42  ;;  %v2497_v61 = vmax.f32 %v2465_v0, 0.0  ;;  %v9079_v17 = vmul.f32 0.0078125, %v2221_v60  ;;  %v2219_v21 = vpop.xlane.xlu0 %2218 }
 0x4d6   :  { %11431 = vst [vmem:[#allocation22_spill] sm:$0xff] %v9074_v63  ;;  %v2657_v44 = vmul.f32 %v9043_v10, %v2621_v62  ;;  %v2496_v45 = vmax.f32 %v2464_v28, 0.0  ;;  %v9083_v55 = vmul.f32 0.0078125, %v2219_v21  ;;  %v2527_v3 = vsub.f32 %v8859_v23, %v9034_v27 }
 0x4d7   :  { %6363 = vmatprep.mubr.f32.mxu1 %v9071_v49  ;;  %v2656_v18 = vmul.f32 %v9043_v10, %v2620_v11  ;;  %v2561_v42 = vadd.f32 1e-05, %v2497_v61  ;;  %v2435_v6 = vmul.f32 %v9079_v17, %v9079_v17 }
 0x4d8   :  { %6364 = vmatmul.mubr.f32.vlgmr.msra.gmra.mrb[32].mxu1 %v9074_v63  ;;  %v2693_v34 = vadd.f32 %v9052_v36, %v2657_v44  ;;  %v2560_v33 = vadd.f32 1e-05, %v2496_v45  ;;  %v2317_v2 = vpop.xlane.xlu1 %2316  ;;  %v2434_v23 = vmul.f32 %v9083_v55, %v9083_v55 }
 0x4d9   :  { %v2692_v26 = vadd.f32 %v9052_v36, %v2656_v18  ;;  %7192 = vrsqrt.f32 %v2561_v42  ;;  %v2403_v57 = vmul.f32 0.0078125, %v2317_v2  ;;  %v2315_v52 = vpop.xlane.xlu0 %2314 }
 0x4da   :  { %vm2725_vm4 = vcmp.gt.f32.partialorder %v2693_v34, 0.0  ;;  %7194 = vrsqrt.f32 %v2560_v33  ;;  %v2757_v0 = vmul.f32 0.01, %v2693_v34  ;;  %v2402_v27 = vmul.f32 0.0078125, %v2315_v52 }
 0x4db   :  { %vm2724_vm3 = vcmp.gt.f32.partialorder %v2692_v26, 0.0  ;;  %v7189_v54 = vpop.eup %7188  ;;  %v2756_v62 = vmul.f32 0.01, %v2692_v26  ;;  %v2467_v14 = vsub.f32 %v2403_v57, %v2435_v6  ;;  %v2529_v57 = vsub.f32 %v8871_v12, %v9057_v16 }
 0x4dc   :  { %v7191_v11 = vpop.eup %7190  ;;  %v2623_v15 = vmul.f32 %v7189_v54, %v2527_v3  ;;  %v2789_v44 = vsel %vm2725_vm4, %v2693_v34, %v2757_v0  ;;  %v2466_v60 = vsub.f32 %v2402_v27, %v2434_v23  ;;  %v2225_v63 = vpop.xlane.xlu1 %2224 }
 0x4dd   :  { %v2788_v28 = vsel %vm2724_vm3, %v2692_v26, %v2756_v62  ;;  %v2622_v61 = vmul.f32 %v7191_v11, %v2526_v53  ;;  %v2499_v21 = vmax.f32 %v2467_v14, 0.0  ;;  %v9099_v42 = vadd.f32 %v2789_v44, %v8523_v58  ;;  %v2223_v53 = vpop.xlane.xlu0 %2222 }
 0x4de   :  { %v9095_v18 = vadd.f32 %v2788_v28, %v8520_v38  ;;  %v2659_v45 = vmul.f32 %v9043_v10, %v2623_v15  ;;  %v2498_v2 = vmax.f32 %v2466_v60, 0.0  ;;  %v9104_v3 = vmul.f32 0.0078125, %v2225_v63 }
 0x4df   :  { %v2658_v33 = vmul.f32 %v9043_v10, %v2622_v61  ;;  %v2563_v34 = vadd.f32 1e-05, %v2499_v21  ;;  %v9108_v54 = vmul.f32 0.0078125, %v2223_v53  ;;  %v2528_v63 = vsub.f32 %v8874_v46, %v9060_v50 }
 0x4e0   :  { %6366 = vmatprep.mubr.f32.mxu1 %v9095_v18  ;;  %v2695_v26 = vadd.f32 %v9052_v36, %v2659_v45  ;;  %v2562_v6 = vadd.f32 1e-05, %v2498_v2  ;;  %v2321_v62 = vpop.xlane.xlu1 %2320  ;;  %v2437_v23 = vmul.f32 %v9104_v3, %v9104_v3 }
 0x4e1   :  { %6367 = vmatmul.mubr.f32.gmra.mrb[34].mxu1 %v9099_v42  ;;  %v2694_v38 = vadd.f32 %v9052_v36, %v2658_v33  ;;  %7196 = vrsqrt.f32 %v2563_v34  ;;  %v2405_v27 = vmul.f32 0.0078125, %v2321_v62  ;;  %v2319_v15 = vpop.xlane.xlu0 %2318  ;;  %v2436_v12 = vmul.f32 %v9108_v54, %v9108_v54 }
 0x4e2   :  { %vm2727_vm5 = vcmp.gt.f32.partialorder %v2695_v26, 0.0  ;;  %v2759_v58 = vmul.f32 0.01, %v2695_v26  ;;  %7198 = vrsqrt.f32 %v2562_v6  ;;  %v2404_v16 = vmul.f32 0.0078125, %v2319_v15 }
 0x4e3   :  { %vm2726_vm6 = vcmp.gt.f32.partialorder %v2694_v38, 0.0  ;;  %v7193_v52 = vpop.eup %7192  ;;  %v2758_v0 = vmul.f32 0.01, %v2694_v38  ;;  %v2469_v60 = vsub.f32 %v2405_v27, %v2437_v23 }
 0x4e4   :  { %v7195_v11 = vpop.eup %7194  ;;  %v2791_v14 = vsel %vm2727_vm5, %v2695_v26, %v2759_v58  ;;  %v2625_v28 = vmul.f32 %v7193_v52, %v2529_v57  ;;  %v2468_v45 = vsub.f32 %v2404_v16, %v2436_v12  ;;  %v2530_v57 = vsub.f32 %v8886_v7, %v9083_v55 }
 0x4e5   :  { %v2790_v44 = vsel %vm2726_vm6, %v2694_v38, %v2758_v0  ;;  %v2624_v61 = vmul.f32 %v7195_v11, %v2528_v63  ;;  %v2229_v21 = vpop.xlane.xlu1 %2228  ;;  %v9123_v33 = vadd.f32 %v2791_v14, %v8547_v19  ;;  %v2501_v26 = vmax.f32 %v2469_v60, 0.0 }
 0x4e6   :  { %v9119_v46 = vadd.f32 %v2790_v44, %v8544_v47  ;;  %v2661_v50 = vmul.f32 %v9043_v10, %v2625_v28  ;;  %v9126_v34 = vmul.f32 0.0078125, %v2229_v21  ;;  %v2227_v53 = vpop.xlane.xlu0 %2226  ;;  %v2500_v6 = vmax.f32 %v2468_v45, 0.0 }
 0x4e7   :  { %v2660_v2 = vmul.f32 %v9043_v10, %v2624_v61  ;;  %v9130_v47 = vmul.f32 0.0078125, %v2227_v53  ;;  %v2531_v19 = vsub.f32 %v8883_v29, %v9079_v17  ;;  %v2565_v52 = vadd.f32 1e-05, %v2501_v26 }
 0x4e8   :  { %6369 = vmatprep.mubr.f32.mxu1 %v9119_v46  ;;  %v2697_v38 = vadd.f32 %v9052_v36, %v2661_v50  ;;  %v2564_v63 = vadd.f32 1e-05, %v2500_v6  ;;  %v2439_v62 = vmul.f32 %v9126_v34, %v9126_v34 }
 0x4e9   :  { %6370 = vmatmul.mubr.f32.gmra.mrb[36].mxu1 %v9123_v33  ;;  %v2696_v58 = vadd.f32 %v9052_v36, %v2660_v2  ;;  %v2325_v0 = vpop.xlane.xlu1 %2324  ;;  %7200 = vrsqrt.f32 %v2565_v52  ;;  %v2438_v29 = vmul.f32 %v9130_v47, %v9130_v47  ;;  %v2533_v52 = vsub.f32 %v8895_v8, %v9104_v3 }
 0x4ea   :  { %vm2729_vm8 = vcmp.gt.f32.partialorder %v2697_v38, 0.0  ;;  %v2407_v23 = vmul.f32 0.0078125, %v2325_v0  ;;  %v2323_v27 = vpop.xlane.xlu0 %2322  ;;  %v2761_v14 = vmul.f32 0.01, %v2697_v38  ;;  %7202 = vrsqrt.f32 %v2564_v63 }
 0x4eb   :  { %vm2728_vm7 = vcmp.gt.f32.partialorder %v2696_v58, 0.0  ;;  %v7197_v11 = vpop.eup %7196  ;;  %v2760_v15 = vmul.f32 0.01, %v2696_v58  ;;  %v2406_v7 = vmul.f32 0.0078125, %v2323_v27  ;;  %v2532_v8 = vsub.f32 %v8898_v37, %v9108_v54 }
 0x4ec   :  { %v7199_v28 = vpop.eup %7198  ;;  %v2627_v17 = vmul.f32 %v7197_v11, %v2531_v19  ;;  %v2471_v55 = vsub.f32 %v2407_v23, %v2439_v62  ;;  %v2793_v16 = vsel %vm2729_vm8, %v2697_v38, %v2761_v14 }
 0x4ed   :  { %v2792_v12 = vsel %vm2728_vm7, %v2696_v58, %v2760_v15  ;;  %v2626_v44 = vmul.f32 %v7199_v28, %v2530_v57  ;;  %v2470_v61 = vsub.f32 %v2406_v7, %v2438_v29  ;;  %v2233_v60 = vpop.xlane.xlu1 %2232  ;;  %v9149_v53 = vadd.f32 %v2793_v16, %v8576_v40 }
 0x4ee   :  { %v9143_v50 = vadd.f32 %v2792_v12, %v8568_v43  ;;  %v2663_v45 = vmul.f32 %v9043_v10, %v2627_v17  ;;  %v2503_v21 = vmax.f32 %v2471_v55, 0.0  ;;  %v9146_v2 = vmul.f32 0.0078125, %v2233_v60  ;;  %v2231_v26 = vpop.xlane.xlu0 %2230 }
 0x4ef   :  { %v2662_v6 = vmul.f32 %v9043_v10, %v2626_v44  ;;  %v2502_v19 = vmax.f32 %v2470_v61, 0.0  ;;  %v9152_v58 = vmul.f32 0.0078125, %v2231_v26 }
 0x4f0   :  { %6372 = vmatprep.mubr.f32.mxu1 %v9143_v50  ;;  %v2699_v38 = vadd.f32 %v9052_v36, %v2663_v45  ;;  %v2567_v43 = vadd.f32 1e-05, %v2503_v21  ;;  %v2441_v40 = vmul.f32 %v9146_v2, %v9146_v2 }
 0x4f1   :  { %6373 = vmatmul.mubr.f32.gmra.mrb[38].mxu1 %v9149_v53  ;;  %v2698_v57 = vadd.f32 %v9052_v36, %v2662_v6  ;;  %v2566_v63 = vadd.f32 1e-05, %v2502_v19  ;;  %v2329_v62 = vpop.xlane.xlu1 %2328  ;;  %v2440_v27 = vmul.f32 %v9152_v58, %v9152_v58 }
 0x4f2   :  { %vm2731_vm9 = vcmp.gt.f32.partialorder %v2699_v38, 0.0  ;;  %7204 = vrsqrt.f32 %v2567_v43  ;;  %v2409_v0 = vmul.f32 0.0078125, %v2329_v62  ;;  %v2327_v11 = vpop.xlane.xlu0 %2326  ;;  %v2763_v14 = vmul.f32 0.01, %v2699_v38 }
 0x4f3   :  { %vm2730_vm10 = vcmp.gt.f32.partialorder %v2698_v57, 0.0  ;;  %v2762_v23 = vmul.f32 0.01, %v2698_v57  ;;  %7206 = vrsqrt.f32 %v2566_v63  ;;  %v2408_v15 = vmul.f32 0.0078125, %v2327_v11  ;;  %v7201_v28 = vpop.eup %7200 }
 0x4f4   :  { %v2473_v3 = vsub.f32 %v2409_v0, %v2441_v40  ;;  %v7203_v7 = vpop.eup %7202  ;;  %v2795_v16 = vsel %vm2731_vm9, %v2699_v38, %v2763_v14  ;;  %v2629_v44 = vmul.f32 %v7201_v28, %v2533_v52  ;;  %v2535_v38 = vsub.f32 %v8907_v13, %v9126_v34 }
 0x4f5   :  { %v2794_v29 = vsel %vm2730_vm10, %v2698_v57, %v2762_v23  ;;  %v2472_v17 = vsub.f32 %v2408_v15, %v2440_v27  ;;  %v2237_v55 = vpop.xlane.xlu1 %2236  ;;  %v9173_v21 = vadd.f32 %v2795_v16, %v8600_v9  ;;  %v2628_v26 = vmul.f32 %v7203_v7, %v2532_v8 }
 0x4f6   :  { %v9167_v12 = vadd.f32 %v2794_v29, %v8596_v39  ;;  %v2505_v61 = vmax.f32 %v2473_v3, 0.0  ;;  %v9170_v60 = vmul.f32 0.0078125, %v2237_v55  ;;  %v2235_v45 = vpop.xlane.xlu0 %2234  ;;  %v2665_v6 = vmul.f32 %v9043_v10, %v2629_v44 }
 0x4f7   :  { %v2504_v37 = vmax.f32 %v2472_v17, 0.0  ;;  %v9175_v54 = vmul.f32 0.0078125, %v2235_v45  ;;  %v2664_v19 = vmul.f32 %v9043_v10, %v2628_v26  ;;  %v2534_v14 = vsub.f32 %v8910_v25, %v9130_v47 }
 0x4f8   :  { %6375 = vmatprep.mubr.f32.mxu1 %v9167_v12  ;;  %v2569_v39 = vadd.f32 1e-05, %v2505_v61  ;;  %v2443_v9 = vmul.f32 %v9170_v60, %v9170_v60  ;;  %v2701_v52 = vadd.f32 %v9052_v36, %v2665_v6  ;;  %v2537_v47 = vsub.f32 %v8919_v35, %v9146_v2 }
 0x4f9   :  { %6376 = vmatmul.mubr.f32.gmra.mrb[40].mxu1 %v9173_v21  ;;  %v2568_v43 = vadd.f32 1e-05, %v2504_v37  ;;  %v2333_v57 = vpop.xlane.xlu1 %2332  ;;  %v2442_v63 = vmul.f32 %v9175_v54, %v9175_v54  ;;  %v2700_v0 = vadd.f32 %v9052_v36, %v2664_v19 }
 0x4fa   :  { %7208 = vrsqrt.f32 %v2569_v39  ;;  %v2411_v40 = vmul.f32 0.0078125, %v2333_v57  ;;  %v2331_v62 = vpop.xlane.xlu0 %2330  ;;  %vm2733_vm11 = vcmp.gt.f32.partialorder %v2701_v52, 0.0  ;;  %v2765_v23 = vmul.f32 0.01, %v2701_v52 }
 0x4fb   :  { %7210 = vrsqrt.f32 %v2568_v43  ;;  %v2410_v11 = vmul.f32 0.0078125, %v2331_v62  ;;  %vm2732_vm12 = vcmp.gt.f32.partialorder %v2700_v0, 0.0  ;;  %v2764_v27 = vmul.f32 0.01, %v2700_v0 }
 0x4fc   :  { %v7205_v13 = vpop.eup %7204  ;;  %v2475_v34 = vsub.f32 %v2411_v40, %v2443_v9  ;;  %v2797_v3 = vsel %vm2733_vm11, %v2701_v52, %v2765_v23 }
 0x4fd   :  { %v7207_v15 = vpop.eup %7206  ;;  %v2474_v28 = vsub.f32 %v2410_v11, %v2442_v63  ;;  %v2241_v8 = vpop.xlane.xlu1 %2240  ;;  %v2631_v29 = vmul.f32 %v7205_v13, %v2535_v38  ;;  %v2796_v16 = vsel %vm2732_vm12, %v2700_v0, %v2764_v27  ;;  %v9199_v6 = vadd.f32 %v2797_v3, %v8630_v4 }
 0x4fe   :  { %v2507_v7 = vmax.f32 %v2475_v34, 0.0  ;;  %v9191_v17 = vmul.f32 0.0078125, %v2241_v8  ;;  %v2239_v55 = vpop.xlane.xlu0 %2238  ;;  %v9196_v45 = vadd.f32 %v2796_v16, %v8623_v41  ;;  %v2630_v26 = vmul.f32 %v7207_v15, %v2534_v14 }
 0x4ff   :  { %v2506_v44 = vmax.f32 %v2474_v28, 0.0  ;;  %v9193_v61 = vmul.f32 0.0078125, %v2239_v55  ;;  %v2667_v25 = vmul.f32 %v9043_v10, %v2631_v29  ;;  %v2536_v63 = vsub.f32 %v8922_v22, %v9152_v58 }
 0x500   :  { %v2571_v37 = vadd.f32 1e-05, %v2507_v7  ;;  %6378 = vmatprep.mubr.f32.mxu1 %v9196_v45  ;;  %v2666_v38 = vmul.f32 %v9043_v10, %v2630_v26  ;;  %v2445_v41 = vmul.f32 %v9191_v17, %v9191_v17 }
 0x501   :  { %v2570_v39 = vadd.f32 1e-05, %v2506_v44  ;;  %v2337_v19 = vpop.xlane.xlu1 %2336  ;;  %6379 = vmatmul.mubr.f32.gmra.mrb[42].mxu1 %v9199_v6  ;;  %v2703_v4 = vadd.f32 %v9052_v36, %v2667_v25  ;;  %v2444_v35 = vmul.f32 %v9193_v61, %v9193_v61 }
 0x502   :  { %7212 = vrsqrt.f32 %v2571_v37  ;;  %v2413_v43 = vmul.f32 0.0078125, %v2337_v19  ;;  %v2335_v9 = vpop.xlane.xlu0 %2334  ;;  %v2702_v57 = vadd.f32 %v9052_v36, %v2666_v38 }
 0x503   :  { %7214 = vrsqrt.f32 %v2570_v39  ;;  %v2412_v2 = vmul.f32 0.0078125, %v2335_v9  ;;  %vm2735_vm13 = vcmp.gt.f32.partialorder %v2703_v4, 0.0  ;;  %v2767_v62 = vmul.f32 0.01, %v2703_v4 }
 0x504   :  { %v7209_v52 = vpop.eup %7208  ;;  %v2477_v40 = vsub.f32 %v2413_v43, %v2445_v41  ;;  %vm2734_vm14 = vcmp.gt.f32.partialorder %v2702_v57, 0.0  ;;  %v2766_v13 = vmul.f32 0.01, %v2702_v57  ;;  %v2538_v43 = vsub.f32 %v8934_v5, %v9175_v54 }
 0x505   :  { %v7211_v0 = vpop.eup %7210  ;;  %v2476_v11 = vsub.f32 %v2412_v2, %v2444_v35  ;;  %v2245_v23 = vpop.xlane.xlu1 %2244  ;;  %v2633_v34 = vmul.f32 %v7209_v52, %v2537_v47  ;;  %v2799_v28 = vsel %vm2735_vm13, %v2703_v4, %v2767_v62 }
 0x506   :  { %v2509_v27 = vmax.f32 %v2477_v40, 0.0  ;;  %v9215_v15 = vmul.f32 0.0078125, %v2245_v23  ;;  %v2243_v14 = vpop.xlane.xlu0 %2242  ;;  %v2632_v8 = vmul.f32 %v7211_v0, %v2536_v63  ;;  %v2798_v7 = vsel %vm2734_vm14, %v2702_v57, %v2766_v13 }
 0x507   :  { %v2508_v3 = vmax.f32 %v2476_v11, 0.0  ;;  %v9217_v29 = vmul.f32 0.0078125, %v2243_v14  ;;  %v9220_v58 = vadd.f32 %v2798_v7, %v8644_v30  ;;  %v9223_v44 = vadd.f32 %v2799_v28, %v8654_v59 }
 0x508   :  { %v2573_v22 = vadd.f32 1e-05, %v2509_v27  ;;  %v2668_v26 = vmul.f32 %v9043_v10, %v2632_v8  ;;  %v2447_v37 = vmul.f32 %v9215_v15, %v9215_v15  ;;  %v2669_v39 = vmul.f32 %v9043_v10, %v2633_v34 }
 0x509   :  { %v2572_v55 = vadd.f32 1e-05, %v2508_v3  ;;  %v2341_v16 = vpop.xlane.xlu1 %2340  ;;  %6381 = vmatprep.mubr.f32.mxu1 %v9220_v58  ;;  %v2539_v30 = vsub.f32 %v8931_v20, %v9170_v60  ;;  %v2446_v19 = vmul.f32 %v9217_v29, %v9217_v29  ;;  %v2541_v34 = vsub.f32 %v8943_v1, %v9191_v17 }
 0x50a   :  { %7216 = vrsqrt.f32 %v2573_v22  ;;  %v2415_v25 = vmul.f32 0.0078125, %v2341_v16  ;;  %v2339_v47 = vpop.xlane.xlu0 %2338  ;;  %6382 = vmatmul.mubr.f32.gmra.mrb[44].mxu1 %v9223_v44  ;;  %v2704_v38 = vadd.f32 %v9052_v36, %v2668_v26  ;;  %v2705_v4 = vadd.f32 %v9052_v36, %v2669_v39 }
 0x50b   :  { %v2414_v59 = vmul.f32 0.0078125, %v2339_v47  ;;  %7218 = vrsqrt.f32 %v2572_v55 }
 0x50c   :  { %v7213_v41 = vpop.eup %7212  ;;  %v2479_v9 = vsub.f32 %v2415_v25, %v2447_v37  ;;  %vm2736_vm15 = vcmp.gt.f32.partialorder %v2704_v38, 0.0  ;;  %v2768_v20 = vmul.f32 0.01, %v2704_v38  ;;  %vm2737_vm0 = vcmp.gt.f32.partialorder %v2705_v4, 0.0 }
 0x50d   :  { %v7215_v35 = vpop.eup %7214  ;;  %v2478_v2 = vsub.f32 %v2414_v59, %v2446_v19  ;;  %v2249_v57 = vpop.xlane.xlu1 %2248  ;;  %v2635_v60 = vmul.f32 %v7213_v41, %v2539_v30  ;;  %v2769_v62 = vmul.f32 0.01, %v2705_v4 }
 0x50e   :  { %v2511_v52 = vmax.f32 %v2479_v9, 0.0  ;;  %v9239_v63 = vmul.f32 0.0078125, %v2249_v57  ;;  %v2247_v40 = vpop.xlane.xlu0 %2246  ;;  %v2800_v5 = vsel %vm2736_vm15, %v2704_v38, %v2768_v20  ;;  %v2634_v54 = vmul.f32 %v7215_v35, %v2538_v43 }
 0x50f   :  { %v2510_v0 = vmax.f32 %v2478_v2, 0.0  ;;  %v9241_v11 = vmul.f32 0.0078125, %v2247_v40  ;;  %v9244_v13 = vadd.f32 %v2800_v5, %v8668_v51  ;;  %v2801_v8 = vsel %vm2737_vm0, %v2705_v4, %v2769_v62 }
 0x510   :  { %v2575_v23 = vadd.f32 1e-05, %v2511_v52  ;;  %v2449_v14 = vmul.f32 %v9239_v63, %v9239_v63  ;;  %v9252_v22 = vadd.f32 %v2801_v8, %v8678_v56  ;;  %v2670_v51 = vmul.f32 %v9043_v10, %v2634_v54 }
 0x511   :  { %v2574_v27 = vadd.f32 1e-05, %v2510_v0  ;;  %v2345_v28 = vpop.xlane.xlu1 %2344  ;;  %6384 = vmatprep.mubr.f32.mxu1 %v9244_v13  ;;  %v2448_v1 = vmul.f32 %v9241_v11, %v9241_v11  ;;  %v2671_v55 = vmul.f32 %v9043_v10, %v2635_v60  ;;  %v2540_v35 = vsub.f32 %v8946_v32, %v9193_v61 }
 0x512   :  { %7220 = vrsqrt.f32 %v2575_v23  ;;  %v2417_v3 = vmul.f32 0.0078125, %v2345_v28  ;;  %v2343_v7 = vpop.xlane.xlu0 %2342  ;;  %6385 = vmatmul.mubr.f32.gmra.mrb[46].mxu1 %v9252_v22  ;;  %v2706_v37 = vadd.f32 %v9052_v36, %v2670_v51 }
 0x513   :  { %7222 = vrsqrt.f32 %v2574_v27  ;;  %v2416_v17 = vmul.f32 0.0078125, %v2343_v7  ;;  %v2707_v56 = vadd.f32 %v9052_v36, %v2671_v55 }
 0x514   :  { %v7217_v16 = vpop.eup %7216  ;;  %v2481_v26 = vsub.f32 %v2417_v3, %v2449_v14  ;;  %vm2738_vm1 = vcmp.gt.f32.partialorder %v2706_v37, 0.0  ;;  %v2770_v41 = vmul.f32 0.01, %v2706_v37  ;;  %v11432_v3 = vld [vmem:[#allocation32_spill] sm:$0xff] }
 0x515   :  { %v2480_v25 = vsub.f32 %v2416_v17, %v2448_v1  ;;  %v2253_v47 = vpop.xlane.xlu1 %2252  ;;  %v2637_v39 = vmul.f32 %v7217_v16, %v2541_v34  ;;  %v7219_v30 = vpop.eup %7218  ;;  %vm2739_vm2 = vcmp.gt.f32.partialorder %v2707_v56, 0.0  ;;  %v2771_v4 = vmul.f32 0.01, %v2707_v56 }
 0x516   :  { %v2513_v19 = vmax.f32 %v2481_v26, 0.0  ;;  %v9261_v59 = vmul.f32 0.0078125, %v2253_v47  ;;  %v2251_v38 = vpop.xlane.xlu0 %2250  ;;  %v2802_v57 = vsel %vm2738_vm1, %v2706_v37, %v2770_v41  ;;  %v2636_v23 = vmul.f32 %v7219_v30, %v2540_v35 }
 0x517   :  { %v2512_v43 = vmax.f32 %v2480_v25, 0.0  ;;  %v9263_v9 = vmul.f32 0.0078125, %v2251_v38  ;;  %v9272_v40 = vadd.f32 %v2802_v57, %v8692_v31  ;;  %v2803_v54 = vsel %vm2739_vm2, %v2707_v56, %v2771_v4  ;;  %v11433_v56 = vld [vmem:[#allocation16_spill] sm:$0xff] }
 0x518   :  { %v2577_v2 = vadd.f32 1e-05, %v2513_v19  ;;  %v2451_v60 = vmul.f32 %v9261_v59, %v9261_v59  ;;  %v9276_v61 = vadd.f32 %v2803_v54, %v8702_v48  ;;  %v2673_v34 = vmul.f32 %v9043_v10, %v2637_v39 }
 0x519   :  { %v2576_v20 = vadd.f32 1e-05, %v2512_v43  ;;  %v2450_v52 = vmul.f32 %v9263_v9, %v9263_v9  ;;  %v2349_v62 = vpop.xlane.xlu1 %2348  ;;  %6387 = vmatprep.mubr.f32.mxu1 %v9272_v40  ;;  %v2542_v31 = vsub.f32 %v8958_v24, %v9217_v29  ;;  %v2672_v28 = vmul.f32 %v9043_v10, %v2636_v23 }
 0x51a   :  { %7224 = vrsqrt.f32 %v2577_v2  ;;  %v2419_v0 = vmul.f32 0.0078125, %v2349_v62  ;;  %v2347_v5 = vpop.xlane.xlu0 %2346  ;;  %v2543_v7 = vsub.f32 %v11432_v3, %v9215_v15  ;;  %6388 = vmatmul.mubr.f32.gmra.mrb[48].mxu1 %v9276_v61  ;;  %v2709_v48 = vadd.f32 %v9052_v36, %v2673_v34 }
 0x51b   :  { %7226 = vrsqrt.f32 %v2576_v20  ;;  %v2418_v32 = vmul.f32 0.0078125, %v2347_v5  ;;  %v2708_v26 = vadd.f32 %v9052_v36, %v2672_v28  ;;  %v2545_v39 = vsub.f32 %v11433_v56, %v9239_v63  ;;  %v11434_v63 = vld [vmem:[#allocation9_spill] sm:$0xff] }
 0x51c   :  { %v7221_v27 = vpop.eup %7220  ;;  %v2483_v14 = vsub.f32 %v2419_v0, %v2451_v60  ;;  %vm2741_vm3 = vcmp.gt.f32.partialorder %v2709_v48, 0.0  ;;  %v2773_v25 = vmul.f32 0.01, %v2709_v48 }
 0x51d   :  { %v7223_v8 = vpop.eup %7222  ;;  %v2482_v51 = vsub.f32 %v2418_v32, %v2450_v52  ;;  %v2257_v1 = vpop.xlane.xlu1 %2256  ;;  %vm2740_vm4 = vcmp.gt.f32.partialorder %v2708_v26, 0.0  ;;  %v2639_v15 = vmul.f32 %v7221_v27, %v2543_v7  ;;  %v2772_v38 = vmul.f32 0.01, %v2708_v26  ;;  %v11435_v32 = vld [vmem:[#allocation17_spill] sm:$0xff] }
 0x51e   :  { %v2515_v17 = vmax.f32 %v2483_v14, 0.0  ;;  %v9286_v55 = vmul.f32 0.0078125, %v2257_v1  ;;  %v2255_v16 = vpop.xlane.xlu0 %2254  ;;  %v2638_v24 = vmul.f32 %v7223_v8, %v2542_v31  ;;  %v2805_v35 = vsel %vm2741_vm3, %v2709_v48, %v2773_v25  ;;  %v11436_v31 = vld [vmem:[#allocation25_spill] sm:$0xff] }
 0x51f   :  { %v2514_v29 = vmax.f32 %v2482_v51, 0.0  ;;  %v9289_v37 = vmul.f32 0.0078125, %v2255_v16  ;;  %v2804_v20 = vsel %vm2740_vm4, %v2708_v26, %v2772_v38  ;;  %v2675_v54 = vmul.f32 %v9043_v10, %v2639_v15  ;;  %v11438_v15 = vld [vmem:[#allocation26_spill] sm:$0xff] }
 0x520   :  { %v2579_v47 = vadd.f32 1e-05, %v2515_v17  ;;  %v2453_v19 = vmul.f32 %v9286_v55, %v9286_v55  ;;  %v2674_v2 = vmul.f32 %v9043_v10, %v2638_v24  ;;  %v9299_v62 = vadd.f32 %v2804_v20, %v11434_v63  ;;  %v11441_v20 = vld [vmem:[#allocation18_spill] sm:$0xff] }
 0x521   :  { %v2578_v30 = vadd.f32 1e-05, %v2514_v29  ;;  %v2353_v41 = vpop.xlane.xlu1 %2352  ;;  %v2452_v57 = vmul.f32 %v9289_v37, %v9289_v37  ;;  %v2544_v34 = vsub.f32 %v11435_v32, %v9241_v11  ;;  %v9306_v14 = vadd.f32 %v2805_v35, %v11436_v31 }
 0x522   :  { %7228 = vrsqrt.f32 %v2579_v47  ;;  %v2421_v43 = vmul.f32 0.0078125, %v2353_v41  ;;  %v2351_v4 = vpop.xlane.xlu0 %2350  ;;  %v2710_v5 = vadd.f32 %v9052_v36, %v2674_v2  ;;  %6390 = vmatprep.mubr.f32.mxu1 %v9299_v62  ;;  %v2711_v11 = vadd.f32 %v9052_v36, %v2675_v54  ;;  %v11440_v2 = vld [vmem:[#allocation33_spill] sm:$0xff]  ;;  %v11442_v54 = vld [vmem:[#allocation10_spill] sm:$0xff] }
 0x523   :  { %7230 = vrsqrt.f32 %v2578_v30  ;;  %v2420_v60 = vmul.f32 0.0078125, %v2351_v4  ;;  %11437 = vst [vmem:[#allocation23_spill] sm:$0xff] %v9306_v14  ;;  %6391 = vmatmul.mubr.f32.gmra.mrb[50].mxu1 %v9306_v14 }
 0x524   :  { %v7225_v52 = vpop.eup %7224  ;;  %v2485_v0 = vsub.f32 %v2421_v43, %v2453_v19  ;;  %vm2742_vm5 = vcmp.gt.f32.partialorder %v2710_v5, 0.0  ;;  %v2774_v1 = vmul.f32 0.01, %v2710_v5  ;;  %vm2743_vm6 = vcmp.gt.f32.partialorder %v2711_v11, 0.0 }
 0x525   :  { %v7227_v23 = vpop.eup %7226  ;;  %v2484_v27 = vsub.f32 %v2420_v60, %v2452_v57  ;;  %v2261_v28 = vpop.xlane.xlu1 %2260  ;;  %v2641_v8 = vmul.f32 %v7225_v52, %v2545_v39  ;;  %v2775_v38 = vmul.f32 0.01, %v2711_v11  ;;  %v2547_v57 = vsub.f32 %v11440_v2, %v9261_v59  ;;  %v11447_v2 = vld [vmem:[#allocation19_spill] sm:$0xff] }
 0x526   :  { %v2517_v3 = vmax.f32 %v2485_v0, 0.0  ;;  %v9309_v7 = vmul.f32 0.0078125, %v2261_v28  ;;  %v2259_v51 = vpop.xlane.xlu0 %2258  ;;  %v2640_v16 = vmul.f32 %v7227_v23, %v2544_v34  ;;  %v2806_v24 = vsel %vm2742_vm5, %v2710_v5, %v2774_v1 }
 0x527   :  { %v2516_v48 = vmax.f32 %v2484_v27, 0.0  ;;  %v9312_v17 = vmul.f32 0.0078125, %v2259_v51  ;;  %v9320_v56 = vadd.f32 %v2806_v24, %v11438_v15  ;;  %v2677_v4 = vmul.f32 %v9043_v10, %v2641_v8 }
 0x528   :  { %v2581_v26 = vadd.f32 1e-05, %v2517_v3  ;;  %v2455_v25 = vmul.f32 %v9309_v7, %v9309_v7  ;;  %v2676_v43 = vmul.f32 %v9043_v10, %v2640_v16  ;;  %v2546_v60 = vsub.f32 %v11441_v20, %v9263_v9 }
 0x529   :  { %v2580_v29 = vadd.f32 1e-05, %v2516_v48  ;;  %v2454_v47 = vmul.f32 %v9312_v17, %v9312_v17  ;;  %11439 = vst [vmem:[#allocation24_spill] sm:$0xff] %v9320_v56  ;;  %v2357_v39 = vpop.xlane.xlu1 %2356  ;;  %6393 = vmatprep.mubr.f32.mxu1 %v9320_v56  ;;  %v2807_v63 = vsel %vm2743_vm6, %v2711_v11, %v2775_v38  ;;  %v2713_v27 = vadd.f32 %v9052_v36, %v2677_v4  ;;  %v11446_v4 = vld [vmem:[#allocation34_spill] sm:$0xff] }
 0x52a   :  { %7232 = vrsqrt.f32 %v2581_v26  ;;  %v2423_v30 = vmul.f32 0.0078125, %v2357_v39  ;;  %v2355_v19 = vpop.xlane.xlu0 %2354  ;;  %v9330_v23 = vadd.f32 %v2807_v63, %v11442_v54  ;;  %v2712_v34 = vadd.f32 %v9052_v36, %v2676_v43 }
 0x52b   :  { %7234 = vrsqrt.f32 %v2580_v29  ;;  %v2422_v41 = vmul.f32 0.0078125, %v2355_v19  ;;  %vm2745_vm8 = vcmp.gt.f32.partialorder %v2713_v27, 0.0 }
 0x52c   :  { %v7229_v35 = vpop.eup %7228  ;;  %v2487_v52 = vsub.f32 %v2423_v30, %v2455_v25  ;;  %11443 = vst [vmem:[#allocation32_spill] sm:$0xff] %v9330_v23  ;;  %6394 = vmatmul.mubr.f32.gmra.mrb[52].mxu1 %v9330_v23  ;;  %vm2744_vm7 = vcmp.gt.f32.partialorder %v2712_v34, 0.0  ;;  %v2776_v1 = vmul.f32 0.01, %v2712_v34  ;;  %v11444_v25 = vld [vmem:[#allocation11_spill] sm:$0xff] }
 0x52d   :  { %v7231_v0 = vpop.eup %7230  ;;  %v2486_v5 = vsub.f32 %v2422_v41, %v2454_v47  ;;  %v2265_v32 = vpop.xlane.xlu1 %2264  ;;  %v2643_v3 = vmul.f32 %v7229_v35, %v2547_v57  ;;  %v2777_v30 = vmul.f32 0.01, %v2713_v27  ;;  %v2549_v35 = vsub.f32 %v11446_v4, %v9286_v55 }
 0x52e   :  { %v2519_v31 = vmax.f32 %v2487_v52, 0.0  ;;  %v9334_v28 = vmul.f32 0.0078125, %v2265_v32  ;;  %v2263_v8 = vpop.xlane.xlu0 %2262  ;;  %v2642_v59 = vmul.f32 %v7231_v0, %v2546_v60  ;;  %v2808_v24 = vsel %vm2744_vm7, %v2712_v34, %v2776_v1  ;;  %v11448_v0 = vld [vmem:[#allocation27_spill] sm:$0xff] }
 0x52f   :  { %v2518_v51 = vmax.f32 %v2486_v5, 0.0  ;;  %v9337_v9 = vmul.f32 0.0078125, %v2263_v8  ;;  %v9344_v47 = vadd.f32 %v2808_v24, %v11444_v25  ;;  %v2679_v41 = vmul.f32 %v9043_v10, %v2643_v3 }
 0x530   :  { %v2583_v48 = vadd.f32 1e-05, %v2519_v31  ;;  %v2457_v11 = vmul.f32 %v9334_v28, %v9334_v28  ;;  %v2678_v38 = vmul.f32 %v9043_v10, %v2642_v59  ;;  %v2548_v57 = vsub.f32 %v11447_v2, %v9289_v37 }
 0x531   :  { %v2582_v16 = vadd.f32 1e-05, %v2518_v51  ;;  %v2456_v26 = vmul.f32 %v9337_v9, %v9337_v9  ;;  %v2361_v29 = vpop.xlane.xlu1 %2360  ;;  %11445 = vst [vmem:[#allocation16_spill] sm:$0xff] %v9344_v47  ;;  %6396 = vmatprep.mubr.f32.mxu1 %v9344_v47  ;;  %v2809_v60 = vsel %vm2745_vm8, %v2713_v27, %v2777_v30  ;;  %v2715_v32 = vadd.f32 %v9052_v36, %v2679_v41 }
 0x532   :  { %7236 = vrsqrt.f32 %v2583_v48  ;;  %v2425_v15 = vmul.f32 0.0078125, %v2361_v29  ;;  %v2359_v39 = vpop.xlane.xlu0 %2358  ;;  %v9354_v5 = vadd.f32 %v2809_v60, %v11448_v0  ;;  %v2714_v54 = vadd.f32 %v9052_v36, %v2678_v38  ;;  %v11452_v29 = vld [vmem:[#allocation20_spill] sm:$0xff] }
 0x533   :  { %7238 = vrsqrt.f32 %v2582_v16  ;;  %v2424_v19 = vmul.f32 0.0078125, %v2359_v39  ;;  %vm2747_vm10 = vcmp.gt.f32.partialorder %v2715_v32, 0.0  ;;  %v2779_v27 = vmul.f32 0.01, %v2715_v32 }
 0x534   :  { %v7233_v43 = vpop.eup %7232  ;;  %v2489_v20 = vsub.f32 %v2425_v15, %v2457_v11  ;;  %11449 = vst [vmem:[#allocation9_spill] sm:$0xff] %v9354_v5  ;;  %6397 = vmatmul.mubr.f32.gmra.mrb[54].mxu1 %v9354_v5  ;;  %vm2746_vm9 = vcmp.gt.f32.partialorder %v2714_v54, 0.0  ;;  %v2778_v37 = vmul.f32 0.01, %v2714_v54  ;;  %v11450_v11 = vld [vmem:[#allocation28_spill] sm:$0xff]  ;;  %v2551_v25 = vsub.f32 %v11452_v29, %v9309_v7 }
 0x535   :  { %v7235_v52 = vpop.eup %7234  ;;  %v2488_v63 = vsub.f32 %v2424_v19, %v2456_v26  ;;  %v2645_v8 = vmul.f32 %v7233_v43, %v2549_v35  ;;  %v2811_v26 = vsel %vm2747_vm10, %v2715_v32, %v2779_v27  ;;  %v11453_v15 = vld [vmem:[#allocation12_spill] sm:$0xff] }
 0x536   :  { %v2521_v34 = vmax.f32 %v2489_v20, 0.0  ;;  %v2644_v31 = vmul.f32 %v7235_v52, %v2548_v57  ;;  %v2810_v48 = vsel %vm2746_vm9, %v2714_v54, %v2778_v37  ;;  %v9368_v39 = vadd.f32 %v2811_v26, %v11453_v15  ;;  %v11456_v57 = vld [vmem:[#allocation13_spill] sm:$0xff]  ;;  %v9392_v54 = vld [vmem:[%s11267_s7 + $0x9] ss:$0 sm:$0xff] }
 0x537   :  { %v2520_v55 = vmax.f32 %v2488_v63, 0.0  ;;  %v2681_v51 = vmul.f32 %v9043_v10, %v2645_v8  ;;  %v9362_v16 = vadd.f32 %v2810_v48, %v11450_v11  ;;  %v11458_v52 = vld [vmem:[#allocation29_spill] sm:$0xff]  ;;  %v11464_v15 = vld [vmem:[#allocation14_spill] sm:$0xff] }
 0x538   :  { %v2585_v59 = vadd.f32 1e-05, %v2521_v34  ;;  %v2680_v3 = vmul.f32 %v9043_v10, %v2644_v31  ;;  %11454 = vst [vmem:[#allocation25_spill] sm:$0xff] %v9368_v39  ;;  %v11455_v10 = vld [vmem:[#allocation35_spill] sm:$0xff]  ;;  %v11460_v31 = vld [vmem:[#allocation36_spill] sm:$0xff] }
 0x539   :  { %v2584_v1 = vadd.f32 1e-05, %v2520_v55  ;;  %11451 = vst [vmem:[#allocation17_spill] sm:$0xff] %v9362_v16  ;;  %v2717_v30 = vadd.f32 %v9052_v36, %v2681_v51  ;;  %v2550_v38 = vsub.f32 %v11455_v10, %v9312_v17  ;;  %6399 = vmatprep.mubr.f32.mxu1 %v9362_v16  ;;  %v9381_v17 = vld [vmem:[%s11267_s7 + $0x6] ss:$0 sm:$0xff]  ;;  %v2553_v8 = vsub.f32 %v11460_v31, %v9334_v28 }
 0x53a   :  { %7240 = vrsqrt.f32 %v2585_v59  ;;  %v2716_v24 = vadd.f32 %v9052_v36, %v2680_v3  ;;  %6400 = vmatmul.mubr.f32.gmra.mrb[56].mxu1 %v9368_v39  ;;  %v11461_v59 = vld [vmem:[#allocation21_spill] sm:$0xff] }
 0x53b   :  { %7242 = vrsqrt.f32 %v2584_v1  ;;  %vm2749_vm12 = vcmp.gt.f32.partialorder %v2717_v30, 0.0  ;;  %v2781_v4 = vmul.f32 0.01, %v2717_v30  ;;  %v2552_v27 = vsub.f32 %v11461_v59, %v9337_v9  ;;  %v3745_v59 = vld [vmem:[#allocation6 + $0x50] sm:$0xff] }
 0x53c   :  { %v7237_v19 = vpop.eup %7236  ;;  %vm2748_vm11 = vcmp.gt.f32.partialorder %v2716_v24, 0.0  ;;  %v2780_v41 = vmul.f32 0.01, %v2716_v24 }
 0x53d   :  { %v7239_v43 = vpop.eup %7238  ;;  %v2647_v7 = vmul.f32 %v7237_v19, %v2551_v25  ;;  %v2813_v36 = vsel %vm2749_vm12, %v2717_v30, %v2781_v4  ;;  %v11466_v4 = vld [vmem:[#allocation15_spill] sm:$0xff] }
 0x53e   :  { %v2812_v35 = vsel %vm2748_vm11, %v2716_v24, %v2780_v41  ;;  %v2646_v2 = vmul.f32 %v7239_v43, %v2550_v38  ;;  %v9385_v63 = vadd.f32 %v2813_v36, %v11458_v52  ;;  %v11462_v24 = vld [vmem:[#allocation30_spill] sm:$0xff]  ;;  %v3739_v36 = vld [vmem:[#allocation6 + $0x20] sm:$0xff] }
 0x53f   :  { %v9376_v20 = vadd.f32 %v2812_v35, %v11456_v57  ;;  %v2683_v60 = vmul.f32 %v9381_v17, %v2647_v7  ;;  %v11468_v35 = vld [vmem:[#allocation31_spill] sm:$0xff]  ;;  %v3736_v57 = vld [vmem:[#allocation6 + $0x8] sm:$0xff] }
 0x540   :  { %11459 = vst [vmem:[#allocation33_spill] sm:$0xff] %v9385_v63  ;;  %v2682_v0 = vmul.f32 %v9381_v17, %v2646_v2  ;;  %v6675_v52 = vpack.c.bf16 %v3739_v36, %v3736_v57 }
 0x541   :  { %11457 = vst [vmem:[#allocation26_spill] sm:$0xff] %v9376_v20  ;;  %6402 = vmatprep.mubr.f32.mxu1 %v9376_v20  ;;  %v2719_v32 = vadd.f32 %v9392_v54, %v2683_v60  ;;  %v3735_v60 = vld [vmem:[#allocation6] sm:$0xff] }
 0x542   :  { %6403 = vmatmul.mubr.f32.gmra.mrb[58].mxu1 %v9385_v63  ;;  %v2718_v34 = vadd.f32 %v9392_v54, %v2682_v0  ;;  %v3738_v0 = vld [vmem:[#allocation6 + $0x18] sm:$0xff]  ;;  %6676 = vmatprep.subr.bf16.mxu0 %v6675_v52  ;;  %v3756_v52 = vld [vmem:[#allocation6 + $0xa8] sm:$0xff] }
 0x543   :  { %vm2751_vm13 = vcmp.gt.f32.partialorder %v2719_v32, 0.0  ;;  %v2783_v55 = vmul.f32 0.01, %v2719_v32 }
 0x544   :  { %v7241_v37 = vpop.eup %7240  ;;  %vm2750_vm14 = vcmp.gt.f32.partialorder %v2718_v34, 0.0  ;;  %v2782_v3 = vmul.f32 0.01, %v2718_v34 }
 0x545   :  { %v7243_v51 = vpop.eup %7242  ;;  %v2815_v1 = vsel %vm2751_vm13, %v2719_v32, %v2783_v55  ;;  %v2649_v48 = vmul.f32 %v7241_v37, %v2553_v8  ;;  %v6677_v32 = vpack.c.bf16 %v3738_v0, %v3735_v60  ;;  %v3742_v37 = vld [vmem:[#allocation6 + $0x38] sm:$0xff]  ;;  %v3760_v0 = vld [vmem:[#allocation6 + $0xc8] sm:$0xff] }
 0x546   :  { %v2814_v11 = vsel %vm2750_vm14, %v2718_v34, %v2782_v3  ;;  %v2648_v26 = vmul.f32 %v7243_v51, %v2552_v27  ;;  %v9406_v28 = vadd.f32 %v2815_v1, %v11464_v15  ;;  %v9424_v34 = vld [vmem:[%s11267_s7 + $0x3] ss:$0 sm:$0xff]  ;;  %v3741_v27 = vld [vmem:[#allocation6 + $0x30] sm:$0xff]  ;;  %v6679_v1 = vpack.c.bf16 %v3745_v59, %v3742_v37  ;;  %v3748_v15 = vld [vmem:[#allocation6 + $0x68] sm:$0xff] }
 0x547   :  { %v9402_v29 = vadd.f32 %v2814_v11, %v11462_v24  ;;  %v2685_v25 = vmul.f32 %v9381_v17, %v2649_v48  ;;  %6678 = vmatpush1.bf16.msra.mxu0 %v6677_v32  ;;  %v3744_v48 = vld [vmem:[#allocation6 + $0x48] sm:$0xff]  ;;  %v3763_v32 = vld [vmem:[#allocation6 + $0xe0] sm:$0xff] }
 0x548   :  { %11465 = vst [vmem:[#allocation10_spill] sm:$0xff] %v9406_v28  ;;  %v2684_v30 = vmul.f32 %v9381_v17, %v2648_v26  ;;  %v6681_v11 = vpack.c.bf16 %v3744_v48, %v3741_v27  ;;  %6680 = vmatprep.subr.bf16.mxu0 %v6679_v1  ;;  %v3762_v1 = vld [vmem:[#allocation6 + $0xd8] sm:$0xff] }
 0x549   :  { %11463 = vst [vmem:[#allocation18_spill] sm:$0xff] %v9402_v29  ;;  %6405 = vmatprep.mubr.f32.mxu1 %v9402_v29  ;;  %v2721_v9 = vadd.f32 %v9392_v54, %v2685_v25 }
 0x54a   :  { %6406 = vmatmul.mubr.f32.gmra.mrb[60].mxu1 %v9406_v28  ;;  %v2720_v19 = vadd.f32 %v9392_v54, %v2684_v30  ;;  %v3751_v30 = vld [vmem:[#allocation6 + $0x80] sm:$0xff] }
 0x54b   :  { %vm2753_vm15 = vcmp.gt.f32.partialorder %v2721_v9, 0.0  ;;  %v2785_v10 = vmul.f32 0.01, %v2721_v9  ;;  %6682 = vmatpush1.bf16.msra.mxu0 %v6681_v11 }
 0x54c   :  { %vm2752_vm0 = vcmp.gt.f32.partialorder %v2720_v19, 0.0  ;;  %v2784_v38 = vmul.f32 0.01, %v2720_v19 }
 0x54d   :  { %v2817_v41 = vsel %vm2753_vm15, %v2721_v9, %v2785_v10  ;;  %v3747_v9 = vld [vmem:[#allocation6 + $0x60] sm:$0xff]  ;;  %v6683_v10 = vpack.c.bf16 %v3751_v30, %v3748_v15 }
 0x54e   :  { %v2816_v43 = vsel %vm2752_vm0, %v2720_v19, %v2784_v38  ;;  %v9417_v2 = vadd.f32 %v2817_v41, %v11468_v35  ;;  %v3750_v38 = vld [vmem:[#allocation6 + $0x78] sm:$0xff]  ;;  %v3753_v35 = vld [vmem:[#allocation6 + $0x90] sm:$0xff] }
 0x54f   :  { %v9414_v7 = vadd.f32 %v2816_v43, %v11466_v4  ;;  %v6685_v41 = vpack.c.bf16 %v3750_v38, %v3747_v9  ;;  %v3754_v43 = vld [vmem:[#allocation6 + $0x98] sm:$0xff]  ;;  %v3757_v4 = vld [vmem:[#allocation6 + $0xb0] sm:$0xff]  ;;  %6684 = vmatprep.subr.bf16.mxu0 %v6683_v10 }
 0x550   :  { %11469 = vst [vmem:[#allocation34_spill] sm:$0xff] %v9417_v2  ;;  %v6687_v60 = vpack.c.bf16 %v3757_v4, %v3754_v43  ;;  %v3740_v43 = vld [vmem:[#allocation6 + $0x28] sm:$0xff] }
 0x551   :  { %11467 = vst [vmem:[#allocation11_spill] sm:$0xff] %v9414_v7  ;;  %6408 = vmatprep.mubr.f32.mxu1 %v9414_v7  ;;  %6686 = vmatpush1.bf16.msra.mxu0 %v6685_v41  ;;  %v3737_v41 = vld [vmem:[#allocation6 + $0x10] sm:$0xff] }
 0x552   :  { %6409 = vmatmul.mubr.f32.gmra.mrb[62].mxu1 %v9417_v2  ;;  %6688 = vmatprep.subr.bf16.mxu0 %v6687_v60  ;;  %v6707_v4 = vpack.c.bf16 %v3740_v43, %v3737_v41  ;;  %v3743_v60 = vld [vmem:[#allocation6 + $0x40] sm:$0xff] }
 0x554   :  { %6708 = vmatprep.subr.bf16.mxu1 %v6707_v4 }
 0x555   :  { %6710 = vmatpush3.bf16.msra.mxu1 %v6707_v4  ;;  %v3771_v4 = vld [vmem:[#allocation6 + $0x120] sm:$0xff] }
 0x5ab   :  { %v6365_v31 = vpop.f32.mrb[32].mxu1 }
 0x5ac   :  { %v2936_v8 = vpop.f32.mrb[33].mxu1  ;;  %v9430_v3 = vadd.f32 %v6365_v31, %v9424_v34  ;;  %v6689_v31 = vpack.c.bf16 %v3756_v52, %v3753_v35  ;;  %v3746_v52 = vld [vmem:[#allocation6 + $0x58] sm:$0xff] }
 0x5ad   :  { %v9427_v55 = vadd.f32 %v9424_v34, %v2936_v8  ;;  %v6691_v8 = vpack.c.bf16 %v3763_v32, %v3760_v0  ;;  %v6711_v32 = vpack.c.bf16 %v3746_v52, %v3743_v60  ;;  %v3758_v52 = vld [vmem:[#allocation6 + $0xb8] sm:$0xff] }
 0x5ae   :  { %v3160_v26 = vmul.f32 %v9430_v3, %v9430_v3  ;;  %6690 = vmatpush1.bf16.msra.mxu0 %v6689_v31 }
 0x5af   :  { %3095 = vadd.xlane.f32.xlu0 %v9427_v55  ;;  %v3159_v51 = vmul.f32 %v9427_v55, %v9427_v55  ;;  %6692 = vmatprep.subr.bf16.mxu0 %v6691_v8 }
 0x5b0   :  { %6712 = vmatprep.subr.bf16.mxu1 %v6711_v32 }
 0x5b1   :  { %3191 = vadd.xlane.f32.xlu1 %v3159_v51  ;;  %v3759_v51 = vld [vmem:[#allocation6 + $0xc0] sm:$0xff]  ;;  %6714 = vmatpush3.bf16.msra.mxu1 %v6711_v32 }
 0x5b2   :  { %v6693_v11 = vpack.c.bf16 %v3762_v1, %v3759_v51  ;;  %v3766_v51 = vld [vmem:[#allocation6 + $0xf8] sm:$0xff]  ;;  %v3769_v1 = vld [vmem:[#allocation6 + $0x110] sm:$0xff] }
 0x5b3   :  { %3097 = vadd.xlane.f32.xlu0 %v9430_v3 }
 0x5b4   :  { %v6368_v24 = vpop.f32.mrb[34].mxu1  ;;  %6694 = vmatpush1.bf16.msra.mxu0 %v6693_v11  ;;  %v3765_v11 = vld [vmem:[#allocation6 + $0xf0] sm:$0xff] }
 0x5b5   :  { %3193 = vadd.xlane.f32.xlu1 %v3160_v26  ;;  %v2946_v25 = vpop.f32.mrb[35].mxu1  ;;  %v9442_v57 = vadd.f32 %v6368_v24, %v9424_v34 }
 0x5b6   :  { %v9439_v19 = vadd.f32 %v9424_v34, %v2946_v25 }
 0x5b7   :  { %v3162_v37 = vmul.f32 %v9442_v57, %v9442_v57 }
 0x5b8   :  { %3099 = vadd.xlane.f32.xlu0 %v9439_v19  ;;  %v3161_v36 = vmul.f32 %v9439_v19, %v9439_v19 }
 0x5ba   :  { %3195 = vadd.xlane.f32.xlu1 %v3161_v36 }
 0x5bc   :  { %3101 = vadd.xlane.f32.xlu0 %v9442_v57  ;;  %v6371_v59 = vpop.f32.mrb[36].mxu1 }
 0x5bd   :  { %v2956_v27 = vpop.f32.mrb[37].mxu1  ;;  %v9454_v26 = vadd.f32 %v6371_v59, %v9424_v34  ;;  %v3749_v59 = vld [vmem:[#allocation6 + $0x70] sm:$0xff] }
 0x5be   :  { %3197 = vadd.xlane.f32.xlu1 %v3162_v37  ;;  %v9451_v48 = vadd.f32 %v9424_v34, %v2956_v27  ;;  %v3752_v27 = vld [vmem:[#allocation6 + $0x88] sm:$0xff] }
 0x5bf   :  { %v3164_v25 = vmul.f32 %v9454_v26, %v9454_v26 }
 0x5c0   :  { %3103 = vadd.xlane.f32.xlu0 %v9451_v48  ;;  %v3163_v24 = vmul.f32 %v9451_v48, %v9451_v48 }
 0x5c2   :  { %3199 = vadd.xlane.f32.xlu1 %v3163_v24  ;;  %v6715_v24 = vpack.c.bf16 %v3752_v27, %v3749_v59  ;;  %v3761_v27 = vld [vmem:[#allocation6 + $0xd0] sm:$0xff] }
 0x5c4   :  { %3105 = vadd.xlane.f32.xlu0 %v9454_v26  ;;  %v6374_v15 = vpop.f32.mrb[38].mxu1  ;;  %6716 = vmatprep.subr.bf16.mxu1 %v6715_v24 }
 0x5c5   :  { %v2966_v30 = vpop.f32.mrb[39].mxu1  ;;  %v9466_v10 = vadd.f32 %v6374_v15, %v9424_v34  ;;  %v3768_v15 = vld [vmem:[#allocation6 + $0x108] sm:$0xff]  ;;  %6718 = vmatpush3.bf16.msra.mxu1 %v6715_v24 }
 0x5c6   :  { %3201 = vadd.xlane.f32.xlu1 %v3164_v25  ;;  %v9463_v9 = vadd.f32 %v9424_v34, %v2966_v30  ;;  %v6695_v25 = vpack.c.bf16 %v3769_v1, %v3766_v51  ;;  %v3772_v30 = vld [vmem:[#allocation6 + $0x128] sm:$0xff]  ;;  %v6697_v41 = vpack.c.bf16 %v3768_v15, %v3765_v11  ;;  %v3778_v15 = vld [vmem:[#allocation6 + $0x158] sm:$0xff] }
 0x5c7   :  { %v3166_v36 = vmul.f32 %v9466_v10, %v9466_v10  ;;  %v3764_v51 = vld [vmem:[#allocation6 + $0xe8] sm:$0xff] }
 0x5c8   :  { %3107 = vadd.xlane.f32.xlu0 %v9463_v9  ;;  %v3165_v38 = vmul.f32 %v9463_v9, %v9463_v9  ;;  %6696 = vmatprep.subr.bf16.mxu0 %v6695_v25  ;;  %v6723_v11 = vpack.c.bf16 %v3764_v51, %v3761_v27 }
 0x5c9   :  { %6698 = vmatpush1.bf16.msra.mxu0 %v6697_v41 }
 0x5ca   :  { %3203 = vadd.xlane.f32.xlu1 %v3165_v38  ;;  %v3775_v38 = vld [vmem:[#allocation6 + $0x140] sm:$0xff] }
 0x5cb   :  { %v6699_v43 = vpack.c.bf16 %v3775_v38, %v3772_v30  ;;  %v3781_v30 = vld [vmem:[#allocation6 + $0x170] sm:$0xff] }
 0x5cc   :  { %3109 = vadd.xlane.f32.xlu0 %v9466_v10  ;;  %v6377_v35 = vpop.f32.mrb[40].mxu1  ;;  %v3777_v38 = vld [vmem:[#allocation6 + $0x150] sm:$0xff]  ;;  %v6703_v41 = vpack.c.bf16 %v3781_v30, %v3778_v15  ;;  %v3779_v15 = vld [vmem:[#allocation6 + $0x160] sm:$0xff]  ;;  %v3782_v30 = vld [vmem:[#allocation6 + $0x178] sm:$0xff] }
 0x5cd   :  { %v2976_v0 = vpop.f32.mrb[41].mxu1  ;;  %v9478_v8 = vadd.f32 %v6377_v35, %v9424_v34  ;;  %v3774_v35 = vld [vmem:[#allocation6 + $0x138] sm:$0xff]  ;;  %6700 = vmatprep.subr.bf16.mxu0 %v6699_v43  ;;  %v3780_v43 = vld [vmem:[#allocation6 + $0x168] sm:$0xff] }
 0x5ce   :  { %v9475_v31 = vadd.f32 %v9424_v34, %v2976_v0  ;;  %3205 = vadd.xlane.f32.xlu1 %v3166_v36  ;;  %v3755_v36 = vld [vmem:[#allocation6 + $0xa0] sm:$0xff]  ;;  %v6701_v0 = vpack.c.bf16 %v3774_v35, %v3771_v4  ;;  %v3770_v35 = vld [vmem:[#allocation6 + $0x118] sm:$0xff] }
 0x5cf   :  { %v3168_v60 = vmul.f32 %v9478_v8, %v9478_v8  ;;  %v6719_v32 = vpack.c.bf16 %v3758_v52, %v3755_v36  ;;  %v3767_v4 = vld [vmem:[#allocation6 + $0x100] sm:$0xff]  ;;  %v6705_v36 = vpack.c.bf16 %v3780_v43, %v3777_v38  ;;  %v6735_v38 = vpack.c.bf16 %v3782_v30, %v3779_v15 }
 0x5d0   :  { %3111 = vadd.xlane.f32.xlu0 %v9475_v31  ;;  %v3167_v37 = vmul.f32 %v9475_v31, %v9475_v31  ;;  %6702 = vmatpush1.bf16.msra.mxu0 %v6701_v0 }
 0x5d1   :  { %6720 = vmatprep.subr.bf16.mxu1 %v6719_v32  ;;  %6704 = vmatprep.subr.bf16.mxu0 %v6703_v41  ;;  %v11325_v41 = vmov 0.0  }
 0x5d2   :  { %3207 = vadd.xlane.f32.xlu1 %v3167_v37  ;;  %6722 = vmatpush3.bf16.msra.mxu1 %v6719_v32 }
 0x5d3   :  { %6724 = vmatprep.subr.bf16.mxu1 %v6723_v11  ;;  %3864 = vmatprep.mubr.f32.mxu0 %v11325_v41 }
 0x5d4   :  { %3113 = vadd.xlane.f32.xlu0 %v9478_v8  ;;  %v6380_v37 = vpop.f32.mrb[42].mxu1  ;;  %6706 = vmatpush1.bf16.msra.mxu0 %v6705_v36 }
 0x5d5   :  { %v2986_v59 = vpop.f32.mrb[43].mxu1  ;;  %v9490_v25 = vadd.f32 %v6380_v37, %v9424_v34  ;;  %v3773_v37 = vld [vmem:[#allocation6 + $0x130] sm:$0xff] }
 0x5d6   :  { %3209 = vadd.xlane.f32.xlu1 %v3168_v60  ;;  %v9487_v1 = vadd.f32 %v9424_v34, %v2986_v59  ;;  %6726 = vmatpush3.bf16.msra.mxu1 %v6723_v11  ;;  %v6727_v60 = vpack.c.bf16 %v3770_v35, %v3767_v4  ;;  %v3776_v59 = vld [vmem:[#allocation6 + $0x148] sm:$0xff] }
 0x5d7   :  { %v3170_v52 = vmul.f32 %v9490_v25, %v9490_v25  ;;  %v6731_v51 = vpack.c.bf16 %v3776_v59, %v3773_v37 }
 0x5d8   :  { %3115 = vadd.xlane.f32.xlu0 %v9487_v1  ;;  %v3169_v24 = vmul.f32 %v9487_v1, %v9487_v1  ;;  %6728 = vmatprep.subr.bf16.mxu1 %v6727_v60 }
 0x5da   :  { %3211 = vadd.xlane.f32.xlu1 %v3169_v24  ;;  %6730 = vmatpush3.bf16.msra.mxu1 %v6727_v60 }
 0x5db   :  { %6732 = vmatprep.subr.bf16.mxu1 %v6731_v51 }
 0x5dc   :  { %3117 = vadd.xlane.f32.xlu0 %v9490_v25 }
 0x5dd   :  { %v6383_v0 = vpop.f32.mrb[44].mxu1 }
 0x5de   :  { %v2996_v32 = vpop.f32.mrb[45].mxu1  ;;  %3213 = vadd.xlane.f32.xlu1 %v3170_v52  ;;  %v9502_v11 = vadd.f32 %v6383_v0, %v9424_v34  ;;  %6734 = vmatpush3.bf16.msra.mxu1 %v6731_v51 }
 0x5df   :  { %v9499_v27 = vadd.f32 %v9424_v34, %v2996_v32  ;;  %6736 = vmatprep.subr.bf16.mxu1 %v6735_v38 }
 0x5e0   :  { %v3172_v43 = vmul.f32 %v9502_v11, %v9502_v11 }
 0x5e1   :  { %3119 = vadd.xlane.f32.xlu0 %v9499_v27  ;;  %v3171_v24 = vmul.f32 %v9499_v27, %v9499_v27 }
 0x5e2   :  { %6738 = vmatpush3.bf16.msra.mxu1 %v6735_v38 }
 0x5e3   :  { %3215 = vadd.xlane.f32.xlu1 %v3171_v24 }
 0x5e5   :  { %3121 = vadd.xlane.f32.xlu0 %v9502_v11  ;;  %v6386_v4 = vpop.f32.mrb[46].mxu1 }
 0x5e6   :  { %v3006_v35 = vpop.f32.mrb[47].mxu1  ;;  %v9515_v60 = vadd.f32 %v6386_v4, %v9424_v34 }
 0x5e7   :  { %3217 = vadd.xlane.f32.xlu1 %v3172_v43  ;;  %v9512_v36 = vadd.f32 %v9424_v34, %v3006_v35 }
 0x5e8   :  { %v3174_v0 = vmul.f32 %v9515_v60, %v9515_v60 }
 0x5e9   :  { %3123 = vadd.xlane.f32.xlu0 %v9512_v36  ;;  %v3173_v52 = vmul.f32 %v9512_v36, %v9512_v36 }
 0x5eb   :  { %3219 = vadd.xlane.f32.xlu1 %v3173_v52 }
 0x5ed   :  { %3125 = vadd.xlane.f32.xlu0 %v9515_v60  ;;  %v6389_v32 = vpop.f32.mrb[48].mxu1 }
 0x5ee   :  { %v3016_v37 = vpop.f32.mrb[49].mxu1  ;;  %v9527_v51 = vadd.f32 %v6389_v32, %v9424_v34 }
 0x5ef   :  { %3221 = vadd.xlane.f32.xlu1 %v3174_v0  ;;  %v9524_v59 = vadd.f32 %v9424_v34, %v3016_v37 }
 0x5f0   :  { %v3176_v15 = vmul.f32 %v9527_v51, %v9527_v51 }
 0x5f1   :  { %3127 = vadd.xlane.f32.xlu0 %v9524_v59  ;;  %v3175_v24 = vmul.f32 %v9524_v59, %v9524_v59 }
 0x5f3   :  { %3223 = vadd.xlane.f32.xlu1 %v3175_v24 }
 0x5f5   :  { %3129 = vadd.xlane.f32.xlu0 %v9527_v51 }
 0x5f6   :  { %v6392_v30 = vpop.f32.mrb[50].mxu1 }
 0x5f7   :  { %3225 = vadd.xlane.f32.xlu1 %v3176_v15  ;;  %v3026_v38 = vpop.f32.mrb[51].mxu1  ;;  %v9539_v4 = vadd.f32 %v6392_v30, %v9424_v34 }
 0x5f8   :  { %v9536_v43 = vadd.f32 %v9424_v34, %v3026_v38 }
 0x5f9   :  { %v3178_v0 = vmul.f32 %v9539_v4, %v9539_v4 }
 0x5fa   :  { %3131 = vadd.xlane.f32.xlu0 %v9536_v43  ;;  %v3177_v35 = vmul.f32 %v9536_v43, %v9536_v43 }
 0x5fc   :  { %3227 = vadd.xlane.f32.xlu1 %v3177_v35 }
 0x5fe   :  { %3133 = vadd.xlane.f32.xlu0 %v9539_v4 }
 0x5ff   :  { %v6395_v52 = vpop.f32.mrb[52].mxu1 }
 0x600   :  { %v3036_v32 = vpop.f32.mrb[53].mxu1  ;;  %3229 = vadd.xlane.f32.xlu1 %v3178_v0  ;;  %v9551_v24 = vadd.f32 %v6395_v52, %v9424_v34 }
 0x601   :  { %v9548_v37 = vadd.f32 %v9424_v34, %v3036_v32 }
 0x602   :  { %v3180_v38 = vmul.f32 %v9551_v24, %v9551_v24 }
 0x603   :  { %3135 = vadd.xlane.f32.xlu0 %v9548_v37  ;;  %v3179_v15 = vmul.f32 %v9548_v37, %v9548_v37 }
 0x605   :  { %3231 = vadd.xlane.f32.xlu1 %v3179_v15 }
 0x607   :  { %3137 = vadd.xlane.f32.xlu0 %v9551_v24  ;;  %v6398_v30 = vpop.f32.mrb[54].mxu1 }
 0x608   :  { %v3046_v35 = vpop.f32.mrb[55].mxu1  ;;  %v9563_v52 = vadd.f32 %v6398_v30, %v9424_v34 }
 0x609   :  { %v9560_v32 = vadd.f32 %v9424_v34, %v3046_v35  ;;  %3233 = vadd.xlane.f32.xlu1 %v3180_v38 }
 0x60a   :  { %11471 = vst [vmem:[#allocation27_spill] sm:$0xff] %v9563_v52  ;;  %v3182_v35 = vmul.f32 %v9563_v52, %v9563_v52 }
 0x60b   :  { %11470 = vst [vmem:[#allocation19_spill] sm:$0xff] %v9560_v32  ;;  %3139 = vadd.xlane.f32.xlu0 %v9560_v32  ;;  %v3181_v0 = vmul.f32 %v9560_v32, %v9560_v32 }
 0x60d   :  { %3235 = vadd.xlane.f32.xlu1 %v3181_v0  ;;  %v6401_v15 = vpop.f32.mrb[56].mxu1 }
 0x60e   :  { %v3056_v41 = vpop.f32.mrb[57].mxu1  ;;  %v9577_v7 = vadd.f32 %v6401_v15, %v9424_v34 }
 0x60f   :  { %3141 = vadd.xlane.f32.xlu0 %v9563_v52  ;;  %v9570_v2 = vadd.f32 %v9424_v34, %v3056_v41 }
 0x610   :  { %11473 = vst [vmem:[#allocation20_spill] sm:$0xff] %v9577_v7  ;;  %v3184_v41 = vmul.f32 %v9577_v7, %v9577_v7 }
 0x611   :  { %11472 = vst [vmem:[#allocation28_spill] sm:$0xff] %v9570_v2  ;;  %3237 = vadd.xlane.f32.xlu1 %v3182_v35  ;;  %v3183_v30 = vmul.f32 %v9570_v2, %v9570_v2 }
 0x613   :  { %3143 = vadd.xlane.f32.xlu0 %v9570_v2 }
 0x615   :  { %v6404_v38 = vpop.f32.mrb[58].mxu1  ;;  %3239 = vadd.xlane.f32.xlu1 %v3183_v30 }
 0x616   :  { %v3066_v0 = vpop.f32.mrb[59].mxu1  ;;  %v9589_v15 = vadd.f32 %v6404_v38, %v9424_v34 }
 0x617   :  { %v9581_v28 = vadd.f32 %v9424_v34, %v3066_v0  ;;  %3145 = vadd.xlane.f32.xlu0 %v9577_v7 }
 0x618   :  { %11475 = vst [vmem:[#allocation35_spill] sm:$0xff] %v9589_v15  ;;  %v3186_v0 = vmul.f32 %v9589_v15, %v9589_v15 }
 0x619   :  { %11474 = vst [vmem:[#allocation12_spill] sm:$0xff] %v9581_v28  ;;  %3241 = vadd.xlane.f32.xlu1 %v3184_v41  ;;  %v3185_v35 = vmul.f32 %v9581_v28, %v9581_v28 }
 0x61b   :  { %3147 = vadd.xlane.f32.xlu0 %v9581_v28 }
 0x61d   :  { %v6407_v29 = vpop.f32.mrb[60].mxu1  ;;  %3243 = vadd.xlane.f32.xlu1 %v3185_v35 }
 0x61e   :  { %v3076_v63 = vpop.f32.mrb[61].mxu1  ;;  %v9601_v38 = vadd.f32 %v6407_v29, %v9424_v34 }
 0x61f   :  { %v9593_v30 = vadd.f32 %v9424_v34, %v3076_v63  ;;  %3149 = vadd.xlane.f32.xlu0 %v9589_v15 }
 0x620   :  { %11477 = vst [vmem:[#allocation29_spill] sm:$0xff] %v9601_v38  ;;  %v3188_v35 = vmul.f32 %v9601_v38, %v9601_v38 }
 0x621   :  { %11476 = vst [vmem:[#allocation13_spill] sm:$0xff] %v9593_v30  ;;  %3245 = vadd.xlane.f32.xlu1 %v3186_v0  ;;  %v3187_v41 = vmul.f32 %v9593_v30, %v9593_v30 }
 0x623   :  { %3151 = vadd.xlane.f32.xlu0 %v9593_v30 }
 0x625   :  { %v6410_v20 = vpop.f32.mrb[62].mxu1  ;;  %3247 = vadd.xlane.f32.xlu1 %v3187_v41 }
 0x626   :  { %v3086_v39 = vpop.f32.mrb[63].mxu1  ;;  %v9613_v16 = vadd.f32 %v6410_v20, %v9424_v34 }
 0x627   :  { %v9605_v63 = vadd.f32 %v9424_v34, %v3086_v39  ;;  %3153 = vadd.xlane.f32.xlu0 %v9601_v38 }
 0x628   :  { %11479 = vst [vmem:[#allocation21_spill] sm:$0xff] %v9613_v16  ;;  %v3190_v39 = vmul.f32 %v9613_v16, %v9613_v16 }
 0x629   :  { %11478 = vst [vmem:[#allocation36_spill] sm:$0xff] %v9605_v63  ;;  %3249 = vadd.xlane.f32.xlu1 %v3188_v35  ;;  %v3189_v0 = vmul.f32 %v9605_v63, %v9605_v63 }
 0x62b   :  { %3155 = vadd.xlane.f32.xlu0 %v9605_v63 }
 0x62d   :  { %3251 = vadd.xlane.f32.xlu1 %v3189_v0 }
 0x62f   :  { %3157 = vadd.xlane.f32.xlu0 %v9613_v16 }
 0x631   :  { %3253 = vadd.xlane.f32.xlu1 %v3190_v39 }
 0x63c   :  { %v3096_v29 = vpop.xlane.xlu0 %3095 }
 0x63d   :  { %v3255_v41 = vmul.f32 0.0078125, %v3096_v29 }
 0x63e   :  { %v3192_v30 = vpop.xlane.xlu1 %3191 }
 0x63f   :  { %v3319_v38 = vmul.f32 %v3255_v41, %v3255_v41  ;;  %v3287_v35 = vmul.f32 0.0078125, %v3192_v30 }
 0x640   :  { %v3098_v5 = vpop.xlane.xlu0 %3097 }
 0x641   :  { %v3351_v15 = vsub.f32 %v3287_v35, %v3319_v38  ;;  %v3256_v28 = vmul.f32 0.0078125, %v3098_v5 }
 0x642   :  { %v3194_v47 = vpop.xlane.xlu1 %3193 }
 0x643   :  { %v3383_v20 = vmax.f32 %v3351_v15, 0.0  ;;  %v3320_v34 = vmul.f32 %v3256_v28, %v3256_v28  ;;  %v3288_v7 = vmul.f32 0.0078125, %v3194_v47 }
 0x645   :  { %v3447_v63 = vadd.f32 1e-05, %v3383_v20  ;;  %v3352_v0 = vsub.f32 %v3288_v7, %v3320_v34  ;;  %v3100_v23 = vpop.xlane.xlu0 %3099 }
 0x646   :  { %v3257_v2 = vmul.f32 0.0078125, %v3100_v23  ;;  %v3415_v23 = vsub.f32 %v9427_v55, %v3255_v41  ;;  %v3416_v55 = vsub.f32 %v9430_v3, %v3256_v28 }
 0x647   :  { %7244 = vrsqrt.f32 %v3447_v63  ;;  %v3384_v56 = vmax.f32 %v3352_v0, 0.0  ;;  %v3196_v16 = vpop.xlane.xlu1 %3195 }
 0x648   :  { %v3321_v52 = vmul.f32 %v3257_v2, %v3257_v2  ;;  %v3289_v29 = vmul.f32 0.0078125, %v3196_v16  ;;  %v3417_v28 = vsub.f32 %v9439_v19, %v3257_v2 }
 0x649   :  { %v3448_v39 = vadd.f32 1e-05, %v3384_v56  ;;  %v3102_v32 = vpop.xlane.xlu0 %3101 }
 0x64a   :  { %v3353_v30 = vsub.f32 %v3289_v29, %v3321_v52  ;;  %v9619_v14 = vmul.f32 0.0078125, %v3102_v32 }
 0x64b   :  { %7246 = vrsqrt.f32 %v3448_v39  ;;  %v3198_v5 = vpop.xlane.xlu1 %3197 }
 0x64c   :  { %v3385_v38 = vmax.f32 %v3353_v30, 0.0  ;;  %v3322_v47 = vmul.f32 %v9619_v14, %v9619_v14  ;;  %v3290_v15 = vmul.f32 0.0078125, %v3198_v5 }
 0x64d   :  { %v3104_v63 = vpop.xlane.xlu0 %3103 }
 0x64e   :  { %v3449_v7 = vadd.f32 1e-05, %v3385_v38  ;;  %v3354_v35 = vsub.f32 %v3290_v15, %v3322_v47  ;;  %v9624_v20 = vmul.f32 0.0078125, %v3104_v63 }
 0x64f   :  { %v3200_v34 = vpop.xlane.xlu1 %3199 }
 0x650   :  { %7248 = vrsqrt.f32 %v3449_v7  ;;  %v3386_v16 = vmax.f32 %v3354_v35, 0.0  ;;  %v3323_v32 = vmul.f32 %v9624_v20, %v9624_v20  ;;  %v3291_v0 = vmul.f32 0.0078125, %v3200_v34 }
 0x651   :  { %v7245_v56 = vpop.eup %7244  ;;  %v3106_v29 = vpop.xlane.xlu0 %3105 }
 0x652   :  { %v3511_v52 = vmul.f32 %v7245_v56, %v3415_v23  ;;  %v3450_v39 = vadd.f32 1e-05, %v3386_v16  ;;  %v3355_v5 = vsub.f32 %v3291_v0, %v3323_v32  ;;  %v9629_v38 = vmul.f32 0.0078125, %v3106_v29 }
 0x653   :  { %v3202_v41 = vpop.xlane.xlu1 %3201 }
 0x654   :  { %v3543_v30 = vmul.f32 %v9381_v17, %v3511_v52  ;;  %7250 = vrsqrt.f32 %v3450_v39  ;;  %v3387_v15 = vmax.f32 %v3355_v5, 0.0  ;;  %v3324_v7 = vmul.f32 %v9629_v38, %v9629_v38 }
 0x655   :  { %v7247_v47 = vpop.eup %7246  ;;  %v3292_v35 = vmul.f32 0.0078125, %v3202_v41  ;;  %v3108_v34 = vpop.xlane.xlu0 %3107 }
 0x656   :  { %v3575_v63 = vadd.f32 %v9392_v54, %v3543_v30  ;;  %v3512_v23 = vmul.f32 %v7247_v47, %v3416_v55  ;;  %v3451_v56 = vadd.f32 1e-05, %v3387_v15  ;;  %v9635_v52 = vmul.f32 0.0078125, %v3108_v34 }
 0x657   :  { %v3356_v16 = vsub.f32 %v3292_v35, %v3324_v7  ;;  %v3204_v39 = vpop.xlane.xlu1 %3203 }
 0x658   :  { %vm3607_vm1 = vcmp.gt.f32.partialorder %v3575_v63, 0.0  ;;  %v3639_v32 = vmul.f32 0.01, %v3575_v63  ;;  %v3544_v0 = vmul.f32 %v9381_v17, %v3512_v23  ;;  %7252 = vrsqrt.f32 %v3451_v56 }
 0x659   :  { %v3388_v3 = vmax.f32 %v3356_v16, 0.0  ;;  %v3325_v5 = vmul.f32 %v9635_v52, %v9635_v52  ;;  %v3293_v30 = vmul.f32 0.0078125, %v3204_v39  ;;  %v3110_v41 = vpop.xlane.xlu0 %3109  ;;  %v3418_v23 = vsub.f32 %v9442_v57, %v9619_v14 }
 0x65a   :  { %v7249_v29 = vpop.eup %7248  ;;  %v3671_v47 = vsel %vm3607_vm1, %v3575_v63, %v3639_v32  ;;  %v3576_v7 = vadd.f32 %v9392_v54, %v3544_v0  ;;  %v9645_v19 = vmul.f32 0.0078125, %v3110_v41 }
 0x65b   :  { %v3452_v55 = vadd.f32 1e-05, %v3388_v3  ;;  %v3703_v15 = vadd.f32 %v3671_v47, %v9071_v49  ;;  %v3513_v35 = vmul.f32 %v7249_v29, %v3417_v28  ;;  %v3357_v2 = vsub.f32 %v3293_v30, %v3325_v5  ;;  %v3206_v56 = vpop.xlane.xlu1 %3205  ;;  %v11481_v47 = vld [vmem:[#allocation22_spill] sm:$0xff] }
 0x65c   :  { %vm3608_vm2 = vcmp.gt.f32.partialorder %v3576_v7, 0.0  ;;  %v3640_v16 = vmul.f32 0.01, %v3576_v7  ;;  %v3326_v49 = vmul.f32 %v9645_v19, %v9645_v19  ;;  %v3294_v0 = vmul.f32 0.0078125, %v3206_v56 }
 0x65d   :  { %7254 = vrsqrt.f32 %v3452_v55  ;;  %3865 = vmatmul.mubr.f32.vlgmr.msra.gmra.mrb[64].mxu0 %v3703_v15  ;;  %6443 = vmatprep.mubr.f32.mxu1 %v3703_v15  ;;  %v3545_v63 = vmul.f32 %v9381_v17, %v3513_v35  ;;  %v3389_v32 = vmax.f32 %v3357_v2, 0.0  ;;  %v11480_v28 = vmov 0.0   ;;  %v3112_v14 = vpop.xlane.xlu0 %3111 }
 0x65e   :  { %v7251_v34 = vpop.eup %7250  ;;  %3870 = vmatprep.mubr.f32.mxu0 %v11480_v28  ;;  %v3672_v57 = vsel %vm3608_vm2, %v3576_v7, %v3640_v16  ;;  %v3358_v5 = vsub.f32 %v3294_v0, %v3326_v49  ;;  %v9652_v30 = vmul.f32 0.0078125, %v3112_v14  ;;  %v3419_v2 = vsub.f32 %v9451_v48, %v9624_v20 }
 0x65f   :  { %v3577_v3 = vadd.f32 %v9392_v54, %v3545_v63  ;;  %v3514_v39 = vmul.f32 %v7251_v34, %v3418_v23  ;;  %v3453_v29 = vadd.f32 1e-05, %v3389_v32  ;;  %v3704_v55 = vadd.f32 %v3672_v57, %v11481_v47  ;;  %v3208_v41 = vpop.xlane.xlu1 %3207 }
 0x660   :  { %v3390_v56 = vmax.f32 %v3358_v5, 0.0  ;;  %v3327_v7 = vmul.f32 %v9652_v30, %v9652_v30  ;;  %v3295_v16 = vmul.f32 0.0078125, %v3208_v41  ;;  %v3420_v14 = vsub.f32 %v9454_v26, %v9629_v38  ;;  %v4571_v38 = vld [vmem:[%s11266_s6 + $0x8] sm:$0xff] }
 0x661   :  { %vm3609_vm3 = vcmp.gt.f32.partialorder %v3577_v3, 0.0  ;;  %v3641_v15 = vmul.f32 0.01, %v3577_v3  ;;  %v3546_v35 = vmul.f32 %v9381_v17, %v3514_v39  ;;  %7256 = vrsqrt.f32 %v3453_v29  ;;  %3871 = vmatmul.mubr.f32.gmra.mrb[66].mxu0 %v3704_v55  ;;  %6444 = vmatmul.mubr.f32.vlgmr.msra.gmra.mrb[64].mxu1 %v3704_v55  ;;  %v3114_v63 = vpop.xlane.xlu0 %3113 }
 0x662   :  { %v7253_v23 = vpop.eup %7252  ;;  %3876 = vmatprep.mubr.f32.mxu0 %v11480_v28  ;;  %v3454_v49 = vadd.f32 1e-05, %v3390_v56  ;;  %v9662_v0 = vmul.f32 0.0078125, %v3114_v63  ;;  %v3359_v57 = vsub.f32 %v3295_v16, %v3327_v7  ;;  %v3421_v5 = vsub.f32 %v9463_v9, %v9635_v52  ;;  %v4574_v9 = vld [vmem:[%s11266_s6 + $0x20] sm:$0xff]  ;;  %v4572_v16 = vld [vmem:[%s11266_s6 + $0x10] sm:$0xff]  ;;  %v4575_v63 = vld [vmem:[%s11266_s6 + $0x28] sm:$0xff] }
 0x663   :  { %v3673_v34 = vsel %vm3609_vm3, %v3577_v3, %v3641_v15  ;;  %v3578_v32 = vadd.f32 %v9392_v54, %v3546_v35  ;;  %v3515_v20 = vmul.f32 %v7253_v23, %v3419_v2  ;;  %v3210_v39 = vpop.xlane.xlu1 %3209  ;;  %v4570_v52 = vld [vmem:[%s11266_s6] sm:$0xff]  ;;  %v6739_v56 = vpack.c.bf16 %v4574_v9, %v4571_v38  ;;  %v4573_v23 = vld [vmem:[%s11266_s6 + $0x18] sm:$0xff] }
 0x664   :  { %v3705_v48 = vadd.f32 %v3673_v34, %v9095_v18  ;;  %7258 = vrsqrt.f32 %v3454_v49  ;;  %v3328_v3 = vmul.f32 %v9662_v0, %v9662_v0  ;;  %v3296_v47 = vmul.f32 0.0078125, %v3210_v39 }
 0x665   :  { %vm3610_vm4 = vcmp.gt.f32.partialorder %v3578_v32, 0.0  ;;  %v3642_v29 = vmul.f32 0.01, %v3578_v32  ;;  %v3391_v18 = vmax.f32 %v3359_v57, 0.0  ;;  %v3547_v26 = vmul.f32 %v9381_v17, %v3515_v20  ;;  %v4577_v20 = vld [vmem:[%s11266_s6 + $0x38] sm:$0xff]  ;;  %v4576_v57 = vld [vmem:[%s11266_s6 + $0x30] sm:$0xff]  ;;  %6740 = vmatprep.subr.bf16.mxu1 %v6739_v56 }
 0x666   :  { %3877 = vmatmul.mubr.f32.gmra.mrb[68].mxu0 %v3705_v48  ;;  %6446 = vmatprep.mubr.f32.mxu1 %v3705_v48  ;;  %v3360_v15 = vsub.f32 %v3296_v47, %v3328_v3  ;;  %v7396_v7 = vmov 0.0|0.0   ;;  %v6741_v49 = vpack.c.bf16 %v4573_v23, %v4570_v52  ;;  %v6836_v48 = vpack.c.bf16 %v4575_v63, %v4572_v16 }
 0x667   :  { %v7255_v55 = vpop.eup %7254  ;;  %3882 = vmatprep.mubr.f32.mxu0 %v11480_v28  ;;  %v3674_v41 = vsel %vm3610_vm4, %v3578_v32, %v3642_v29  ;;  %6835 = vmatprep.subr.bf16.mxu0 %v7396_v7  ;;  %v3455_v34 = vadd.f32 1e-05, %v3391_v18  ;;  %v3116_v32 = vpop.xlane.xlu0 %3115  ;;  %v3422_v18 = vsub.f32 %v9466_v10, %v9645_v19  ;;  %v4578_v10 = vld [vmem:[%s11266_s6 + $0x40] sm:$0xff]  ;;  %v4581_v19 = vld [vmem:[%s11266_s6 + $0x58] sm:$0xff] }
 0x668   :  { %v3706_v35 = vadd.f32 %v3674_v41, %v9099_v42  ;;  %v3516_v2 = vmul.f32 %v7255_v55, %v3420_v14  ;;  %v3579_v42 = vadd.f32 %v9392_v54, %v3547_v26  ;;  %v4580_v14 = vld [vmem:[%s11266_s6 + $0x50] sm:$0xff]  ;;  %v3392_v39 = vmax.f32 %v3360_v15, 0.0  ;;  %v4579_v55 = vld [vmem:[%s11266_s6 + $0x48] sm:$0xff]  ;;  %v3212_v41 = vpop.xlane.xlu1 %3211  ;;  %6742 = vmatpush1.bf16.msra.mxu1 %v6741_v49  ;;  %6837 = vmatpush1.bf16.msra.mxu0 %v6836_v48 }
 0x669   :  { %v9703_v29 = vmul.f32 0.0078125, %v3116_v32  ;;  %v6743_v47 = vpack.c.bf16 %v4580_v14, %v4577_v20  ;;  %7260 = vrsqrt.f32 %v3455_v34  ;;  %v3297_v15 = vmul.f32 0.0078125, %v3212_v41  ;;  %6838 = vmatprep.subr.bf16.mxu0 %v7396_v7 }
 0x66a   :  { %3883 = vmatmul.mubr.f32.gmra.mrb[70].mxu0 %v3706_v35  ;;  %6447 = vmatmul.mubr.f32.gmra.mrb[66].mxu1 %v3706_v35  ;;  %v3548_v3 = vmul.f32 %v9381_v17, %v3516_v2  ;;  %vm3611_vm5 = vcmp.gt.f32.partialorder %v3579_v42, 0.0  ;;  %v3643_v26 = vmul.f32 0.01, %v3579_v42  ;;  %v3456_v9 = vadd.f32 1e-05, %v3392_v39 }
 0x66b   :  { %3888 = vmatprep.mubr.f32.mxu0 %v11480_v28  ;;  %v7257_v38 = vpop.eup %7256  ;;  %v3329_v52 = vmul.f32 %v9703_v29, %v9703_v29  ;;  %v6745_v35 = vpack.c.bf16 %v4579_v55, %v4576_v57  ;;  %v3118_v2 = vpop.xlane.xlu0 %3117  ;;  %6744 = vmatprep.subr.bf16.mxu1 %v6743_v47  ;;  %v6839_v14 = vpack.c.bf16 %v4581_v19, %v4578_v10  ;;  %v9756_v19 = vld [vmem:[%s11267_s7 + $0x6] ss:$0 sm:$0xff] }
 0x66c   :  { %v3675_v23 = vsel %vm3611_vm5, %v3579_v42, %v3643_v26  ;;  %v3580_v56 = vadd.f32 %v9392_v54, %v3548_v3  ;;  %v3517_v16 = vmul.f32 %v7257_v38, %v3421_v5  ;;  %7262 = vrsqrt.f32 %v3456_v9  ;;  %v3214_v49 = vpop.xlane.xlu1 %3213  ;;  %v4583_v42 = vld [vmem:[%s11266_s6 + $0x68] sm:$0xff]  ;;  %v4586_v5 = vld [vmem:[%s11266_s6 + $0x80] sm:$0xff] }
 0x66d   :  { %v3361_v63 = vsub.f32 %v3297_v15, %v3329_v52  ;;  %v9722_v34 = vmul.f32 0.0078125, %v3118_v2  ;;  %v3707_v32 = vadd.f32 %v3675_v23, %v9119_v46  ;;  %v3423_v39 = vsub.f32 %v9475_v31, %v9652_v30  ;;  %6746 = vmatpush1.bf16.msra.mxu1 %v6745_v35  ;;  %v4585_v31 = vld [vmem:[%s11266_s6 + $0x78] sm:$0xff]  ;;  %v4584_v30 = vld [vmem:[%s11266_s6 + $0x70] sm:$0xff]  ;;  %v4587_v38 = vld [vmem:[%s11266_s6 + $0x88] sm:$0xff]  ;;  %6840 = vmatpush1.bf16.msra.mxu0 %v6839_v14 }
 0x66e   :  { %vm3612_vm6 = vcmp.gt.f32.partialorder %v3580_v56, 0.0  ;;  %v3644_v48 = vmul.f32 0.01, %v3580_v56  ;;  %v3549_v20 = vmul.f32 %v9381_v17, %v3517_v16  ;;  %v7259_v57 = vpop.eup %7258  ;;  %v3298_v47 = vmul.f32 0.0078125, %v3214_v49  ;;  %v4582_v17 = vld [vmem:[%s11266_s6 + $0x60] sm:$0xff]  ;;  %6841 = vmatprep.subr.bf16.mxu0 %v7396_v7  ;;  %v4589_v23 = vld [vmem:[%s11266_s6 + $0x98] sm:$0xff] }
 0x66f   :  { %v3393_v3 = vmax.f32 %v3361_v63, 0.0  ;;  %v3330_v46 = vmul.f32 %v9722_v34, %v9722_v34  ;;  %3889 = vmatmul.mubr.f32.gmra.mrb[72].mxu0 %v3707_v32  ;;  %6449 = vmatprep.mubr.f32.mxu1 %v3707_v32  ;;  %v3518_v26 = vmul.f32 %v7259_v57, %v3422_v18  ;;  %v3120_v15 = vpop.xlane.xlu0 %3119  ;;  %v6749_v16 = vpack.c.bf16 %v4585_v31, %v4582_v17  ;;  %v4592_v32 = vld [vmem:[%s11266_s6 + $0xb0] sm:$0xff]  ;;  %v9782_v17 = vld [vmem:[%s11267_s7 + $0x9] ss:$0 sm:$0xff] }
 0x670   :  { %3894 = vmatprep.mubr.f32.mxu0 %v11480_v28  ;;  %v3676_v55 = vsel %vm3612_vm6, %v3580_v56, %v3644_v48  ;;  %v3581_v41 = vadd.f32 %v9392_v54, %v3549_v20  ;;  %v6747_v54 = vpack.c.bf16 %v4586_v5, %v4583_v42  ;;  %v9751_v18 = vmul.f32 0.0078125, %v3120_v15  ;;  %v3216_v56 = vpop.xlane.xlu1 %3215  ;;  %v4588_v49 = vld [vmem:[%s11266_s6 + $0x90] sm:$0xff]  ;;  %v4591_v48 = vld [vmem:[%s11266_s6 + $0xa8] sm:$0xff] }
 0x671   :  { %v3457_v9 = vadd.f32 1e-05, %v3393_v3  ;;  %v3362_v52 = vsub.f32 %v3298_v47, %v3330_v46  ;;  %v3708_v10 = vadd.f32 %v3676_v55, %v9123_v33  ;;  %v3550_v2 = vmul.f32 %v9756_v19, %v3518_v26  ;;  %v4595_v15 = vld [vmem:[%s11266_s6 + $0xc8] sm:$0xff] }
 0x672   :  { %vm3613_vm7 = vcmp.gt.f32.partialorder %v3581_v41, 0.0  ;;  %v3645_v35 = vmul.f32 0.01, %v3581_v41  ;;  %v6842_v63 = vpack.c.bf16 %v4587_v38, %v4584_v30  ;;  %v3424_v14 = vsub.f32 %v9478_v8, %v9662_v0  ;;  %6748 = vmatprep.subr.bf16.mxu1 %v6747_v54  ;;  %v4593_v30 = vld [vmem:[%s11266_s6 + $0xb8] sm:$0xff] }
 0x673   :  { %7264 = vrsqrt.f32 %v3457_v9  ;;  %v3394_v33 = vmax.f32 %v3362_v52, 0.0  ;;  %3895 = vmatmul.mubr.f32.gmra.mrb[74].mxu0 %v3708_v10  ;;  %6450 = vmatmul.mubr.f32.gmra.mrb[68].mxu1 %v3708_v10  ;;  %v7261_v20 = vpop.eup %7260  ;;  %v3331_v42 = vmul.f32 %v9751_v18, %v9751_v18  ;;  %v3299_v5 = vmul.f32 0.0078125, %v3216_v56  ;;  %v3122_v46 = vpop.xlane.xlu0 %3121  ;;  %v4598_v10 = vld [vmem:[%s11266_s6 + $0xe0] sm:$0xff] }
 0x674   :  { %3900 = vmatprep.mubr.f32.mxu0 %v11480_v28  ;;  %v3677_v57 = vsel %vm3613_vm7, %v3581_v41, %v3645_v35  ;;  %v3582_v8 = vadd.f32 %v9782_v17, %v3550_v2  ;;  %v3519_v0 = vmul.f32 %v7261_v20, %v3423_v39  ;;  %6750 = vmatpush1.bf16.msra.mxu1 %v6749_v16  ;;  %v9785_v26 = vmul.f32 0.0078125, %v3122_v46  ;;  %v3218_v39 = vpop.xlane.xlu1 %3217 }
 0x675   :  { %v3458_v3 = vadd.f32 1e-05, %v3394_v33  ;;  %v3709_v47 = vadd.f32 %v3677_v57, %v9143_v50  ;;  %6843 = vmatpush1.bf16.msra.mxu0 %v6842_v63  ;;  %v3363_v55 = vsub.f32 %v3299_v5, %v3331_v42  ;;  %v6751_v31 = vpack.c.bf16 %v4592_v32, %v4589_v23  ;;  %v4590_v50 = vld [vmem:[%s11266_s6 + $0xa0] sm:$0xff] }
 0x676   :  { %v6753_v41 = vpack.c.bf16 %v4591_v48, %v4588_v49  ;;  %6844 = vmatprep.subr.bf16.mxu0 %v7396_v7  ;;  %v7263_v38 = vpop.eup %7262  ;;  %vm3614_vm8 = vcmp.gt.f32.partialorder %v3582_v8, 0.0  ;;  %v3646_v9 = vmul.f32 0.01, %v3582_v8  ;;  %v3551_v52 = vmul.f32 %v9756_v19, %v3519_v0  ;;  %v4594_v33 = vld [vmem:[%s11266_s6 + $0xc0] sm:$0xff]  ;;  %v4599_v49 = vld [vmem:[%s11266_s6 + $0xe8] sm:$0xff] }
 0x677   :  { %7266 = vrsqrt.f32 %v3458_v3  ;;  %3901 = vmatmul.mubr.f32.gmra.mrb[76].mxu0 %v3709_v47  ;;  %6452 = vmatprep.mubr.f32.mxu1 %v3709_v47  ;;  %v3425_v54 = vsub.f32 %v9487_v1, %v9703_v29  ;;  %v3395_v35 = vmax.f32 %v3363_v55, 0.0  ;;  %v3332_v2 = vmul.f32 %v9785_v26, %v9785_v26  ;;  %v4597_v1 = vld [vmem:[%s11266_s6 + $0xd8] sm:$0xff]  ;;  %v4596_v29 = vld [vmem:[%s11266_s6 + $0xd0] sm:$0xff]  ;;  %v3124_v42 = vpop.xlane.xlu0 %3123 }
 0x678   :  { %v3300_v23 = vmul.f32 0.0078125, %v3218_v39  ;;  %3906 = vmatprep.mubr.f32.mxu0 %v11480_v28  ;;  %6752 = vmatprep.subr.bf16.mxu1 %v6751_v31  ;;  %v3678_v56 = vsel %vm3614_vm8, %v3582_v8, %v3646_v9  ;;  %v3583_v16 = vadd.f32 %v9782_v17, %v3551_v52  ;;  %v3520_v63 = vmul.f32 %v7263_v38, %v3424_v14  ;;  %v4601_v47 = vld [vmem:[%s11266_s6 + $0xf8] sm:$0xff]  ;;  %v3220_v0 = vpop.xlane.xlu1 %3219 }
 0x679   :  { %6754 = vmatpush1.bf16.msra.mxu1 %v6753_v41  ;;  %v6845_v32 = vpack.c.bf16 %v4593_v30, %v4590_v50  ;;  %v3459_v48 = vadd.f32 1e-05, %v3395_v35  ;;  %v3710_v5 = vadd.f32 %v3678_v56, %v9149_v53  ;;  %v6755_v14 = vpack.c.bf16 %v4598_v10, %v4595_v15  ;;  %v4604_v53 = vld [vmem:[%s11266_s6 + $0x110] sm:$0xff]  ;;  %v4603_v50 = vld [vmem:[%s11266_s6 + $0x108] sm:$0xff] }
 0x67a   :  { %v3364_v20 = vsub.f32 %v3300_v23, %v3332_v2  ;;  %v9820_v57 = vmul.f32 0.0078125, %v3124_v42  ;;  %vm3615_vm9 = vcmp.gt.f32.partialorder %v3583_v16, 0.0  ;;  %v3647_v3 = vmul.f32 0.01, %v3583_v16  ;;  %v4600_v41 = vld [vmem:[%s11266_s6 + $0xf0] sm:$0xff]  ;;  %v4607_v42 = vld [vmem:[%s11266_s6 + $0x128] sm:$0xff] }
 0x67b   :  { %v3552_v46 = vmul.f32 %v9756_v19, %v3520_v63  ;;  %6846 = vmatpush1.bf16.msra.mxu0 %v6845_v32  ;;  %7268 = vrsqrt.f32 %v3459_v48  ;;  %6453 = vmatmul.mubr.f32.gmra.mrb[70].mxu1 %v3710_v5  ;;  %v6757_v55 = vpack.c.bf16 %v4597_v1, %v4594_v33  ;;  %v6848_v31 = vpack.c.bf16 %v4599_v49, %v4596_v29  ;;  %v3126_v10 = vpop.xlane.xlu0 %3125  ;;  %v4605_v32 = vld [vmem:[%s11266_s6 + $0x118] sm:$0xff] }
 0x67c   :  { %v3396_v8 = vmax.f32 %v3364_v20, 0.0  ;;  %3907 = vmatmul.mubr.f32.gmra.mrb[78].mxu0 %v3710_v5  ;;  %v3426_v38 = vsub.f32 %v9490_v25, %v9722_v34  ;;  %v3333_v39 = vmul.f32 %v9820_v57, %v9820_v57  ;;  %v3301_v9 = vmul.f32 0.0078125, %v3220_v0  ;;  %6756 = vmatprep.subr.bf16.mxu1 %v6755_v14  ;;  %v3222_v63 = vpop.xlane.xlu1 %3221 }
 0x67d   :  { %v7265_v30 = vpop.eup %7264  ;;  %3912 = vmatprep.mubr.f32.mxu0 %v11480_v28  ;;  %v3679_v52 = vsel %vm3615_vm9, %v3583_v16, %v3647_v3  ;;  %v3584_v2 = vadd.f32 %v9782_v17, %v3552_v46  ;;  %6758 = vmatpush1.bf16.msra.mxu1 %v6757_v55  ;;  %v9844_v34 = vmul.f32 0.0078125, %v3126_v10  ;;  %v6759_v33 = vpack.c.bf16 %v4604_v53, %v4601_v47  ;;  %v4609_v46 = vld [vmem:[%s11266_s6 + $0x138] sm:$0xff]  ;;  %v4616_v10 = vld [vmem:[%s11266_s6 + $0x170] sm:$0xff] }
 0x67e   :  { %v3460_v15 = vadd.f32 1e-05, %v3396_v8  ;;  %v3711_v35 = vadd.f32 %v3679_v52, %v9167_v12  ;;  %v3521_v23 = vmul.f32 %v7265_v30, %v3425_v54  ;;  %6847 = vmatprep.subr.bf16.mxu0 %v7396_v7  ;;  %v3365_v25 = vsub.f32 %v3301_v9, %v3333_v39  ;;  %v4602_v54 = vld [vmem:[%s11266_s6 + $0x100] sm:$0xff]  ;;  %v4608_v30 = vld [vmem:[%s11266_s6 + $0x130] sm:$0xff] }
 0x67f   :  { %6849 = vmatpush1.bf16.msra.mxu0 %v6848_v31  ;;  %v6761_v56 = vpack.c.bf16 %v4603_v50, %v4600_v41  ;;  %vm3616_vm10 = vcmp.gt.f32.partialorder %v3584_v2, 0.0  ;;  %v3648_v16 = vmul.f32 0.01, %v3584_v2  ;;  %v3427_v29 = vsub.f32 %v9499_v27, %v9751_v18  ;;  %6760 = vmatprep.subr.bf16.mxu1 %v6759_v33  ;;  %v4610_v27 = vld [vmem:[%s11266_s6 + $0x140] sm:$0xff]  ;;  %v3128_v0 = vpop.xlane.xlu0 %3127 }
 0x680   :  { %7270 = vrsqrt.f32 %v3460_v15  ;;  %3913 = vmatmul.mubr.f32.gmra.mrb[80].mxu0 %v3711_v35  ;;  %6455 = vmatprep.mubr.f32.mxu1 %v3711_v35  ;;  %v3553_v12 = vmul.f32 %v9756_v19, %v3521_v23  ;;  %v3397_v49 = vmax.f32 %v3365_v25, 0.0  ;;  %v3334_v48 = vmul.f32 %v9844_v34, %v9844_v34  ;;  %v4606_v18 = vld [vmem:[%s11266_s6 + $0x120] sm:$0xff]  ;;  %v3224_v39 = vpop.xlane.xlu1 %3223  ;;  %v4613_v15 = vld [vmem:[%s11266_s6 + $0x158] sm:$0xff] }
 0x681   :  { %v7267_v1 = vpop.eup %7266  ;;  %v3302_v20 = vmul.f32 0.0078125, %v3222_v63  ;;  %3918 = vmatprep.mubr.f32.mxu0 %v11480_v28  ;;  %v3680_v5 = vsel %vm3616_vm10, %v3584_v2, %v3648_v16  ;;  %6762 = vmatpush1.bf16.msra.mxu1 %v6761_v56  ;;  %v6851_v31 = vpack.c.bf16 %v4605_v32, %v4602_v54  ;;  %v9873_v53 = vmul.f32 0.0078125, %v3128_v0 }
 0x682   :  { %v3585_v14 = vadd.f32 %v9782_v17, %v3553_v12  ;;  %v3522_v3 = vmul.f32 %v7267_v1, %v3426_v38  ;;  %6850 = vmatprep.subr.bf16.mxu0 %v7396_v7  ;;  %v3461_v47 = vadd.f32 1e-05, %v3397_v49  ;;  %v3712_v55 = vadd.f32 %v3680_v5, %v9173_v21  ;;  %v4611_v21 = vld [vmem:[%s11266_s6 + $0x148] sm:$0xff]  ;;  %v4612_v49 = vld [vmem:[%s11266_s6 + $0x150] sm:$0xff]  ;;  %v4617_v5 = vld [vmem:[%s11266_s6 + $0x178] sm:$0xff] }
 0x683   :  { %v3366_v8 = vsub.f32 %v3302_v20, %v3334_v48  ;;  %v6763_v9 = vpack.c.bf16 %v4610_v27, %v4607_v42  ;;  %v6765_v52 = vpack.c.bf16 %v4609_v46, %v4606_v18  ;;  %v3428_v2 = vsub.f32 %v9502_v11, %v9785_v26  ;;  %6852 = vmatpush1.bf16.msra.mxu0 %v6851_v31  ;;  %v3130_v63 = vpop.xlane.xlu0 %3129  ;;  %v4614_v42 = vld [vmem:[%s11266_s6 + $0x160] sm:$0xff] }
 0x684   :  { %vm3617_vm11 = vcmp.gt.f32.partialorder %v3585_v14, 0.0  ;;  %v3649_v41 = vmul.f32 0.01, %v3585_v14  ;;  %v3554_v50 = vmul.f32 %v9756_v19, %v3522_v3  ;;  %7272 = vrsqrt.f32 %v3461_v47  ;;  %3919 = vmatmul.mubr.f32.gmra.mrb[82].mxu0 %v3712_v55  ;;  %6456 = vmatmul.mubr.f32.gmra.mrb[72].mxu1 %v3712_v55  ;;  %v3226_v48 = vpop.xlane.xlu1 %3225  ;;  %v4619_v47 = vld [vmem:[%s11266_s6 + $0x188] sm:$0xff]  ;;  %v4618_v31 = vld [vmem:[%s11266_s6 + $0x180] sm:$0xff] }
 0x685   :  { %v3398_v38 = vmax.f32 %v3366_v8, 0.0  ;;  %v7269_v35 = vpop.eup %7268  ;;  %v3335_v23 = vmul.f32 %v9873_v53, %v9873_v53  ;;  %v3303_v25 = vmul.f32 0.0078125, %v3224_v39  ;;  %3924 = vmatprep.mubr.f32.mxu0 %v11480_v28  ;;  %6764 = vmatprep.subr.bf16.mxu1 %v6763_v9  ;;  %v9897_v26 = vmul.f32 0.0078125, %v3130_v63  ;;  %v4622_v8 = vld [vmem:[%s11266_s6 + $0x1a0] sm:$0xff] }
 0x686   :  { %v3681_v33 = vsel %vm3617_vm11, %v3585_v14, %v3649_v41  ;;  %v3586_v12 = vadd.f32 %v9782_v17, %v3554_v50  ;;  %v3523_v54 = vmul.f32 %v7269_v35, %v3427_v29  ;;  %6853 = vmatprep.subr.bf16.mxu0 %v7396_v7  ;;  %6766 = vmatpush1.bf16.msra.mxu1 %v6765_v52  ;;  %v3304_v46 = vmul.f32 0.0078125, %v3226_v48  ;;  %v4621_v41 = vld [vmem:[%s11266_s6 + $0x198] sm:$0xff]  ;;  %v4623_v35 = vld [vmem:[%s11266_s6 + $0x1a8] sm:$0xff] }
 0x687   :  { %v3462_v56 = vadd.f32 1e-05, %v3398_v38  ;;  %v3713_v16 = vadd.f32 %v3681_v33, %v9196_v45  ;;  %v3367_v11 = vsub.f32 %v3303_v25, %v3335_v23  ;;  %v6854_v32 = vpack.c.bf16 %v4611_v21, %v4608_v30  ;;  %v4615_v45 = vld [vmem:[%s11266_s6 + $0x168] sm:$0xff]  ;;  %v3132_v9 = vpop.xlane.xlu0 %3131 }
 0x688   :  { %v6767_v1 = vpack.c.bf16 %v4616_v10, %v4613_v15  ;;  %vm3618_vm12 = vcmp.gt.f32.partialorder %v3586_v12, 0.0  ;;  %v3650_v29 = vmul.f32 0.01, %v3586_v12  ;;  %v3555_v20 = vmul.f32 %v9756_v19, %v3523_v54  ;;  %v4620_v10 = vld [vmem:[%s11266_s6 + $0x190] sm:$0xff] }
 0x689   :  { %7274 = vrsqrt.f32 %v3462_v56  ;;  %3925 = vmatmul.mubr.f32.gmra.mrb[84].mxu0 %v3713_v16  ;;  %6458 = vmatprep.mubr.f32.mxu1 %v3713_v16  ;;  %v3429_v3 = vsub.f32 %v9512_v36, %v9820_v57  ;;  %v3399_v27 = vmax.f32 %v3367_v11, 0.0  ;;  %v3336_v18 = vmul.f32 %v9897_v26, %v9897_v26  ;;  %v3228_v56 = vpop.xlane.xlu1 %3227  ;;  %v4628_v54 = vld [vmem:[%s11266_s6 + $0x1d0] sm:$0xff] }
 0x68a   :  { %v7271_v14 = vpop.eup %7270  ;;  %3930 = vmatprep.mubr.f32.mxu0 %v11480_v28  ;;  %6855 = vmatpush1.bf16.msra.mxu0 %v6854_v32  ;;  %v3682_v0 = vsel %vm3618_vm12, %v3586_v12, %v3650_v29  ;;  %v3587_v55 = vadd.f32 %v9782_v17, %v3555_v20  ;;  %v6769_v57 = vpack.c.bf16 %v4615_v45, %v4612_v49  ;;  %v4625_v12 = vld [vmem:[%s11266_s6 + $0x1b8] sm:$0xff]  ;;  %v4627_v49 = vld [vmem:[%s11266_s6 + $0x1c8] sm:$0xff] }
 0x68b   :  { %v3524_v36 = vmul.f32 %v7271_v14, %v3428_v2  ;;  %6768 = vmatprep.subr.bf16.mxu1 %v6767_v1  ;;  %v3463_v50 = vadd.f32 1e-05, %v3399_v27  ;;  %v3368_v30 = vsub.f32 %v3304_v46, %v3336_v18  ;;  %v3714_v38 = vadd.f32 %v3682_v0, %v9199_v6  ;;  %6856 = vmatprep.subr.bf16.mxu0 %v7396_v7  ;;  %v4624_v1 = vld [vmem:[%s11266_s6 + $0x1b0] sm:$0xff]  ;;  %v3134_v45 = vpop.xlane.xlu0 %3133 }
 0x68c   :  { %v6857_v39 = vpack.c.bf16 %v4617_v5, %v4614_v42  ;;  %vm3619_vm13 = vcmp.gt.f32.partialorder %v3587_v55, 0.0  ;;  %v3651_v52 = vmul.f32 0.01, %v3587_v55  ;;  %6770 = vmatpush1.bf16.msra.mxu1 %v6769_v57  ;;  %v6771_v15 = vpack.c.bf16 %v4622_v8, %v4619_v47 }
 0x68d   :  { %v3556_v21 = vmul.f32 %v9756_v19, %v3524_v36  ;;  %7276 = vrsqrt.f32 %v3463_v50  ;;  %v3400_v6 = vmax.f32 %v3368_v30, 0.0  ;;  %v9939_v2 = vmul.f32 0.0078125, %v3132_v9  ;;  %3931 = vmatmul.mubr.f32.gmra.mrb[86].mxu0 %v3714_v38  ;;  %6459 = vmatmul.mubr.f32.gmra.mrb[74].mxu1 %v3714_v38  ;;  %v3230_v18 = vpop.xlane.xlu1 %3229 }
 0x68e   :  { %v6773_v23 = vpack.c.bf16 %v4621_v41, %v4618_v31  ;;  %v7273_v25 = vpop.eup %7272  ;;  %v3430_v33 = vsub.f32 %v9515_v60, %v9844_v34  ;;  %3936 = vmatprep.mubr.f32.mxu0 %v11480_v28  ;;  %v3683_v63 = vsel %vm3619_vm13, %v3587_v55, %v3651_v52  ;;  %6858 = vmatpush1.bf16.msra.mxu0 %v6857_v39  ;;  %v3305_v34 = vmul.f32 0.0078125, %v3228_v56  ;;  %v4631_v31 = vld [vmem:[%s11266_s6 + $0x1e8] sm:$0xff]  ;;  %v4634_v41 = vld [vmem:[%s11266_s6 + $0x200] sm:$0xff] }
 0x68f   :  { %v3588_v16 = vadd.f32 %v9782_v17, %v3556_v21  ;;  %v3464_v11 = vadd.f32 1e-05, %v3400_v6  ;;  %v3337_v60 = vmul.f32 %v9939_v2, %v9939_v2  ;;  %6772 = vmatprep.subr.bf16.mxu1 %v6771_v15  ;;  %6859 = vmatprep.subr.bf16.mxu0 %v7396_v7  ;;  %v6860_v32 = vpack.c.bf16 %v4623_v35, %v4620_v10  ;;  %v4630_v35 = vld [vmem:[%s11266_s6 + $0x1e0] sm:$0xff]  ;;  %v4633_v6 = vld [vmem:[%s11266_s6 + $0x1f8] sm:$0xff] }
 0x690   :  { %v3715_v48 = vadd.f32 %v3683_v63, %v9220_v58  ;;  %v3525_v20 = vmul.f32 %v7273_v25, %v3429_v3  ;;  %6774 = vmatpush1.bf16.msra.mxu1 %v6773_v23  ;;  %v9962_v5 = vmul.f32 0.0078125, %v3134_v45  ;;  %v6775_v14 = vpack.c.bf16 %v4628_v54, %v4625_v12  ;;  %v4626_v58 = vld [vmem:[%s11266_s6 + $0x1c0] sm:$0xff]  ;;  %v4629_v3 = vld [vmem:[%s11266_s6 + $0x1d8] sm:$0xff]  ;;  %v3136_v50 = vpop.xlane.xlu0 %3135 }
 0x691   :  { %vm3620_vm14 = vcmp.gt.f32.partialorder %v3588_v16, 0.0  ;;  %v3652_v29 = vmul.f32 0.01, %v3588_v16  ;;  %7278 = vrsqrt.f32 %v3464_v11  ;;  %v3369_v42 = vsub.f32 %v3305_v34, %v3337_v60 }
 0x692   :  { %3937 = vmatmul.mubr.f32.gmra.mrb[88].mxu0 %v3715_v48  ;;  %6461 = vmatprep.mubr.f32.mxu1 %v3715_v48  ;;  %v3557_v47 = vmul.f32 %v9756_v19, %v3525_v20  ;;  %v6777_v8 = vpack.c.bf16 %v4627_v49, %v4624_v1  ;;  %v3431_v0 = vsub.f32 %v9524_v59, %v9873_v53  ;;  %v3306_v57 = vmul.f32 0.0078125, %v3230_v18  ;;  %v3232_v21 = vpop.xlane.xlu1 %3231  ;;  %v4632_v48 = vld [vmem:[%s11266_s6 + $0x1f0] sm:$0xff] }
 0x693   :  { %v7275_v27 = vpop.eup %7274  ;;  %v3684_v46 = vsel %vm3620_vm14, %v3588_v16, %v3652_v29  ;;  %v3401_v55 = vmax.f32 %v3369_v42, 0.0  ;;  %v3338_v36 = vmul.f32 %v9962_v5, %v9962_v5  ;;  %3942 = vmatprep.mubr.f32.mxu0 %v11480_v28  ;;  %6861 = vmatpush1.bf16.msra.mxu0 %v6860_v32  ;;  %v9985_v9 = vmul.f32 0.0078125, %v3136_v50  ;;  %v4635_v29 = vld [vmem:[%s11266_s6 + $0x208] sm:$0xff] }
 0x694   :  { %v3716_v30 = vadd.f32 %v3684_v46, %v9223_v44  ;;  %v3589_v59 = vadd.f32 %v9782_v17, %v3557_v47  ;;  %v3526_v53 = vmul.f32 %v7275_v27, %v3430_v33  ;;  %6776 = vmatprep.subr.bf16.mxu1 %v6775_v14  ;;  %6862 = vmatprep.subr.bf16.mxu0 %v7396_v7  ;;  %v3307_v63 = vmul.f32 0.0078125, %v3232_v21  ;;  %v3138_v16 = vpop.xlane.xlu0 %3137 }
 0x695   :  { %v3465_v38 = vadd.f32 1e-05, %v3401_v55  ;;  %v3370_v39 = vsub.f32 %v3306_v57, %v3338_v36  ;;  %6778 = vmatpush1.bf16.msra.mxu1 %v6777_v8  ;;  %v6863_v52 = vpack.c.bf16 %v4629_v3, %v4626_v58  ;;  %v6779_v44 = vpack.c.bf16 %v4634_v41, %v4631_v31  ;;  %v4637_v55 = vld [vmem:[%s11266_s6 + $0x218] sm:$0xff]  ;;  %v4640_v36 = vld [vmem:[%s11266_s6 + $0x230] sm:$0xff] }
 0x696   :  { %3943 = vmatmul.mubr.f32.gmra.mrb[90].mxu0 %v3716_v30  ;;  %6462 = vmatmul.mubr.f32.gmra.mrb[76].mxu1 %v3716_v30  ;;  %vm3621_vm15 = vcmp.gt.f32.partialorder %v3589_v59, 0.0  ;;  %v3653_v15 = vmul.f32 0.01, %v3589_v59  ;;  %v3558_v10 = vmul.f32 %v9756_v19, %v3526_v53  ;;  %v3432_v25 = vsub.f32 %v9527_v51, %v9897_v26  ;;  %v3234_v1 = vpop.xlane.xlu1 %3233 }
 0x697   :  { %v7277_v23 = vpop.eup %7276  ;;  %7280 = vrsqrt.f32 %v3465_v38  ;;  %v3402_v33 = vmax.f32 %v3370_v39, 0.0  ;;  %v3339_v56 = vmul.f32 %v9985_v9, %v9985_v9  ;;  %3948 = vmatprep.mubr.f32.mxu0 %v11480_v28  ;;  %6864 = vmatpush1.bf16.msra.mxu0 %v6863_v52  ;;  %v10001_v34 = vmul.f32 0.0078125, %v3138_v16  ;;  %v4636_v38 = vld [vmem:[%s11266_s6 + $0x210] sm:$0xff]  ;;  %v4639_v39 = vld [vmem:[%s11266_s6 + $0x228] sm:$0xff] }
 0x698   :  { %v3685_v12 = vsel %vm3621_vm15, %v3589_v59, %v3653_v15  ;;  %v3590_v54 = vadd.f32 %v9782_v17, %v3558_v10  ;;  %v3527_v11 = vmul.f32 %v7277_v23, %v3431_v0  ;;  %6780 = vmatprep.subr.bf16.mxu1 %v6779_v44  ;;  %6865 = vmatprep.subr.bf16.mxu0 %v7396_v7  ;;  %v3308_v42 = vmul.f32 0.0078125, %v3234_v1  ;;  %v3140_v27 = vpop.xlane.xlu0 %3139  ;;  %v4638_v23 = vld [vmem:[%s11266_s6 + $0x220] sm:$0xff] }
 0x699   :  { %v3466_v60 = vadd.f32 1e-05, %v3402_v33  ;;  %v3717_v51 = vadd.f32 %v3685_v12, %v9244_v13  ;;  %v6781_v26 = vpack.c.bf16 %v4633_v6, %v4630_v35  ;;  %v3371_v32 = vsub.f32 %v3307_v63, %v3339_v56  ;;  %v4646_v12 = vld [vmem:[%s11266_s6 + $0x260] sm:$0xff] }
 0x69a   :  { %vm3622_vm0 = vcmp.gt.f32.partialorder %v3590_v54, 0.0  ;;  %v3654_v49 = vmul.f32 0.01, %v3590_v54  ;;  %v3559_v45 = vmul.f32 %v9756_v19, %v3527_v11  ;;  %v3340_v13 = vmul.f32 %v10001_v34, %v10001_v34  ;;  %v3236_v31 = vpop.xlane.xlu1 %3235 }
 0x69b   :  { %v7279_v20 = vpop.eup %7278  ;;  %7282 = vrsqrt.f32 %v3466_v60  ;;  %3949 = vmatmul.mubr.f32.gmra.mrb[92].mxu0 %v3717_v51  ;;  %6464 = vmatprep.mubr.f32.mxu1 %v3717_v51  ;;  %v3403_v14 = vmax.f32 %v3371_v32, 0.0  ;;  %v10015_v58 = vmul.f32 0.0078125, %v3140_v27  ;;  %v6866_v0 = vpack.c.bf16 %v4635_v29, %v4632_v48  ;;  %v4642_v51 = vld [vmem:[%s11266_s6 + $0x240] sm:$0xff] }
 0x69c   :  { %3954 = vmatprep.mubr.f32.mxu0 %v11480_v28  ;;  %v3686_v18 = vsel %vm3622_vm0, %v3590_v54, %v3654_v49  ;;  %v3591_v46 = vadd.f32 %v9782_v17, %v3559_v45  ;;  %v3528_v47 = vmul.f32 %v7279_v20, %v3432_v25  ;;  %6782 = vmatpush1.bf16.msra.mxu1 %v6781_v26  ;;  %v3309_v53 = vmul.f32 0.0078125, %v3236_v31  ;;  %v3142_v52 = vpop.xlane.xlu0 %3141  ;;  %v4641_v25 = vld [vmem:[%s11266_s6 + $0x238] sm:$0xff]  ;;  %v4651_v31 = vld [vmem:[%s11266_s6 + $0x288] sm:$0xff] }
 0x69d   :  { %v3372_v8 = vsub.f32 %v3308_v42, %v3340_v13  ;;  %v3718_v3 = vadd.f32 %v3686_v18, %v9252_v22  ;;  %v3467_v57 = vadd.f32 1e-05, %v3403_v14  ;;  %v3433_v30 = vsub.f32 %v9536_v43, %v9939_v2  ;;  %6867 = vmatpush1.bf16.msra.mxu0 %v6866_v0  ;;  %v4645_v26 = vld [vmem:[%s11266_s6 + $0x258] sm:$0xff]  ;;  %v4644_v42 = vld [vmem:[%s11266_s6 + $0x250] sm:$0xff] }
 0x69e   :  { %vm3623_vm1 = vcmp.gt.f32.partialorder %v3591_v46, 0.0  ;;  %v3655_v41 = vmul.f32 0.01, %v3591_v46  ;;  %v3560_v50 = vmul.f32 %v9756_v19, %v3528_v47  ;;  %v3341_v22 = vmul.f32 %v10015_v58, %v10015_v58  ;;  %6868 = vmatprep.subr.bf16.mxu0 %v7396_v7  ;;  %v3238_v33 = vpop.xlane.xlu1 %3237 }
 0x69f   :  { %v3404_v59 = vmax.f32 %v3372_v8, 0.0  ;;  %3955 = vmatmul.mubr.f32.gmra.mrb[94].mxu0 %v3718_v3  ;;  %6465 = vmatmul.mubr.f32.gmra.mrb[78].mxu1 %v3718_v3  ;;  %7284 = vrsqrt.f32 %v3467_v57  ;;  %v6783_v21 = vpack.c.bf16 %v4640_v36, %v4637_v55  ;;  %v10037_v35 = vmul.f32 0.0078125, %v3142_v52  ;;  %v4647_v8 = vld [vmem:[%s11266_s6 + $0x268] sm:$0xff]  ;;  %v4652_v3 = vld [vmem:[%s11266_s6 + $0x290] sm:$0xff] }
 0x6a0   :  { %3960 = vmatprep.mubr.f32.mxu0 %v11480_v28  ;;  %v3687_v43 = vsel %vm3623_vm1, %v3591_v46, %v3655_v41  ;;  %v3592_v2 = vadd.f32 %v9782_v17, %v3560_v50  ;;  %v3373_v44 = vsub.f32 %v3309_v53, %v3341_v22  ;;  %v6785_v16 = vpack.c.bf16 %v4639_v39, %v4636_v38  ;;  %v3144_v1 = vpop.xlane.xlu0 %3143  ;;  %v4648_v57 = vld [vmem:[%s11266_s6 + $0x270] sm:$0xff] }
 0x6a1   :  { %v7281_v15 = vpop.eup %7280  ;;  %v3468_v10 = vadd.f32 1e-05, %v3404_v59  ;;  %v3719_v6 = vadd.f32 %v3687_v43, %v9272_v40  ;;  %6784 = vmatprep.subr.bf16.mxu1 %v6783_v21  ;;  %v4643_v40 = vld [vmem:[%s11266_s6 + $0x248] sm:$0xff]  ;;  %v3434_v54 = vsub.f32 %v9539_v4, %v9962_v5  ;;  %v3342_v60 = vmul.f32 %v10037_v35, %v10037_v35 }
 0x6a2   :  { %vm3624_vm2 = vcmp.gt.f32.partialorder %v3592_v2, 0.0  ;;  %v3656_v56 = vmul.f32 0.01, %v3592_v2  ;;  %v3529_v63 = vmul.f32 %v7281_v15, %v3433_v30  ;;  %v3405_v11 = vmax.f32 %v3373_v44, 0.0  ;;  %6786 = vmatpush1.bf16.msra.mxu1 %v6785_v16  ;;  %v3240_v27 = vpop.xlane.xlu1 %3239 }
 0x6a3   :  { %7286 = vrsqrt.f32 %v3468_v10  ;;  %3961 = vmatmul.mubr.f32.gmra.mrb[96].mxu0 %v3719_v6  ;;  %6467 = vmatprep.mubr.f32.mxu1 %v3719_v6  ;;  %v3310_v32 = vmul.f32 0.0078125, %v3238_v33  ;;  %v6869_v49 = vpack.c.bf16 %v4641_v25, %v4638_v23  ;;  %v10066_v29 = vmul.f32 0.0078125, %v3144_v1  ;;  %v4650_v23 = vld [vmem:[%s11266_s6 + $0x280] sm:$0xff]  ;;  %v4653_v25 = vld [vmem:[%s11266_s6 + $0x298] sm:$0xff] }
 0x6a4   :  { %3966 = vmatprep.mubr.f32.mxu0 %v11480_v28  ;;  %v3688_v4 = vsel %vm3624_vm2, %v3592_v2, %v3656_v56  ;;  %v3561_v5 = vmul.f32 %v9756_v19, %v3529_v63  ;;  %v3469_v48 = vadd.f32 1e-05, %v3405_v11  ;;  %v6787_v13 = vpack.c.bf16 %v4646_v12, %v4643_v40  ;;  %v3146_v50 = vpop.xlane.xlu0 %3145 }
 0x6a5   :  { %v7283_v45 = vpop.eup %7282  ;;  %v3720_v20 = vadd.f32 %v3688_v4, %v9276_v61  ;;  %v3374_v14 = vsub.f32 %v3310_v32, %v3342_v60  ;;  %6870 = vmatpush1.bf16.msra.mxu0 %v6869_v49  ;;  %v6789_v47 = vpack.c.bf16 %v4645_v26, %v4642_v51  ;;  %v4649_v61 = vld [vmem:[%s11266_s6 + $0x278] sm:$0xff]  ;;  %v3435_v0 = vsub.f32 %v9548_v37, %v9985_v9  ;;  %v4658_v26 = vld [vmem:[%s11266_s6 + $0x2c0] sm:$0xff]  ;;  %v11482_v49 = vld [vmem:[#allocation23_spill] sm:$0xff] }
 0x6a6   :  { %v3593_v18 = vadd.f32 %v9782_v17, %v3561_v5  ;;  %v3530_v46 = vmul.f32 %v7283_v45, %v3434_v54  ;;  %7288 = vrsqrt.f32 %v3469_v48  ;;  %v3343_v55 = vmul.f32 %v10066_v29, %v10066_v29  ;;  %6788 = vmatprep.subr.bf16.mxu1 %v6787_v13  ;;  %6871 = vmatprep.subr.bf16.mxu0 %v7396_v7  ;;  %v3242_v52 = vpop.xlane.xlu1 %3241 }
 0x6a7   :  { %v3311_v36 = vmul.f32 0.0078125, %v3240_v27  ;;  %3967 = vmatmul.mubr.f32.gmra.mrb[98].mxu0 %v3720_v20  ;;  %6468 = vmatmul.mubr.f32.gmra.mrb[80].mxu1 %v3720_v20  ;;  %v3406_v41 = vmax.f32 %v3374_v14, 0.0  ;;  %v10094_v59 = vmul.f32 0.0078125, %v3146_v50  ;;  %v6872_v22 = vpack.c.bf16 %v4647_v8, %v4644_v42 }
 0x6a8   :  { %3972 = vmatprep.mubr.f32.mxu0 %v11480_v28  ;;  %vm3625_vm3 = vcmp.gt.f32.partialorder %v3593_v18, 0.0  ;;  %v3657_v37 = vmul.f32 0.01, %v3593_v18  ;;  %v3562_v9 = vmul.f32 %v9756_v19, %v3530_v46  ;;  %6790 = vmatpush1.bf16.msra.mxu1 %v6789_v47  ;;  %v6791_v53 = vpack.c.bf16 %v4652_v3, %v4649_v61  ;;  %v3148_v33 = vpop.xlane.xlu0 %3147  ;;  %v11483_v61 = vld [vmem:[#allocation19_spill] sm:$0xff] }
 0x6a9   :  { %v3375_v30 = vsub.f32 %v3311_v36, %v3343_v55  ;;  %v7285_v38 = vpop.eup %7284  ;;  %v3470_v39 = vadd.f32 1e-05, %v3406_v41  ;;  %v6793_v21 = vpack.c.bf16 %v4651_v31, %v4648_v57  ;;  %v3436_v15 = vsub.f32 %v9551_v24, %v10001_v34  ;;  %6873 = vmatpush1.bf16.msra.mxu0 %v6872_v22  ;;  %v4654_v36 = vld [vmem:[%s11266_s6 + $0x2a0] sm:$0xff]  ;;  %v4657_v57 = vld [vmem:[%s11266_s6 + $0x2b8] sm:$0xff] }
 0x6aa   :  { %v3689_v43 = vsel %vm3625_vm3, %v3593_v18, %v3657_v37  ;;  %v3594_v2 = vadd.f32 %v9782_v17, %v3562_v9  ;;  %v3344_v44 = vmul.f32 %v10094_v59, %v10094_v59  ;;  %v3312_v6 = vmul.f32 0.0078125, %v3242_v52  ;;  %6792 = vmatprep.subr.bf16.mxu1 %v6791_v53  ;;  %6874 = vmatprep.subr.bf16.mxu0 %v7396_v7  ;;  %v3244_v54 = vpop.xlane.xlu1 %3243  ;;  %v11484_v53 = vld [vmem:[#allocation27_spill] sm:$0xff] }
 0x6ab   :  { %v3407_v10 = vmax.f32 %v3375_v30, 0.0  ;;  %7290 = vrsqrt.f32 %v3470_v39  ;;  %v3721_v56 = vadd.f32 %v3689_v43, %v9299_v62  ;;  %v10110_v40 = vmul.f32 0.0078125, %v3148_v33  ;;  %v4655_v62 = vld [vmem:[%s11266_s6 + $0x2a8] sm:$0xff] }
 0x6ac   :  { %vm3626_vm4 = vcmp.gt.f32.partialorder %v3594_v2, 0.0  ;;  %v3658_v24 = vmul.f32 0.01, %v3594_v2  ;;  %v3376_v16 = vsub.f32 %v3312_v6, %v3344_v44  ;;  %v3531_v12 = vmul.f32 %v7285_v38, %v3435_v0  ;;  %6794 = vmatpush1.bf16.msra.mxu1 %v6793_v21  ;;  %v3150_v5 = vpop.xlane.xlu0 %3149  ;;  %v11485_v21 = vld [vmem:[#allocation28_spill] sm:$0xff] }
 0x6ad   :  { %v7287_v34 = vpop.eup %7286  ;;  %v3471_v63 = vadd.f32 1e-05, %v3407_v10  ;;  %3973 = vmatmul.mubr.f32.gmra.mrb[100].mxu0 %v3721_v56  ;;  %6470 = vmatprep.mubr.f32.mxu1 %v3721_v56  ;;  %v6875_v51 = vpack.c.bf16 %v4653_v25, %v4650_v23  ;;  %v3345_v1 = vmul.f32 %v10110_v40, %v10110_v40  ;;  %v3313_v4 = vmul.f32 0.0078125, %v3244_v54  ;;  %v11486_v6 = vld [vmem:[#allocation24_spill] sm:$0xff] }
 0x6ae   :  { %v3690_v11 = vsel %vm3626_vm4, %v3594_v2, %v3658_v24  ;;  %v3532_v60 = vmul.f32 %v7287_v34, %v3436_v15  ;;  %v3408_v32 = vmax.f32 %v3376_v16, 0.0  ;;  %3978 = vmatprep.mubr.f32.mxu0 %v11480_v28  ;;  %v3563_v48 = vmul.f32 %v9756_v19, %v3531_v12  ;;  %v3246_v46 = vpop.xlane.xlu1 %3245 }
 0x6af   :  { %7292 = vrsqrt.f32 %v3471_v63  ;;  %v3722_v45 = vadd.f32 %v3690_v11, %v11482_v49  ;;  %6876 = vmatpush1.bf16.msra.mxu0 %v6875_v51  ;;  %v10124_v14 = vmul.f32 0.0078125, %v3150_v5  ;;  %v6795_v27 = vpack.c.bf16 %v4658_v26, %v4655_v62  ;;  %v4659_v62 = vld [vmem:[%s11266_s6 + $0x2c8] sm:$0xff]  ;;  %v11488_v26 = vld [vmem:[#allocation20_spill] sm:$0xff] }
 0x6b0   :  { %v3564_v20 = vmul.f32 %v9756_v19, %v3532_v60  ;;  %v7289_v13 = vpop.eup %7288  ;;  %v3472_v42 = vadd.f32 1e-05, %v3408_v32  ;;  %6877 = vmatprep.subr.bf16.mxu0 %v7396_v7  ;;  %v3377_v18 = vsub.f32 %v3313_v4, %v3345_v1  ;;  %v3595_v47 = vadd.f32 %v9782_v17, %v3563_v48  ;;  %v3152_v41 = vpop.xlane.xlu0 %3151  ;;  %v10169_v48 = vld [vmem:[%s11267_s7 + $0x6] ss:$0 sm:$0xff] }
 0x6b1   :  { %3979 = vmatmul.mubr.f32.gmra.mrb[102].mxu0 %v3722_v45  ;;  %6471 = vmatmul.mubr.f32.gmra.mrb[82].mxu1 %v3722_v45  ;;  %v3437_v3 = vsub.f32 %v11483_v61, %v10015_v58  ;;  %v3346_v0 = vmul.f32 %v10124_v14, %v10124_v14  ;;  %v3314_v55 = vmul.f32 0.0078125, %v3246_v46  ;;  %v10140_v37 = vmul.f32 0.0078125, %v3152_v41  ;;  %v4664_v41 = vld [vmem:[%s11266_s6 + $0x2f0] sm:$0xff] }
 0x6b2   :  { %v3596_v8 = vadd.f32 %v9782_v17, %v3564_v20  ;;  %7294 = vrsqrt.f32 %v3472_v42  ;;  %3984 = vmatprep.mubr.f32.mxu0 %v11480_v28  ;;  %6796 = vmatprep.subr.bf16.mxu1 %v6795_v27  ;;  %v3409_v31 = vmax.f32 %v3377_v18, 0.0  ;;  %vm3627_vm5 = vcmp.gt.f32.partialorder %v3595_v47, 0.0  ;;  %v3248_v43 = vpop.xlane.xlu1 %3247 }
 0x6b3   :  { %v3659_v58 = vmul.f32 0.01, %v3595_v47  ;;  %v3378_v50 = vsub.f32 %v3314_v55, %v3346_v0  ;;  %v3533_v30 = vmul.f32 %v7289_v13, %v3437_v3  ;;  %v3438_v38 = vsub.f32 %v11484_v53, %v10037_v35 }
 0x6b4   :  { %vm3628_vm6 = vcmp.gt.f32.partialorder %v3596_v8, 0.0  ;;  %v3660_v9 = vmul.f32 0.01, %v3596_v8  ;;  %v3473_v39 = vadd.f32 1e-05, %v3409_v31  ;;  %v6797_v2 = vpack.c.bf16 %v4657_v57, %v4654_v36  ;;  %v3154_v33 = vpop.xlane.xlu0 %3153  ;;  %v11489_v36 = vld [vmem:[#allocation16_spill] sm:$0xff] }
 0x6b5   :  { %v7291_v22 = vpop.eup %7290  ;;  %v3691_v52 = vsel %vm3627_vm5, %v3595_v47, %v3659_v58  ;;  %v3439_v15 = vsub.f32 %v11485_v21, %v10066_v29  ;;  %v3410_v10 = vmax.f32 %v3378_v50, 0.0  ;;  %v3347_v44 = vmul.f32 %v10140_v37, %v10140_v37  ;;  %v11487_v29 = vld [vmem:[#allocation32_spill] sm:$0xff] }
 0x6b6   :  { %v3723_v23 = vadd.f32 %v3691_v52, %v11486_v6  ;;  %7296 = vrsqrt.f32 %v3473_v39  ;;  %v3315_v25 = vmul.f32 0.0078125, %v3248_v43  ;;  %v3692_v56 = vsel %vm3628_vm6, %v3596_v8, %v3660_v9  ;;  %6798 = vmatpush1.bf16.msra.mxu1 %v6797_v2  ;;  %v3250_v11 = vpop.xlane.xlu1 %3249  ;;  %v4661_v31 = vld [vmem:[%s11266_s6 + $0x2d8] sm:$0xff] }
 0x6b7   :  { %v3565_v35 = vmul.f32 %v9756_v19, %v3533_v30  ;;  %v3474_v34 = vadd.f32 1e-05, %v3410_v10  ;;  %v10151_v63 = vmul.f32 0.0078125, %v3154_v33  ;;  %v3724_v16 = vadd.f32 %v3692_v56, %v11487_v29  ;;  %v4656_v19 = vld [vmem:[%s11266_s6 + $0x2b0] sm:$0xff]  ;;  %v11490_v52 = vld [vmem:[#allocation12_spill] sm:$0xff] }
 0x6b8   :  { %3985 = vmatmul.mubr.f32.gmra.mrb[104].mxu0 %v3723_v23  ;;  %6473 = vmatprep.mubr.f32.mxu1 %v3723_v23  ;;  %v3534_v12 = vmul.f32 %v7291_v22, %v3438_v38  ;;  %v3379_v54 = vsub.f32 %v3315_v25, %v3347_v44  ;;  %v3440_v32 = vsub.f32 %v11488_v26, %v10094_v59  ;;  %v3316_v4 = vmul.f32 0.0078125, %v3250_v11  ;;  %v3156_v49 = vpop.xlane.xlu0 %3155  ;;  %v10192_v22 = vld [vmem:[%s11267_s7 + $0x9] ss:$0 sm:$0xff]  ;;  %v11491_v10 = vld [vmem:[#allocation35_spill] sm:$0xff]  ;;  %v11492_v23 = vld [vmem:[#allocation9_spill] sm:$0xff] }
 0x6b9   :  { %v7293_v24 = vpop.eup %7292  ;;  %3990 = vmatprep.mubr.f32.mxu0 %v11480_v28  ;;  %v3597_v60 = vadd.f32 %v9782_v17, %v3565_v35  ;;  %7298 = vrsqrt.f32 %v3474_v34  ;;  %v3348_v1 = vmul.f32 %v10151_v63, %v10151_v63  ;;  %6474 = vmatmul.mubr.f32.gmra.mrb[84].mxu1 %v3724_v16  ;;  %v10172_v42 = vmul.f32 0.0078125, %v3156_v49 }
 0x6ba   :  { %v3535_v51 = vmul.f32 %v7293_v24, %v3439_v15  ;;  %v3411_v5 = vmax.f32 %v3379_v54, 0.0  ;;  %v3566_v20 = vmul.f32 %v10169_v48, %v3534_v12  ;;  %v6878_v18 = vpack.c.bf16 %v4659_v62, %v4656_v19  ;;  %v3252_v8 = vpop.xlane.xlu1 %3251  ;;  %v11493_v24 = vld [vmem:[#allocation13_spill] sm:$0xff]  ;;  %v4663_v12 = vld [vmem:[%s11266_s6 + $0x2e8] sm:$0xff]  ;;  %v4665_v19 = vld [vmem:[%s11266_s6 + $0x2f8] sm:$0xff] }
 0x6bb   :  { %vm3629_vm7 = vcmp.gt.f32.partialorder %v3597_v60, 0.0  ;;  %v3661_v45 = vmul.f32 0.01, %v3597_v60  ;;  %v3380_v59 = vsub.f32 %v3316_v4, %v3348_v1  ;;  %v3349_v55 = vmul.f32 %v10172_v42, %v10172_v42  ;;  %v11494_v62 = vld [vmem:[#allocation17_spill] sm:$0xff]  ;;  %v4667_v4 = vld [vmem:[%s11266_s6 + $0x308] sm:$0xff] }
 0x6bc   :  { %v7295_v13 = vpop.eup %7294  ;;  %3991 = vmatmul.mubr.f32.gmra.mrb[106].mxu0 %v3724_v16  ;;  %v3567_v27 = vmul.f32 %v10169_v48, %v3535_v51  ;;  %v3475_v46 = vadd.f32 1e-05, %v3411_v5  ;;  %v3598_v61 = vadd.f32 %v9782_v17, %v3566_v20  ;;  %v3317_v58 = vmul.f32 0.0078125, %v3252_v8  ;;  %v3158_v50 = vpop.xlane.xlu0 %3157  ;;  %v4660_v16 = vld [vmem:[%s11266_s6 + $0x2d0] sm:$0xff]  ;;  %v4670_v5 = vld [vmem:[%s11266_s6 + $0x320] sm:$0xff] }
 0x6bd   :  { %3996 = vmatprep.mubr.f32.mxu0 %v11480_v28  ;;  %v3693_v47 = vsel %vm3629_vm7, %v3597_v60, %v3661_v45  ;;  %v3536_v3 = vmul.f32 %v7295_v13, %v3440_v32  ;;  %v3412_v0 = vmax.f32 %v3380_v59, 0.0  ;;  %6879 = vmatpush1.bf16.msra.mxu0 %v6878_v18  ;;  %v10187_v30 = vmul.f32 0.0078125, %v3158_v50 }
 0x6be   :  { %v3725_v57 = vadd.f32 %v3693_v47, %v11489_v36  ;;  %7300 = vrsqrt.f32 %v3475_v46  ;;  %vm3630_vm8 = vcmp.gt.f32.partialorder %v3598_v61, 0.0  ;;  %v3662_v17 = vmul.f32 0.01, %v3598_v61  ;;  %6880 = vmatprep.subr.bf16.mxu0 %v7396_v7  ;;  %v3254_v21 = vpop.xlane.xlu1 %3253  ;;  %v11495_v47 = vld [vmem:[#allocation25_spill] sm:$0xff] }
 0x6bf   :  { %v3476_v9 = vadd.f32 1e-05, %v3412_v0  ;;  %v3599_v53 = vadd.f32 %v10192_v22, %v3567_v27  ;;  %v3568_v38 = vmul.f32 %v10169_v48, %v3536_v3  ;;  %v3441_v43 = vsub.f32 %v11490_v52, %v10110_v40  ;;  %v11496_v36 = vld [vmem:[#allocation29_spill] sm:$0xff] }
 0x6c0   :  { %3997 = vmatmul.mubr.f32.gmra.mrb[108].mxu0 %v3725_v57  ;;  %6476 = vmatprep.mubr.f32.mxu1 %v3725_v57  ;;  %v7297_v39 = vpop.eup %7296  ;;  %v3381_v2 = vsub.f32 %v3317_v58, %v3349_v55  ;;  %v3694_v7 = vsel %vm3630_vm8, %v3598_v61, %v3662_v17  ;;  %v6799_v15 = vpack.c.bf16 %v4664_v41, %v4661_v31  ;;  %v3318_v56 = vmul.f32 0.0078125, %v3254_v21  ;;  %v11497_v17 = vld [vmem:[#allocation26_spill] sm:$0xff] }
 0x6c1   :  { %4002 = vmatprep.mubr.f32.mxu0 %v11480_v28  ;;  %v3442_v44 = vsub.f32 %v11491_v10, %v10124_v14  ;;  %7302 = vrsqrt.f32 %v3476_v9  ;;  %v3350_v6 = vmul.f32 %v10187_v30, %v10187_v30  ;;  %v3726_v25 = vadd.f32 %v3694_v7, %v11492_v23  ;;  %v11500_v23 = vld [vmem:[#allocation18_spill] sm:$0xff] }
 0x6c2   :  { %v3413_v33 = vmax.f32 %v3381_v2, 0.0  ;;  %vm3631_vm9 = vcmp.gt.f32.partialorder %v3599_v53, 0.0  ;;  %v3663_v35 = vmul.f32 0.01, %v3599_v53  ;;  %6800 = vmatprep.subr.bf16.mxu1 %v6799_v15  ;;  %v3443_v34 = vsub.f32 %v11493_v24, %v10140_v37  ;;  %v4662_v37 = vld [vmem:[%s11266_s6 + $0x2e0] sm:$0xff]  ;;  %v11499_v2 = vld [vmem:[#allocation36_spill] sm:$0xff] }
 0x6c3   :  { %v7299_v40 = vpop.eup %7298  ;;  %6477 = vmatmul.mubr.f32.gmra.mrb[86].mxu1 %v3726_v25  ;;  %v3600_v29 = vadd.f32 %v10192_v22, %v3568_v38  ;;  %v3537_v14 = vmul.f32 %v7297_v39, %v3441_v43  ;;  %v3382_v11 = vsub.f32 %v3318_v56, %v3350_v6  ;;  %v6801_v20 = vpack.c.bf16 %v4663_v12, %v4660_v16  ;;  %v11498_v39 = vld [vmem:[#allocation33_spill] sm:$0xff] }
 0x6c4   :  { %4003 = vmatmul.mubr.f32.gmra.mrb[110].mxu0 %v3726_v25  ;;  %v3477_v54 = vadd.f32 1e-05, %v3413_v33  ;;  %v3695_v60 = vsel %vm3631_vm9, %v3599_v53, %v3663_v35  ;;  %v3538_v51 = vmul.f32 %v7299_v40, %v3442_v44  ;;  %v6881_v27 = vpack.c.bf16 %v4665_v19, %v4662_v37  ;;  %v11501_v56 = vld [vmem:[#allocation21_spill] sm:$0xff] }
 0x6c5   :  { %4008 = vmatprep.mubr.f32.mxu0 %v11480_v28  ;;  %v3727_v26 = vadd.f32 %v3695_v60, %v11494_v62  ;;  %vm3632_vm10 = vcmp.gt.f32.partialorder %v3600_v29, 0.0  ;;  %v3664_v32 = vmul.f32 0.01, %v3600_v29  ;;  %v3569_v1 = vmul.f32 %v10169_v48, %v3537_v14  ;;  %6802 = vmatpush1.bf16.msra.mxu1 %v6801_v20  ;;  %v11503_v60 = vld [vmem:[#allocation11_spill] sm:$0xff]  ;;  %v11504_v62 = vld [vmem:[#allocation34_spill] sm:$0xff] }
 0x6c6   :  { %7304 = vrsqrt.f32 %v3477_v54  ;;  %v3414_v49 = vmax.f32 %v3382_v11, 0.0  ;;  %v3570_v45 = vmul.f32 %v10169_v48, %v3538_v51  ;;  %v6803_v3 = vpack.c.bf16 %v4670_v5, %v4667_v4  ;;  %6882 = vmatpush1.bf16.msra.mxu0 %v6881_v27 }
 0x6c7   :  { %6479 = vmatprep.mubr.f32.mxu1 %v3727_v26  ;;  %v3696_v13 = vsel %vm3632_vm10, %v3600_v29, %v3664_v32  ;;  %v3601_v59 = vadd.f32 %v10192_v22, %v3569_v1  ;;  %v3444_v57 = vsub.f32 %v11496_v36, %v10151_v63  ;;  %v3445_v7 = vsub.f32 %v11499_v2, %v10172_v42 }
 0x6c8   :  { %4009 = vmatmul.mubr.f32.gmra.mrb[112].mxu0 %v3727_v26  ;;  %v7301_v18 = vpop.eup %7300  ;;  %v3478_v46 = vadd.f32 1e-05, %v3414_v49  ;;  %v3728_v8 = vadd.f32 %v3696_v13, %v11495_v47  ;;  %v3602_v61 = vadd.f32 %v10192_v22, %v3570_v45  ;;  %6804 = vmatprep.subr.bf16.mxu1 %v6803_v3  ;;  %v3446_v35 = vsub.f32 %v11501_v56, %v10187_v30  ;;  %v3783_v49 = vld [vmem:[%s11268_s8] sm:$0x7]  ;;  %v4669_v3 = vld [vmem:[%s11266_s6 + $0x318] sm:$0xff]  ;;  %v4683_v56 = vld [vmem:[%s11266_s6 + $0x388] sm:$0xff] }
 0x6c9   :  { %4014 = vmatprep.mubr.f32.mxu0 %v11480_v28  ;;  %vm3633_vm11 = vcmp.gt.f32.partialorder %v3601_v59, 0.0  ;;  %v3665_v0 = vmul.f32 0.01, %v3601_v59  ;;  %v3539_v55 = vmul.f32 %v7301_v18, %v3443_v34  ;;  %v11502_v34 = vld [vmem:[#allocation10_spill] sm:$0xff]  ;;  %v3785_v1 = vlaneseq  ;;  %v4666_v47 = vld [vmem:[%s11266_s6 + $0x300] sm:$0xff] }
 0x6ca   :  { %7306 = vrsqrt.f32 %v3478_v46  ;;  %6480 = vmatmul.mubr.f32.gmra.mrb[88].mxu1 %v3728_v8  ;;  %vm3634_vm12 = vcmp.gt.f32.partialorder %v3602_v61, 0.0  ;;  %v3666_v31 = vmul.f32 0.01, %v3602_v61 }
 0x6cb   :  { %v7303_v41 = vpop.eup %7302  ;;  %v3697_v58 = vsel %vm3633_vm11, %v3601_v59, %v3665_v0  ;;  %v3571_v50 = vmul.f32 %v10169_v48, %v3539_v55  ;;  %v10265_v4 = vshrl.u32 %v3785_v1, 7  ;;  %v4673_v0 = vld [vmem:[%s11266_s6 + $0x338] sm:$0xff]  ;;  %v4676_v55 = vld [vmem:[%s11266_s6 + $0x350] sm:$0xff] }
 0x6cc   :  { %4015 = vmatmul.mubr.f32.gmra.mrb[114].mxu0 %v3728_v8  ;;  %v3729_v9 = vadd.f32 %v3697_v58, %v11497_v17  ;;  %v3698_v53 = vsel %vm3634_vm12, %v3602_v61, %v3666_v31  ;;  %v3540_v38 = vmul.f32 %v7303_v41, %v3444_v57  ;;  %v4674_v57 = vld [vmem:[%s11266_s6 + $0x340] sm:$0xff]  ;;  %v4677_v31 = vld [vmem:[%s11266_s6 + $0x358] sm:$0xff]  ;;  %v6805_v17 = vpack.c.bf16 %v4669_v3, %v4666_v47 }
 0x6cd   :  { %4020 = vmatprep.mubr.f32.mxu0 %v11480_v28  ;;  %v3730_v52 = vadd.f32 %v3698_v53, %v11498_v39  ;;  %v3603_v63 = vadd.f32 %v10192_v22, %v3571_v50  ;;  %v3787_v5 = vsub.s32 0, %v10265_v4  ;;  %v3791_v45 = vsub.s32 1, %v10265_v4 }
 0x6ce   :  { %6482 = vmatprep.mubr.f32.mxu1 %v3729_v9  ;;  %v3572_v43 = vmul.f32 %v10169_v48, %v3540_v38  ;;  %v3795_v59 = vsub.s32 2, %v10265_v4  ;;  %v6887_v2 = vpack.c.bf16 %v4677_v31, %v4674_v57 }
 0x6cf   :  { %6483 = vmatmul.mubr.f32.gmra.mrb[90].mxu1 %v3730_v52  ;;  %vm3635_vm13 = vcmp.gt.f32.partialorder %v3603_v63, 0.0  ;;  %v3667_v21 = vmul.f32 0.01, %v3603_v63  ;;  %v10274_v20 = vrot.slane %v3783_v49, %v3787_v5  ;;  %v10278_v13 = vrot.slane %v3783_v49, %v3791_v45 }
 0x6d0   :  { %4021 = vmatmul.mubr.f32.gmra.mrb[116].mxu0 %v3729_v9  ;;  %v7305_v15 = vpop.eup %7304  ;;  %v3604_v10 = vadd.f32 %v10192_v22, %v3572_v43  ;;  %v10288_v61 = vrot.slane %v3783_v49, %v3795_v59  ;;  %v6807_v9 = vpack.c.bf16 %v4676_v55, %v4673_v0  ;;  %v4672_v43 = vld [vmem:[%s11266_s6 + $0x330] sm:$0xff]  ;;  %v4687_v55 = vld [vmem:[%s11266_s6 + $0x3a8] sm:$0xff] }
 0x6d1   :  { %4026 = vmatprep.mubr.f32.mxu0 %v11480_v28  ;;  %v3699_v44 = vsel %vm3635_vm13, %v3603_v63, %v3667_v21  ;;  %v3541_v6 = vmul.f32 %v7305_v15, %v3445_v7  ;;  %v4684_v0 = vld [vmem:[%s11266_s6 + $0x390] sm:$0xff] }
 0x6d2   :  { %v3731_v25 = vadd.f32 %v3699_v44, %v11500_v23  ;;  %vm3636_vm14 = vcmp.gt.f32.partialorder %v3604_v10, 0.0  ;;  %v3668_v33 = vmul.f32 0.01, %v3604_v10  ;;  %v4679_v44 = vld [vmem:[%s11266_s6 + $0x368] sm:$0xff] }
 0x6d3   :  { %v3573_v42 = vmul.f32 %v10169_v48, %v3541_v6  ;;  %v4682_v6 = vld [vmem:[%s11266_s6 + $0x380] sm:$0xff] }
 0x6d4   :  { %4027 = vmatmul.mubr.f32.gmra.mrb[118].mxu0 %v3730_v52  ;;  %v7307_v40 = vpop.eup %7306  ;;  %6485 = vmatprep.mubr.f32.mxu1 %v3731_v25  ;;  %v3700_v24 = vsel %vm3636_vm14, %v3604_v10, %v3668_v33  ;;  %v4675_v10 = vld [vmem:[%s11266_s6 + $0x348] sm:$0xff]  ;;  %v4680_v33 = vld [vmem:[%s11266_s6 + $0x370] sm:$0xff] }
 0x6d5   :  { %4032 = vmatprep.mubr.f32.mxu0 %v11480_v28  ;;  %v3732_v29 = vadd.f32 %v3700_v24, %v11502_v34  ;;  %v3605_v14 = vadd.f32 %v10192_v22, %v3573_v42  ;;  %v3542_v16 = vmul.f32 %v7307_v40, %v3446_v35  ;;  %v4681_v40 = vld [vmem:[%s11266_s6 + $0x378] sm:$0xff] }
 0x6d7   :  { %6486 = vmatmul.mubr.f32.gmra.mrb[92].mxu1 %v3732_v29  ;;  %vm3637_vm15 = vcmp.gt.f32.partialorder %v3605_v14, 0.0  ;;  %v3669_v12 = vmul.f32 0.01, %v3605_v14  ;;  %v3574_v54 = vmul.f32 %v10169_v48, %v3542_v16  ;;  %v4668_v48 = vld [vmem:[%s11266_s6 + $0x310] sm:$0xff] }
 0x6d8   :  { %4033 = vmatmul.mubr.f32.gmra.mrb[120].mxu0 %v3731_v25  ;;  %v10328_v25 = vld [vmem:[%s11266_s6 + $0x360] sm:$0xff]  ;;  %v4688_v16 = vld [vmem:[%s11266_s6 + $0x3b0] sm:$0xff] }
 0x6d9   :  { %4038 = vmatprep.mubr.f32.mxu0 %v11480_v28  ;;  %v3701_v30 = vsel %vm3637_vm15, %v3605_v14, %v3669_v12  ;;  %v3606_v11 = vadd.f32 %v10192_v22, %v3574_v54  ;;  %v4671_v22 = vld [vmem:[%s11266_s6 + $0x328] sm:$0xff]  ;;  %v4685_v14 = vld [vmem:[%s11266_s6 + $0x398] sm:$0xff] }
 0x6da   :  { %v3733_v51 = vadd.f32 %v3701_v30, %v11503_v60  ;;  %v6883_v32 = vpack.c.bf16 %v4671_v22, %v4668_v48  ;;  %v6811_v30 = vpack.c.bf16 %v4682_v6, %v4679_v44  ;;  %v4686_v60 = vld [vmem:[%s11266_s6 + $0x3a0] sm:$0xff]  ;;  %v4693_v44 = vld [vmem:[%s11266_s6 + $0x3d8] sm:$0xff] }
 0x6db   :  { %vm3638_vm0 = vcmp.gt.f32.partialorder %v3606_v11, 0.0  ;;  %v3670_v37 = vmul.f32 0.01, %v3606_v11  ;;  %v4697_v6 = vld [vmem:[%s11266_s6 + $0x3f8] sm:$0xff] }
 0x6dc   :  { %4039 = vmatmul.mubr.f32.gmra.mrb[122].mxu0 %v3732_v29  ;;  %6488 = vmatprep.mubr.f32.mxu1 %v3733_v51  ;;  %v6809_v29 = vpack.c.bf16 %v4675_v10, %v4672_v43 }
 0x6dd   :  { %4044 = vmatprep.mubr.f32.mxu0 %v11480_v28  ;;  %v3702_v19 = vsel %vm3638_vm0, %v3606_v11, %v3670_v37  ;;  %6884 = vmatprep.subr.bf16.mxu0 %v6883_v32  ;;  %v6891_v11 = vpack.c.bf16 %v4683_v56, %v4680_v33  ;;  %v4698_v33 = vld [vmem:[%s11266_s6 + $0x400] sm:$0xff]  ;;  %v4701_v56 = vld [vmem:[%s11266_s6 + $0x418] sm:$0xff] }
 0x6de   :  { %v3734_v26 = vadd.f32 %v3702_v19, %v11504_v62  ;;  %v6813_v62 = vpack.c.bf16 %v4681_v40, %v10328_v25 }
 0x6e0   :  { %4045 = vmatmul.mubr.f32.gmra.mrb[124].mxu0 %v3733_v51  ;;  %6489 = vmatmul.mubr.f32.gmra.mrb[94].mxu1 %v3734_v26  ;;  %v4689_v51 = vld [vmem:[%s11266_s6 + $0x3b8] sm:$0xff] }
 0x6e1   :  { %4050 = vmatprep.mubr.f32.mxu0 %v11480_v28 }
 0x6e4   :  { %4051 = vmatmul.mubr.f32.gmra.mrb[126].mxu0 %v3734_v26 }
 0x730   :  { %v3866_v27 = vpop.f32.mrb[64].mxu0 }
 0x731   :  { %v3867_v18 = vadd.f32 %v3866_v27, %v10274_v20  ;;  %v3868_v46 = vpop.f32.mrb[65].mxu0 }
 0x732   :  { %v3869_v8 = vadd.f32 %v3868_v46, %v10278_v13  ;;  %v6895_v46 = vpack.c.bf16 %v4689_v51, %v4686_v60  ;;  %v4699_v51 = vld [vmem:[%s11266_s6 + $0x408] sm:$0xff] }
 0x733   :  { %v4378_v36 = vmul.f32 0.01, %v3867_v18  ;;  %vm4282_vm1 = vcmp.gt.f32.partialorder %v3867_v18, 0.0 }
 0x734   :  { %v4379_v41 = vmul.f32 0.01, %v3869_v8  ;;  %vm4283_vm2 = vcmp.gt.f32.partialorder %v3869_v8, 0.0  ;;  %v3872_v58 = vpop.f32.mrb[66].mxu0  ;;  %v6445_v50 = vpop.f32.mrb[64].mxu1 }
 0x735   :  { %v3873_v53 = vadd.f32 %v3872_v58, %v10274_v20  ;;  %v10307_v38 = vadd.f32 %v6445_v50, %v10288_v61  ;;  %v3874_v39 = vpop.f32.mrb[67].mxu0  ;;  %v4123_v52 = vpop.f32.mrb[65].mxu1  ;;  %v4474_v7 = vsel %vm4282_vm1, %v3867_v18, %v4378_v36  ;;  %v4691_v36 = vld [vmem:[%s11266_s6 + $0x3c8] sm:$0xff]  ;;  %v4692_v58 = vld [vmem:[%s11266_s6 + $0x3d0] sm:$0xff] }
 0x736   :  { %v4475_v63 = vsel %vm4283_vm2, %v3869_v8, %v4379_v41  ;;  %v3875_v21 = vadd.f32 %v3874_v39, %v10278_v13  ;;  %v10314_v15 = vadd.f32 %v4123_v52, %v10288_v61  ;;  %v4694_v41 = vld [vmem:[%s11266_s6 + $0x3e0] sm:$0xff]  ;;  %v4695_v50 = vld [vmem:[%s11266_s6 + $0x3e8] sm:$0xff] }
 0x737   :  { %4795 = vmatprep.mubr.f32.mxu1 %v4475_v63  ;;  %5309 = vmatprep.mubr.f32.mxu0 %v4475_v63  ;;  %v4381_v23 = vmul.f32 0.01, %v3873_v53  ;;  %vm4285_vm4 = vcmp.gt.f32.partialorder %v3873_v53, 0.0  ;;  %v6819_v52 = vpack.c.bf16 %v4694_v41, %v4691_v36  ;;  %v6899_v63 = vpack.c.bf16 %v4695_v50, %v4692_v58  ;;  %v4709_v36 = vld [vmem:[%s11266_s6 + $0x458] sm:$0xff]  ;;  %v4712_v41 = vld [vmem:[%s11266_s6 + $0x470] sm:$0xff]  ;;  %v4710_v50 = vld [vmem:[%s11266_s6 + $0x460] sm:$0xff] }
 0x738   :  { %4796 = vmatmul.mubr.f32.vlgmr.msra.gmra.mrb[96].mxu1 %v4474_v7  ;;  %5310 = vmatmul.mubr.f32.vlgmr.msra.gmra.mrb[128].mxu0 %v4474_v7  ;;  %v4382_v35 = vmul.f32 0.01, %v3875_v21  ;;  %vm4286_vm3 = vcmp.gt.f32.partialorder %v3875_v21, 0.0 }
 0x739   :  { %v3878_v42 = vpop.f32.mrb[68].mxu0  ;;  %6806 = vmatpush1.bf16.msra.mxu1 %v6805_v17  ;;  %6886 = vmatpush3.bf16.msra.mxu0 %v6883_v32  ;;  %v4477_v19 = vsel %vm4285_vm4, %v3873_v53, %v4381_v23  ;;  %v6815_v32 = vpack.c.bf16 %v4688_v16, %v4685_v14  ;;  %v4700_v23 = vld [vmem:[%s11266_s6 + $0x410] sm:$0xff] }
 0x73a   :  { %v3879_v24 = vadd.f32 %v3878_v42, %v10274_v20  ;;  %v3880_v34 = vpop.f32.mrb[69].mxu0  ;;  %6808 = vmatprep.subr.bf16.mxu1 %v6807_v9  ;;  %6888 = vmatprep.subr.bf16.mxu0 %v6887_v2  ;;  %v4478_v54 = vsel %vm4286_vm3, %v3875_v21, %v4382_v35  ;;  %v6817_v9 = vpack.c.bf16 %v4687_v55, %v4684_v0  ;;  %v4690_v21 = vld [vmem:[%s11266_s6 + $0x3c0] sm:$0xff]  ;;  %v4705_v55 = vld [vmem:[%s11266_s6 + $0x438] sm:$0xff] }
 0x73b   :  { %v3881_v12 = vadd.f32 %v3880_v34, %v10278_v13  ;;  %4801 = vmatprep.mubr.f32.mxu1 %v4478_v54  ;;  %5314 = vmatprep.mubr.f32.mxu0 %v4478_v54  ;;  %v6821_v16 = vpack.c.bf16 %v4693_v44, %v4690_v21  ;;  %v4696_v54 = vld [vmem:[%s11266_s6 + $0x3f0] sm:$0xff]  ;;  %v4702_v0 = vld [vmem:[%s11266_s6 + $0x420] sm:$0xff] }
 0x73c   :  { %v4384_v37 = vmul.f32 0.01, %v3879_v24  ;;  %4802 = vmatmul.mubr.f32.gmra.mrb[98].mxu1 %v4477_v19  ;;  %5315 = vmatmul.mubr.f32.gmra.mrb[130].mxu0 %v4477_v19  ;;  %vm4288_vm6 = vcmp.gt.f32.partialorder %v3879_v24, 0.0  ;;  %v4706_v19 = vld [vmem:[%s11266_s6 + $0x440] sm:$0xff] }
 0x73d   :  { %v4385_v26 = vmul.f32 0.01, %v3881_v12  ;;  %v3884_v48 = vpop.f32.mrb[70].mxu0  ;;  %v6448_v22 = vpop.f32.mrb[66].mxu1  ;;  %vm4289_vm5 = vcmp.gt.f32.partialorder %v3881_v12, 0.0  ;;  %6810 = vmatpush1.bf16.msra.mxu1 %v6809_v29  ;;  %6890 = vmatpush3.bf16.msra.mxu0 %v6887_v2 }
 0x73e   :  { %v3885_v1 = vadd.f32 %v3884_v48, %v10274_v20  ;;  %v10357_v49 = vadd.f32 %v6448_v22, %v10288_v61  ;;  %v3886_v27 = vpop.f32.mrb[71].mxu0  ;;  %v4133_v18 = vpop.f32.mrb[67].mxu1  ;;  %6812 = vmatprep.subr.bf16.mxu1 %v6811_v30  ;;  %6892 = vmatprep.subr.bf16.mxu0 %v6891_v11  ;;  %v4480_v31 = vsel %vm4288_vm6, %v3879_v24, %v4384_v37  ;;  %v4703_v37 = vld [vmem:[%s11266_s6 + $0x428] sm:$0xff]  ;;  %v4704_v22 = vld [vmem:[%s11266_s6 + $0x430] sm:$0xff] }
 0x73f   :  { %v3887_v47 = vadd.f32 %v3886_v27, %v10278_v13  ;;  %v10361_v8 = vadd.f32 %v4133_v18, %v10288_v61  ;;  %v4481_v3 = vsel %vm4289_vm5, %v3881_v12, %v4385_v26  ;;  %v6823_v12 = vpack.c.bf16 %v4700_v23, %v4697_v6 }
 0x740   :  { %v4387_v57 = vmul.f32 0.01, %v3885_v1  ;;  %4807 = vmatprep.mubr.f32.mxu1 %v4481_v3  ;;  %5319 = vmatprep.mubr.f32.mxu0 %v4481_v3  ;;  %vm4291_vm8 = vcmp.gt.f32.partialorder %v3885_v1, 0.0  ;;  %v6827_v3 = vpack.c.bf16 %v4706_v19, %v4703_v37 }
 0x741   :  { %v4388_v17 = vmul.f32 0.01, %v3887_v47  ;;  %4808 = vmatmul.mubr.f32.gmra.mrb[100].mxu1 %v4480_v31  ;;  %5320 = vmatmul.mubr.f32.gmra.mrb[132].mxu0 %v4480_v31  ;;  %vm4292_vm7 = vcmp.gt.f32.partialorder %v3887_v47, 0.0 }
 0x742   :  { %6814 = vmatpush1.bf16.msra.mxu1 %v6813_v62  ;;  %6894 = vmatpush3.bf16.msra.mxu0 %v6891_v11  ;;  %v3890_v53 = vpop.f32.mrb[72].mxu0  ;;  %v4483_v7 = vsel %vm4291_vm8, %v3885_v1, %v4387_v57  ;;  %v6903_v62 = vpack.c.bf16 %v4701_v56, %v4698_v33 }
 0x743   :  { %v4484_v39 = vsel %vm4292_vm7, %v3887_v47, %v4388_v17  ;;  %6816 = vmatprep.subr.bf16.mxu1 %v6815_v32  ;;  %6896 = vmatprep.subr.bf16.mxu0 %v6895_v46  ;;  %v3891_v43 = vadd.f32 %v3890_v53, %v10274_v20  ;;  %v3892_v2 = vpop.f32.mrb[73].mxu0  ;;  %v4707_v32 = vld [vmem:[%s11266_s6 + $0x448] sm:$0xff]  ;;  %v6825_v47 = vpack.c.bf16 %v4699_v51, %v4696_v54  ;;  %v4713_v17 = vld [vmem:[%s11266_s6 + $0x478] sm:$0xff] }
 0x744   :  { %4813 = vmatprep.mubr.f32.mxu1 %v4484_v39  ;;  %5324 = vmatprep.mubr.f32.mxu0 %v4484_v39  ;;  %v3893_v10 = vadd.f32 %v3892_v2, %v10278_v13  ;;  %v6907_v58 = vpack.c.bf16 %v4707_v32, %v4704_v22  ;;  %v6831_v2 = vpack.c.bf16 %v4712_v41, %v4709_v36 }
 0x745   :  { %4814 = vmatmul.mubr.f32.gmra.mrb[102].mxu1 %v4483_v7  ;;  %5325 = vmatmul.mubr.f32.gmra.mrb[134].mxu0 %v4483_v7  ;;  %v4390_v25 = vmul.f32 0.01, %v3891_v43  ;;  %vm4294_vm10 = vcmp.gt.f32.partialorder %v3891_v43, 0.0  ;;  %v6911_v7 = vpack.c.bf16 %v4713_v17, %v4710_v50 }
 0x746   :  { %6818 = vmatpush1.bf16.msra.mxu1 %v6817_v9  ;;  %6898 = vmatpush3.bf16.msra.mxu0 %v6895_v46  ;;  %v4391_v35 = vmul.f32 0.01, %v3893_v10  ;;  %v3896_v42 = vpop.f32.mrb[74].mxu0  ;;  %v6451_v40 = vpop.f32.mrb[68].mxu1  ;;  %vm4295_vm9 = vcmp.gt.f32.partialorder %v3893_v10, 0.0 }
 0x747   :  { %6820 = vmatprep.subr.bf16.mxu1 %v6819_v52  ;;  %6900 = vmatprep.subr.bf16.mxu0 %v6899_v63  ;;  %v3897_v24 = vadd.f32 %v3896_v42, %v10274_v20  ;;  %v10404_v34 = vadd.f32 %v6451_v40, %v10288_v61  ;;  %v3898_v29 = vpop.f32.mrb[75].mxu0  ;;  %v4143_v14 = vpop.f32.mrb[69].mxu1  ;;  %v4486_v48 = vsel %vm4294_vm10, %v3891_v43, %v4390_v25  ;;  %v4711_v42 = vld [vmem:[%s11266_s6 + $0x468] sm:$0xff] }
 0x748   :  { %v3899_v30 = vadd.f32 %v3898_v29, %v10278_v13  ;;  %v10411_v11 = vadd.f32 %v4143_v14, %v10288_v61  ;;  %v4487_v60 = vsel %vm4295_vm9, %v3893_v10, %v4391_v35  ;;  %v6829_v43 = vpack.c.bf16 %v4705_v55, %v4702_v0  ;;  %v4708_v35 = vld [vmem:[%s11266_s6 + $0x450] sm:$0xff] }
 0x749   :  { %v4393_v26 = vmul.f32 0.01, %v3897_v24  ;;  %4819 = vmatprep.mubr.f32.mxu1 %v4487_v60  ;;  %5329 = vmatprep.mubr.f32.mxu0 %v4487_v60  ;;  %vm4297_vm12 = vcmp.gt.f32.partialorder %v3897_v24, 0.0 }
 0x74a   :  { %v4394_v1 = vmul.f32 0.01, %v3899_v30  ;;  %v3902_v27 = vpop.f32.mrb[76].mxu0  ;;  %4820 = vmatmul.mubr.f32.gmra.mrb[104].mxu1 %v4486_v48  ;;  %5330 = vmatmul.mubr.f32.gmra.mrb[136].mxu0 %v4486_v48  ;;  %vm4298_vm11 = vcmp.gt.f32.partialorder %v3899_v30, 0.0 }
 0x74b   :  { %v3903_v18 = vadd.f32 %v3902_v27, %v10274_v20  ;;  %v3904_v46 = vpop.f32.mrb[77].mxu0  ;;  %6822 = vmatpush1.bf16.msra.mxu1 %v6821_v16  ;;  %6902 = vmatpush3.bf16.msra.mxu0 %v6899_v63  ;;  %v4489_v53 = vsel %vm4297_vm12, %v3897_v24, %v4393_v26 }
 0x74c   :  { %v3905_v57 = vadd.f32 %v3904_v46, %v10278_v13  ;;  %v4490_v31 = vsel %vm4298_vm11, %v3899_v30, %v4394_v1  ;;  %6824 = vmatprep.subr.bf16.mxu1 %v6823_v12  ;;  %6904 = vmatprep.subr.bf16.mxu0 %v6903_v62  ;;  %v6833_v12 = vpack.c.bf16 %v4711_v42, %v4708_v35 }
 0x74d   :  { %v4396_v9 = vmul.f32 0.01, %v3903_v18  ;;  %4825 = vmatprep.mubr.f32.mxu1 %v4490_v31  ;;  %5334 = vmatprep.mubr.f32.mxu0 %v4490_v31  ;;  %vm4300_vm14 = vcmp.gt.f32.partialorder %v3903_v18, 0.0 }
 0x74e   :  { %v4397_v39 = vmul.f32 0.01, %v3905_v57  ;;  %4826 = vmatmul.mubr.f32.gmra.mrb[106].mxu1 %v4489_v53  ;;  %5335 = vmatmul.mubr.f32.gmra.mrb[138].mxu0 %v4489_v53  ;;  %vm4301_vm13 = vcmp.gt.f32.partialorder %v3905_v57, 0.0  ;;  %v6454_v63 = vpop.f32.mrb[70].mxu1 }
 0x74f   :  { %v3908_v52 = vpop.f32.mrb[78].mxu0  ;;  %6826 = vmatpush1.bf16.msra.mxu1 %v6825_v47  ;;  %6906 = vmatpush3.bf16.msra.mxu0 %v6903_v62  ;;  %v10452_v10 = vadd.f32 %v6454_v63, %v10288_v61  ;;  %v4153_v6 = vpop.f32.mrb[71].mxu1  ;;  %v4492_v56 = vsel %vm4300_vm14, %v3903_v18, %v4396_v9 }
 0x750   :  { %v3909_v21 = vadd.f32 %v3908_v52, %v10274_v20  ;;  %v3910_v44 = vpop.f32.mrb[79].mxu0  ;;  %v4493_v23 = vsel %vm4301_vm13, %v3905_v57, %v4397_v39  ;;  %6828 = vmatprep.subr.bf16.mxu1 %v6827_v3  ;;  %6908 = vmatprep.subr.bf16.mxu0 %v6907_v58  ;;  %v10456_v33 = vadd.f32 %v4153_v6, %v10288_v61 }
 0x751   :  { %v3911_v25 = vadd.f32 %v3910_v44, %v10278_v13  ;;  %4831 = vmatprep.mubr.f32.mxu1 %v4493_v23  ;;  %5339 = vmatprep.mubr.f32.mxu0 %v4493_v23 }
 0x752   :  { %v4399_v40 = vmul.f32 0.01, %v3909_v21  ;;  %4832 = vmatmul.mubr.f32.gmra.mrb[108].mxu1 %v4492_v56  ;;  %5340 = vmatmul.mubr.f32.gmra.mrb[140].mxu0 %v4492_v56  ;;  %vm4303_vm0 = vcmp.gt.f32.partialorder %v3909_v21, 0.0 }
 0x753   :  { %v4400_v24 = vmul.f32 0.01, %v3911_v25  ;;  %v3914_v29 = vpop.f32.mrb[80].mxu0  ;;  %vm4304_vm15 = vcmp.gt.f32.partialorder %v3911_v25, 0.0  ;;  %6830 = vmatpush1.bf16.msra.mxu1 %v6829_v43  ;;  %6910 = vmatpush3.bf16.msra.mxu0 %v6907_v58 }
 0x754   :  { %v3915_v14 = vadd.f32 %v3914_v29, %v10274_v20  ;;  %v3916_v16 = vpop.f32.mrb[81].mxu0  ;;  %6832 = vmatprep.subr.bf16.mxu1 %v6831_v2  ;;  %6912 = vmatprep.subr.bf16.mxu0 %v6911_v7  ;;  %v4495_v51 = vsel %vm4303_vm0, %v3909_v21, %v4399_v40 }
 0x755   :  { %v3917_v54 = vadd.f32 %v3916_v16, %v10278_v13  ;;  %v4496_v30 = vsel %vm4304_vm15, %v3911_v25, %v4400_v24 }
 0x756   :  { %v4402_v60 = vmul.f32 0.01, %v3915_v14  ;;  %4837 = vmatprep.mubr.f32.mxu1 %v4496_v30  ;;  %5344 = vmatprep.mubr.f32.mxu0 %v4496_v30  ;;  %vm4306_vm2 = vcmp.gt.f32.partialorder %v3915_v14, 0.0 }
 0x757   :  { %v4403_v37 = vmul.f32 0.01, %v3917_v54  ;;  %4838 = vmatmul.mubr.f32.gmra.mrb[110].mxu1 %v4495_v51  ;;  %5345 = vmatmul.mubr.f32.gmra.mrb[142].mxu0 %v4495_v51  ;;  %vm4307_vm1 = vcmp.gt.f32.partialorder %v3917_v54, 0.0  ;;  %v3920_v19 = vpop.f32.mrb[82].mxu0  ;;  %v6457_v62 = vpop.f32.mrb[72].mxu1 }
 0x758   :  { %6834 = vmatpush1.bf16.msra.mxu1 %v6833_v12  ;;  %6914 = vmatpush3.bf16.msra.mxu0 %v6911_v7  ;;  %v3921_v26 = vadd.f32 %v3920_v19, %v10274_v20  ;;  %v10469_v48 = vadd.f32 %v6457_v62, %v10288_v61  ;;  %v3922_v22 = vpop.f32.mrb[83].mxu0  ;;  %v4163_v32 = vpop.f32.mrb[73].mxu1  ;;  %v4498_v46 = vsel %vm4306_vm2, %v3915_v14, %v4402_v60 }
 0x759   :  { %v4499_v1 = vsel %vm4307_vm1, %v3917_v54, %v4403_v37  ;;  %v3923_v27 = vadd.f32 %v3922_v22, %v10278_v13  ;;  %v10473_v18 = vadd.f32 %v4163_v32, %v10288_v61 }
 0x75a   :  { %4843 = vmatprep.mubr.f32.mxu1 %v4499_v1  ;;  %5349 = vmatprep.mubr.f32.mxu0 %v4499_v1  ;;  %v4405_v47 = vmul.f32 0.01, %v3921_v26  ;;  %vm4309_vm4 = vcmp.gt.f32.partialorder %v3921_v26, 0.0 }
 0x75b   :  { %4844 = vmatmul.mubr.f32.gmra.mrb[112].mxu1 %v4498_v46  ;;  %5350 = vmatmul.mubr.f32.gmra.mrb[144].mxu0 %v4498_v46  ;;  %v4406_v3 = vmul.f32 0.01, %v3923_v27  ;;  %vm4310_vm3 = vcmp.gt.f32.partialorder %v3923_v27, 0.0 }
 0x75c   :  { %v3926_v0 = vpop.f32.mrb[84].mxu0  ;;  %v4501_v58 = vsel %vm4309_vm4, %v3921_v26, %v4405_v47 }
 0x75d   :  { %v3927_v55 = vadd.f32 %v3926_v0, %v10274_v20  ;;  %v3928_v36 = vpop.f32.mrb[85].mxu0  ;;  %v4502_v31 = vsel %vm4310_vm3, %v3923_v27, %v4406_v3 }
 0x75e   :  { %v3929_v57 = vadd.f32 %v3928_v36, %v10278_v13  ;;  %4849 = vmatprep.mubr.f32.mxu1 %v4502_v31  ;;  %5354 = vmatprep.mubr.f32.mxu0 %v4502_v31 }
 0x75f   :  { %v4408_v41 = vmul.f32 0.01, %v3927_v55  ;;  %4850 = vmatmul.mubr.f32.gmra.mrb[114].mxu1 %v4501_v58  ;;  %5355 = vmatmul.mubr.f32.gmra.mrb[146].mxu0 %v4501_v58  ;;  %vm4312_vm6 = vcmp.gt.f32.partialorder %v3927_v55, 0.0 }
 0x760   :  { %v4409_v50 = vmul.f32 0.01, %v3929_v57  ;;  %vm4313_vm5 = vcmp.gt.f32.partialorder %v3929_v57, 0.0  ;;  %v3932_v17 = vpop.f32.mrb[86].mxu0  ;;  %v6460_v9 = vpop.f32.mrb[74].mxu1 }
 0x761   :  { %v3933_v53 = vadd.f32 %v3932_v17, %v10274_v20  ;;  %v10479_v39 = vadd.f32 %v6460_v9, %v10288_v61  ;;  %v3934_v52 = vpop.f32.mrb[87].mxu0  ;;  %v4173_v63 = vpop.f32.mrb[75].mxu1  ;;  %v4504_v21 = vsel %vm4312_vm6, %v3927_v55, %v4408_v41 }
 0x762   :  { %v4505_v43 = vsel %vm4313_vm5, %v3929_v57, %v4409_v50  ;;  %v3935_v2 = vadd.f32 %v3934_v52, %v10278_v13  ;;  %v10483_v7 = vadd.f32 %v4173_v63, %v10288_v61 }
 0x763   :  { %4855 = vmatprep.mubr.f32.mxu1 %v4505_v43  ;;  %5359 = vmatprep.mubr.f32.mxu0 %v4505_v43  ;;  %v4411_v44 = vmul.f32 0.01, %v3933_v53  ;;  %vm4315_vm8 = vcmp.gt.f32.partialorder %v3933_v53, 0.0 }
 0x764   :  { %4856 = vmatmul.mubr.f32.gmra.mrb[116].mxu1 %v4504_v21  ;;  %5360 = vmatmul.mubr.f32.gmra.mrb[148].mxu0 %v4504_v21  ;;  %v4412_v6 = vmul.f32 0.01, %v3935_v2  ;;  %vm4316_vm7 = vcmp.gt.f32.partialorder %v3935_v2, 0.0 }
 0x765   :  { %v3938_v23 = vpop.f32.mrb[88].mxu0  ;;  %v4507_v40 = vsel %vm4315_vm8, %v3933_v53, %v4411_v44 }
 0x766   :  { %v3939_v25 = vadd.f32 %v3938_v23, %v10274_v20  ;;  %v3940_v56 = vpop.f32.mrb[89].mxu0  ;;  %v4508_v35 = vsel %vm4316_vm7, %v3935_v2, %v4412_v6 }
 0x767   :  { %v3941_v42 = vadd.f32 %v3940_v56, %v10278_v13  ;;  %4861 = vmatprep.mubr.f32.mxu1 %v4508_v35  ;;  %5364 = vmatprep.mubr.f32.mxu0 %v4508_v35 }
 0x768   :  { %v4414_v24 = vmul.f32 0.01, %v3939_v25  ;;  %4862 = vmatmul.mubr.f32.gmra.mrb[118].mxu1 %v4507_v40  ;;  %5365 = vmatmul.mubr.f32.gmra.mrb[150].mxu0 %v4507_v40  ;;  %vm4318_vm10 = vcmp.gt.f32.partialorder %v3939_v25, 0.0 }
 0x769   :  { %v4415_v29 = vmul.f32 0.01, %v3941_v42  ;;  %v3944_v14 = vpop.f32.mrb[90].mxu0  ;;  %v6463_v16 = vpop.f32.mrb[76].mxu1  ;;  %vm4319_vm9 = vcmp.gt.f32.partialorder %v3941_v42, 0.0 }
 0x76a   :  { %v3945_v12 = vadd.f32 %v3944_v14, %v10274_v20  ;;  %v10489_v54 = vadd.f32 %v6463_v16, %v10288_v61  ;;  %v3946_v30 = vpop.f32.mrb[91].mxu0  ;;  %v4183_v60 = vpop.f32.mrb[77].mxu1  ;;  %v4510_v26 = vsel %vm4318_vm10, %v3939_v25, %v4414_v24 }
 0x76b   :  { %v3947_v51 = vadd.f32 %v3946_v30, %v10278_v13  ;;  %v10493_v37 = vadd.f32 %v4183_v60, %v10288_v61  ;;  %v4511_v19 = vsel %vm4319_vm9, %v3941_v42, %v4415_v29 }
 0x76c   :  { %v4417_v62 = vmul.f32 0.01, %v3945_v12  ;;  %4867 = vmatprep.mubr.f32.mxu1 %v4511_v19  ;;  %5369 = vmatprep.mubr.f32.mxu0 %v4511_v19  ;;  %vm4321_vm12 = vcmp.gt.f32.partialorder %v3945_v12, 0.0 }
 0x76d   :  { %v4418_v22 = vmul.f32 0.01, %v3947_v51  ;;  %4868 = vmatmul.mubr.f32.gmra.mrb[120].mxu1 %v4510_v26  ;;  %5370 = vmatmul.mubr.f32.gmra.mrb[152].mxu0 %v4510_v26  ;;  %vm4322_vm11 = vcmp.gt.f32.partialorder %v3947_v51, 0.0 }
 0x76e   :  { %v3950_v32 = vpop.f32.mrb[92].mxu0  ;;  %v4513_v3 = vsel %vm4321_vm12, %v3945_v12, %v4417_v62 }
 0x76f   :  { %v3951_v1 = vadd.f32 %v3950_v32, %v10274_v20  ;;  %v3952_v27 = vpop.f32.mrb[93].mxu0  ;;  %v4514_v46 = vsel %vm4322_vm11, %v3947_v51, %v4418_v22 }
 0x770   :  { %v3953_v47 = vadd.f32 %v3952_v27, %v10278_v13  ;;  %4873 = vmatprep.mubr.f32.mxu1 %v4514_v46  ;;  %5374 = vmatprep.mubr.f32.mxu0 %v4514_v46 }
 0x771   :  { %v4420_v0 = vmul.f32 0.01, %v3951_v1  ;;  %4874 = vmatmul.mubr.f32.gmra.mrb[122].mxu1 %v4513_v3  ;;  %5375 = vmatmul.mubr.f32.gmra.mrb[154].mxu0 %v4513_v3  ;;  %vm4324_vm14 = vcmp.gt.f32.partialorder %v3951_v1, 0.0 }
 0x772   :  { %v4421_v55 = vmul.f32 0.01, %v3953_v47  ;;  %v3956_v36 = vpop.f32.mrb[94].mxu0  ;;  %v6466_v57 = vpop.f32.mrb[78].mxu1  ;;  %vm4325_vm13 = vcmp.gt.f32.partialorder %v3953_v47, 0.0 }
 0x773   :  { %v3957_v31 = vadd.f32 %v3956_v36, %v10274_v20  ;;  %v10499_v41 = vadd.f32 %v6466_v57, %v10288_v61  ;;  %v3958_v58 = vpop.f32.mrb[95].mxu0  ;;  %v4193_v50 = vpop.f32.mrb[79].mxu1  ;;  %v4516_v63 = vsel %vm4324_vm14, %v3951_v1, %v4420_v0 }
 0x774   :  { %v3959_v17 = vadd.f32 %v3958_v58, %v10278_v13  ;;  %v10503_v9 = vadd.f32 %v4193_v50, %v10288_v61  ;;  %v4517_v53 = vsel %vm4325_vm13, %v3953_v47, %v4421_v55 }
 0x775   :  { %v4423_v52 = vmul.f32 0.01, %v3957_v31  ;;  %4879 = vmatprep.mubr.f32.mxu1 %v4517_v53  ;;  %5379 = vmatprep.mubr.f32.mxu0 %v4517_v53  ;;  %vm4327_vm0 = vcmp.gt.f32.partialorder %v3957_v31, 0.0 }
 0x776   :  { %v4424_v43 = vmul.f32 0.01, %v3959_v17  ;;  %v3962_v2 = vpop.f32.mrb[96].mxu0  ;;  %4880 = vmatmul.mubr.f32.gmra.mrb[124].mxu1 %v4516_v63  ;;  %5380 = vmatmul.mubr.f32.gmra.mrb[156].mxu0 %v4516_v63  ;;  %vm4328_vm15 = vcmp.gt.f32.partialorder %v3959_v17, 0.0 }
 0x777   :  { %v3963_v21 = vadd.f32 %v3962_v2, %v10274_v20  ;;  %v3964_v44 = vpop.f32.mrb[97].mxu0  ;;  %v4519_v56 = vsel %vm4327_vm0, %v3957_v31, %v4423_v52 }
 0x778   :  { %v3965_v6 = vadd.f32 %v3964_v44, %v10278_v13  ;;  %v4520_v23 = vsel %vm4328_vm15, %v3959_v17, %v4424_v43 }
 0x779   :  { %v4426_v25 = vmul.f32 0.01, %v3963_v21  ;;  %4885 = vmatprep.mubr.f32.mxu1 %v4520_v23  ;;  %5384 = vmatprep.mubr.f32.mxu0 %v4520_v23  ;;  %vm4330_vm2 = vcmp.gt.f32.partialorder %v3963_v21, 0.0 }
 0x77a   :  { %v4427_v35 = vmul.f32 0.01, %v3965_v6  ;;  %v3968_v42 = vpop.f32.mrb[98].mxu0  ;;  %v6469_v40 = vpop.f32.mrb[80].mxu1  ;;  %4886 = vmatmul.mubr.f32.gmra.mrb[126].mxu1 %v4519_v56  ;;  %5385 = vmatmul.mubr.f32.gmra.mrb[158].mxu0 %v4519_v56  ;;  %vm4331_vm1 = vcmp.gt.f32.partialorder %v3965_v6, 0.0 }
 0x77b   :  { %v3969_v24 = vadd.f32 %v3968_v42, %v10274_v20  ;;  %v10509_v29 = vadd.f32 %v6469_v40, %v10288_v61  ;;  %v3970_v14 = vpop.f32.mrb[99].mxu0  ;;  %v4203_v16 = vpop.f32.mrb[81].mxu1  ;;  %v4522_v19 = vsel %vm4330_vm2, %v3963_v21, %v4426_v25 }
 0x77c   :  { %v3971_v12 = vadd.f32 %v3970_v14, %v10278_v13  ;;  %v10513_v30 = vadd.f32 %v4203_v16, %v10288_v61  ;;  %v4523_v60 = vsel %vm4331_vm1, %v3965_v6, %v4427_v35 }
 0x77d   :  { %v4429_v51 = vmul.f32 0.01, %v3969_v24  ;;  %4891 = vmatprep.mubr.f32.mxu1 %v4523_v60  ;;  %5389 = vmatprep.mubr.f32.mxu0 %v4523_v60  ;;  %vm4333_vm4 = vcmp.gt.f32.partialorder %v3969_v24, 0.0 }
 0x77e   :  { %v4430_v62 = vmul.f32 0.01, %v3971_v12  ;;  %4892 = vmatmul.mubr.f32.gmra.mrb[128].mxu1 %v4522_v19  ;;  %5390 = vmatmul.mubr.f32.gmra.mrb[160].mxu0 %v4522_v19  ;;  %vm4334_vm3 = vcmp.gt.f32.partialorder %v3971_v12, 0.0 }
 0x77f   :  { %v4525_v32 = vsel %vm4333_vm4, %v3969_v24, %v4429_v51 }
 0x780   :  { %v4526_v26 = vsel %vm4334_vm3, %v3971_v12, %v4430_v62  ;;  %v3974_v22 = vpop.f32.mrb[100].mxu0 }
 0x781   :  { %4897 = vmatprep.mubr.f32.mxu1 %v4526_v26  ;;  %5394 = vmatprep.mubr.f32.mxu0 %v4526_v26  ;;  %v3975_v1 = vadd.f32 %v3974_v22, %v10274_v20  ;;  %v3976_v27 = vpop.f32.mrb[101].mxu0 }
 0x782   :  { %4898 = vmatmul.mubr.f32.gmra.mrb[130].mxu1 %v4525_v32  ;;  %5395 = vmatmul.mubr.f32.gmra.mrb[162].mxu0 %v4525_v32  ;;  %v3977_v46 = vadd.f32 %v3976_v27, %v10278_v13 }
 0x783   :  { %v4432_v47 = vmul.f32 0.01, %v3975_v1  ;;  %vm4336_vm6 = vcmp.gt.f32.partialorder %v3975_v1, 0.0 }
 0x784   :  { %v4433_v3 = vmul.f32 0.01, %v3977_v46  ;;  %v3980_v0 = vpop.f32.mrb[102].mxu0  ;;  %v6472_v55 = vpop.f32.mrb[82].mxu1  ;;  %vm4337_vm5 = vcmp.gt.f32.partialorder %v3977_v46, 0.0 }
 0x785   :  { %v3981_v36 = vadd.f32 %v3980_v0, %v10274_v20  ;;  %v10519_v57 = vadd.f32 %v6472_v55, %v10288_v61  ;;  %v3982_v31 = vpop.f32.mrb[103].mxu0  ;;  %v4213_v58 = vpop.f32.mrb[83].mxu1  ;;  %v4528_v63 = vsel %vm4336_vm6, %v3975_v1, %v4432_v47 }
 0x786   :  { %v3983_v50 = vadd.f32 %v3982_v31, %v10278_v13  ;;  %v10523_v17 = vadd.f32 %v4213_v58, %v10288_v61  ;;  %v4529_v53 = vsel %vm4337_vm5, %v3977_v46, %v4433_v3 }
 0x787   :  { %v4435_v52 = vmul.f32 0.01, %v3981_v36  ;;  %4903 = vmatprep.mubr.f32.mxu1 %v4529_v53  ;;  %5399 = vmatprep.mubr.f32.mxu0 %v4529_v53  ;;  %vm4339_vm8 = vcmp.gt.f32.partialorder %v3981_v36, 0.0 }
 0x788   :  { %v4436_v43 = vmul.f32 0.01, %v3983_v50  ;;  %4904 = vmatmul.mubr.f32.gmra.mrb[132].mxu1 %v4528_v63  ;;  %5400 = vmatmul.mubr.f32.gmra.mrb[164].mxu0 %v4528_v63  ;;  %vm4340_vm7 = vcmp.gt.f32.partialorder %v3983_v50, 0.0 }
 0x789   :  { %v4531_v44 = vsel %vm4339_vm8, %v3981_v36, %v4435_v52 }
 0x78a   :  { %v4532_v2 = vsel %vm4340_vm7, %v3983_v50, %v4436_v43 }
 0x78b   :  { %v3986_v21 = vpop.f32.mrb[104].mxu0  ;;  %4909 = vmatprep.mubr.f32.mxu1 %v4532_v2  ;;  %5404 = vmatprep.mubr.f32.mxu0 %v4532_v2 }
 0x78c   :  { %v3987_v6 = vadd.f32 %v3986_v21, %v10274_v20  ;;  %v3988_v23 = vpop.f32.mrb[105].mxu0  ;;  %4910 = vmatmul.mubr.f32.gmra.mrb[134].mxu1 %v4531_v44  ;;  %5405 = vmatmul.mubr.f32.gmra.mrb[166].mxu0 %v4531_v44  ;;  %v6475_v56 = vpop.f32.mrb[84].mxu1 }
 0x78d   :  { %v3989_v25 = vadd.f32 %v3988_v23, %v10278_v13  ;;  %v10528_v42 = vadd.f32 %v6475_v56, %v10288_v61  ;;  %v4223_v40 = vpop.f32.mrb[85].mxu1 }
 0x78e   :  { %v4438_v35 = vmul.f32 0.01, %v3987_v6  ;;  %v10531_v16 = vadd.f32 %v4223_v40, %v10288_v61  ;;  %vm4342_vm10 = vcmp.gt.f32.partialorder %v3987_v6, 0.0 }
 0x78f   :  { %v4439_v24 = vmul.f32 0.01, %v3989_v25  ;;  %v3992_v14 = vpop.f32.mrb[106].mxu0  ;;  %vm4343_vm9 = vcmp.gt.f32.partialorder %v3989_v25, 0.0 }
 0x790   :  { %v3993_v12 = vadd.f32 %v3992_v14, %v10274_v20  ;;  %v3994_v60 = vpop.f32.mrb[107].mxu0  ;;  %v4534_v26 = vsel %vm4342_vm10, %v3987_v6, %v4438_v35 }
 0x791   :  { %v3995_v51 = vadd.f32 %v3994_v60, %v10278_v13  ;;  %v4535_v19 = vsel %vm4343_vm9, %v3989_v25, %v4439_v24 }
 0x792   :  { %v4441_v62 = vmul.f32 0.01, %v3993_v12  ;;  %4915 = vmatprep.mubr.f32.mxu1 %v4535_v19  ;;  %5409 = vmatprep.mubr.f32.mxu0 %v4535_v19  ;;  %vm4345_vm12 = vcmp.gt.f32.partialorder %v3993_v12, 0.0 }
 0x793   :  { %v4442_v22 = vmul.f32 0.01, %v3995_v51  ;;  %v3998_v32 = vpop.f32.mrb[108].mxu0  ;;  %4916 = vmatmul.mubr.f32.gmra.mrb[136].mxu1 %v4534_v26  ;;  %5410 = vmatmul.mubr.f32.gmra.mrb[168].mxu0 %v4534_v26  ;;  %vm4346_vm11 = vcmp.gt.f32.partialorder %v3995_v51, 0.0 }
 0x794   :  { %v3999_v1 = vadd.f32 %v3998_v32, %v10274_v20  ;;  %v4000_v27 = vpop.f32.mrb[109].mxu0  ;;  %v4537_v0 = vsel %vm4345_vm12, %v3993_v12, %v4441_v62 }
 0x795   :  { %v4001_v46 = vadd.f32 %v4000_v27, %v10278_v13  ;;  %v4538_v47 = vsel %vm4346_vm11, %v3995_v51, %v4442_v22 }
 0x796   :  { %v4444_v3 = vmul.f32 0.01, %v3999_v1  ;;  %4921 = vmatprep.mubr.f32.mxu1 %v4538_v47  ;;  %5414 = vmatprep.mubr.f32.mxu0 %v4538_v47  ;;  %v6478_v31 = vpop.f32.mrb[86].mxu1  ;;  %vm4348_vm14 = vcmp.gt.f32.partialorder %v3999_v1, 0.0 }
 0x797   :  { %v4445_v55 = vmul.f32 0.01, %v4001_v46  ;;  %v4004_v36 = vpop.f32.mrb[110].mxu0  ;;  %4922 = vmatmul.mubr.f32.gmra.mrb[138].mxu1 %v4537_v0  ;;  %5415 = vmatmul.mubr.f32.gmra.mrb[170].mxu0 %v4537_v0  ;;  %vm4349_vm13 = vcmp.gt.f32.partialorder %v4001_v46, 0.0  ;;  %v10539_v50 = vadd.f32 %v6478_v31, %v10288_v61  ;;  %v4233_v52 = vpop.f32.mrb[87].mxu1 }
 0x798   :  { %v4005_v58 = vadd.f32 %v4004_v36, %v10274_v20  ;;  %v4006_v53 = vpop.f32.mrb[111].mxu0  ;;  %v10543_v43 = vadd.f32 %v4233_v52, %v10288_v61  ;;  %v4540_v44 = vsel %vm4348_vm14, %v3999_v1, %v4444_v3 }
 0x799   :  { %v4007_v63 = vadd.f32 %v4006_v53, %v10278_v13  ;;  %v4541_v2 = vsel %vm4349_vm13, %v4001_v46, %v4445_v55 }
 0x79a   :  { %v4447_v21 = vmul.f32 0.01, %v4005_v58  ;;  %4927 = vmatprep.mubr.f32.mxu1 %v4541_v2  ;;  %5419 = vmatprep.mubr.f32.mxu0 %v4541_v2  ;;  %vm4351_vm0 = vcmp.gt.f32.partialorder %v4005_v58, 0.0 }
 0x79b   :  { %v4448_v6 = vmul.f32 0.01, %v4007_v63  ;;  %v4010_v23 = vpop.f32.mrb[112].mxu0  ;;  %4928 = vmatmul.mubr.f32.gmra.mrb[140].mxu1 %v4540_v44  ;;  %5420 = vmatmul.mubr.f32.gmra.mrb[172].mxu0 %v4540_v44  ;;  %vm4352_vm15 = vcmp.gt.f32.partialorder %v4007_v63, 0.0 }
 0x79c   :  { %v4011_v25 = vadd.f32 %v4010_v23, %v10274_v20  ;;  %v4012_v56 = vpop.f32.mrb[113].mxu0  ;;  %v4543_v12 = vsel %vm4351_vm0, %v4005_v58, %v4447_v21 }
 0x79d   :  { %v4013_v35 = vadd.f32 %v4012_v56, %v10278_v13  ;;  %v4544_v40 = vsel %vm4352_vm15, %v4007_v63, %v4448_v6  ;;  %v6481_v14 = vpop.f32.mrb[88].mxu1 }
 0x79e   :  { %v4450_v24 = vmul.f32 0.01, %v4011_v25  ;;  %4933 = vmatprep.mubr.f32.mxu1 %v4544_v40  ;;  %5424 = vmatprep.mubr.f32.mxu0 %v4544_v40  ;;  %v10548_v19 = vadd.f32 %v6481_v14, %v10288_v61  ;;  %v4243_v62 = vpop.f32.mrb[89].mxu1  ;;  %vm4354_vm2 = vcmp.gt.f32.partialorder %v4011_v25, 0.0 }
 0x79f   :  { %v4451_v60 = vmul.f32 0.01, %v4013_v35  ;;  %v4016_v51 = vpop.f32.mrb[114].mxu0  ;;  %4934 = vmatmul.mubr.f32.gmra.mrb[142].mxu1 %v4543_v12  ;;  %5425 = vmatmul.mubr.f32.gmra.mrb[174].mxu0 %v4543_v12  ;;  %vm4355_vm1 = vcmp.gt.f32.partialorder %v4013_v35, 0.0  ;;  %v10552_v32 = vadd.f32 %v4243_v62, %v10288_v61 }
 0x7a0   :  { %v4017_v26 = vadd.f32 %v4016_v51, %v10274_v20  ;;  %v4018_v22 = vpop.f32.mrb[115].mxu0  ;;  %v4546_v47 = vsel %vm4354_vm2, %v4011_v25, %v4450_v24  ;;  %vm4287_vm2 = vcmp.gt.f32.partialorder %v10307_v38, 0.0 }
 0x7a1   :  { %v4019_v1 = vadd.f32 %v4018_v22, %v10278_v13  ;;  %v4547_v27 = vsel %vm4355_vm1, %v4013_v35, %v4451_v60  ;;  %vm4284_vm1 = vcmp.gt.f32.partialorder %v10314_v15, 0.0 }
 0x7a2   :  { %v4453_v46 = vmul.f32 0.01, %v4017_v26  ;;  %4939 = vmatprep.mubr.f32.mxu1 %v4547_v27  ;;  %5429 = vmatprep.mubr.f32.mxu0 %v4547_v27  ;;  %v6484_v55 = vpop.f32.mrb[90].mxu1  ;;  %vm4357_vm4 = vcmp.gt.f32.partialorder %v4017_v26, 0.0 }
 0x7a3   :  { %v4454_v3 = vmul.f32 0.01, %v4019_v1  ;;  %v4022_v0 = vpop.f32.mrb[116].mxu0  ;;  %4940 = vmatmul.mubr.f32.gmra.mrb[144].mxu1 %v4546_v47  ;;  %5430 = vmatmul.mubr.f32.gmra.mrb[176].mxu0 %v4546_v47  ;;  %vm4358_vm3 = vcmp.gt.f32.partialorder %v4019_v1, 0.0  ;;  %v10557_v58 = vadd.f32 %v6484_v55, %v10288_v61  ;;  %v4253_v53 = vpop.f32.mrb[91].mxu1 }
 0x7a4   :  { %v4023_v36 = vadd.f32 %v4022_v0, %v10274_v20  ;;  %v4024_v31 = vpop.f32.mrb[117].mxu0  ;;  %v10561_v2 = vadd.f32 %v4253_v53, %v10288_v61  ;;  %v4549_v44 = vsel %vm4357_vm4, %v4017_v26, %v4453_v46  ;;  %vm4293_vm4 = vcmp.gt.f32.partialorder %v10357_v49, 0.0 }
 0x7a5   :  { %v4025_v52 = vadd.f32 %v4024_v31, %v10278_v13  ;;  %v4550_v63 = vsel %vm4358_vm3, %v4019_v1, %v4454_v3  ;;  %vm4290_vm3 = vcmp.gt.f32.partialorder %v10361_v8, 0.0 }
 0x7a6   :  { %v4456_v21 = vmul.f32 0.01, %v4023_v36  ;;  %4945 = vmatprep.mubr.f32.mxu1 %v4550_v63  ;;  %5434 = vmatprep.mubr.f32.mxu0 %v4550_v63  ;;  %vm4360_vm6 = vcmp.gt.f32.partialorder %v4023_v36, 0.0 }
 0x7a7   :  { %v4457_v6 = vmul.f32 0.01, %v4025_v52  ;;  %v4028_v23 = vpop.f32.mrb[118].mxu0  ;;  %4946 = vmatmul.mubr.f32.gmra.mrb[146].mxu1 %v4549_v44  ;;  %5435 = vmatmul.mubr.f32.gmra.mrb[178].mxu0 %v4549_v44  ;;  %vm4361_vm5 = vcmp.gt.f32.partialorder %v4025_v52, 0.0 }
 0x7a8   :  { %v4029_v25 = vadd.f32 %v4028_v23, %v10274_v20  ;;  %v4030_v56 = vpop.f32.mrb[119].mxu0  ;;  %v4552_v14 = vsel %vm4360_vm6, %v4023_v36, %v4456_v21  ;;  %vm4299_vm6 = vcmp.gt.f32.partialorder %v10404_v34, 0.0 }
 0x7a9   :  { %v4031_v35 = vadd.f32 %v4030_v56, %v10278_v13  ;;  %v4553_v40 = vsel %vm4361_vm5, %v4025_v52, %v4457_v6  ;;  %vm4296_vm5 = vcmp.gt.f32.partialorder %v10411_v11, 0.0 }
 0x7aa   :  { %v4459_v24 = vmul.f32 0.01, %v4029_v25  ;;  %4951 = vmatprep.mubr.f32.mxu1 %v4553_v40  ;;  %5439 = vmatprep.mubr.f32.mxu0 %v4553_v40  ;;  %v6487_v51 = vpop.f32.mrb[92].mxu1  ;;  %vm4363_vm8 = vcmp.gt.f32.partialorder %v4029_v25, 0.0 }
 0x7ab   :  { %v4460_v12 = vmul.f32 0.01, %v4031_v35  ;;  %v4034_v60 = vpop.f32.mrb[120].mxu0  ;;  %4952 = vmatmul.mubr.f32.gmra.mrb[148].mxu1 %v4552_v14  ;;  %5440 = vmatmul.mubr.f32.gmra.mrb[180].mxu0 %v4552_v14  ;;  %vm4364_vm7 = vcmp.gt.f32.partialorder %v4031_v35, 0.0  ;;  %v10567_v22 = vadd.f32 %v6487_v51, %v10288_v61  ;;  %v4263_v1 = vpop.f32.mrb[93].mxu1 }
 0x7ac   :  { %v4035_v62 = vadd.f32 %v4034_v60, %v10274_v20  ;;  %v4036_v26 = vpop.f32.mrb[121].mxu0  ;;  %v10571_v47 = vadd.f32 %v4263_v1, %v10288_v61  ;;  %v4555_v0 = vsel %vm4363_vm8, %v4029_v25, %v4459_v24  ;;  %vm4305_vm8 = vcmp.gt.f32.partialorder %v10452_v10, 0.0 }
 0x7ad   :  { %v4037_v27 = vadd.f32 %v4036_v26, %v10278_v13  ;;  %v4556_v46 = vsel %vm4364_vm7, %v4031_v35, %v4460_v12  ;;  %vm4302_vm7 = vcmp.gt.f32.partialorder %v10456_v33, 0.0 }
 0x7ae   :  { %v4462_v3 = vmul.f32 0.01, %v4035_v62  ;;  %4957 = vmatprep.mubr.f32.mxu1 %v4556_v46  ;;  %5444 = vmatprep.mubr.f32.mxu0 %v4556_v46  ;;  %vm4366_vm10 = vcmp.gt.f32.partialorder %v4035_v62, 0.0 }
 0x7af   :  { %v4463_v55 = vmul.f32 0.01, %v4037_v27  ;;  %v4040_v36 = vpop.f32.mrb[122].mxu0  ;;  %4958 = vmatmul.mubr.f32.gmra.mrb[150].mxu1 %v4555_v0  ;;  %5445 = vmatmul.mubr.f32.gmra.mrb[182].mxu0 %v4555_v0  ;;  %vm4367_vm9 = vcmp.gt.f32.partialorder %v4037_v27, 0.0 }
 0x7b0   :  { %v4041_v31 = vadd.f32 %v4040_v36, %v10274_v20  ;;  %v4042_v53 = vpop.f32.mrb[123].mxu0  ;;  %v4558_v44 = vsel %vm4366_vm10, %v4035_v62, %v4462_v3  ;;  %vm4311_vm10 = vcmp.gt.f32.partialorder %v10469_v48, 0.0 }
 0x7b1   :  { %v4043_v52 = vadd.f32 %v4042_v53, %v10278_v13  ;;  %v4559_v63 = vsel %vm4367_vm9, %v4037_v27, %v4463_v55  ;;  %vm4308_vm9 = vcmp.gt.f32.partialorder %v10473_v18, 0.0 }
 0x7b2   :  { %v4465_v21 = vmul.f32 0.01, %v4041_v31  ;;  %4963 = vmatprep.mubr.f32.mxu1 %v4559_v63  ;;  %5449 = vmatprep.mubr.f32.mxu0 %v4559_v63  ;;  %vm4369_vm12 = vcmp.gt.f32.partialorder %v4041_v31, 0.0 }
 0x7b3   :  { %v4466_v6 = vmul.f32 0.01, %v4043_v52  ;;  %v4046_v23 = vpop.f32.mrb[124].mxu0  ;;  %4964 = vmatmul.mubr.f32.gmra.mrb[152].mxu1 %v4558_v44  ;;  %5450 = vmatmul.mubr.f32.gmra.mrb[184].mxu0 %v4558_v44  ;;  %vm4370_vm11 = vcmp.gt.f32.partialorder %v4043_v52, 0.0  ;;  %v6490_v35 = vpop.f32.mrb[94].mxu1 }
 0x7b4   :  { %v4047_v25 = vadd.f32 %v4046_v23, %v10274_v20  ;;  %v4048_v56 = vpop.f32.mrb[125].mxu0  ;;  %v10578_v14 = vadd.f32 %v6490_v35, %v10288_v61  ;;  %v4273_v12 = vpop.f32.mrb[95].mxu1  ;;  %v4561_v51 = vsel %vm4369_vm12, %v4041_v31, %v4465_v21  ;;  %v4380_v31 = vmul.f32 0.01, %v10314_v15 }
 0x7b5   :  { %v4049_v40 = vadd.f32 %v4048_v56, %v10278_v13  ;;  %v4562_v24 = vsel %vm4370_vm11, %v4043_v52, %v4466_v6  ;;  %v10581_v62 = vadd.f32 %v4273_v12, %v10288_v61  ;;  %v4386_v52 = vmul.f32 0.01, %v10361_v8 }
 0x7b6   :  { %v4468_v60 = vmul.f32 0.01, %v4047_v25  ;;  %4969 = vmatprep.mubr.f32.mxu1 %v4562_v24  ;;  %5454 = vmatprep.mubr.f32.mxu0 %v4562_v24  ;;  %vm4372_vm14 = vcmp.gt.f32.partialorder %v4047_v25, 0.0  ;;  %v4476_v63 = vsel %vm4284_vm1, %v10314_v15, %v4380_v31  ;;  %v4389_v44 = vmul.f32 0.01, %v10357_v49 }
 0x7b7   :  { %v4469_v26 = vmul.f32 0.01, %v4049_v40  ;;  %v4052_v1 = vpop.f32.mrb[126].mxu0  ;;  %4970 = vmatmul.mubr.f32.gmra.mrb[154].mxu1 %v4561_v51  ;;  %5455 = vmatmul.mubr.f32.gmra.mrb[186].mxu0 %v4561_v51  ;;  %vm4373_vm13 = vcmp.gt.f32.partialorder %v4049_v40, 0.0  ;;  %v4392_v6 = vmul.f32 0.01, %v10411_v11  ;;  %v4482_v23 = vsel %vm4290_vm3, %v10361_v8, %v4386_v52 }
 0x7b8   :  { %v4053_v27 = vadd.f32 %v4052_v1, %v10274_v20  ;;  %v4054_v46 = vpop.f32.mrb[127].mxu0  ;;  %v4564_v36 = vsel %vm4372_vm14, %v4047_v25, %v4468_v60  ;;  %v4383_v20 = vmul.f32 0.01, %v10307_v38  ;;  %v4395_v15 = vmul.f32 0.01, %v10404_v34 }
 0x7b9   :  { %v4055_v3 = vadd.f32 %v4054_v46, %v10278_v13  ;;  %v4565_v0 = vsel %vm4373_vm13, %v4049_v40, %v4469_v26  ;;  %v4485_v25 = vsel %vm4293_vm4, %v10357_v49, %v4389_v44  ;;  %v4488_v56 = vsel %vm4296_vm5, %v10411_v11, %v4392_v6 }
 0x7ba   :  { %v4471_v55 = vmul.f32 0.01, %v4053_v27  ;;  %4975 = vmatprep.mubr.f32.mxu1 %v4565_v0  ;;  %5459 = vmatprep.mubr.f32.mxu0 %v4565_v0  ;;  %vm4375_vm0 = vcmp.gt.f32.partialorder %v4053_v27, 0.0  ;;  %v4479_v21 = vsel %vm4287_vm2, %v10307_v38, %v4383_v20  ;;  %v4398_v38 = vmul.f32 0.01, %v10456_v33 }
 0x7bb   :  { %v4472_v61 = vmul.f32 0.01, %v4055_v3  ;;  %4976 = vmatmul.mubr.f32.gmra.mrb[156].mxu1 %v4564_v36  ;;  %5460 = vmatmul.mubr.f32.gmra.mrb[188].mxu0 %v4564_v36  ;;  %vm4376_vm15 = vcmp.gt.f32.partialorder %v4055_v3, 0.0  ;;  %v4401_v8 = vmul.f32 0.01, %v10452_v10  ;;  %v4491_v35 = vsel %vm4299_vm6, %v10404_v34, %v4395_v15 }
 0x7bc   :  { %v4567_v13 = vsel %vm4375_vm0, %v4053_v27, %v4471_v55  ;;  %v4404_v40 = vmul.f32 0.01, %v10473_v18  ;;  %v4494_v49 = vsel %vm4302_vm7, %v10456_v33, %v4398_v38  ;;  %v4407_v11 = vmul.f32 0.01, %v10469_v48 }
 0x7bd   :  { %v4568_v53 = vsel %vm4376_vm15, %v4055_v3, %v4472_v61  ;;  %v4497_v24 = vsel %vm4305_vm8, %v10452_v10, %v4401_v8  ;;  %v4410_v12 = vmul.f32 0.01, %v10483_v7  ;;  %vm4314_vm11 = vcmp.gt.f32.partialorder %v10483_v7, 0.0 }
 0x7be   :  { %4981 = vmatprep.mubr.f32.mxu1 %v4568_v53  ;;  %5464 = vmatprep.mubr.f32.mxu0 %v4568_v53  ;;  %v4500_v34 = vsel %vm4308_vm9, %v10473_v18, %v4404_v40  ;;  %v4413_v33 = vmul.f32 0.01, %v10479_v39  ;;  %v4503_v60 = vsel %vm4311_vm10, %v10469_v48, %v4407_v11  ;;  %v4416_v51 = vmul.f32 0.01, %v10493_v37 }
 0x7bf   :  { %4982 = vmatmul.mubr.f32.gmra.mrb[158].mxu1 %v4567_v13  ;;  %5465 = vmatmul.mubr.f32.gmra.mrb[190].mxu0 %v4567_v13  ;;  %v4506_v10 = vsel %vm4314_vm11, %v10483_v7, %v4410_v12  ;;  %vm4317_vm12 = vcmp.gt.f32.partialorder %v10479_v39, 0.0  ;;  %vm4320_vm13 = vcmp.gt.f32.partialorder %v10493_v37, 0.0  ;;  %v4419_v18 = vmul.f32 0.01, %v10489_v54 }
 0x7c0   :  { %6523 = vmatprep.mubr.f32.mxu0 %v4476_v63  ;;  %5052 = vmatprep.mubr.f32.mxu1 %v11480_v28  ;;  %v4509_v26 = vsel %vm4317_vm12, %v10479_v39, %v4413_v33  ;;  %v4422_v1 = vmul.f32 0.01, %v10503_v9  ;;  %v10632_v48 = vsel %vm4320_vm13, %v10493_v37, %v4416_v51  ;;  %vm4323_vm14 = vcmp.gt.f32.partialorder %v10489_v54, 0.0 }
 0x7c1   :  { %vm4326_vm15 = vcmp.gt.f32.partialorder %v10503_v9, 0.0  ;;  %v4425_v7 = vmul.f32 0.01, %v10499_v41  ;;  %v10640_v27 = vsel %vm4323_vm14, %v10489_v54, %v4419_v18  ;;  %v4428_v39 = vmul.f32 0.01, %v10513_v30 }
 0x7c2   :  { %v10645_v37 = vsel %vm4326_vm15, %v10503_v9, %v4422_v1  ;;  %vm4329_vm0 = vcmp.gt.f32.partialorder %v10499_v41, 0.0  ;;  %vm4332_vm1 = vcmp.gt.f32.partialorder %v10513_v30, 0.0  ;;  %v4431_v46 = vmul.f32 0.01, %v10509_v29 }
 0x7c3   :  { %5053 = vmatmul.mubr.f32.vlgmr.msra.gmra.mrb[96].mxu1 %v4476_v63  ;;  %6524 = vmatmul.mubr.f32.vlgmr.msra.gmra.mrb[192].mxu0 %v4479_v21  ;;  %v10653_v54 = vsel %vm4329_vm0, %v10499_v41, %v4425_v7  ;;  %v4434_v3 = vmul.f32 0.01, %v10523_v17  ;;  %v10658_v9 = vsel %vm4332_vm1, %v10513_v30, %v4428_v39  ;;  %vm4335_vm2 = vcmp.gt.f32.partialorder %v10509_v29, 0.0 }
 0x7c4   :  { %6526 = vmatprep.mubr.f32.mxu0 %v4482_v23  ;;  %5058 = vmatprep.mubr.f32.mxu1 %v11480_v28  ;;  %vm4338_vm3 = vcmp.gt.f32.partialorder %v10523_v17, 0.0  ;;  %v4437_v0 = vmul.f32 0.01, %v10519_v57  ;;  %v10666_v41 = vsel %vm4335_vm2, %v10509_v29, %v4431_v46  ;;  %v4440_v55 = vmul.f32 0.01, %v10531_v16 }
 0x7c5   :  { %v10671_v30 = vsel %vm4338_vm3, %v10523_v17, %v4434_v3  ;;  %vm4341_vm4 = vcmp.gt.f32.partialorder %v10519_v57, 0.0  ;;  %vm4344_vm5 = vcmp.gt.f32.partialorder %v10531_v16, 0.0  ;;  %v4443_v36 = vmul.f32 0.01, %v10528_v42 }
 0x7c6   :  { %v10679_v29 = vsel %vm4341_vm4, %v10519_v57, %v4437_v0  ;;  %v4446_v31 = vmul.f32 0.01, %v10543_v43  ;;  %v10684_v17 = vsel %vm4344_vm5, %v10531_v16, %v4440_v55  ;;  %vm4347_vm6 = vcmp.gt.f32.partialorder %v10528_v42, 0.0 }
 0x7c7   :  { %5059 = vmatmul.mubr.f32.gmra.mrb[98].mxu1 %v4479_v21  ;;  %6527 = vmatmul.mubr.f32.gmra.mrb[194].mxu0 %v4485_v25  ;;  %vm4350_vm7 = vcmp.gt.f32.partialorder %v10543_v43, 0.0  ;;  %v4449_v61 = vmul.f32 0.01, %v10539_v50  ;;  %v10692_v57 = vsel %vm4347_vm6, %v10528_v42, %v4443_v36  ;;  %v4452_v53 = vmul.f32 0.01, %v10552_v32 }
 0x7c8   :  { %6529 = vmatprep.mubr.f32.mxu0 %v4488_v56  ;;  %5064 = vmatprep.mubr.f32.mxu1 %v11480_v28  ;;  %v10697_v16 = vsel %vm4350_vm7, %v10543_v43, %v4446_v31  ;;  %vm4353_vm8 = vcmp.gt.f32.partialorder %v10539_v50, 0.0  ;;  %vm4356_vm9 = vcmp.gt.f32.partialorder %v10552_v32, 0.0  ;;  %v4455_v20 = vmul.f32 0.01, %v10548_v19 }
 0x7c9   :  { %v10705_v42 = vsel %vm4353_vm8, %v10539_v50, %v4449_v61  ;;  %v4458_v13 = vmul.f32 0.01, %v10561_v2  ;;  %v10710_v43 = vsel %vm4356_vm9, %v10552_v32, %v4452_v53  ;;  %vm4359_vm10 = vcmp.gt.f32.partialorder %v10548_v19, 0.0 }
 0x7ca   :  { %vm4362_vm11 = vcmp.gt.f32.partialorder %v10561_v2, 0.0  ;;  %v4461_v52 = vmul.f32 0.01, %v10557_v58  ;;  %v4551_v50 = vsel %vm4359_vm10, %v10548_v19, %v4455_v20  ;;  %v4464_v63 = vmul.f32 0.01, %v10571_v47 }
 0x7cb   :  { %5065 = vmatmul.mubr.f32.gmra.mrb[100].mxu1 %v4482_v23  ;;  %6530 = vmatmul.mubr.f32.gmra.mrb[196].mxu0 %v4491_v35  ;;  %v4554_v32 = vsel %vm4362_vm11, %v10561_v2, %v4458_v13  ;;  %vm4365_vm12 = vcmp.gt.f32.partialorder %v10557_v58, 0.0  ;;  %vm4368_vm13 = vcmp.gt.f32.partialorder %v10571_v47, 0.0  ;;  %v4467_v21 = vmul.f32 0.01, %v10567_v22 }
 0x7cc   :  { %6532 = vmatprep.mubr.f32.mxu0 %v4494_v49  ;;  %5070 = vmatprep.mubr.f32.mxu1 %v11480_v28  ;;  %v4557_v44 = vsel %vm4365_vm12, %v10557_v58, %v4461_v52  ;;  %v4470_v19 = vmul.f32 0.01, %v10581_v62  ;;  %v4560_v6 = vsel %vm4368_vm13, %v10571_v47, %v4464_v63  ;;  %vm4371_vm14 = vcmp.gt.f32.partialorder %v10567_v22, 0.0 }
 0x7cd   :  { %vm4374_vm15 = vcmp.gt.f32.partialorder %v10581_v62, 0.0  ;;  %v4473_v2 = vmul.f32 0.01, %v10578_v14  ;;  %v4563_v23 = vsel %vm4371_vm14, %v10567_v22, %v4467_v21  ;;  %vm4377_vm0 = vcmp.gt.f32.partialorder %v10578_v14, 0.0 }
 0x7ce   :  { %v4566_v58 = vsel %vm4374_vm15, %v10581_v62, %v4470_v19 }
 0x7cf   :  { %5071 = vmatmul.mubr.f32.gmra.mrb[102].mxu1 %v4485_v25  ;;  %6533 = vmatmul.mubr.f32.gmra.mrb[198].mxu0 %v4497_v24  ;;  %v4569_v47 = vsel %vm4377_vm0, %v10578_v14, %v4473_v2 }
 0x7d0   :  { %6535 = vmatprep.mubr.f32.mxu0 %v4500_v34  ;;  %5076 = vmatprep.mubr.f32.mxu1 %v11480_v28 }
 0x7d3   :  { %5077 = vmatmul.mubr.f32.gmra.mrb[104].mxu1 %v4488_v56  ;;  %6536 = vmatmul.mubr.f32.gmra.mrb[200].mxu0 %v4503_v60 }
 0x7d4   :  { %6538 = vmatprep.mubr.f32.mxu0 %v4506_v10  ;;  %5082 = vmatprep.mubr.f32.mxu1 %v11480_v28 }
 0x7d7   :  { %5083 = vmatmul.mubr.f32.gmra.mrb[106].mxu1 %v4491_v35  ;;  %6539 = vmatmul.mubr.f32.gmra.mrb[202].mxu0 %v4509_v26 }
 0x7d8   :  { %6541 = vmatprep.mubr.f32.mxu0 %v10632_v48  ;;  %5088 = vmatprep.mubr.f32.mxu1 %v11480_v28 }
 0x7db   :  { %5089 = vmatmul.mubr.f32.gmra.mrb[108].mxu1 %v4494_v49  ;;  %6542 = vmatmul.mubr.f32.gmra.mrb[204].mxu0 %v10640_v27 }
 0x7dc   :  { %6544 = vmatprep.mubr.f32.mxu0 %v10645_v37  ;;  %5094 = vmatprep.mubr.f32.mxu1 %v11480_v28 }
 0x7df   :  { %5095 = vmatmul.mubr.f32.gmra.mrb[110].mxu1 %v4497_v24  ;;  %6545 = vmatmul.mubr.f32.gmra.mrb[206].mxu0 %v10653_v54 }
 0x7e0   :  { %6547 = vmatprep.mubr.f32.mxu0 %v10658_v9  ;;  %5100 = vmatprep.mubr.f32.mxu1 %v11480_v28 }
 0x7e3   :  { %5101 = vmatmul.mubr.f32.gmra.mrb[112].mxu1 %v4500_v34  ;;  %6548 = vmatmul.mubr.f32.gmra.mrb[208].mxu0 %v10666_v41 }
 0x7e4   :  { %6550 = vmatprep.mubr.f32.mxu0 %v10671_v30  ;;  %5106 = vmatprep.mubr.f32.mxu1 %v11480_v28 }
 0x7e7   :  { %5107 = vmatmul.mubr.f32.gmra.mrb[114].mxu1 %v4503_v60  ;;  %6551 = vmatmul.mubr.f32.gmra.mrb[210].mxu0 %v10679_v29 }
 0x7e8   :  { %6553 = vmatprep.mubr.f32.mxu0 %v10684_v17  ;;  %5112 = vmatprep.mubr.f32.mxu1 %v11480_v28 }
 0x7eb   :  { %5113 = vmatmul.mubr.f32.gmra.mrb[116].mxu1 %v4506_v10  ;;  %6554 = vmatmul.mubr.f32.gmra.mrb[212].mxu0 %v10692_v57 }
 0x7ec   :  { %6556 = vmatprep.mubr.f32.mxu0 %v10697_v16  ;;  %5118 = vmatprep.mubr.f32.mxu1 %v11480_v28 }
 0x7ef   :  { %5119 = vmatmul.mubr.f32.gmra.mrb[118].mxu1 %v4509_v26  ;;  %6557 = vmatmul.mubr.f32.gmra.mrb[214].mxu0 %v10705_v42 }
 0x7f0   :  { %6559 = vmatprep.mubr.f32.mxu0 %v10710_v43  ;;  %5124 = vmatprep.mubr.f32.mxu1 %v11480_v28 }
 0x7f3   :  { %5125 = vmatmul.mubr.f32.gmra.mrb[120].mxu1 %v10632_v48  ;;  %6560 = vmatmul.mubr.f32.gmra.mrb[216].mxu0 %v4551_v50 }
 0x7f4   :  { %6562 = vmatprep.mubr.f32.mxu0 %v4554_v32  ;;  %5130 = vmatprep.mubr.f32.mxu1 %v11480_v28 }
 0x7f7   :  { %5131 = vmatmul.mubr.f32.gmra.mrb[122].mxu1 %v10640_v27  ;;  %6563 = vmatmul.mubr.f32.gmra.mrb[218].mxu0 %v4557_v44 }
 0x7f8   :  { %6565 = vmatprep.mubr.f32.mxu0 %v4560_v6  ;;  %5136 = vmatprep.mubr.f32.mxu1 %v11480_v28 }
 0x7fb   :  { %5137 = vmatmul.mubr.f32.gmra.mrb[124].mxu1 %v10645_v37  ;;  %6566 = vmatmul.mubr.f32.gmra.mrb[220].mxu0 %v4563_v23 }
 0x7fc   :  { %6568 = vmatprep.mubr.f32.mxu0 %v4566_v58  ;;  %5142 = vmatprep.mubr.f32.mxu1 %v11480_v28 }
 0x7ff   :  { %5143 = vmatmul.mubr.f32.gmra.mrb[126].mxu1 %v10653_v54  ;;  %6569 = vmatmul.mubr.f32.gmra.mrb[222].mxu0 %v4569_v47 }
 0x800   :  { %5148 = vmatprep.mubr.f32.mxu1 %v11480_v28 }
 0x803   :  { %5149 = vmatmul.mubr.f32.gmra.mrb[128].mxu1 %v10658_v9 }
 0x804   :  { %5154 = vmatprep.mubr.f32.mxu1 %v11480_v28 }
 0x807   :  { %5155 = vmatmul.mubr.f32.gmra.mrb[130].mxu1 %v10666_v41 }
 0x808   :  { %5160 = vmatprep.mubr.f32.mxu1 %v11480_v28 }
 0x80b   :  { %v10745_v22 = vpop.f32.mrb[128].mxu0  ;;  %5161 = vmatmul.mubr.f32.gmra.mrb[132].mxu1 %v10671_v30 }
 0x80c   :  { %v5313_v62 = vpop.f32.mrb[129].mxu0  ;;  %5166 = vmatprep.mubr.f32.mxu1 %v11480_v28 }
 0x80f   :  { %v10749_v14 = vpop.f32.mrb[130].mxu0  ;;  %5167 = vmatmul.mubr.f32.gmra.mrb[134].mxu1 %v10679_v29 }
 0x810   :  { %v5318_v15 = vpop.f32.mrb[131].mxu0  ;;  %5172 = vmatprep.mubr.f32.mxu1 %v11480_v28 }
 0x811   :  { %v4714_v15 = vld [vmem:[%s11269_s9] sm:$0x7] }
 0x813   :  { %5173 = vmatmul.mubr.f32.gmra.mrb[136].mxu1 %v10684_v17 }
 0x814   :  { %v10753_v25 = vpop.f32.mrb[132].mxu0  ;;  %5178 = vmatprep.mubr.f32.mxu1 %v11480_v28 }
 0x815   :  { %v5323_v38 = vpop.f32.mrb[133].mxu0 }
 0x817   :  { %5179 = vmatmul.mubr.f32.gmra.mrb[138].mxu1 %v10692_v57 }
 0x818   :  { %v10757_v56 = vpop.f32.mrb[134].mxu0  ;;  %5184 = vmatprep.mubr.f32.mxu1 %v11480_v28 }
 0x819   :  { %v5328_v8 = vpop.f32.mrb[135].mxu0 }
 0x81a   :  { %v10832_v8 = vrot.slane %v4714_v15, %v3795_v59 }
 0x81b   :  { %5185 = vmatmul.mubr.f32.gmra.mrb[140].mxu1 %v10697_v16 }
 0x81c   :  { %5190 = vmatprep.mubr.f32.mxu1 %v11480_v28  ;;  %v5327_v4 = vadd.f32 %v10757_v56, %v10832_v8 }
 0x81d   :  { %v10762_v35 = vpop.f32.mrb[136].mxu0 }
 0x81e   :  { %v5333_v40 = vpop.f32.mrb[137].mxu0 }
 0x81f   :  { %5191 = vmatmul.mubr.f32.gmra.mrb[142].mxu1 %v10705_v42 }
 0x820   :  { %5196 = vmatprep.mubr.f32.mxu1 %v11480_v28 }
 0x821   :  { %v10766_v49 = vpop.f32.mrb[138].mxu0 }
 0x822   :  { %v5338_v11 = vpop.f32.mrb[139].mxu0 }
 0x823   :  { %5197 = vmatmul.mubr.f32.gmra.mrb[144].mxu1 %v10710_v43 }
 0x824   :  { %5202 = vmatprep.mubr.f32.mxu1 %v11480_v28 }
 0x825   :  { %v10770_v24 = vpop.f32.mrb[140].mxu0 }
 0x826   :  { %v5343_v12 = vpop.f32.mrb[141].mxu0 }
 0x827   :  { %5203 = vmatmul.mubr.f32.gmra.mrb[146].mxu1 %v4551_v50  ;;  %v10838_v12 = vrot.slane %v4714_v15, %v3787_v5 }
 0x828   :  { %5208 = vmatprep.mubr.f32.mxu1 %v11480_v28 }
 0x82a   :  { %v10774_v34 = vpop.f32.mrb[142].mxu0 }
 0x82b   :  { %v5348_v33 = vpop.f32.mrb[143].mxu0  ;;  %5209 = vmatmul.mubr.f32.gmra.mrb[148].mxu1 %v4554_v32 }
 0x82c   :  { %5214 = vmatprep.mubr.f32.mxu1 %v11480_v28  ;;  %v10842_v33 = vrot.slane %v4714_v15, %v3791_v45  ;;  %v5322_v45 = vadd.f32 %v10753_v25, %v10832_v8  ;;  %v5337_v25 = vadd.f32 %v10766_v49, %v10832_v8 }
 0x82e   :  { %v10777_v60 = vpop.f32.mrb[144].mxu0 }
 0x82f   :  { %v5353_v51 = vpop.f32.mrb[145].mxu0  ;;  %5215 = vmatmul.mubr.f32.gmra.mrb[150].mxu1 %v4557_v44 }
 0x830   :  { %5220 = vmatprep.mubr.f32.mxu1 %v11480_v28  ;;  %v5317_v51 = vadd.f32 %v10749_v14, %v10832_v8 }
 0x832   :  { %v10780_v10 = vpop.f32.mrb[146].mxu0 }
 0x833   :  { %v5358_v18 = vpop.f32.mrb[147].mxu0  ;;  %5221 = vmatmul.mubr.f32.gmra.mrb[152].mxu1 %v4560_v6 }
 0x834   :  { %5226 = vmatprep.mubr.f32.mxu1 %v11480_v28  ;;  %v5312_v18 = vadd.f32 %v10745_v22, %v10832_v8 }
 0x837   :  { %v10783_v26 = vpop.f32.mrb[148].mxu0  ;;  %5227 = vmatmul.mubr.f32.gmra.mrb[154].mxu1 %v4563_v23 }
 0x838   :  { %v5363_v1 = vpop.f32.mrb[149].mxu0  ;;  %5232 = vmatprep.mubr.f32.mxu1 %v11480_v28 }
 0x83b   :  { %v10786_v48 = vpop.f32.mrb[150].mxu0  ;;  %5233 = vmatmul.mubr.f32.gmra.mrb[156].mxu1 %v4566_v58 }
 0x83c   :  { %v5368_v7 = vpop.f32.mrb[151].mxu0  ;;  %5238 = vmatprep.mubr.f32.mxu1 %v11480_v28 }
 0x83f   :  { %5239 = vmatmul.mubr.f32.gmra.mrb[158].mxu1 %v4569_v47 }
 0x840   :  { %v10789_v27 = vpop.f32.mrb[152].mxu0 }
 0x841   :  { %v5373_v39 = vpop.f32.mrb[153].mxu0 }
 0x844   :  { %v10791_v37 = vpop.f32.mrb[154].mxu0 }
 0x845   :  { %v5378_v46 = vpop.f32.mrb[155].mxu0 }
 0x849   :  { %v10793_v54 = vpop.f32.mrb[156].mxu0 }
 0x84a   :  { %v5383_v3 = vpop.f32.mrb[157].mxu0 }
 0x84d   :  { %v10795_v9 = vpop.f32.mrb[158].mxu0 }
 0x84e   :  { %v5388_v0 = vpop.f32.mrb[159].mxu0 }
 0x851   :  { %v10797_v41 = vpop.f32.mrb[160].mxu0 }
 0x852   :  { %v5393_v55 = vpop.f32.mrb[161].mxu0 }
 0x855   :  { %v10799_v30 = vpop.f32.mrb[162].mxu0 }
 0x856   :  { %v5398_v36 = vpop.f32.mrb[163].mxu0 }
 0x85b   :  { %v10801_v28 = vpop.f32.mrb[164].mxu0 }
 0x85c   :  { %v5403_v29 = vpop.f32.mrb[165].mxu0 }
 0x85f   :  { %v10803_v31 = vpop.f32.mrb[166].mxu0 }
 0x860   :  { %v5408_v17 = vpop.f32.mrb[167].mxu0 }
 0x866   :  { %v10805_v61 = vpop.f32.mrb[168].mxu0 }
 0x867   :  { %v5413_v57 = vpop.f32.mrb[169].mxu0 }
 0x86a   :  { %v10807_v53 = vpop.f32.mrb[170].mxu0 }
 0x86b   :  { %v5418_v16 = vpop.f32.mrb[171].mxu0 }
 0x86c   :  { %v5332_v16 = vadd.f32 %v10762_v35, %v10832_v8  ;;  %v5347_v35 = vadd.f32 %v10774_v34, %v10832_v8 }
 0x86e   :  { %v10809_v20 = vpop.f32.mrb[172].mxu0 }
 0x86f   :  { %v5423_v42 = vpop.f32.mrb[173].mxu0 }
 0x872   :  { %v10811_v13 = vpop.f32.mrb[174].mxu0 }
 0x873   :  { %v5428_v43 = vpop.f32.mrb[175].mxu0 }
 0x876   :  { %v10813_v52 = vpop.f32.mrb[176].mxu0 }
 0x877   :  { %v5433_v50 = vpop.f32.mrb[177].mxu0 }
 0x87a   :  { %v10815_v63 = vpop.f32.mrb[178].mxu0 }
 0x87b   :  { %v5438_v32 = vpop.f32.mrb[179].mxu0 }
 0x87e   :  { %v10817_v21 = vpop.f32.mrb[180].mxu0 }
 0x87f   :  { %v5443_v44 = vpop.f32.mrb[181].mxu0 }
 0x882   :  { %v10819_v19 = vpop.f32.mrb[182].mxu0 }
 0x883   :  { %v5448_v6 = vpop.f32.mrb[183].mxu0 }
 0x886   :  { %v10821_v2 = vpop.f32.mrb[184].mxu0 }
 0x887   :  { %v5453_v23 = vpop.f32.mrb[185].mxu0 }
 0x88a   :  { %v10823_v58 = vpop.f32.mrb[186].mxu0 }
 0x88b   :  { %v5458_v47 = vpop.f32.mrb[187].mxu0 }
 0x88c   :  { %v5342_v47 = vadd.f32 %v10770_v24, %v10832_v8  ;;  %v5357_v24 = vadd.f32 %v10780_v10, %v10832_v8 }
 0x88e   :  { %v10825_v62 = vpop.f32.mrb[188].mxu0 }
 0x88f   :  { %v5463_v38 = vpop.f32.mrb[189].mxu0 }
 0x892   :  { %v10834_v40 = vpop.f32.mrb[190].mxu0 }
 0x893   :  { %v5468_v11 = vpop.f32.mrb[191].mxu0 }
 0x896   :  { %v5054_v1 = vpop.f32.mrb[96].mxu1  ;;  %v6525_v59 = vpop.f32.mrb[192].mxu0 }
 0x897   :  { %v6915_v7 = vadd.f32 %v5054_v1, %v10838_v12  ;;  %v5542_v39 = vadd.f32 %v6525_v59, %v5317_v51  ;;  %v5056_v46 = vpop.f32.mrb[97].mxu1  ;;  %v5536_v3 = vpop.f32.mrb[193].mxu0 }
 0x898   :  { %v6916_v5 = vadd.f32 %v5056_v46, %v10842_v33  ;;  %v5537_v0 = vadd.f32 %v5536_v3, %v5312_v18 }
 0x899   :  { %5695 = vst [vmem:[%s11270_s10] sm:$0xff] %v6915_v7  ;;  %5700 = vst [vmem:[%s11270_s10 + $0x28] sm:$0xff] %v5542_v39  ;;  %v5352_v7 = vadd.f32 %v10777_v60, %v10832_v8  ;;  %v5367_v60 = vadd.f32 %v10786_v48, %v10832_v8 }
 0x89a   :  { %5696 = vst [vmem:[%s11270_s10 + $0x8] sm:$0xff] %v6916_v5  ;;  %5697 = vst [vmem:[%s11270_s10 + $0x10] sm:$0xff] %v5537_v0  ;;  %v5060_v22 = vpop.f32.mrb[98].mxu1  ;;  %v6528_v14 = vpop.f32.mrb[194].mxu0 }
 0x89b   :  { %v6917_v56 = vadd.f32 %v5060_v22, %v10838_v12  ;;  %v5552_v55 = vadd.f32 %v6528_v14, %v5327_v4  ;;  %v5062_v36 = vpop.f32.mrb[99].mxu1  ;;  %v5546_v29 = vpop.f32.mrb[195].mxu0  ;;  %v5362_v22 = vadd.f32 %v10783_v26, %v10832_v8  ;;  %v5377_v26 = vadd.f32 %v10791_v37, %v10832_v8 }
 0x89c   :  { %v6918_v17 = vadd.f32 %v5062_v36, %v10842_v33  ;;  %v5547_v57 = vadd.f32 %v5546_v29, %v5322_v45 }
 0x89d   :  { %5698 = vst [vmem:[%s11270_s10 + $0x18] sm:$0xff] %v6917_v56  ;;  %5706 = vst [vmem:[%s11270_s10 + $0x58] sm:$0xff] %v5552_v55 }
 0x89e   :  { %5699 = vst [vmem:[%s11270_s10 + $0x20] sm:$0xff] %v6918_v17  ;;  %5703 = vst [vmem:[%s11270_s10 + $0x40] sm:$0xff] %v5547_v57  ;;  %v5066_v49 = vpop.f32.mrb[100].mxu1  ;;  %v6531_v42 = vpop.f32.mrb[196].mxu0 }
 0x89f   :  { %v6919_v43 = vadd.f32 %v5066_v49, %v10838_v12  ;;  %v5562_v50 = vadd.f32 %v6531_v42, %v5337_v25  ;;  %v5068_v32 = vpop.f32.mrb[101].mxu1  ;;  %v5556_v44 = vpop.f32.mrb[197].mxu0  ;;  %v5372_v25 = vadd.f32 %v10789_v27, %v10832_v8  ;;  %v5387_v27 = vadd.f32 %v10795_v9, %v10832_v8 }
 0x8a0   :  { %v6920_v6 = vadd.f32 %v5068_v32, %v10842_v33  ;;  %v5557_v23 = vadd.f32 %v5556_v44, %v5332_v16 }
 0x8a1   :  { %5701 = vst [vmem:[%s11270_s10 + $0x30] sm:$0xff] %v6919_v43  ;;  %5712 = vst [vmem:[%s11270_s10 + $0x88] sm:$0xff] %v5562_v50 }
 0x8a2   :  { %5702 = vst [vmem:[%s11270_s10 + $0x38] sm:$0xff] %v6920_v6  ;;  %5709 = vst [vmem:[%s11270_s10 + $0x70] sm:$0xff] %v5557_v23  ;;  %v5072_v34 = vpop.f32.mrb[102].mxu1  ;;  %v6534_v15 = vpop.f32.mrb[198].mxu0  ;;  %v5382_v6 = vadd.f32 %v10793_v54, %v10832_v8  ;;  %v5397_v54 = vadd.f32 %v10799_v30, %v10832_v8 }
 0x8a3   :  { %v6921_v38 = vadd.f32 %v5072_v34, %v10838_v12  ;;  %v5572_v11 = vadd.f32 %v6534_v15, %v5347_v35  ;;  %v5074_v51 = vpop.f32.mrb[103].mxu1  ;;  %v5566_v18 = vpop.f32.mrb[199].mxu0 }
 0x8a4   :  { %v6922_v1 = vadd.f32 %v5074_v51, %v10842_v33  ;;  %v5567_v59 = vadd.f32 %v5566_v18, %v5342_v47  ;;  %v5392_v51 = vadd.f32 %v10797_v41, %v10832_v8  ;;  %v5407_v41 = vadd.f32 %v10803_v31, %v10832_v8 }
 0x8a5   :  { %5704 = vst [vmem:[%s11270_s10 + $0x48] sm:$0xff] %v6921_v38  ;;  %5718 = vst [vmem:[%s11270_s10 + $0xb8] sm:$0xff] %v5572_v11 }
 0x8a6   :  { %5705 = vst [vmem:[%s11270_s10 + $0x50] sm:$0xff] %v6922_v1  ;;  %5715 = vst [vmem:[%s11270_s10 + $0xa0] sm:$0xff] %v5567_v59  ;;  %v5078_v10 = vpop.f32.mrb[104].mxu1  ;;  %v6537_v39 = vpop.f32.mrb[200].mxu0 }
 0x8a7   :  { %v6923_v46 = vadd.f32 %v5078_v10, %v10838_v12  ;;  %v5582_v3 = vadd.f32 %v6537_v39, %v5357_v24  ;;  %v5080_v5 = vpop.f32.mrb[105].mxu1  ;;  %v5576_v0 = vpop.f32.mrb[201].mxu0 }
 0x8a8   :  { %v6924_v4 = vadd.f32 %v5080_v5, %v10842_v33  ;;  %v5577_v45 = vadd.f32 %v5576_v0, %v5352_v7 }
 0x8a9   :  { %5707 = vst [vmem:[%s11270_s10 + $0x60] sm:$0xff] %v6923_v46  ;;  %5724 = vst [vmem:[%s11270_s10 + $0xe8] sm:$0xff] %v5582_v3  ;;  %v5402_v46 = vadd.f32 %v10801_v28, %v10832_v8  ;;  %v5417_v28 = vadd.f32 %v10807_v53, %v10832_v8 }
 0x8aa   :  { %5708 = vst [vmem:[%s11270_s10 + $0x68] sm:$0xff] %v6924_v4  ;;  %5721 = vst [vmem:[%s11270_s10 + $0xd0] sm:$0xff] %v5577_v45  ;;  %v5084_v48 = vpop.f32.mrb[106].mxu1  ;;  %v6540_v14 = vpop.f32.mrb[202].mxu0 }
 0x8ab   :  { %v6925_v56 = vadd.f32 %v5084_v48, %v10838_v12  ;;  %v5592_v55 = vadd.f32 %v6540_v14, %v5367_v60  ;;  %v5086_v36 = vpop.f32.mrb[107].mxu1  ;;  %v5586_v29 = vpop.f32.mrb[203].mxu0  ;;  %v5412_v48 = vadd.f32 %v10805_v61, %v10832_v8  ;;  %v5427_v61 = vadd.f32 %v10811_v13, %v10832_v8 }
 0x8ac   :  { %v6926_v17 = vadd.f32 %v5086_v36, %v10842_v33  ;;  %v5587_v57 = vadd.f32 %v5586_v29, %v5362_v22 }
 0x8ad   :  { %5710 = vst [vmem:[%s11270_s10 + $0x78] sm:$0xff] %v6925_v56  ;;  %5730 = vst [vmem:[%s11270_s10 + $0x118] sm:$0xff] %v5592_v55 }
 0x8ae   :  { %5711 = vst [vmem:[%s11270_s10 + $0x80] sm:$0xff] %v6926_v17  ;;  %5727 = vst [vmem:[%s11270_s10 + $0x100] sm:$0xff] %v5587_v57  ;;  %v5090_v37 = vpop.f32.mrb[108].mxu1  ;;  %v6543_v16 = vpop.f32.mrb[204].mxu0 }
 0x8af   :  { %v6927_v49 = vadd.f32 %v5090_v37, %v10838_v12  ;;  %v5602_v42 = vadd.f32 %v6543_v16, %v5377_v26  ;;  %v5092_v43 = vpop.f32.mrb[109].mxu1  ;;  %v5596_v50 = vpop.f32.mrb[205].mxu0  ;;  %v5422_v26 = vadd.f32 %v10809_v20, %v10832_v8  ;;  %v5437_v20 = vadd.f32 %v10815_v63, %v10832_v8 }
 0x8b0   :  { %v6928_v32 = vadd.f32 %v5092_v43, %v10842_v33  ;;  %v5597_v44 = vadd.f32 %v5596_v50, %v5372_v25 }
 0x8b1   :  { %5713 = vst [vmem:[%s11270_s10 + $0x90] sm:$0xff] %v6927_v49  ;;  %5736 = vst [vmem:[%s11270_s10 + $0x148] sm:$0xff] %v5602_v42 }
 0x8b2   :  { %5714 = vst [vmem:[%s11270_s10 + $0x98] sm:$0xff] %v6928_v32  ;;  %5733 = vst [vmem:[%s11270_s10 + $0x130] sm:$0xff] %v5597_v44  ;;  %v5096_v9 = vpop.f32.mrb[110].mxu1  ;;  %v6546_v23 = vpop.f32.mrb[206].mxu0  ;;  %v5432_v32 = vadd.f32 %v10813_v52, %v10832_v8  ;;  %v5447_v52 = vadd.f32 %v10819_v19, %v10832_v8 }
 0x8b3   :  { %v6929_v35 = vadd.f32 %v5096_v9, %v10838_v12  ;;  %v5612_v47 = vadd.f32 %v6546_v23, %v5387_v27  ;;  %v5098_v34 = vpop.f32.mrb[111].mxu1  ;;  %v5606_v15 = vpop.f32.mrb[207].mxu0 }
 0x8b4   :  { %v6930_v38 = vadd.f32 %v5098_v34, %v10842_v33  ;;  %v5607_v11 = vadd.f32 %v5606_v15, %v5382_v6  ;;  %v5442_v34 = vadd.f32 %v10817_v21, %v10832_v8  ;;  %v5457_v21 = vadd.f32 %v10823_v58, %v10832_v8 }
 0x8b5   :  { %5716 = vst [vmem:[%s11270_s10 + $0xa8] sm:$0xff] %v6929_v35  ;;  %5742 = vst [vmem:[%s11270_s10 + $0x178] sm:$0xff] %v5612_v47 }
 0x8b6   :  { %5717 = vst [vmem:[%s11270_s10 + $0xb0] sm:$0xff] %v6930_v38  ;;  %5739 = vst [vmem:[%s11270_s10 + $0x160] sm:$0xff] %v5607_v11  ;;  %v5102_v30 = vpop.f32.mrb[112].mxu1  ;;  %v6549_v18 = vpop.f32.mrb[208].mxu0 }
 0x8b7   :  { %v6931_v1 = vadd.f32 %v5102_v30, %v10838_v12  ;;  %v5622_v59 = vadd.f32 %v6549_v18, %v5397_v54  ;;  %v5104_v24 = vpop.f32.mrb[113].mxu1  ;;  %v5616_v7 = vpop.f32.mrb[209].mxu0 }
 0x8b8   :  { %v6932_v10 = vadd.f32 %v5104_v24, %v10842_v33  ;;  %v5617_v39 = vadd.f32 %v5616_v7, %v5392_v51 }
 0x8b9   :  { %5719 = vst [vmem:[%s11270_s10 + $0xc0] sm:$0xff] %v6931_v1  ;;  %5748 = vst [vmem:[%s11270_s10 + $0x1a8] sm:$0xff] %v5622_v59  ;;  %v5452_v1 = vadd.f32 %v10821_v2, %v10832_v8  ;;  %v5467_v2 = vadd.f32 %v10834_v40, %v10832_v8 }
 0x8ba   :  { %5720 = vst [vmem:[%s11270_s10 + $0xc8] sm:$0xff] %v6932_v10  ;;  %5745 = vst [vmem:[%s11270_s10 + $0x190] sm:$0xff] %v5617_v39  ;;  %v5108_v31 = vpop.f32.mrb[114].mxu1  ;;  %v6552_v3 = vpop.f32.mrb[210].mxu0 }
 0x8bb   :  { %v6933_v5 = vadd.f32 %v5108_v31, %v10838_v12  ;;  %v5632_v0 = vadd.f32 %v6552_v3, %v5407_v41  ;;  %v5110_v4 = vpop.f32.mrb[115].mxu1  ;;  %v5626_v45 = vpop.f32.mrb[211].mxu0  ;;  %v5462_v31 = vadd.f32 %v10825_v62, %v10832_v8 }
 0x8bc   :  { %v6934_v60 = vadd.f32 %v5110_v4, %v10842_v33  ;;  %v5627_v22 = vadd.f32 %v5626_v45, %v5402_v46 }
 0x8bd   :  { %5722 = vst [vmem:[%s11270_s10 + $0xd8] sm:$0xff] %v6933_v5  ;;  %5754 = vst [vmem:[%s11270_s10 + $0x1d8] sm:$0xff] %v5632_v0 }
 0x8be   :  { %5723 = vst [vmem:[%s11270_s10 + $0xe0] sm:$0xff] %v6934_v60  ;;  %5751 = vst [vmem:[%s11270_s10 + $0x1c0] sm:$0xff] %v5627_v22  ;;  %v5114_v53 = vpop.f32.mrb[116].mxu1  ;;  %v6555_v14 = vpop.f32.mrb[212].mxu0 }
 0x8bf   :  { %v6935_v56 = vadd.f32 %v5114_v53, %v10838_v12  ;;  %v5642_v55 = vadd.f32 %v6555_v14, %v5417_v28  ;;  %v5116_v36 = vpop.f32.mrb[117].mxu1  ;;  %v5636_v29 = vpop.f32.mrb[213].mxu0 }
 0x8c0   :  { %v6936_v17 = vadd.f32 %v5116_v36, %v10842_v33  ;;  %v5637_v57 = vadd.f32 %v5636_v29, %v5412_v48 }
 0x8c1   :  { %5725 = vst [vmem:[%s11270_s10 + $0xf0] sm:$0xff] %v6935_v56  ;;  %5760 = vst [vmem:[%s11270_s10 + $0x208] sm:$0xff] %v5642_v55 }
 0x8c2   :  { %5726 = vst [vmem:[%s11270_s10 + $0xf8] sm:$0xff] %v6936_v17  ;;  %5757 = vst [vmem:[%s11270_s10 + $0x1f0] sm:$0xff] %v5637_v57  ;;  %v5120_v13 = vpop.f32.mrb[118].mxu1  ;;  %v6558_v25 = vpop.f32.mrb[214].mxu0 }
 0x8c3   :  { %v6937_v37 = vadd.f32 %v5120_v13, %v10838_v12  ;;  %v5652_v16 = vadd.f32 %v6558_v25, %v5427_v61  ;;  %v5122_v49 = vpop.f32.mrb[119].mxu1  ;;  %v5646_v42 = vpop.f32.mrb[215].mxu0 }
 0x8c4   :  { %v6938_v43 = vadd.f32 %v5122_v49, %v10842_v33  ;;  %v5647_v50 = vadd.f32 %v5646_v42, %v5422_v26 }
 0x8c5   :  { %5728 = vst [vmem:[%s11270_s10 + $0x108] sm:$0xff] %v6937_v37  ;;  %5766 = vst [vmem:[%s11270_s10 + $0x238] sm:$0xff] %v5652_v16 }
 0x8c6   :  { %5729 = vst [vmem:[%s11270_s10 + $0x110] sm:$0xff] %v6938_v43  ;;  %5763 = vst [vmem:[%s11270_s10 + $0x220] sm:$0xff] %v5647_v50  ;;  %v5126_v63 = vpop.f32.mrb[120].mxu1  ;;  %v6561_v44 = vpop.f32.mrb[216].mxu0 }
 0x8c7   :  { %v6939_v27 = vadd.f32 %v5126_v63, %v10838_v12  ;;  %v5662_v6 = vadd.f32 %v6561_v44, %v5437_v20  ;;  %v5128_v9 = vpop.f32.mrb[121].mxu1  ;;  %v5656_v23 = vpop.f32.mrb[217].mxu0 }
 0x8c8   :  { %v6940_v35 = vadd.f32 %v5128_v9, %v10842_v33  ;;  %v5657_v47 = vadd.f32 %v5656_v23, %v5432_v32 }
 0x8c9   :  { %5731 = vst [vmem:[%s11270_s10 + $0x120] sm:$0xff] %v6939_v27  ;;  %5772 = vst [vmem:[%s11270_s10 + $0x268] sm:$0xff] %v5662_v6 }
 0x8ca   :  { %5732 = vst [vmem:[%s11270_s10 + $0x128] sm:$0xff] %v6940_v35  ;;  %5769 = vst [vmem:[%s11270_s10 + $0x250] sm:$0xff] %v5657_v47  ;;  %v5132_v19 = vpop.f32.mrb[122].mxu1  ;;  %v6564_v15 = vpop.f32.mrb[218].mxu0 }
 0x8cb   :  { %v6941_v38 = vadd.f32 %v5132_v19, %v10838_v12  ;;  %v5672_v11 = vadd.f32 %v6564_v15, %v5447_v52  ;;  %v5134_v54 = vpop.f32.mrb[123].mxu1  ;;  %v5666_v51 = vpop.f32.mrb[219].mxu0 }
 0x8cc   :  { %v6942_v30 = vadd.f32 %v5134_v54, %v10842_v33  ;;  %v5667_v18 = vadd.f32 %v5666_v51, %v5442_v34 }
 0x8cd   :  { %5734 = vst [vmem:[%s11270_s10 + $0x138] sm:$0xff] %v6941_v38  ;;  %5778 = vst [vmem:[%s11270_s10 + $0x298] sm:$0xff] %v5672_v11 }
 0x8ce   :  { %5735 = vst [vmem:[%s11270_s10 + $0x140] sm:$0xff] %v6942_v30  ;;  %5775 = vst [vmem:[%s11270_s10 + $0x280] sm:$0xff] %v5667_v18  ;;  %v5138_v58 = vpop.f32.mrb[124].mxu1  ;;  %v6567_v59 = vpop.f32.mrb[220].mxu0 }
 0x8cf   :  { %v6943_v24 = vadd.f32 %v5138_v58, %v10838_v12  ;;  %v5682_v7 = vadd.f32 %v6567_v59, %v5457_v21  ;;  %v5140_v10 = vpop.f32.mrb[125].mxu1  ;;  %v5676_v39 = vpop.f32.mrb[221].mxu0 }
 0x8d0   :  { %v6944_v41 = vadd.f32 %v5140_v10, %v10842_v33  ;;  %v5677_v46 = vadd.f32 %v5676_v39, %v5452_v1 }
 0x8d1   :  { %5737 = vst [vmem:[%s11270_s10 + $0x150] sm:$0xff] %v6943_v24  ;;  %5784 = vst [vmem:[%s11270_s10 + $0x2c8] sm:$0xff] %v5682_v7 }
 0x8d2   :  { %5738 = vst [vmem:[%s11270_s10 + $0x158] sm:$0xff] %v6944_v41  ;;  %5781 = vst [vmem:[%s11270_s10 + $0x2b0] sm:$0xff] %v5677_v46  ;;  %v5144_v40 = vpop.f32.mrb[126].mxu1  ;;  %v6570_v3 = vpop.f32.mrb[222].mxu0 }
 0x8d3   :  { %v6945_v5 = vadd.f32 %v5144_v40, %v10838_v12  ;;  %v5692_v0 = vadd.f32 %v6570_v3, %v5467_v2  ;;  %v5146_v4 = vpop.f32.mrb[127].mxu1  ;;  %v5686_v45 = vpop.f32.mrb[223].mxu0 }
 0x8d4   :  { %v6946_v60 = vadd.f32 %v5146_v4, %v10842_v33  ;;  %v5687_v22 = vadd.f32 %v5686_v45, %v5462_v31 }
 0x8d5   :  { %5740 = vst [vmem:[%s11270_s10 + $0x168] sm:$0xff] %v6945_v5  ;;  %5790 = vst [vmem:[%s11270_s10 + $0x2f8] sm:$0xff] %v5692_v0 }
 0x8d6   :  { %5741 = vst [vmem:[%s11270_s10 + $0x170] sm:$0xff] %v6946_v60  ;;  %5787 = vst [vmem:[%s11270_s10 + $0x2e0] sm:$0xff] %v5687_v22  ;;  %v5150_v62 = vpop.f32.mrb[128].mxu1 }
 0x8d7   :  { %v6947_v8 = vadd.f32 %v5150_v62, %v10838_v12  ;;  %v5152_v28 = vpop.f32.mrb[129].mxu1 }
 0x8d8   :  { %v6948_v48 = vadd.f32 %v5152_v28, %v10842_v33 }
 0x8d9   :  { %5743 = vst [vmem:[%s11270_s10 + $0x180] sm:$0xff] %v6947_v8 }
 0x8da   :  { %5744 = vst [vmem:[%s11270_s10 + $0x188] sm:$0xff] %v6948_v48  ;;  %v5156_v53 = vpop.f32.mrb[130].mxu1 }
 0x8db   :  { %v6949_v14 = vadd.f32 %v5156_v53, %v10838_v12  ;;  %v5158_v56 = vpop.f32.mrb[131].mxu1 }
 0x8dc   :  { %v6950_v55 = vadd.f32 %v5158_v56, %v10842_v33 }
 0x8dd   :  { %5746 = vst [vmem:[%s11270_s10 + $0x198] sm:$0xff] %v6949_v14 }
 0x8de   :  { %5747 = vst [vmem:[%s11270_s10 + $0x1a0] sm:$0xff] %v6950_v55  ;;  %v5162_v36 = vpop.f32.mrb[132].mxu1 }
 0x8df   :  { %v6951_v29 = vadd.f32 %v5162_v36, %v10838_v12  ;;  %v5164_v17 = vpop.f32.mrb[133].mxu1 }
 0x8e0   :  { %v6952_v57 = vadd.f32 %v5164_v17, %v10842_v33 }
 0x8e1   :  { %5749 = vst [vmem:[%s11270_s10 + $0x1b0] sm:$0xff] %v6951_v29 }
 0x8e2   :  { %5750 = vst [vmem:[%s11270_s10 + $0x1b8] sm:$0xff] %v6952_v57  ;;  %v5168_v61 = vpop.f32.mrb[134].mxu1 }
 0x8e3   :  { %v6953_v26 = vadd.f32 %v5168_v61, %v10838_v12  ;;  %v5170_v13 = vpop.f32.mrb[135].mxu1 }
 0x8e4   :  { %v6954_v25 = vadd.f32 %v5170_v13, %v10842_v33 }
 0x8e5   :  { %5752 = vst [vmem:[%s11270_s10 + $0x1c8] sm:$0xff] %v6953_v26 }
 0x8e6   :  { %5753 = vst [vmem:[%s11270_s10 + $0x1d0] sm:$0xff] %v6954_v25  ;;  %v5174_v37 = vpop.f32.mrb[136].mxu1 }
 0x8e7   :  { %v6955_v16 = vadd.f32 %v5174_v37, %v10838_v12  ;;  %v5176_v49 = vpop.f32.mrb[137].mxu1 }
 0x8e8   :  { %v6956_v42 = vadd.f32 %v5176_v49, %v10842_v33 }
 0x8e9   :  { %5755 = vst [vmem:[%s11270_s10 + $0x1e0] sm:$0xff] %v6955_v16 }
 0x8ea   :  { %5756 = vst [vmem:[%s11270_s10 + $0x1e8] sm:$0xff] %v6956_v42  ;;  %v5180_v43 = vpop.f32.mrb[138].mxu1 }
 0x8eb   :  { %v6957_v50 = vadd.f32 %v5180_v43, %v10838_v12  ;;  %v5182_v20 = vpop.f32.mrb[139].mxu1 }
 0x8ec   :  { %v6958_v32 = vadd.f32 %v5182_v20, %v10842_v33 }
 0x8ed   :  { %5758 = vst [vmem:[%s11270_s10 + $0x1f8] sm:$0xff] %v6957_v50 }
 0x8ee   :  { %5759 = vst [vmem:[%s11270_s10 + $0x200] sm:$0xff] %v6958_v32  ;;  %v5186_v63 = vpop.f32.mrb[140].mxu1 }
 0x8ef   :  { %v6959_v44 = vadd.f32 %v5186_v63, %v10838_v12  ;;  %v5188_v27 = vpop.f32.mrb[141].mxu1 }
 0x8f0   :  { %v6960_v6 = vadd.f32 %v5188_v27, %v10842_v33 }
 0x8f1   :  { %5761 = vst [vmem:[%s11270_s10 + $0x210] sm:$0xff] %v6959_v44 }
 0x8f2   :  { %5762 = vst [vmem:[%s11270_s10 + $0x218] sm:$0xff] %v6960_v6  ;;  %v5192_v9 = vpop.f32.mrb[142].mxu1 }
 0x8f3   :  { %v6961_v23 = vadd.f32 %v5192_v9, %v10838_v12  ;;  %v5194_v35 = vpop.f32.mrb[143].mxu1 }
 0x8f4   :  { %v6962_v47 = vadd.f32 %v5194_v35, %v10842_v33 }
 0x8f5   :  { %5764 = vst [vmem:[%s11270_s10 + $0x228] sm:$0xff] %v6961_v23 }
 0x8f6   :  { %5765 = vst [vmem:[%s11270_s10 + $0x230] sm:$0xff] %v6962_v47  ;;  %v5198_v52 = vpop.f32.mrb[144].mxu1 }
 0x8f7   :  { %v6963_v34 = vadd.f32 %v5198_v52, %v10838_v12  ;;  %v5200_v19 = vpop.f32.mrb[145].mxu1 }
 0x8f8   :  { %v6964_v15 = vadd.f32 %v5200_v19, %v10842_v33 }
 0x8f9   :  { %5767 = vst [vmem:[%s11270_s10 + $0x240] sm:$0xff] %v6963_v34 }
 0x8fa   :  { %5768 = vst [vmem:[%s11270_s10 + $0x248] sm:$0xff] %v6964_v15  ;;  %v5204_v38 = vpop.f32.mrb[146].mxu1 }
 0x8fb   :  { %v6965_v11 = vadd.f32 %v5204_v38, %v10838_v12  ;;  %v5206_v54 = vpop.f32.mrb[147].mxu1 }
 0x8fc   :  { %v6966_v51 = vadd.f32 %v5206_v54, %v10842_v33 }
 0x8fd   :  { %5770 = vst [vmem:[%s11270_s10 + $0x258] sm:$0xff] %v6965_v11 }
 0x8fe   :  { %5771 = vst [vmem:[%s11270_s10 + $0x260] sm:$0xff] %v6966_v51  ;;  %v5210_v30 = vpop.f32.mrb[148].mxu1 }
 0x8ff   :  { %v6967_v18 = vadd.f32 %v5210_v30, %v10838_v12  ;;  %v5212_v21 = vpop.f32.mrb[149].mxu1 }
 0x900   :  { %v6968_v1 = vadd.f32 %v5212_v21, %v10842_v33 }
 0x901   :  { %5773 = vst [vmem:[%s11270_s10 + $0x270] sm:$0xff] %v6967_v18 }
 0x902   :  { %5774 = vst [vmem:[%s11270_s10 + $0x278] sm:$0xff] %v6968_v1  ;;  %v5216_v58 = vpop.f32.mrb[150].mxu1 }
 0x903   :  { %v6969_v59 = vadd.f32 %v5216_v58, %v10838_v12  ;;  %v5218_v24 = vpop.f32.mrb[151].mxu1 }
 0x904   :  { %v6970_v7 = vadd.f32 %v5218_v24, %v10842_v33 }
 0x905   :  { %5776 = vst [vmem:[%s11270_s10 + $0x288] sm:$0xff] %v6969_v59 }
 0x906   :  { %5777 = vst [vmem:[%s11270_s10 + $0x290] sm:$0xff] %v6970_v7  ;;  %v5222_v10 = vpop.f32.mrb[152].mxu1 }
 0x907   :  { %v6971_v39 = vadd.f32 %v5222_v10, %v10838_v12  ;;  %v5224_v41 = vpop.f32.mrb[153].mxu1 }
 0x908   :  { %v6972_v46 = vadd.f32 %v5224_v41, %v10842_v33 }
 0x909   :  { %5779 = vst [vmem:[%s11270_s10 + $0x2a0] sm:$0xff] %v6971_v39 }
 0x90a   :  { %5780 = vst [vmem:[%s11270_s10 + $0x2a8] sm:$0xff] %v6972_v46  ;;  %v5228_v2 = vpop.f32.mrb[154].mxu1 }
 0x90b   :  { %v6973_v31 = vadd.f32 %v5228_v2, %v10838_v12  ;;  %v5230_v40 = vpop.f32.mrb[155].mxu1 }
 0x90c   :  { %v6974_v3 = vadd.f32 %v5230_v40, %v10842_v33 }
 0x90d   :  { %5782 = vst [vmem:[%s11270_s10 + $0x2b8] sm:$0xff] %v6973_v31 }
 0x90e   :  { %5783 = vst [vmem:[%s11270_s10 + $0x2c0] sm:$0xff] %v6974_v3  ;;  %v5234_v5 = vpop.f32.mrb[156].mxu1 }
 0x90f   :  { %v6975_v0 = vadd.f32 %v5234_v5, %v10838_v12  ;;  %v5236_v4 = vpop.f32.mrb[157].mxu1 }
 0x910   :  { %v6976_v45 = vadd.f32 %v5236_v4, %v10842_v33 }
 0x911   :  { %5785 = vst [vmem:[%s11270_s10 + $0x2d0] sm:$0xff] %v6975_v0 }
 0x912   :  { %5786 = vst [vmem:[%s11270_s10 + $0x2d8] sm:$0xff] %v6976_v45  ;;  %v5240_v60 = vpop.f32.mrb[158].mxu1 }
 0x913   :  { %v6977_v22 = vadd.f32 %v5240_v60, %v10838_v12  ;;  %v5242_v62 = vpop.f32.mrb[159].mxu1 }
 0x914   :  { %v6978_v8 = vadd.f32 %v5242_v62, %v10842_v33 }
 0x915   :  { %5788 = vst [vmem:[%s11270_s10 + $0x2e8] sm:$0xff] %v6977_v22 }
 0x916   :  { %5789 = vst [vmem:[%s11270_s10 + $0x2f0] sm:$0xff] %v6978_v8 }
 0x917   :  { %5795 = vsyncpa [#allocation3], 1 }
 0x918   :  { %5796 = vsyncpa [#allocation5], 1 }

</bundles_post_ra>
